<compile_context>
chip_gen: v6e
topology: v6e:2x2x1
jax: 0.10.0
libtpu: 0.0.40
codegen_flags: <defaults>
</compile_context>

<pallas_src>
import itertools
import numpy as np
import jax
import jax.numpy as jnp
from jax.experimental import pallas as pl
from jax.experimental.pallas import tpu as pltpu

# ---------------- hyper-parameters (small, consistent with the module) ----------------
D_MODEL   = 32
D_FFN     = 64
N_HEADS   = 4
N_LEVELS  = 2
N_POINTS  = 2
D_HEAD    = D_MODEL // N_HEADS
BATCH     = 2
EPS       = 1e-5

# (D, H, W) per feature level -- static Python constants
SPATIAL_SHAPES = ((4, 4, 4), (2, 2, 2))
LEVEL_START = []
_s = 0
for (_d, _h, _w) in SPATIAL_SHAPES:
    LEVEL_START.append(_s)
    _s += _d * _h * _w
LEVEL_START = tuple(LEVEL_START)
S_TOTAL = _s                      # total number of tokens (= 72)

N_SAMP_COLS = N_LEVELS * N_POINTS * 3 * N_HEADS    # 48, column order [(l,p), coord, head]
N_ATTN_COLS = N_LEVELS * N_POINTS * N_HEADS        # 16, column order [(l,p), head]
N_QP        = N_SAMP_COLS + N_ATTN_COLS            # 64 (fused offset+logit projection)
X_WIDTH     = 2 * D_MODEL + N_SAMP_COLS            # 112 packed [src | pos | refsc]

# consts slab layout (rows); shape (32, 128)
_ROW_COORD0 = 0      # rows 0..5  : per-level token coords (xr,yr,zr) x levels, cols 0:S_TOTAL
_ROW_BIAS   = 6      # rows 6..14 : bv, bq, bo, g1, be1, b1, b2, g2, be2
_ROW_SEG    = 16     # rows 16..31: (16,16) per-head segment-sum mask
CONST_ROWS  = 32
CONST_COLS  = 128


def _layer_norm(x, gamma, beta):
    mu = jnp.mean(x, axis=-1, keepdims=True)
    var = jnp.mean((x - mu) ** 2, axis=-1, keepdims=True)
    return (x - mu) * jax.lax.rsqrt(var + EPS) * gamma + beta


# --------------------------------- Pallas kernel ---------------------------------
def _make_kernel(bpg):
    """bpg = batch elements handled per grid step (static)."""

    def kernel(xin_ref, w_ref, w2_ref, consts_ref, out_ref, acc_ref, pc_ref, at_ref):
        C, M, L, P = D_MODEL, N_HEADS, N_LEVELS, N_POINTS
        S = S_TOTAL

        # ---- packed weight slab: [wv | wq | w1 | wo_bd] (static lane slices) ----
        wv    = w_ref[:, 0:C]
        wq    = w_ref[:, C:C + N_QP]
        w1    = w_ref[:, C + N_QP:C + N_QP + D_FFN]
        wo_bd = w_ref[:, C + N_QP + D_FFN:C + N_QP + D_FFN + M * C]
        w2    = w2_ref[...]

        # ---- constants slab: seg mask, biases/gammas/betas, coord rows ----
        seg = consts_ref[_ROW_SEG:_ROW_SEG + N_ATTN_COLS, 0:N_ATTN_COLS]
        bv  = consts_ref[_ROW_BIAS + 0:_ROW_BIAS + 1, 0:C]
        bq  = consts_ref[_ROW_BIAS + 1:_ROW_BIAS + 2, 0:N_QP]
        bo  = consts_ref[_ROW_BIAS + 2:_ROW_BIAS + 3, 0:C]
        g1  = consts_ref[_ROW_BIAS + 3:_ROW_BIAS + 4, 0:C]
        be1 = consts_ref[_ROW_BIAS + 4:_ROW_BIAS + 5, 0:C]
        b1  = consts_ref[_ROW_BIAS + 5:_ROW_BIAS + 6, 0:D_FFN]
        b2  = consts_ref[_ROW_BIAS + 6:_ROW_BIAS + 7, 0:C]
        g2  = consts_ref[_ROW_BIAS + 7:_ROW_BIAS + 8, 0:C]
        be2 = consts_ref[_ROW_BIAS + 8:_ROW_BIAS + 9, 0:C]
        coord_rows = [(consts_ref[3 * l + 0:3 * l + 1, 0:S],
                       consts_ref[3 * l + 1:3 * l + 2, 0:S],
                       consts_ref[3 * l + 2:3 * l + 3, 0:S]) for l in range(L)]

        for b in range(bpg):                       # static Python loop (batch fold)
            blk   = xin_ref[b]                     # (S, 112)
            src   = blk[:, 0:C]
            pos   = blk[:, C:2 * C]
            refsc = blk[:, 2 * C:2 * C + N_SAMP_COLS]   # ref*size - 0.5 (host precomputed)
            q = src + pos                          # with_pos_embed

            # ---- projections: value from src; fused (offsets | attn logits) from q ----
            value = jnp.dot(src, wv, preferred_element_type=jnp.float32) + bv
            qp    = jnp.dot(q, wq, preferred_element_type=jnp.float32) + bq
            samp  = qp[:, 0:N_SAMP_COLS]                       # (S, 48)
            alog  = qp[:, N_SAMP_COLS:N_QP]                    # (S, 16)

            # ---- softmax over (level, point) per head (global row max is shift-correct) ----
            mx  = jnp.max(alog, axis=1, keepdims=True)
            e   = jnp.exp(alog - mx)
            den = jnp.dot(e, seg, preferred_element_type=jnp.float32)   # per-head denom
            den = jnp.maximum(den, 1e-20)          # NaN guard for approx reciprocal
            at_ref[...] = e * pl.reciprocal(den, approx=True)           # (S, 16)

            # ---- continuous sampling coords: p = ref*size - 0.5 + offset ----
            pc_ref[...] = refsc + samp                                   # (S, 48)

            # ---- Wo folded into value for all heads at once (one K=32, N=128 matmul) ----
            vo_all = jnp.dot(value, wo_bd, preferred_element_type=jnp.float32)   # (S, M*C)

            # ---- gather-as-matmul with separable trilinear hat weights ----
            acc_ref[...] = jnp.zeros((S, C), jnp.float32)
            for m in range(M):
                A = jnp.zeros((S, S), jnp.float32)
                for l in range(L):
                    xr, yr, zr = coord_rows[l]
                    for p in range(P):
                        lp = l * P + p
                        cb = lp * 3 * M
                        px = pc_ref[:, cb + m:cb + m + 1]
                        py = pc_ref[:, cb + M + m:cb + M + m + 1]
                        pz = pc_ref[:, cb + 2 * M + m:cb + 2 * M + m + 1]
                        hx = jnp.maximum(1.0 - jnp.abs(xr - px), 0.0)   # (S, S)
                        hy = jnp.maximum(1.0 - jnp.abs(yr - py), 0.0)
                        hz = jnp.maximum(1.0 - jnp.abs(zr - pz), 0.0)
                        a = at_ref[:, lp * M + m:lp * M + m + 1]
                        A = A + a * (hx * hy * hz)
                v_om = vo_all[:, m * C:(m + 1) * C].astype(jnp.bfloat16)
                acc_ref[...] = acc_ref[...] + jnp.dot(
                    A.astype(jnp.bfloat16), v_om, preferred_element_type=jnp.float32)
            src2 = acc_ref[...] + bo

            # ---- residual + LayerNorm1 (dropout1 identity in eval mode) ----
            x = _layer_norm(src + src2, g1, be1)

            # ---- FFN: Linear1 -> ReLU -> Linear2, residual, LayerNorm2 ----
            h = jnp.maximum(jnp.dot(x, w1, preferred_element_type=jnp.float32) + b1, 0.0)
            y = jnp.dot(h, w2, preferred_element_type=jnp.float32) + b2
            out_ref[b] = _layer_norm(x + y, g2, be2)

    return kernel


# --------------------------------- host wrapper ---------------------------------
def _default_batches_per_step():
    """Fold the whole batch into one grid step on single-TensorCore chips (v5e/v6e);
    keep one batch element per parallel grid step on multi-core chips (v7x, v4/v5p)."""
    try:
        kind = jax.devices()[0].device_kind.lower()
    except Exception:
        return 1
    if ("v6" in kind) or ("v5e" in kind) or ("v5 lite" in kind) or ("v5lite" in kind):
        return BATCH
    return 1


def run_layer(src, pos, reference_points, params, batches_per_step=None):
    N, S, C = src.shape
    assert S == S_TOTAL and C == D_MODEL
    bpg = batches_per_step if batches_per_step is not None else _default_batches_per_step()
    if N % bpg != 0:
        bpg = 1
    grid = (N // bpg,)

    # ---- ref*size - 0.5 expanded to the samp column layout [(l,p), coord, head] ----
    sizes = jnp.asarray(np.array([[w, h, d] for (d, h, w) in SPATIAL_SHAPES],
                                 dtype=np.float32))               # (L, 3) in (W, H, D)
    refsc = (reference_points[:, :, :, None, :, None] *
             sizes[None, None, :, None, :, None] - 0.5)
    refsc = jnp.broadcast_to(refsc, (N, S, N_LEVELS, N_POINTS, 3, N_HEADS))
    refsc = refsc.reshape(N, S, N_SAMP_COLS).astype(jnp.float32)

    # single packed batched input: [src | pos | refsc]
    xin = jnp.concatenate([src, pos, refsc], axis=-1).astype(jnp.float32)   # (N, S, 112)

    # fused q-side projection (sampling offsets | attention logits)
    wq = jnp.concatenate([params['woff'], params['wat']], axis=1)           # (C, 64)
    bq = jnp.concatenate([params['boff'], params['bat']], axis=1)           # (1, 64)

    # block-diagonal expansion of the output projection: wo_bd[m*Dh+d, m*C+c] = wo[m*Dh+d, c]
    wo_heads = params['wo'].reshape(N_HEADS, D_HEAD, D_MODEL)
    wo_bd = (jnp.eye(N_HEADS, dtype=jnp.float32)[:, None, :, None] *
             wo_heads[:, :, None, :]).reshape(D_MODEL, N_HEADS * D_MODEL)   # (32, 128)

    # packed weight slab [wv | wq | w1 | wo_bd]  (all have C=32 rows)
    w_slab = jnp.concatenate([params['wv'], wq, params['w1'], wo_bd],
                             axis=1).astype(jnp.float32)                    # (32, 288)
    w2 = params['w2'].astype(jnp.float32)                                   # (64, 32)

    # ---- constants slab: coord rows (with out-of-level sentinel), seg mask, biases ----
    consts = np.zeros((CONST_ROWS, CONST_COLS), np.float32)
    t = np.arange(S_TOTAL)
    for l, (Dl, Hl, Wl) in enumerate(SPATIAL_SHAPES):
        s0 = LEVEL_START[l]
        tt = np.maximum(t - s0, 0)
        in_lvl = (t >= s0) & (t < s0 + Dl * Hl * Wl)
        consts[_ROW_COORD0 + 3 * l + 0, :S_TOTAL] = np.where(in_lvl, tt % Wl, 1e6)
        consts[_ROW_COORD0 + 3 * l + 1, :S_TOTAL] = (tt // Wl) % Hl
        consts[_ROW_COORD0 + 3 * l + 2, :S_TOTAL] = tt // (Wl * Hl)
    ii, jj = np.meshgrid(np.arange(N_ATTN_COLS), np.arange(N_ATTN_COLS), indexing='ij')
    consts[_ROW_SEG:_ROW_SEG + N_ATTN_COLS, :N_ATTN_COLS] = \
        ((ii % N_HEADS) == (jj % N_HEADS)).astype(np.float32)
    bias_rows = [params['bv'], bq, params['bo'], params['g1'], params['be1'],
                 params['b1'], params['b2'], params['g2'], params['be2']]
    for r, arr in enumerate(bias_rows):
        a = np.asarray(arr, np.float32).reshape(-1)
        consts[_ROW_BIAS + r, :a.shape[0]] = a
    consts = jnp.asarray(consts)

    in_specs = [
        pl.BlockSpec((bpg, S, X_WIDTH), lambda n: (n, 0, 0)),
        pl.BlockSpec(w_slab.shape, lambda n: (0, 0)),
        pl.BlockSpec(w2.shape, lambda n: (0, 0)),
        pl.BlockSpec(consts.shape, lambda n: (0, 0)),
    ]
    out_spec = pl.BlockSpec((bpg, S, C), lambda n: (n, 0, 0))

    return pl.pallas_call(
        _make_kernel(bpg),
        out_shape=jax.ShapeDtypeStruct((N, S, C), jnp.float32),
        grid_spec=pltpu.PrefetchScalarGridSpec(
            num_scalar_prefetch=0,
            grid=grid,
            in_specs=in_specs,
            out_specs=out_spec,
            scratch_shapes=[pltpu.VMEM((S_TOTAL, D_MODEL), jnp.float32),     # acc
                            pltpu.VMEM((S_TOTAL, N_SAMP_COLS), jnp.float32), # pcoord
                            pltpu.VMEM((S_TOTAL, N_ATTN_COLS), jnp.float32)],# attn
        ),
        compiler_params=pltpu.CompilerParams(dimension_semantics=("parallel",)),
    )(xin, w_slab, w2, consts)


# ------------------------------ pure-JAX reference ------------------------------
def reference_forward(src, pos, ref_pts, p):
    N, S, C = src.shape
    M, L, P, Dh = N_HEADS, N_LEVELS, N_POINTS, D_HEAD
    LP = L * P
    q = src + pos
    value = src @ p['wv'] + p['bv']
    samp = (q @ p['woff'] + p['boff']).reshape(N, S, LP, 3, M)
    alog = (q @ p['wat'] + p['bat']).reshape(N, S, LP, M)
    attn = jax.nn.softmax(alog, axis=2)
    value_h = value.reshape(N, S, M, Dh)
    out = jnp.zeros((N, S, M, Dh), jnp.float32)
    for l, (Dl, Hl, Wl) in enumerate(SPATIAL_SHAPES):
        s0 = LEVEL_START[l]
        for pt in range(P):
            lp = l * P + pt
            loc_x = ref_pts[:, :, l, 0][..., None] + samp[:, :, lp, 0, :] / Wl
            loc_y = ref_pts[:, :, l, 1][..., None] + samp[:, :, lp, 1, :] / Hl
            loc_z = ref_pts[:, :, l, 2][..., None] + samp[:, :, lp, 2, :] / Dl
            px = loc_x * Wl - 0.5
            py = loc_y * Hl - 0.5
            pz = loc_z * Dl - 0.5
            x0f = jnp.floor(px); y0f = jnp.floor(py); z0f = jnp.floor(pz)
            fx = px - x0f; fy = py - y0f; fz = pz - z0f
            x0 = x0f.astype(jnp.int32); y0 = y0f.astype(jnp.int32); z0 = z0f.astype(jnp.int32)
            a_lp = attn[:, :, lp, :]
            for dz, dy, dx in itertools.product((0, 1), repeat=3):
                xi = x0 + dx; yi = y0 + dy; zi = z0 + dz
                wx = fx if dx else 1.0 - fx
                wy = fy if dy else 1.0 - fy
                wz = fz if dz else 1.0 - fz
                valid = ((xi >= 0) & (xi < Wl) & (yi >= 0) & (yi < Hl) &
                         (zi >= 0) & (zi < Dl))
                xc = jnp.clip(xi, 0, Wl - 1)
                yc = jnp.clip(yi, 0, Hl - 1)
                zc = jnp.clip(zi, 0, Dl - 1)
                flat = s0 + (zc * Hl + yc) * Wl + xc
                g = jnp.take_along_axis(value_h, flat[..., None], axis=1)
                w = jnp.where(valid, wx * wy * wz, 0.0) * a_lp
                out = out + w[..., None] * g
    attn_out = out.reshape(N, S, C)
    src2 = attn_out @ p['wo'] + p['bo']
    x = _layer_norm(src + src2, p['g1'], p['be1'])
    h = jax.nn.relu(x @ p['w1'] + p['b1'])
    y = h @ p['w2'] + p['b2']
    return _layer_norm(x + y, p['g2'], p['be2'])


# ------------------------------ deterministic setup ------------------------------
def make_params(key):
    ks = jax.random.split(key, 14)
    C, F, M, L, P = D_MODEL, D_FFN, N_HEADS, N_LEVELS, N_POINTS

    def init(k, shape, scale=0.1):
        return jax.random.normal(k, shape, jnp.float32) * scale

    p = {}
    p['wv']   = init(ks[0], (C, C))
    p['bv']   = init(ks[1], (1, C))
    # sampling-offset / attention-weight matrices use column order [(level,point), coord/—, head]
    p['woff'] = init(ks[2], (C, L * P * 3 * M), scale=0.2)
    p['boff'] = init(ks[3], (1, L * P * 3 * M), scale=0.2)
    p['wat']  = init(ks[4], (C, L * P * M))
    p['bat']  = init(ks[5], (1, L * P * M))
    p['wo']   = init(ks[6], (C, C))
    p['bo']   = init(ks[7], (1, C))
    p['g1']   = 1.0 + init(ks[8], (1, C), scale=0.05)
    p['be1']  = init(ks[9], (1, C), scale=0.05)
    p['w1']   = init(ks[10], (C, F))
    p['b1']   = init(ks[11], (1, F))
    p['w2']   = init(ks[12], (F, C))
    p['b2']   = init(ks[13], (1, C))
    p['g2']   = 1.0 + 0.05 * jnp.cos(jnp.arange(C, dtype=jnp.float32)).reshape(1, C)
    p['be2']  = 0.05 * jnp.sin(jnp.arange(C, dtype=jnp.float32)).reshape(1, C)
    return p


def make_reference_points():
    refs = []
    for (Dl, Hl, Wl) in SPATIAL_SHAPES:
        z, y, x = jnp.meshgrid(jnp.arange(Dl, dtype=jnp.float32),
                               jnp.arange(Hl, dtype=jnp.float32),
                               jnp.arange(Wl, dtype=jnp.float32), indexing='ij')
        rx = (x.reshape(-1) + 0.5) / Wl
        ry = (y.reshape(-1) + 0.5) / Hl
        rz = (z.reshape(-1) + 0.5) / Dl
        refs.append(jnp.stack([rx, ry, rz], axis=-1))
    ref = jnp.concatenate(refs, axis=0)                               # (S, 3) in (x, y, z)
    return jnp.broadcast_to(ref[None, :, None, :],
                            (BATCH, S_TOTAL, N_LEVELS, 3)).astype(jnp.float32)


if __name__ == "__main__":
    key = jax.random.PRNGKey(0)
    k1, k2, k3 = jax.random.split(key, 3)
    src = jax.random.normal(k1, (BATCH, S_TOTAL, D_MODEL), jnp.float32)
    pos = jax.random.normal(k2, (BATCH, S_TOTAL, D_MODEL), jnp.float32)
    params = make_params(k3)
    ref_pts = make_reference_points()

    out = run_layer(src, pos, ref_pts, params)
    out = jax.block_until_ready(out)

    ref = reference_forward(src, pos, ref_pts, params)
    err = float(jnp.max(jnp.abs(out - ref)))
    assert out.shape == (BATCH, S_TOTAL, D_MODEL)
    assert np.isfinite(err) and err < 2e-2, f"max abs err {err}"
    print("KERNEL_OK")
</pallas_src>

<mosaic_0001>
module attributes {stable_mosaic.version = 11 : i64} {
  func.func @kernel(%arg0: i32, %arg1: memref<1x72x112xf32, #tpu.memory_space<vmem>>, %arg2: memref<32x288xf32, #tpu.memory_space<vmem>>, %arg3: memref<64x32xf32, #tpu.memory_space<vmem>>, %arg4: memref<32x128xf32, #tpu.memory_space<vmem>>, %arg5: memref<1x72x32xf32, #tpu.memory_space<vmem>>, %arg6: memref<72x32xf32, #tpu.memory_space<vmem>>, %arg7: memref<72x48xf32, #tpu.memory_space<vmem>>, %arg8: memref<72x16xf32, #tpu.memory_space<vmem>>) attributes {dimension_semantics = [#tpu.dimension_semantics<parallel>], iteration_bounds = array<i64: 2>, scalar_prefetch = 0 : i64, scratch_operands = 3 : i64, tpu.core_type = #tpu.core_type<tc>, window_params = [{transform_indices = @transform_0, window_bounds = array<i64: 1, 72, 112>}, {pipeline_mode = #tpu.pipeline_mode<synchronous>, transform_indices = @transform_1, window_bounds = array<i64: 32, 288>}, {pipeline_mode = #tpu.pipeline_mode<synchronous>, transform_indices = @transform_2, window_bounds = array<i64: 64, 32>}, {pipeline_mode = #tpu.pipeline_mode<synchronous>, transform_indices = @transform_3, window_bounds = array<i64: 32, 128>}, {transform_indices = @transform_4, window_bounds = array<i64: 1, 72, 32>}]} {
    %c0 = arith.constant 0 : index
    %c0_0 = arith.constant 0 : index
    %0 = vector.load %arg2[%c0, %c0_0] : memref<32x288xf32, #tpu.memory_space<vmem>>, vector<32x32xf32>
    %c0_1 = arith.constant 0 : index
    %c32 = arith.constant 32 : index
    %1 = vector.load %arg2[%c0_1, %c32] : memref<32x288xf32, #tpu.memory_space<vmem>>, vector<32x64xf32>
    %c0_2 = arith.constant 0 : index
    %c96 = arith.constant 96 : index
    %2 = vector.load %arg2[%c0_2, %c96] : memref<32x288xf32, #tpu.memory_space<vmem>>, vector<32x64xf32>
    %c0_3 = arith.constant 0 : index
    %c160 = arith.constant 160 : index
    %3 = vector.load %arg2[%c0_3, %c160] : memref<32x288xf32, #tpu.memory_space<vmem>>, vector<32x128xf32>
    %c0_4 = arith.constant 0 : index
    %c0_5 = arith.constant 0 : index
    %4 = vector.load %arg3[%c0_4, %c0_5] : memref<64x32xf32, #tpu.memory_space<vmem>>, vector<64x32xf32>
    %c16 = arith.constant 16 : index
    %c0_6 = arith.constant 0 : index
    %5 = vector.load %arg4[%c16, %c0_6] : memref<32x128xf32, #tpu.memory_space<vmem>>, vector<16x16xf32>
    %c6 = arith.constant 6 : index
    %c0_7 = arith.constant 0 : index
    %6 = vector.load %arg4[%c6, %c0_7] : memref<32x128xf32, #tpu.memory_space<vmem>>, vector<1x32xf32>
    %c7 = arith.constant 7 : index
    %c0_8 = arith.constant 0 : index
    %7 = vector.load %arg4[%c7, %c0_8] : memref<32x128xf32, #tpu.memory_space<vmem>>, vector<1x64xf32>
    %c8 = arith.constant 8 : index
    %c0_9 = arith.constant 0 : index
    %8 = vector.load %arg4[%c8, %c0_9] : memref<32x128xf32, #tpu.memory_space<vmem>>, vector<1x32xf32>
    %c9 = arith.constant 9 : index
    %c0_10 = arith.constant 0 : index
    %9 = vector.load %arg4[%c9, %c0_10] : memref<32x128xf32, #tpu.memory_space<vmem>>, vector<1x32xf32>
    %c10 = arith.constant 10 : index
    %c0_11 = arith.constant 0 : index
    %10 = vector.load %arg4[%c10, %c0_11] : memref<32x128xf32, #tpu.memory_space<vmem>>, vector<1x32xf32>
    %c11 = arith.constant 11 : index
    %c0_12 = arith.constant 0 : index
    %11 = vector.load %arg4[%c11, %c0_12] : memref<32x128xf32, #tpu.memory_space<vmem>>, vector<1x64xf32>
    %c12 = arith.constant 12 : index
    %c0_13 = arith.constant 0 : index
    %12 = vector.load %arg4[%c12, %c0_13] : memref<32x128xf32, #tpu.memory_space<vmem>>, vector<1x32xf32>
    %c13 = arith.constant 13 : index
    %c0_14 = arith.constant 0 : index
    %13 = vector.load %arg4[%c13, %c0_14] : memref<32x128xf32, #tpu.memory_space<vmem>>, vector<1x32xf32>
    %c14 = arith.constant 14 : index
    %c0_15 = arith.constant 0 : index
    %14 = vector.load %arg4[%c14, %c0_15] : memref<32x128xf32, #tpu.memory_space<vmem>>, vector<1x32xf32>
    %c0_16 = arith.constant 0 : index
    %c0_17 = arith.constant 0 : index
    %15 = vector.load %arg4[%c0_16, %c0_17] : memref<32x128xf32, #tpu.memory_space<vmem>>, vector<1x72xf32>
    %c1 = arith.constant 1 : index
    %c0_18 = arith.constant 0 : index
    %16 = vector.load %arg4[%c1, %c0_18] : memref<32x128xf32, #tpu.memory_space<vmem>>, vector<1x72xf32>
    %c2 = arith.constant 2 : index
    %c0_19 = arith.constant 0 : index
    %17 = vector.load %arg4[%c2, %c0_19] : memref<32x128xf32, #tpu.memory_space<vmem>>, vector<1x72xf32>
    %c3 = arith.constant 3 : index
    %c0_20 = arith.constant 0 : index
    %18 = vector.load %arg4[%c3, %c0_20] : memref<32x128xf32, #tpu.memory_space<vmem>>, vector<1x72xf32>
    %c4 = arith.constant 4 : index
    %c0_21 = arith.constant 0 : index
    %19 = vector.load %arg4[%c4, %c0_21] : memref<32x128xf32, #tpu.memory_space<vmem>>, vector<1x72xf32>
    %c5 = arith.constant 5 : index
    %c0_22 = arith.constant 0 : index
    %20 = vector.load %arg4[%c5, %c0_22] : memref<32x128xf32, #tpu.memory_space<vmem>>, vector<1x72xf32>
    %c0_23 = arith.constant 0 : index
    %c0_24 = arith.constant 0 : index
    %c0_25 = arith.constant 0 : index
    %21 = vector.load %arg1[%c0_23, %c0_24, %c0_25] : memref<1x72x112xf32, #tpu.memory_space<vmem>>, vector<1x72x112xf32>
    %22 = vector.shape_cast %21 : vector<1x72x112xf32> to vector<72x112xf32>
    %23 = vector.extract_strided_slice %22 {offsets = [0, 0], sizes = [72, 32], strides = [1, 1]} : vector<72x112xf32> to vector<72x32xf32>
    %24 = vector.extract_strided_slice %22 {offsets = [0, 32], sizes = [72, 32], strides = [1, 1]} : vector<72x112xf32> to vector<72x32xf32>
    %25 = vector.extract_strided_slice %22 {offsets = [0, 64], sizes = [72, 48], strides = [1, 1]} : vector<72x112xf32> to vector<72x48xf32>
    %26 = arith.addf %23, %24 : vector<72x32xf32>
    %cst = arith.constant dense<0.000000e+00> : vector<72x32xf32>
    %27 = tpu.matmul %23, %0, %cst {dimension_numbers = #tpu.dot_dimension_numbers<[1], [0], [0], [1], [0, 0, 1, 1], [], []>} : vector<72x32xf32>, vector<32x32xf32>, vector<72x32xf32> -> vector<72x32xf32>
    %28 = vector.broadcast %6 : vector<1x32xf32> to vector<72x32xf32>
    %29 = arith.addf %27, %28 : vector<72x32xf32>
    %cst_26 = arith.constant dense<0.000000e+00> : vector<72x64xf32>
    %30 = tpu.matmul %26, %1, %cst_26 {dimension_numbers = #tpu.dot_dimension_numbers<[1], [0], [0], [1], [0, 0, 1, 1], [], []>} : vector<72x32xf32>, vector<32x64xf32>, vector<72x64xf32> -> vector<72x64xf32>
    %31 = vector.broadcast %7 : vector<1x64xf32> to vector<72x64xf32>
    %32 = arith.addf %30, %31 : vector<72x64xf32>
    %33 = vector.extract_strided_slice %32 {offsets = [0, 0], sizes = [72, 48], strides = [1, 1]} : vector<72x64xf32> to vector<72x48xf32>
    %34 = vector.extract_strided_slice %32 {offsets = [0, 48], sizes = [72, 16], strides = [1, 1]} : vector<72x64xf32> to vector<72x16xf32>
    %cst_27 = arith.constant dense<0xFF800000> : vector<72xf32>
    %35 = vector.multi_reduction <maximumf>, %34, %cst_27 [1] : vector<72x16xf32> to vector<72xf32>
    %36 = vector.shape_cast %35 : vector<72xf32> to vector<72x1xf32>
    %37 = vector.broadcast %36 : vector<72x1xf32> to vector<72x16xf32>
    %38 = arith.subf %34, %37 : vector<72x16xf32>
    %39 = math.exp %38 : vector<72x16xf32>
    %cst_28 = arith.constant dense<0.000000e+00> : vector<72x16xf32>
    %40 = tpu.matmul %39, %5, %cst_28 {dimension_numbers = #tpu.dot_dimension_numbers<[1], [0], [0], [1], [0, 0, 1, 1], [], []>} : vector<72x16xf32>, vector<16x16xf32>, vector<72x16xf32> -> vector<72x16xf32>
    %cst_29 = arith.constant 9.99999968E-21 : f32
    %41 = vector.broadcast %cst_29 : f32 to vector<72x16xf32>
    %42 = arith.maximumf %40, %41 : vector<72x16xf32>
    %43 = tpu.reciprocal %42 {approx = true} : vector<72x16xf32> -> vector<72x16xf32>
    %44 = arith.mulf %39, %43 : vector<72x16xf32>
    %c0_30 = arith.constant 0 : index
    %c0_31 = arith.constant 0 : index
    %45 = vector.load %arg8[%c0_30, %c0_31] : memref<72x16xf32, #tpu.memory_space<vmem>>, vector<72x16xf32>
    tpu.vector_store %arg8[%c0_30, %c0_31], %44 {strides = array<i32>} : memref<72x16xf32, #tpu.memory_space<vmem>>, vector<72x16xf32>,
    %46 = arith.addf %25, %33 : vector<72x48xf32>
    %c0_32 = arith.constant 0 : index
    %c0_33 = arith.constant 0 : index
    %47 = vector.load %arg7[%c0_32, %c0_33] : memref<72x48xf32, #tpu.memory_space<vmem>>, vector<72x48xf32>
    tpu.vector_store %arg7[%c0_32, %c0_33], %46 {strides = array<i32>} : memref<72x48xf32, #tpu.memory_space<vmem>>, vector<72x48xf32>,
    %cst_34 = arith.constant dense<0.000000e+00> : vector<72x128xf32>
    %48 = tpu.matmul %29, %3, %cst_34 {dimension_numbers = #tpu.dot_dimension_numbers<[1], [0], [0], [1], [0, 0, 1, 1], [], []>} : vector<72x32xf32>, vector<32x128xf32>, vector<72x128xf32> -> vector<72x128xf32>
    %cst_35 = arith.constant 0.000000e+00 : f32
    %49 = vector.broadcast %cst_35 : f32 to vector<72x32xf32>
    %c0_36 = arith.constant 0 : index
    %c0_37 = arith.constant 0 : index
    %50 = vector.load %arg6[%c0_36, %c0_37] : memref<72x32xf32, #tpu.memory_space<vmem>>, vector<72x32xf32>
    tpu.vector_store %arg6[%c0_36, %c0_37], %49 {strides = array<i32>} : memref<72x32xf32, #tpu.memory_space<vmem>>, vector<72x32xf32>,
    %cst_38 = arith.constant 0.000000e+00 : f32
    %51 = vector.broadcast %cst_38 : f32 to vector<72x72xf32>
    %c0_39 = arith.constant 0 : index
    %c0_40 = arith.constant 0 : index
    %52 = vector.load %arg7[%c0_39, %c0_40] : memref<72x48xf32, #tpu.memory_space<vmem>>, vector<72x1xf32>
    %c0_41 = arith.constant 0 : index
    %c4_42 = arith.constant 4 : index
    %53 = vector.load %arg7[%c0_41, %c4_42] : memref<72x48xf32, #tpu.memory_space<vmem>>, vector<72x1xf32>
    %c0_43 = arith.constant 0 : index
    %c8_44 = arith.constant 8 : index
    %54 = vector.load %arg7[%c0_43, %c8_44] : memref<72x48xf32, #tpu.memory_space<vmem>>, vector<72x1xf32>
    %55 = vector.broadcast %15 : vector<1x72xf32> to vector<72x72xf32>
    %56 = vector.broadcast %52 : vector<72x1xf32> to vector<72x72xf32>
    %57 = arith.subf %55, %56 : vector<72x72xf32>
    %58 = math.absf %57 : vector<72x72xf32>
    %cst_45 = arith.constant 1.000000e+00 : f32
    %59 = vector.broadcast %cst_45 : f32 to vector<72x72xf32>
    %60 = arith.subf %59, %58 : vector<72x72xf32>
    %cst_46 = arith.constant 0.000000e+00 : f32
    %61 = vector.broadcast %cst_46 : f32 to vector<72x72xf32>
    %62 = arith.maximumf %60, %61 : vector<72x72xf32>
    %63 = vector.broadcast %16 : vector<1x72xf32> to vector<72x72xf32>
    %64 = vector.broadcast %53 : vector<72x1xf32> to vector<72x72xf32>
    %65 = arith.subf %63, %64 : vector<72x72xf32>
    %66 = math.absf %65 : vector<72x72xf32>
    %cst_47 = arith.constant 1.000000e+00 : f32
    %67 = vector.broadcast %cst_47 : f32 to vector<72x72xf32>
    %68 = arith.subf %67, %66 : vector<72x72xf32>
    %cst_48 = arith.constant 0.000000e+00 : f32
    %69 = vector.broadcast %cst_48 : f32 to vector<72x72xf32>
    %70 = arith.maximumf %68, %69 : vector<72x72xf32>
    %71 = vector.broadcast %17 : vector<1x72xf32> to vector<72x72xf32>
    %72 = vector.broadcast %54 : vector<72x1xf32> to vector<72x72xf32>
    %73 = arith.subf %71, %72 : vector<72x72xf32>
    %74 = math.absf %73 : vector<72x72xf32>
    %cst_49 = arith.constant 1.000000e+00 : f32
    %75 = vector.broadcast %cst_49 : f32 to vector<72x72xf32>
    %76 = arith.subf %75, %74 : vector<72x72xf32>
    %cst_50 = arith.constant 0.000000e+00 : f32
    %77 = vector.broadcast %cst_50 : f32 to vector<72x72xf32>
    %78 = arith.maximumf %76, %77 : vector<72x72xf32>
    %c0_51 = arith.constant 0 : index
    %c0_52 = arith.constant 0 : index
    %79 = vector.load %arg8[%c0_51, %c0_52] : memref<72x16xf32, #tpu.memory_space<vmem>>, vector<72x1xf32>
    %80 = arith.mulf %62, %70 : vector<72x72xf32>
    %81 = arith.mulf %80, %78 : vector<72x72xf32>
    %82 = vector.broadcast %79 : vector<72x1xf32> to vector<72x72xf32>
    %83 = arith.mulf %82, %81 : vector<72x72xf32>
    %84 = arith.addf %51, %83 : vector<72x72xf32>
    %c0_53 = arith.constant 0 : index
    %c12_54 = arith.constant 12 : index
    %85 = vector.load %arg7[%c0_53, %c12_54] : memref<72x48xf32, #tpu.memory_space<vmem>>, vector<72x1xf32>
    %c0_55 = arith.constant 0 : index
    %c16_56 = arith.constant 16 : index
    %86 = vector.load %arg7[%c0_55, %c16_56] : memref<72x48xf32, #tpu.memory_space<vmem>>, vector<72x1xf32>
    %c0_57 = arith.constant 0 : index
    %c20 = arith.constant 20 : index
    %87 = vector.load %arg7[%c0_57, %c20] : memref<72x48xf32, #tpu.memory_space<vmem>>, vector<72x1xf32>
    %88 = vector.broadcast %15 : vector<1x72xf32> to vector<72x72xf32>
    %89 = vector.broadcast %85 : vector<72x1xf32> to vector<72x72xf32>
    %90 = arith.subf %88, %89 : vector<72x72xf32>
    %91 = math.absf %90 : vector<72x72xf32>
    %cst_58 = arith.constant 1.000000e+00 : f32
    %92 = vector.broadcast %cst_58 : f32 to vector<72x72xf32>
    %93 = arith.subf %92, %91 : vector<72x72xf32>
    %cst_59 = arith.constant 0.000000e+00 : f32
    %94 = vector.broadcast %cst_59 : f32 to vector<72x72xf32>
    %95 = arith.maximumf %93, %94 : vector<72x72xf32>
    %96 = vector.broadcast %16 : vector<1x72xf32> to vector<72x72xf32>
    %97 = vector.broadcast %86 : vector<72x1xf32> to vector<72x72xf32>
    %98 = arith.subf %96, %97 : vector<72x72xf32>
    %99 = math.absf %98 : vector<72x72xf32>
    %cst_60 = arith.constant 1.000000e+00 : f32
    %100 = vector.broadcast %cst_60 : f32 to vector<72x72xf32>
    %101 = arith.subf %100, %99 : vector<72x72xf32>
    %cst_61 = arith.constant 0.000000e+00 : f32
    %102 = vector.broadcast %cst_61 : f32 to vector<72x72xf32>
    %103 = arith.maximumf %101, %102 : vector<72x72xf32>
    %104 = vector.broadcast %17 : vector<1x72xf32> to vector<72x72xf32>
    %105 = vector.broadcast %87 : vector<72x1xf32> to vector<72x72xf32>
    %106 = arith.subf %104, %105 : vector<72x72xf32>
    %107 = math.absf %106 : vector<72x72xf32>
    %cst_62 = arith.constant 1.000000e+00 : f32
    %108 = vector.broadcast %cst_62 : f32 to vector<72x72xf32>
    %109 = arith.subf %108, %107 : vector<72x72xf32>
    %cst_63 = arith.constant 0.000000e+00 : f32
    %110 = vector.broadcast %cst_63 : f32 to vector<72x72xf32>
    %111 = arith.maximumf %109, %110 : vector<72x72xf32>
    %c0_64 = arith.constant 0 : index
    %c4_65 = arith.constant 4 : index
    %112 = vector.load %arg8[%c0_64, %c4_65] : memref<72x16xf32, #tpu.memory_space<vmem>>, vector<72x1xf32>
    %113 = arith.mulf %95, %103 : vector<72x72xf32>
    %114 = arith.mulf %113, %111 : vector<72x72xf32>
    %115 = vector.broadcast %112 : vector<72x1xf32> to vector<72x72xf32>
    %116 = arith.mulf %115, %114 : vector<72x72xf32>
    %117 = arith.addf %84, %116 : vector<72x72xf32>
    %c0_66 = arith.constant 0 : index
    %c24 = arith.constant 24 : index
    %118 = vector.load %arg7[%c0_66, %c24] : memref<72x48xf32, #tpu.memory_space<vmem>>, vector<72x1xf32>
    %c0_67 = arith.constant 0 : index
    %c28 = arith.constant 28 : index
    %119 = vector.load %arg7[%c0_67, %c28] : memref<72x48xf32, #tpu.memory_space<vmem>>, vector<72x1xf32>
    %c0_68 = arith.constant 0 : index
    %c32_69 = arith.constant 32 : index
    %120 = vector.load %arg7[%c0_68, %c32_69] : memref<72x48xf32, #tpu.memory_space<vmem>>, vector<72x1xf32>
    %121 = vector.broadcast %18 : vector<1x72xf32> to vector<72x72xf32>
    %122 = vector.broadcast %118 : vector<72x1xf32> to vector<72x72xf32>
    %123 = arith.subf %121, %122 : vector<72x72xf32>
    %124 = math.absf %123 : vector<72x72xf32>
    %cst_70 = arith.constant 1.000000e+00 : f32
    %125 = vector.broadcast %cst_70 : f32 to vector<72x72xf32>
    %126 = arith.subf %125, %124 : vector<72x72xf32>
    %cst_71 = arith.constant 0.000000e+00 : f32
    %127 = vector.broadcast %cst_71 : f32 to vector<72x72xf32>
    %128 = arith.maximumf %126, %127 : vector<72x72xf32>
    %129 = vector.broadcast %19 : vector<1x72xf32> to vector<72x72xf32>
    %130 = vector.broadcast %119 : vector<72x1xf32> to vector<72x72xf32>
    %131 = arith.subf %129, %130 : vector<72x72xf32>
    %132 = math.absf %131 : vector<72x72xf32>
    %cst_72 = arith.constant 1.000000e+00 : f32
    %133 = vector.broadcast %cst_72 : f32 to vector<72x72xf32>
    %134 = arith.subf %133, %132 : vector<72x72xf32>
    %cst_73 = arith.constant 0.000000e+00 : f32
    %135 = vector.broadcast %cst_73 : f32 to vector<72x72xf32>
    %136 = arith.maximumf %134, %135 : vector<72x72xf32>
    %137 = vector.broadcast %20 : vector<1x72xf32> to vector<72x72xf32>
    %138 = vector.broadcast %120 : vector<72x1xf32> to vector<72x72xf32>
    %139 = arith.subf %137, %138 : vector<72x72xf32>
    %140 = math.absf %139 : vector<72x72xf32>
    %cst_74 = arith.constant 1.000000e+00 : f32
    %141 = vector.broadcast %cst_74 : f32 to vector<72x72xf32>
    %142 = arith.subf %141, %140 : vector<72x72xf32>
    %cst_75 = arith.constant 0.000000e+00 : f32
    %143 = vector.broadcast %cst_75 : f32 to vector<72x72xf32>
    %144 = arith.maximumf %142, %143 : vector<72x72xf32>
    %c0_76 = arith.constant 0 : index
    %c8_77 = arith.constant 8 : index
    %145 = vector.load %arg8[%c0_76, %c8_77] : memref<72x16xf32, #tpu.memory_space<vmem>>, vector<72x1xf32>
    %146 = arith.mulf %128, %136 : vector<72x72xf32>
    %147 = arith.mulf %146, %144 : vector<72x72xf32>
    %148 = vector.broadcast %145 : vector<72x1xf32> to vector<72x72xf32>
    %149 = arith.mulf %148, %147 : vector<72x72xf32>
    %150 = arith.addf %117, %149 : vector<72x72xf32>
    %c0_78 = arith.constant 0 : index
    %c36 = arith.constant 36 : index
    %151 = vector.load %arg7[%c0_78, %c36] : memref<72x48xf32, #tpu.memory_space<vmem>>, vector<72x1xf32>
    %c0_79 = arith.constant 0 : index
    %c40 = arith.constant 40 : index
    %152 = vector.load %arg7[%c0_79, %c40] : memref<72x48xf32, #tpu.memory_space<vmem>>, vector<72x1xf32>
    %c0_80 = arith.constant 0 : index
    %c44 = arith.constant 44 : index
    %153 = vector.load %arg7[%c0_80, %c44] : memref<72x48xf32, #tpu.memory_space<vmem>>, vector<72x1xf32>
    %154 = vector.broadcast %18 : vector<1x72xf32> to vector<72x72xf32>
    %155 = vector.broadcast %151 : vector<72x1xf32> to vector<72x72xf32>
    %156 = arith.subf %154, %155 : vector<72x72xf32>
    %157 = math.absf %156 : vector<72x72xf32>
    %cst_81 = arith.constant 1.000000e+00 : f32
    %158 = vector.broadcast %cst_81 : f32 to vector<72x72xf32>
    %159 = arith.subf %158, %157 : vector<72x72xf32>
    %cst_82 = arith.constant 0.000000e+00 : f32
    %160 = vector.broadcast %cst_82 : f32 to vector<72x72xf32>
    %161 = arith.maximumf %159, %160 : vector<72x72xf32>
    %162 = vector.broadcast %19 : vector<1x72xf32> to vector<72x72xf32>
    %163 = vector.broadcast %152 : vector<72x1xf32> to vector<72x72xf32>
    %164 = arith.subf %162, %163 : vector<72x72xf32>
    %165 = math.absf %164 : vector<72x72xf32>
    %cst_83 = arith.constant 1.000000e+00 : f32
    %166 = vector.broadcast %cst_83 : f32 to vector<72x72xf32>
    %167 = arith.subf %166, %165 : vector<72x72xf32>
    %cst_84 = arith.constant 0.000000e+00 : f32
    %168 = vector.broadcast %cst_84 : f32 to vector<72x72xf32>
    %169 = arith.maximumf %167, %168 : vector<72x72xf32>
    %170 = vector.broadcast %20 : vector<1x72xf32> to vector<72x72xf32>
    %171 = vector.broadcast %153 : vector<72x1xf32> to vector<72x72xf32>
    %172 = arith.subf %170, %171 : vector<72x72xf32>
    %173 = math.absf %172 : vector<72x72xf32>
    %cst_85 = arith.constant 1.000000e+00 : f32
    %174 = vector.broadcast %cst_85 : f32 to vector<72x72xf32>
    %175 = arith.subf %174, %173 : vector<72x72xf32>
    %cst_86 = arith.constant 0.000000e+00 : f32
    %176 = vector.broadcast %cst_86 : f32 to vector<72x72xf32>
    %177 = arith.maximumf %175, %176 : vector<72x72xf32>
    %c0_87 = arith.constant 0 : index
    %c12_88 = arith.constant 12 : index
    %178 = vector.load %arg8[%c0_87, %c12_88] : memref<72x16xf32, #tpu.memory_space<vmem>>, vector<72x1xf32>
    %179 = arith.mulf %161, %169 : vector<72x72xf32>
    %180 = arith.mulf %179, %177 : vector<72x72xf32>
    %181 = vector.broadcast %178 : vector<72x1xf32> to vector<72x72xf32>
    %182 = arith.mulf %181, %180 : vector<72x72xf32>
    %183 = arith.addf %150, %182 : vector<72x72xf32>
    %184 = vector.extract_strided_slice %48 {offsets = [0, 0], sizes = [72, 32], strides = [1, 1]} : vector<72x128xf32> to vector<72x32xf32>
    %185 = arith.truncf %184 : vector<72x32xf32> to vector<72x32xbf16>
    %c0_89 = arith.constant 0 : index
    %c0_90 = arith.constant 0 : index
    %186 = vector.load %arg6[%c0_89, %c0_90] : memref<72x32xf32, #tpu.memory_space<vmem>>, vector<72x32xf32>
    %187 = arith.truncf %183 : vector<72x72xf32> to vector<72x72xbf16>
    %cst_91 = arith.constant dense<0.000000e+00> : vector<72x32xf32>
    %188 = tpu.matmul %187, %185, %cst_91 {dimension_numbers = #tpu.dot_dimension_numbers<[1], [0], [0], [1], [0, 0, 1, 1], [], []>} : vector<72x72xbf16>, vector<72x32xbf16>, vector<72x32xf32> -> vector<72x32xf32>
    %189 = arith.addf %186, %188 : vector<72x32xf32>
    %c0_92 = arith.constant 0 : index
    %c0_93 = arith.constant 0 : index
    %190 = vector.load %arg6[%c0_92, %c0_93] : memref<72x32xf32, #tpu.memory_space<vmem>>, vector<72x32xf32>
    tpu.vector_store %arg6[%c0_92, %c0_93], %189 {strides = array<i32>} : memref<72x32xf32, #tpu.memory_space<vmem>>, vector<72x32xf32>,
    %cst_94 = arith.constant 0.000000e+00 : f32
    %191 = vector.broadcast %cst_94 : f32 to vector<72x72xf32>
    %c0_95 = arith.constant 0 : index
    %c1_96 = arith.constant 1 : index
    %192 = vector.load %arg7[%c0_95, %c1_96] : memref<72x48xf32, #tpu.memory_space<vmem>>, vector<72x1xf32>
    %c0_97 = arith.constant 0 : index
    %c5_98 = arith.constant 5 : index
    %193 = vector.load %arg7[%c0_97, %c5_98] : memref<72x48xf32, #tpu.memory_space<vmem>>, vector<72x1xf32>
    %c0_99 = arith.constant 0 : index
    %c9_100 = arith.constant 9 : index
    %194 = vector.load %arg7[%c0_99, %c9_100] : memref<72x48xf32, #tpu.memory_space<vmem>>, vector<72x1xf32>
    %195 = vector.broadcast %15 : vector<1x72xf32> to vector<72x72xf32>
    %196 = vector.broadcast %192 : vector<72x1xf32> to vector<72x72xf32>
    %197 = arith.subf %195, %196 : vector<72x72xf32>
    %198 = math.absf %197 : vector<72x72xf32>
    %cst_101 = arith.constant 1.000000e+00 : f32
    %199 = vector.broadcast %cst_101 : f32 to vector<72x72xf32>
    %200 = arith.subf %199, %198 : vector<72x72xf32>
    %cst_102 = arith.constant 0.000000e+00 : f32
    %201 = vector.broadcast %cst_102 : f32 to vector<72x72xf32>
    %202 = arith.maximumf %200, %201 : vector<72x72xf32>
    %203 = vector.broadcast %16 : vector<1x72xf32> to vector<72x72xf32>
    %204 = vector.broadcast %193 : vector<72x1xf32> to vector<72x72xf32>
    %205 = arith.subf %203, %204 : vector<72x72xf32>
    %206 = math.absf %205 : vector<72x72xf32>
    %cst_103 = arith.constant 1.000000e+00 : f32
    %207 = vector.broadcast %cst_103 : f32 to vector<72x72xf32>
    %208 = arith.subf %207, %206 : vector<72x72xf32>
    %cst_104 = arith.constant 0.000000e+00 : f32
    %209 = vector.broadcast %cst_104 : f32 to vector<72x72xf32>
    %210 = arith.maximumf %208, %209 : vector<72x72xf32>
    %211 = vector.broadcast %17 : vector<1x72xf32> to vector<72x72xf32>
    %212 = vector.broadcast %194 : vector<72x1xf32> to vector<72x72xf32>
    %213 = arith.subf %211, %212 : vector<72x72xf32>
    %214 = math.absf %213 : vector<72x72xf32>
    %cst_105 = arith.constant 1.000000e+00 : f32
    %215 = vector.broadcast %cst_105 : f32 to vector<72x72xf32>
    %216 = arith.subf %215, %214 : vector<72x72xf32>
    %cst_106 = arith.constant 0.000000e+00 : f32
    %217 = vector.broadcast %cst_106 : f32 to vector<72x72xf32>
    %218 = arith.maximumf %216, %217 : vector<72x72xf32>
    %c0_107 = arith.constant 0 : index
    %c1_108 = arith.constant 1 : index
    %219 = vector.load %arg8[%c0_107, %c1_108] : memref<72x16xf32, #tpu.memory_space<vmem>>, vector<72x1xf32>
    %220 = arith.mulf %202, %210 : vector<72x72xf32>
    %221 = arith.mulf %220, %218 : vector<72x72xf32>
    %222 = vector.broadcast %219 : vector<72x1xf32> to vector<72x72xf32>
    %223 = arith.mulf %222, %221 : vector<72x72xf32>
    %224 = arith.addf %191, %223 : vector<72x72xf32>
    %c0_109 = arith.constant 0 : index
    %c13_110 = arith.constant 13 : index
    %225 = vector.load %arg7[%c0_109, %c13_110] : memref<72x48xf32, #tpu.memory_space<vmem>>, vector<72x1xf32>
    %c0_111 = arith.constant 0 : index
    %c17 = arith.constant 17 : index
    %226 = vector.load %arg7[%c0_111, %c17] : memref<72x48xf32, #tpu.memory_space<vmem>>, vector<72x1xf32>
    %c0_112 = arith.constant 0 : index
    %c21 = arith.constant 21 : index
    %227 = vector.load %arg7[%c0_112, %c21] : memref<72x48xf32, #tpu.memory_space<vmem>>, vector<72x1xf32>
    %228 = vector.broadcast %15 : vector<1x72xf32> to vector<72x72xf32>
    %229 = vector.broadcast %225 : vector<72x1xf32> to vector<72x72xf32>
    %230 = arith.subf %228, %229 : vector<72x72xf32>
    %231 = math.absf %230 : vector<72x72xf32>
    %cst_113 = arith.constant 1.000000e+00 : f32
    %232 = vector.broadcast %cst_113 : f32 to vector<72x72xf32>
    %233 = arith.subf %232, %231 : vector<72x72xf32>
    %cst_114 = arith.constant 0.000000e+00 : f32
    %234 = vector.broadcast %cst_114 : f32 to vector<72x72xf32>
    %235 = arith.maximumf %233, %234 : vector<72x72xf32>
    %236 = vector.broadcast %16 : vector<1x72xf32> to vector<72x72xf32>
    %237 = vector.broadcast %226 : vector<72x1xf32> to vector<72x72xf32>
    %238 = arith.subf %236, %237 : vector<72x72xf32>
    %239 = math.absf %238 : vector<72x72xf32>
    %cst_115 = arith.constant 1.000000e+00 : f32
    %240 = vector.broadcast %cst_115 : f32 to vector<72x72xf32>
    %241 = arith.subf %240, %239 : vector<72x72xf32>
    %cst_116 = arith.constant 0.000000e+00 : f32
    %242 = vector.broadcast %cst_116 : f32 to vector<72x72xf32>
    %243 = arith.maximumf %241, %242 : vector<72x72xf32>
    %244 = vector.broadcast %17 : vector<1x72xf32> to vector<72x72xf32>
    %245 = vector.broadcast %227 : vector<72x1xf32> to vector<72x72xf32>
    %246 = arith.subf %244, %245 : vector<72x72xf32>
    %247 = math.absf %246 : vector<72x72xf32>
    %cst_117 = arith.constant 1.000000e+00 : f32
    %248 = vector.broadcast %cst_117 : f32 to vector<72x72xf32>
    %249 = arith.subf %248, %247 : vector<72x72xf32>
    %cst_118 = arith.constant 0.000000e+00 : f32
    %250 = vector.broadcast %cst_118 : f32 to vector<72x72xf32>
    %251 = arith.maximumf %249, %250 : vector<72x72xf32>
    %c0_119 = arith.constant 0 : index
    %c5_120 = arith.constant 5 : index
    %252 = vector.load %arg8[%c0_119, %c5_120] : memref<72x16xf32, #tpu.memory_space<vmem>>, vector<72x1xf32>
    %253 = arith.mulf %235, %243 : vector<72x72xf32>
    %254 = arith.mulf %253, %251 : vector<72x72xf32>
    %255 = vector.broadcast %252 : vector<72x1xf32> to vector<72x72xf32>
    %256 = arith.mulf %255, %254 : vector<72x72xf32>
    %257 = arith.addf %224, %256 : vector<72x72xf32>
    %c0_121 = arith.constant 0 : index
    %c25 = arith.constant 25 : index
    %258 = vector.load %arg7[%c0_121, %c25] : memref<72x48xf32, #tpu.memory_space<vmem>>, vector<72x1xf32>
    %c0_122 = arith.constant 0 : index
    %c29 = arith.constant 29 : index
    %259 = vector.load %arg7[%c0_122, %c29] : memref<72x48xf32, #tpu.memory_space<vmem>>, vector<72x1xf32>
    %c0_123 = arith.constant 0 : index
    %c33 = arith.constant 33 : index
    %260 = vector.load %arg7[%c0_123, %c33] : memref<72x48xf32, #tpu.memory_space<vmem>>, vector<72x1xf32>
    %261 = vector.broadcast %18 : vector<1x72xf32> to vector<72x72xf32>
    %262 = vector.broadcast %258 : vector<72x1xf32> to vector<72x72xf32>
    %263 = arith.subf %261, %262 : vector<72x72xf32>
    %264 = math.absf %263 : vector<72x72xf32>
    %cst_124 = arith.constant 1.000000e+00 : f32
    %265 = vector.broadcast %cst_124 : f32 to vector<72x72xf32>
    %266 = arith.subf %265, %264 : vector<72x72xf32>
    %cst_125 = arith.constant 0.000000e+00 : f32
    %267 = vector.broadcast %cst_125 : f32 to vector<72x72xf32>
    %268 = arith.maximumf %266, %267 : vector<72x72xf32>
    %269 = vector.broadcast %19 : vector<1x72xf32> to vector<72x72xf32>
    %270 = vector.broadcast %259 : vector<72x1xf32> to vector<72x72xf32>
    %271 = arith.subf %269, %270 : vector<72x72xf32>
    %272 = math.absf %271 : vector<72x72xf32>
    %cst_126 = arith.constant 1.000000e+00 : f32
    %273 = vector.broadcast %cst_126 : f32 to vector<72x72xf32>
    %274 = arith.subf %273, %272 : vector<72x72xf32>
    %cst_127 = arith.constant 0.000000e+00 : f32
    %275 = vector.broadcast %cst_127 : f32 to vector<72x72xf32>
    %276 = arith.maximumf %274, %275 : vector<72x72xf32>
    %277 = vector.broadcast %20 : vector<1x72xf32> to vector<72x72xf32>
    %278 = vector.broadcast %260 : vector<72x1xf32> to vector<72x72xf32>
    %279 = arith.subf %277, %278 : vector<72x72xf32>
    %280 = math.absf %279 : vector<72x72xf32>
    %cst_128 = arith.constant 1.000000e+00 : f32
    %281 = vector.broadcast %cst_128 : f32 to vector<72x72xf32>
    %282 = arith.subf %281, %280 : vector<72x72xf32>
    %cst_129 = arith.constant 0.000000e+00 : f32
    %283 = vector.broadcast %cst_129 : f32 to vector<72x72xf32>
    %284 = arith.maximumf %282, %283 : vector<72x72xf32>
    %c0_130 = arith.constant 0 : index
    %c9_131 = arith.constant 9 : index
    %285 = vector.load %arg8[%c0_130, %c9_131] : memref<72x16xf32, #tpu.memory_space<vmem>>, vector<72x1xf32>
    %286 = arith.mulf %268, %276 : vector<72x72xf32>
    %287 = arith.mulf %286, %284 : vector<72x72xf32>
    %288 = vector.broadcast %285 : vector<72x1xf32> to vector<72x72xf32>
    %289 = arith.mulf %288, %287 : vector<72x72xf32>
    %290 = arith.addf %257, %289 : vector<72x72xf32>
    %c0_132 = arith.constant 0 : index
    %c37 = arith.constant 37 : index
    %291 = vector.load %arg7[%c0_132, %c37] : memref<72x48xf32, #tpu.memory_space<vmem>>, vector<72x1xf32>
    %c0_133 = arith.constant 0 : index
    %c41 = arith.constant 41 : index
    %292 = vector.load %arg7[%c0_133, %c41] : memref<72x48xf32, #tpu.memory_space<vmem>>, vector<72x1xf32>
    %c0_134 = arith.constant 0 : index
    %c45 = arith.constant 45 : index
    %293 = vector.load %arg7[%c0_134, %c45] : memref<72x48xf32, #tpu.memory_space<vmem>>, vector<72x1xf32>
    %294 = vector.broadcast %18 : vector<1x72xf32> to vector<72x72xf32>
    %295 = vector.broadcast %291 : vector<72x1xf32> to vector<72x72xf32>
    %296 = arith.subf %294, %295 : vector<72x72xf32>
    %297 = math.absf %296 : vector<72x72xf32>
    %cst_135 = arith.constant 1.000000e+00 : f32
    %298 = vector.broadcast %cst_135 : f32 to vector<72x72xf32>
    %299 = arith.subf %298, %297 : vector<72x72xf32>
    %cst_136 = arith.constant 0.000000e+00 : f32
    %300 = vector.broadcast %cst_136 : f32 to vector<72x72xf32>
    %301 = arith.maximumf %299, %300 : vector<72x72xf32>
    %302 = vector.broadcast %19 : vector<1x72xf32> to vector<72x72xf32>
    %303 = vector.broadcast %292 : vector<72x1xf32> to vector<72x72xf32>
    %304 = arith.subf %302, %303 : vector<72x72xf32>
    %305 = math.absf %304 : vector<72x72xf32>
    %cst_137 = arith.constant 1.000000e+00 : f32
    %306 = vector.broadcast %cst_137 : f32 to vector<72x72xf32>
    %307 = arith.subf %306, %305 : vector<72x72xf32>
    %cst_138 = arith.constant 0.000000e+00 : f32
    %308 = vector.broadcast %cst_138 : f32 to vector<72x72xf32>
    %309 = arith.maximumf %307, %308 : vector<72x72xf32>
    %310 = vector.broadcast %20 : vector<1x72xf32> to vector<72x72xf32>
    %311 = vector.broadcast %293 : vector<72x1xf32> to vector<72x72xf32>
    %312 = arith.subf %310, %311 : vector<72x72xf32>
    %313 = math.absf %312 : vector<72x72xf32>
    %cst_139 = arith.constant 1.000000e+00 : f32
    %314 = vector.broadcast %cst_139 : f32 to vector<72x72xf32>
    %315 = arith.subf %314, %313 : vector<72x72xf32>
    %cst_140 = arith.constant 0.000000e+00 : f32
    %316 = vector.broadcast %cst_140 : f32 to vector<72x72xf32>
    %317 = arith.maximumf %315, %316 : vector<72x72xf32>
    %c0_141 = arith.constant 0 : index
    %c13_142 = arith.constant 13 : index
    %318 = vector.load %arg8[%c0_141, %c13_142] : memref<72x16xf32, #tpu.memory_space<vmem>>, vector<72x1xf32>
    %319 = arith.mulf %301, %309 : vector<72x72xf32>
    %320 = arith.mulf %319, %317 : vector<72x72xf32>
    %321 = vector.broadcast %318 : vector<72x1xf32> to vector<72x72xf32>
    %322 = arith.mulf %321, %320 : vector<72x72xf32>
    %323 = arith.addf %290, %322 : vector<72x72xf32>
    %324 = vector.extract_strided_slice %48 {offsets = [0, 32], sizes = [72, 32], strides = [1, 1]} : vector<72x128xf32> to vector<72x32xf32>
    %325 = arith.truncf %324 : vector<72x32xf32> to vector<72x32xbf16>
    %c0_143 = arith.constant 0 : index
    %c0_144 = arith.constant 0 : index
    %326 = vector.load %arg6[%c0_143, %c0_144] : memref<72x32xf32, #tpu.memory_space<vmem>>, vector<72x32xf32>
    %327 = arith.truncf %323 : vector<72x72xf32> to vector<72x72xbf16>
    %cst_145 = arith.constant dense<0.000000e+00> : vector<72x32xf32>
    %328 = tpu.matmul %327, %325, %cst_145 {dimension_numbers = #tpu.dot_dimension_numbers<[1], [0], [0], [1], [0, 0, 1, 1], [], []>} : vector<72x72xbf16>, vector<72x32xbf16>, vector<72x32xf32> -> vector<72x32xf32>
    %329 = arith.addf %326, %328 : vector<72x32xf32>
    %c0_146 = arith.constant 0 : index
    %c0_147 = arith.constant 0 : index
    %330 = vector.load %arg6[%c0_146, %c0_147] : memref<72x32xf32, #tpu.memory_space<vmem>>, vector<72x32xf32>
    tpu.vector_store %arg6[%c0_146, %c0_147], %329 {strides = array<i32>} : memref<72x32xf32, #tpu.memory_space<vmem>>, vector<72x32xf32>,
    %cst_148 = arith.constant 0.000000e+00 : f32
    %331 = vector.broadcast %cst_148 : f32 to vector<72x72xf32>
    %c0_149 = arith.constant 0 : index
    %c2_150 = arith.constant 2 : index
    %332 = vector.load %arg7[%c0_149, %c2_150] : memref<72x48xf32, #tpu.memory_space<vmem>>, vector<72x1xf32>
    %c0_151 = arith.constant 0 : index
    %c6_152 = arith.constant 6 : index
    %333 = vector.load %arg7[%c0_151, %c6_152] : memref<72x48xf32, #tpu.memory_space<vmem>>, vector<72x1xf32>
    %c0_153 = arith.constant 0 : index
    %c10_154 = arith.constant 10 : index
    %334 = vector.load %arg7[%c0_153, %c10_154] : memref<72x48xf32, #tpu.memory_space<vmem>>, vector<72x1xf32>
    %335 = vector.broadcast %15 : vector<1x72xf32> to vector<72x72xf32>
    %336 = vector.broadcast %332 : vector<72x1xf32> to vector<72x72xf32>
    %337 = arith.subf %335, %336 : vector<72x72xf32>
    %338 = math.absf %337 : vector<72x72xf32>
    %cst_155 = arith.constant 1.000000e+00 : f32
    %339 = vector.broadcast %cst_155 : f32 to vector<72x72xf32>
    %340 = arith.subf %339, %338 : vector<72x72xf32>
    %cst_156 = arith.constant 0.000000e+00 : f32
    %341 = vector.broadcast %cst_156 : f32 to vector<72x72xf32>
    %342 = arith.maximumf %340, %341 : vector<72x72xf32>
    %343 = vector.broadcast %16 : vector<1x72xf32> to vector<72x72xf32>
    %344 = vector.broadcast %333 : vector<72x1xf32> to vector<72x72xf32>
    %345 = arith.subf %343, %344 : vector<72x72xf32>
    %346 = math.absf %345 : vector<72x72xf32>
    %cst_157 = arith.constant 1.000000e+00 : f32
    %347 = vector.broadcast %cst_157 : f32 to vector<72x72xf32>
    %348 = arith.subf %347, %346 : vector<72x72xf32>
    %cst_158 = arith.constant 0.000000e+00 : f32
    %349 = vector.broadcast %cst_158 : f32 to vector<72x72xf32>
    %350 = arith.maximumf %348, %349 : vector<72x72xf32>
    %351 = vector.broadcast %17 : vector<1x72xf32> to vector<72x72xf32>
    %352 = vector.broadcast %334 : vector<72x1xf32> to vector<72x72xf32>
    %353 = arith.subf %351, %352 : vector<72x72xf32>
    %354 = math.absf %353 : vector<72x72xf32>
    %cst_159 = arith.constant 1.000000e+00 : f32
    %355 = vector.broadcast %cst_159 : f32 to vector<72x72xf32>
    %356 = arith.subf %355, %354 : vector<72x72xf32>
    %cst_160 = arith.constant 0.000000e+00 : f32
    %357 = vector.broadcast %cst_160 : f32 to vector<72x72xf32>
    %358 = arith.maximumf %356, %357 : vector<72x72xf32>
    %c0_161 = arith.constant 0 : index
    %c2_162 = arith.constant 2 : index
    %359 = vector.load %arg8[%c0_161, %c2_162] : memref<72x16xf32, #tpu.memory_space<vmem>>, vector<72x1xf32>
    %360 = arith.mulf %342, %350 : vector<72x72xf32>
    %361 = arith.mulf %360, %358 : vector<72x72xf32>
    %362 = vector.broadcast %359 : vector<72x1xf32> to vector<72x72xf32>
    %363 = arith.mulf %362, %361 : vector<72x72xf32>
    %364 = arith.addf %331, %363 : vector<72x72xf32>
    %c0_163 = arith.constant 0 : index
    %c14_164 = arith.constant 14 : index
    %365 = vector.load %arg7[%c0_163, %c14_164] : memref<72x48xf32, #tpu.memory_space<vmem>>, vector<72x1xf32>
    %c0_165 = arith.constant 0 : index
    %c18 = arith.constant 18 : index
    %366 = vector.load %arg7[%c0_165, %c18] : memref<72x48xf32, #tpu.memory_space<vmem>>, vector<72x1xf32>
    %c0_166 = arith.constant 0 : index
    %c22 = arith.constant 22 : index
    %367 = vector.load %arg7[%c0_166, %c22] : memref<72x48xf32, #tpu.memory_space<vmem>>, vector<72x1xf32>
    %368 = vector.broadcast %15 : vector<1x72xf32> to vector<72x72xf32>
    %369 = vector.broadcast %365 : vector<72x1xf32> to vector<72x72xf32>
    %370 = arith.subf %368, %369 : vector<72x72xf32>
    %371 = math.absf %370 : vector<72x72xf32>
    %cst_167 = arith.constant 1.000000e+00 : f32
    %372 = vector.broadcast %cst_167 : f32 to vector<72x72xf32>
    %373 = arith.subf %372, %371 : vector<72x72xf32>
    %cst_168 = arith.constant 0.000000e+00 : f32
    %374 = vector.broadcast %cst_168 : f32 to vector<72x72xf32>
    %375 = arith.maximumf %373, %374 : vector<72x72xf32>
    %376 = vector.broadcast %16 : vector<1x72xf32> to vector<72x72xf32>
    %377 = vector.broadcast %366 : vector<72x1xf32> to vector<72x72xf32>
    %378 = arith.subf %376, %377 : vector<72x72xf32>
    %379 = math.absf %378 : vector<72x72xf32>
    %cst_169 = arith.constant 1.000000e+00 : f32
    %380 = vector.broadcast %cst_169 : f32 to vector<72x72xf32>
    %381 = arith.subf %380, %379 : vector<72x72xf32>
    %cst_170 = arith.constant 0.000000e+00 : f32
    %382 = vector.broadcast %cst_170 : f32 to vector<72x72xf32>
    %383 = arith.maximumf %381, %382 : vector<72x72xf32>
    %384 = vector.broadcast %17 : vector<1x72xf32> to vector<72x72xf32>
    %385 = vector.broadcast %367 : vector<72x1xf32> to vector<72x72xf32>
    %386 = arith.subf %384, %385 : vector<72x72xf32>
    %387 = math.absf %386 : vector<72x72xf32>
    %cst_171 = arith.constant 1.000000e+00 : f32
    %388 = vector.broadcast %cst_171 : f32 to vector<72x72xf32>
    %389 = arith.subf %388, %387 : vector<72x72xf32>
    %cst_172 = arith.constant 0.000000e+00 : f32
    %390 = vector.broadcast %cst_172 : f32 to vector<72x72xf32>
    %391 = arith.maximumf %389, %390 : vector<72x72xf32>
    %c0_173 = arith.constant 0 : index
    %c6_174 = arith.constant 6 : index
    %392 = vector.load %arg8[%c0_173, %c6_174] : memref<72x16xf32, #tpu.memory_space<vmem>>, vector<72x1xf32>
    %393 = arith.mulf %375, %383 : vector<72x72xf32>
    %394 = arith.mulf %393, %391 : vector<72x72xf32>
    %395 = vector.broadcast %392 : vector<72x1xf32> to vector<72x72xf32>
    %396 = arith.mulf %395, %394 : vector<72x72xf32>
    %397 = arith.addf %364, %396 : vector<72x72xf32>
    %c0_175 = arith.constant 0 : index
    %c26 = arith.constant 26 : index
    %398 = vector.load %arg7[%c0_175, %c26] : memref<72x48xf32, #tpu.memory_space<vmem>>, vector<72x1xf32>
    %c0_176 = arith.constant 0 : index
    %c30 = arith.constant 30 : index
    %399 = vector.load %arg7[%c0_176, %c30] : memref<72x48xf32, #tpu.memory_space<vmem>>, vector<72x1xf32>
    %c0_177 = arith.constant 0 : index
    %c34 = arith.constant 34 : index
    %400 = vector.load %arg7[%c0_177, %c34] : memref<72x48xf32, #tpu.memory_space<vmem>>, vector<72x1xf32>
    %401 = vector.broadcast %18 : vector<1x72xf32> to vector<72x72xf32>
    %402 = vector.broadcast %398 : vector<72x1xf32> to vector<72x72xf32>
    %403 = arith.subf %401, %402 : vector<72x72xf32>
    %404 = math.absf %403 : vector<72x72xf32>
    %cst_178 = arith.constant 1.000000e+00 : f32
    %405 = vector.broadcast %cst_178 : f32 to vector<72x72xf32>
    %406 = arith.subf %405, %404 : vector<72x72xf32>
    %cst_179 = arith.constant 0.000000e+00 : f32
    %407 = vector.broadcast %cst_179 : f32 to vector<72x72xf32>
    %408 = arith.maximumf %406, %407 : vector<72x72xf32>
    %409 = vector.broadcast %19 : vector<1x72xf32> to vector<72x72xf32>
    %410 = vector.broadcast %399 : vector<72x1xf32> to vector<72x72xf32>
    %411 = arith.subf %409, %410 : vector<72x72xf32>
    %412 = math.absf %411 : vector<72x72xf32>
    %cst_180 = arith.constant 1.000000e+00 : f32
    %413 = vector.broadcast %cst_180 : f32 to vector<72x72xf32>
    %414 = arith.subf %413, %412 : vector<72x72xf32>
    %cst_181 = arith.constant 0.000000e+00 : f32
    %415 = vector.broadcast %cst_181 : f32 to vector<72x72xf32>
    %416 = arith.maximumf %414, %415 : vector<72x72xf32>
    %417 = vector.broadcast %20 : vector<1x72xf32> to vector<72x72xf32>
    %418 = vector.broadcast %400 : vector<72x1xf32> to vector<72x72xf32>
    %419 = arith.subf %417, %418 : vector<72x72xf32>
    %420 = math.absf %419 : vector<72x72xf32>
    %cst_182 = arith.constant 1.000000e+00 : f32
    %421 = vector.broadcast %cst_182 : f32 to vector<72x72xf32>
    %422 = arith.subf %421, %420 : vector<72x72xf32>
    %cst_183 = arith.constant 0.000000e+00 : f32
    %423 = vector.broadcast %cst_183 : f32 to vector<72x72xf32>
    %424 = arith.maximumf %422, %423 : vector<72x72xf32>
    %c0_184 = arith.constant 0 : index
    %c10_185 = arith.constant 10 : index
    %425 = vector.load %arg8[%c0_184, %c10_185] : memref<72x16xf32, #tpu.memory_space<vmem>>, vector<72x1xf32>
    %426 = arith.mulf %408, %416 : vector<72x72xf32>
    %427 = arith.mulf %426, %424 : vector<72x72xf32>
    %428 = vector.broadcast %425 : vector<72x1xf32> to vector<72x72xf32>
    %429 = arith.mulf %428, %427 : vector<72x72xf32>
    %430 = arith.addf %397, %429 : vector<72x72xf32>
    %c0_186 = arith.constant 0 : index
    %c38 = arith.constant 38 : index
    %431 = vector.load %arg7[%c0_186, %c38] : memref<72x48xf32, #tpu.memory_space<vmem>>, vector<72x1xf32>
    %c0_187 = arith.constant 0 : index
    %c42 = arith.constant 42 : index
    %432 = vector.load %arg7[%c0_187, %c42] : memref<72x48xf32, #tpu.memory_space<vmem>>, vector<72x1xf32>
    %c0_188 = arith.constant 0 : index
    %c46 = arith.constant 46 : index
    %433 = vector.load %arg7[%c0_188, %c46] : memref<72x48xf32, #tpu.memory_space<vmem>>, vector<72x1xf32>
    %434 = vector.broadcast %18 : vector<1x72xf32> to vector<72x72xf32>
    %435 = vector.broadcast %431 : vector<72x1xf32> to vector<72x72xf32>
    %436 = arith.subf %434, %435 : vector<72x72xf32>
    %437 = math.absf %436 : vector<72x72xf32>
    %cst_189 = arith.constant 1.000000e+00 : f32
    %438 = vector.broadcast %cst_189 : f32 to vector<72x72xf32>
    %439 = arith.subf %438, %437 : vector<72x72xf32>
    %cst_190 = arith.constant 0.000000e+00 : f32
    %440 = vector.broadcast %cst_190 : f32 to vector<72x72xf32>
    %441 = arith.maximumf %439, %440 : vector<72x72xf32>
    %442 = vector.broadcast %19 : vector<1x72xf32> to vector<72x72xf32>
    %443 = vector.broadcast %432 : vector<72x1xf32> to vector<72x72xf32>
    %444 = arith.subf %442, %443 : vector<72x72xf32>
    %445 = math.absf %444 : vector<72x72xf32>
    %cst_191 = arith.constant 1.000000e+00 : f32
    %446 = vector.broadcast %cst_191 : f32 to vector<72x72xf32>
    %447 = arith.subf %446, %445 : vector<72x72xf32>
    %cst_192 = arith.constant 0.000000e+00 : f32
    %448 = vector.broadcast %cst_192 : f32 to vector<72x72xf32>
    %449 = arith.maximumf %447, %448 : vector<72x72xf32>
    %450 = vector.broadcast %20 : vector<1x72xf32> to vector<72x72xf32>
    %451 = vector.broadcast %433 : vector<72x1xf32> to vector<72x72xf32>
    %452 = arith.subf %450, %451 : vector<72x72xf32>
    %453 = math.absf %452 : vector<72x72xf32>
    %cst_193 = arith.constant 1.000000e+00 : f32
    %454 = vector.broadcast %cst_193 : f32 to vector<72x72xf32>
    %455 = arith.subf %454, %453 : vector<72x72xf32>
    %cst_194 = arith.constant 0.000000e+00 : f32
    %456 = vector.broadcast %cst_194 : f32 to vector<72x72xf32>
    %457 = arith.maximumf %455, %456 : vector<72x72xf32>
    %c0_195 = arith.constant 0 : index
    %c14_196 = arith.constant 14 : index
    %458 = vector.load %arg8[%c0_195, %c14_196] : memref<72x16xf32, #tpu.memory_space<vmem>>, vector<72x1xf32>
    %459 = arith.mulf %441, %449 : vector<72x72xf32>
    %460 = arith.mulf %459, %457 : vector<72x72xf32>
    %461 = vector.broadcast %458 : vector<72x1xf32> to vector<72x72xf32>
    %462 = arith.mulf %461, %460 : vector<72x72xf32>
    %463 = arith.addf %430, %462 : vector<72x72xf32>
    %464 = vector.extract_strided_slice %48 {offsets = [0, 64], sizes = [72, 32], strides = [1, 1]} : vector<72x128xf32> to vector<72x32xf32>
    %465 = arith.truncf %464 : vector<72x32xf32> to vector<72x32xbf16>
    %c0_197 = arith.constant 0 : index
    %c0_198 = arith.constant 0 : index
    %466 = vector.load %arg6[%c0_197, %c0_198] : memref<72x32xf32, #tpu.memory_space<vmem>>, vector<72x32xf32>
    %467 = arith.truncf %463 : vector<72x72xf32> to vector<72x72xbf16>
    %cst_199 = arith.constant dense<0.000000e+00> : vector<72x32xf32>
    %468 = tpu.matmul %467, %465, %cst_199 {dimension_numbers = #tpu.dot_dimension_numbers<[1], [0], [0], [1], [0, 0, 1, 1], [], []>} : vector<72x72xbf16>, vector<72x32xbf16>, vector<72x32xf32> -> vector<72x32xf32>
    %469 = arith.addf %466, %468 : vector<72x32xf32>
    %c0_200 = arith.constant 0 : index
    %c0_201 = arith.constant 0 : index
    %470 = vector.load %arg6[%c0_200, %c0_201] : memref<72x32xf32, #tpu.memory_space<vmem>>, vector<72x32xf32>
    tpu.vector_store %arg6[%c0_200, %c0_201], %469 {strides = array<i32>} : memref<72x32xf32, #tpu.memory_space<vmem>>, vector<72x32xf32>,
    %cst_202 = arith.constant 0.000000e+00 : f32
    %471 = vector.broadcast %cst_202 : f32 to vector<72x72xf32>
    %c0_203 = arith.constant 0 : index
    %c3_204 = arith.constant 3 : index
    %472 = vector.load %arg7[%c0_203, %c3_204] : memref<72x48xf32, #tpu.memory_space<vmem>>, vector<72x1xf32>
    %c0_205 = arith.constant 0 : index
    %c7_206 = arith.constant 7 : index
    %473 = vector.load %arg7[%c0_205, %c7_206] : memref<72x48xf32, #tpu.memory_space<vmem>>, vector<72x1xf32>
    %c0_207 = arith.constant 0 : index
    %c11_208 = arith.constant 11 : index
    %474 = vector.load %arg7[%c0_207, %c11_208] : memref<72x48xf32, #tpu.memory_space<vmem>>, vector<72x1xf32>
    %475 = vector.broadcast %15 : vector<1x72xf32> to vector<72x72xf32>
    %476 = vector.broadcast %472 : vector<72x1xf32> to vector<72x72xf32>
    %477 = arith.subf %475, %476 : vector<72x72xf32>
    %478 = math.absf %477 : vector<72x72xf32>
    %cst_209 = arith.constant 1.000000e+00 : f32
    %479 = vector.broadcast %cst_209 : f32 to vector<72x72xf32>
    %480 = arith.subf %479, %478 : vector<72x72xf32>
    %cst_210 = arith.constant 0.000000e+00 : f32
    %481 = vector.broadcast %cst_210 : f32 to vector<72x72xf32>
    %482 = arith.maximumf %480, %481 : vector<72x72xf32>
    %483 = vector.broadcast %16 : vector<1x72xf32> to vector<72x72xf32>
    %484 = vector.broadcast %473 : vector<72x1xf32> to vector<72x72xf32>
    %485 = arith.subf %483, %484 : vector<72x72xf32>
    %486 = math.absf %485 : vector<72x72xf32>
    %cst_211 = arith.constant 1.000000e+00 : f32
    %487 = vector.broadcast %cst_211 : f32 to vector<72x72xf32>
    %488 = arith.subf %487, %486 : vector<72x72xf32>
    %cst_212 = arith.constant 0.000000e+00 : f32
    %489 = vector.broadcast %cst_212 : f32 to vector<72x72xf32>
    %490 = arith.maximumf %488, %489 : vector<72x72xf32>
    %491 = vector.broadcast %17 : vector<1x72xf32> to vector<72x72xf32>
    %492 = vector.broadcast %474 : vector<72x1xf32> to vector<72x72xf32>
    %493 = arith.subf %491, %492 : vector<72x72xf32>
    %494 = math.absf %493 : vector<72x72xf32>
    %cst_213 = arith.constant 1.000000e+00 : f32
    %495 = vector.broadcast %cst_213 : f32 to vector<72x72xf32>
    %496 = arith.subf %495, %494 : vector<72x72xf32>
    %cst_214 = arith.constant 0.000000e+00 : f32
    %497 = vector.broadcast %cst_214 : f32 to vector<72x72xf32>
    %498 = arith.maximumf %496, %497 : vector<72x72xf32>
    %c0_215 = arith.constant 0 : index
    %c3_216 = arith.constant 3 : index
    %499 = vector.load %arg8[%c0_215, %c3_216] : memref<72x16xf32, #tpu.memory_space<vmem>>, vector<72x1xf32>
    %500 = arith.mulf %482, %490 : vector<72x72xf32>
    %501 = arith.mulf %500, %498 : vector<72x72xf32>
    %502 = vector.broadcast %499 : vector<72x1xf32> to vector<72x72xf32>
    %503 = arith.mulf %502, %501 : vector<72x72xf32>
    %504 = arith.addf %471, %503 : vector<72x72xf32>
    %c0_217 = arith.constant 0 : index
    %c15 = arith.constant 15 : index
    %505 = vector.load %arg7[%c0_217, %c15] : memref<72x48xf32, #tpu.memory_space<vmem>>, vector<72x1xf32>
    %c0_218 = arith.constant 0 : index
    %c19 = arith.constant 19 : index
    %506 = vector.load %arg7[%c0_218, %c19] : memref<72x48xf32, #tpu.memory_space<vmem>>, vector<72x1xf32>
    %c0_219 = arith.constant 0 : index
    %c23 = arith.constant 23 : index
    %507 = vector.load %arg7[%c0_219, %c23] : memref<72x48xf32, #tpu.memory_space<vmem>>, vector<72x1xf32>
    %508 = vector.broadcast %15 : vector<1x72xf32> to vector<72x72xf32>
    %509 = vector.broadcast %505 : vector<72x1xf32> to vector<72x72xf32>
    %510 = arith.subf %508, %509 : vector<72x72xf32>
    %511 = math.absf %510 : vector<72x72xf32>
    %cst_220 = arith.constant 1.000000e+00 : f32
    %512 = vector.broadcast %cst_220 : f32 to vector<72x72xf32>
    %513 = arith.subf %512, %511 : vector<72x72xf32>
    %cst_221 = arith.constant 0.000000e+00 : f32
    %514 = vector.broadcast %cst_221 : f32 to vector<72x72xf32>
    %515 = arith.maximumf %513, %514 : vector<72x72xf32>
    %516 = vector.broadcast %16 : vector<1x72xf32> to vector<72x72xf32>
    %517 = vector.broadcast %506 : vector<72x1xf32> to vector<72x72xf32>
    %518 = arith.subf %516, %517 : vector<72x72xf32>
    %519 = math.absf %518 : vector<72x72xf32>
    %cst_222 = arith.constant 1.000000e+00 : f32
    %520 = vector.broadcast %cst_222 : f32 to vector<72x72xf32>
    %521 = arith.subf %520, %519 : vector<72x72xf32>
    %cst_223 = arith.constant 0.000000e+00 : f32
    %522 = vector.broadcast %cst_223 : f32 to vector<72x72xf32>
    %523 = arith.maximumf %521, %522 : vector<72x72xf32>
    %524 = vector.broadcast %17 : vector<1x72xf32> to vector<72x72xf32>
    %525 = vector.broadcast %507 : vector<72x1xf32> to vector<72x72xf32>
    %526 = arith.subf %524, %525 : vector<72x72xf32>
    %527 = math.absf %526 : vector<72x72xf32>
    %cst_224 = arith.constant 1.000000e+00 : f32
    %528 = vector.broadcast %cst_224 : f32 to vector<72x72xf32>
    %529 = arith.subf %528, %527 : vector<72x72xf32>
    %cst_225 = arith.constant 0.000000e+00 : f32
    %530 = vector.broadcast %cst_225 : f32 to vector<72x72xf32>
    %531 = arith.maximumf %529, %530 : vector<72x72xf32>
    %c0_226 = arith.constant 0 : index
    %c7_227 = arith.constant 7 : index
    %532 = vector.load %arg8[%c0_226, %c7_227] : memref<72x16xf32, #tpu.memory_space<vmem>>, vector<72x1xf32>
    %533 = arith.mulf %515, %523 : vector<72x72xf32>
    %534 = arith.mulf %533, %531 : vector<72x72xf32>
    %535 = vector.broadcast %532 : vector<72x1xf32> to vector<72x72xf32>
    %536 = arith.mulf %535, %534 : vector<72x72xf32>
    %537 = arith.addf %504, %536 : vector<72x72xf32>
    %c0_228 = arith.constant 0 : index
    %c27 = arith.constant 27 : index
    %538 = vector.load %arg7[%c0_228, %c27] : memref<72x48xf32, #tpu.memory_space<vmem>>, vector<72x1xf32>
    %c0_229 = arith.constant 0 : index
    %c31 = arith.constant 31 : index
    %539 = vector.load %arg7[%c0_229, %c31] : memref<72x48xf32, #tpu.memory_space<vmem>>, vector<72x1xf32>
    %c0_230 = arith.constant 0 : index
    %c35 = arith.constant 35 : index
    %540 = vector.load %arg7[%c0_230, %c35] : memref<72x48xf32, #tpu.memory_space<vmem>>, vector<72x1xf32>
    %541 = vector.broadcast %18 : vector<1x72xf32> to vector<72x72xf32>
    %542 = vector.broadcast %538 : vector<72x1xf32> to vector<72x72xf32>
    %543 = arith.subf %541, %542 : vector<72x72xf32>
    %544 = math.absf %543 : vector<72x72xf32>
    %cst_231 = arith.constant 1.000000e+00 : f32
    %545 = vector.broadcast %cst_231 : f32 to vector<72x72xf32>
    %546 = arith.subf %545, %544 : vector<72x72xf32>
    %cst_232 = arith.constant 0.000000e+00 : f32
    %547 = vector.broadcast %cst_232 : f32 to vector<72x72xf32>
    %548 = arith.maximumf %546, %547 : vector<72x72xf32>
    %549 = vector.broadcast %19 : vector<1x72xf32> to vector<72x72xf32>
    %550 = vector.broadcast %539 : vector<72x1xf32> to vector<72x72xf32>
    %551 = arith.subf %549, %550 : vector<72x72xf32>
    %552 = math.absf %551 : vector<72x72xf32>
    %cst_233 = arith.constant 1.000000e+00 : f32
    %553 = vector.broadcast %cst_233 : f32 to vector<72x72xf32>
    %554 = arith.subf %553, %552 : vector<72x72xf32>
    %cst_234 = arith.constant 0.000000e+00 : f32
    %555 = vector.broadcast %cst_234 : f32 to vector<72x72xf32>
    %556 = arith.maximumf %554, %555 : vector<72x72xf32>
    %557 = vector.broadcast %20 : vector<1x72xf32> to vector<72x72xf32>
    %558 = vector.broadcast %540 : vector<72x1xf32> to vector<72x72xf32>
    %559 = arith.subf %557, %558 : vector<72x72xf32>
    %560 = math.absf %559 : vector<72x72xf32>
    %cst_235 = arith.constant 1.000000e+00 : f32
    %561 = vector.broadcast %cst_235 : f32 to vector<72x72xf32>
    %562 = arith.subf %561, %560 : vector<72x72xf32>
    %cst_236 = arith.constant 0.000000e+00 : f32
    %563 = vector.broadcast %cst_236 : f32 to vector<72x72xf32>
    %564 = arith.maximumf %562, %563 : vector<72x72xf32>
    %c0_237 = arith.constant 0 : index
    %c11_238 = arith.constant 11 : index
    %565 = vector.load %arg8[%c0_237, %c11_238] : memref<72x16xf32, #tpu.memory_space<vmem>>, vector<72x1xf32>
    %566 = arith.mulf %548, %556 : vector<72x72xf32>
    %567 = arith.mulf %566, %564 : vector<72x72xf32>
    %568 = vector.broadcast %565 : vector<72x1xf32> to vector<72x72xf32>
    %569 = arith.mulf %568, %567 : vector<72x72xf32>
    %570 = arith.addf %537, %569 : vector<72x72xf32>
    %c0_239 = arith.constant 0 : index
    %c39 = arith.constant 39 : index
    %571 = vector.load %arg7[%c0_239, %c39] : memref<72x48xf32, #tpu.memory_space<vmem>>, vector<72x1xf32>
    %c0_240 = arith.constant 0 : index
    %c43 = arith.constant 43 : index
    %572 = vector.load %arg7[%c0_240, %c43] : memref<72x48xf32, #tpu.memory_space<vmem>>, vector<72x1xf32>
    %c0_241 = arith.constant 0 : index
    %c47 = arith.constant 47 : index
    %573 = vector.load %arg7[%c0_241, %c47] : memref<72x48xf32, #tpu.memory_space<vmem>>, vector<72x1xf32>
    %574 = vector.broadcast %18 : vector<1x72xf32> to vector<72x72xf32>
    %575 = vector.broadcast %571 : vector<72x1xf32> to vector<72x72xf32>
    %576 = arith.subf %574, %575 : vector<72x72xf32>
    %577 = math.absf %576 : vector<72x72xf32>
    %cst_242 = arith.constant 1.000000e+00 : f32
    %578 = vector.broadcast %cst_242 : f32 to vector<72x72xf32>
    %579 = arith.subf %578, %577 : vector<72x72xf32>
    %cst_243 = arith.constant 0.000000e+00 : f32
    %580 = vector.broadcast %cst_243 : f32 to vector<72x72xf32>
    %581 = arith.maximumf %579, %580 : vector<72x72xf32>
    %582 = vector.broadcast %19 : vector<1x72xf32> to vector<72x72xf32>
    %583 = vector.broadcast %572 : vector<72x1xf32> to vector<72x72xf32>
    %584 = arith.subf %582, %583 : vector<72x72xf32>
    %585 = math.absf %584 : vector<72x72xf32>
    %cst_244 = arith.constant 1.000000e+00 : f32
    %586 = vector.broadcast %cst_244 : f32 to vector<72x72xf32>
    %587 = arith.subf %586, %585 : vector<72x72xf32>
    %cst_245 = arith.constant 0.000000e+00 : f32
    %588 = vector.broadcast %cst_245 : f32 to vector<72x72xf32>
    %589 = arith.maximumf %587, %588 : vector<72x72xf32>
    %590 = vector.broadcast %20 : vector<1x72xf32> to vector<72x72xf32>
    %591 = vector.broadcast %573 : vector<72x1xf32> to vector<72x72xf32>
    %592 = arith.subf %590, %591 : vector<72x72xf32>
    %593 = math.absf %592 : vector<72x72xf32>
    %cst_246 = arith.constant 1.000000e+00 : f32
    %594 = vector.broadcast %cst_246 : f32 to vector<72x72xf32>
    %595 = arith.subf %594, %593 : vector<72x72xf32>
    %cst_247 = arith.constant 0.000000e+00 : f32
    %596 = vector.broadcast %cst_247 : f32 to vector<72x72xf32>
    %597 = arith.maximumf %595, %596 : vector<72x72xf32>
    %c0_248 = arith.constant 0 : index
    %c15_249 = arith.constant 15 : index
    %598 = vector.load %arg8[%c0_248, %c15_249] : memref<72x16xf32, #tpu.memory_space<vmem>>, vector<72x1xf32>
    %599 = arith.mulf %581, %589 : vector<72x72xf32>
    %600 = arith.mulf %599, %597 : vector<72x72xf32>
    %601 = vector.broadcast %598 : vector<72x1xf32> to vector<72x72xf32>
    %602 = arith.mulf %601, %600 : vector<72x72xf32>
    %603 = arith.addf %570, %602 : vector<72x72xf32>
    %604 = vector.extract_strided_slice %48 {offsets = [0, 96], sizes = [72, 32], strides = [1, 1]} : vector<72x128xf32> to vector<72x32xf32>
    %605 = arith.truncf %604 : vector<72x32xf32> to vector<72x32xbf16>
    %c0_250 = arith.constant 0 : index
    %c0_251 = arith.constant 0 : index
    %606 = vector.load %arg6[%c0_250, %c0_251] : memref<72x32xf32, #tpu.memory_space<vmem>>, vector<72x32xf32>
    %607 = arith.truncf %603 : vector<72x72xf32> to vector<72x72xbf16>
    %cst_252 = arith.constant dense<0.000000e+00> : vector<72x32xf32>
    %608 = tpu.matmul %607, %605, %cst_252 {dimension_numbers = #tpu.dot_dimension_numbers<[1], [0], [0], [1], [0, 0, 1, 1], [], []>} : vector<72x72xbf16>, vector<72x32xbf16>, vector<72x32xf32> -> vector<72x32xf32>
    %609 = arith.addf %606, %608 : vector<72x32xf32>
    %c0_253 = arith.constant 0 : index
    %c0_254 = arith.constant 0 : index
    %610 = vector.load %arg6[%c0_253, %c0_254] : memref<72x32xf32, #tpu.memory_space<vmem>>, vector<72x32xf32>
    tpu.vector_store %arg6[%c0_253, %c0_254], %609 {strides = array<i32>} : memref<72x32xf32, #tpu.memory_space<vmem>>, vector<72x32xf32>,
    %c0_255 = arith.constant 0 : index
    %c0_256 = arith.constant 0 : index
    %611 = vector.load %arg6[%c0_255, %c0_256] : memref<72x32xf32, #tpu.memory_space<vmem>>, vector<72x32xf32>
    %612 = vector.broadcast %8 : vector<1x32xf32> to vector<72x32xf32>
    %613 = arith.addf %611, %612 : vector<72x32xf32>
    %614 = arith.addf %23, %613 : vector<72x32xf32>
    %cst_257 = arith.constant dense<0.000000e+00> : vector<72xf32>
    %615 = vector.multi_reduction <add>, %614, %cst_257 [1] : vector<72x32xf32> to vector<72xf32>
    %616 = vector.shape_cast %615 : vector<72xf32> to vector<72x1xf32>
    %cst_258 = arith.constant 3.200000e+01 : f32
    %617 = vector.broadcast %cst_258 : f32 to vector<72x1xf32>
    %618 = arith.divf %616, %617 : vector<72x1xf32>
    %619 = vector.broadcast %618 : vector<72x1xf32> to vector<72x32xf32>
    %620 = arith.subf %614, %619 : vector<72x32xf32>
    %621 = arith.mulf %620, %620 : vector<72x32xf32>
    %cst_259 = arith.constant dense<0.000000e+00> : vector<72xf32>
    %622 = vector.multi_reduction <add>, %621, %cst_259 [1] : vector<72x32xf32> to vector<72xf32>
    %623 = vector.shape_cast %622 : vector<72xf32> to vector<72x1xf32>
    %cst_260 = arith.constant 3.200000e+01 : f32
    %624 = vector.broadcast %cst_260 : f32 to vector<72x1xf32>
    %625 = arith.divf %623, %624 : vector<72x1xf32>
    %626 = vector.broadcast %618 : vector<72x1xf32> to vector<72x32xf32>
    %627 = arith.subf %614, %626 : vector<72x32xf32>
    %cst_261 = arith.constant 9.99999974E-6 : f32
    %628 = vector.broadcast %cst_261 : f32 to vector<72x1xf32>
    %629 = arith.addf %625, %628 : vector<72x1xf32>
    %630 = math.rsqrt %629 : vector<72x1xf32>
    %631 = vector.broadcast %630 : vector<72x1xf32> to vector<72x32xf32>
    %632 = arith.mulf %627, %631 : vector<72x32xf32>
    %633 = vector.broadcast %9 : vector<1x32xf32> to vector<72x32xf32>
    %634 = arith.mulf %632, %633 : vector<72x32xf32>
    %635 = vector.broadcast %10 : vector<1x32xf32> to vector<72x32xf32>
    %636 = arith.addf %634, %635 : vector<72x32xf32>
    %cst_262 = arith.constant dense<0.000000e+00> : vector<72x64xf32>
    %637 = tpu.matmul %636, %2, %cst_262 {dimension_numbers = #tpu.dot_dimension_numbers<[1], [0], [0], [1], [0, 0, 1, 1], [], []>} : vector<72x32xf32>, vector<32x64xf32>, vector<72x64xf32> -> vector<72x64xf32>
    %638 = vector.broadcast %11 : vector<1x64xf32> to vector<72x64xf32>
    %639 = arith.addf %637, %638 : vector<72x64xf32>
    %cst_263 = arith.constant 0.000000e+00 : f32
    %640 = vector.broadcast %cst_263 : f32 to vector<72x64xf32>
    %641 = arith.maximumf %639, %640 : vector<72x64xf32>
    %cst_264 = arith.constant dense<0.000000e+00> : vector<72x32xf32>
    %642 = tpu.matmul %641, %4, %cst_264 {dimension_numbers = #tpu.dot_dimension_numbers<[1], [0], [0], [1], [0, 0, 1, 1], [], []>} : vector<72x64xf32>, vector<64x32xf32>, vector<72x32xf32> -> vector<72x32xf32>
    %643 = vector.broadcast %12 : vector<1x32xf32> to vector<72x32xf32>
    %644 = arith.addf %642, %643 : vector<72x32xf32>
    %645 = arith.addf %636, %644 : vector<72x32xf32>
    %cst_265 = arith.constant dense<0.000000e+00> : vector<72xf32>
    %646 = vector.multi_reduction <add>, %645, %cst_265 [1] : vector<72x32xf32> to vector<72xf32>
    %647 = vector.shape_cast %646 : vector<72xf32> to vector<72x1xf32>
    %cst_266 = arith.constant 3.200000e+01 : f32
    %648 = vector.broadcast %cst_266 : f32 to vector<72x1xf32>
    %649 = arith.divf %647, %648 : vector<72x1xf32>
    %650 = vector.broadcast %649 : vector<72x1xf32> to vector<72x32xf32>
    %651 = arith.subf %645, %650 : vector<72x32xf32>
    %652 = arith.mulf %651, %651 : vector<72x32xf32>
    %cst_267 = arith.constant dense<0.000000e+00> : vector<72xf32>
    %653 = vector.multi_reduction <add>, %652, %cst_267 [1] : vector<72x32xf32> to vector<72xf32>
    %654 = vector.shape_cast %653 : vector<72xf32> to vector<72x1xf32>
    %cst_268 = arith.constant 3.200000e+01 : f32
    %655 = vector.broadcast %cst_268 : f32 to vector<72x1xf32>
    %656 = arith.divf %654, %655 : vector<72x1xf32>
    %657 = vector.broadcast %649 : vector<72x1xf32> to vector<72x32xf32>
    %658 = arith.subf %645, %657 : vector<72x32xf32>
    %cst_269 = arith.constant 9.99999974E-6 : f32
    %659 = vector.broadcast %cst_269 : f32 to vector<72x1xf32>
    %660 = arith.addf %656, %659 : vector<72x1xf32>
    %661 = math.rsqrt %660 : vector<72x1xf32>
    %662 = vector.broadcast %661 : vector<72x1xf32> to vector<72x32xf32>
    %663 = arith.mulf %658, %662 : vector<72x32xf32>
    %664 = vector.broadcast %13 : vector<1x32xf32> to vector<72x32xf32>
    %665 = arith.mulf %663, %664 : vector<72x32xf32>
    %666 = vector.broadcast %14 : vector<1x32xf32> to vector<72x32xf32>
    %667 = arith.addf %665, %666 : vector<72x32xf32>
    %c0_270 = arith.constant 0 : index
    %c0_271 = arith.constant 0 : index
    %c0_272 = arith.constant 0 : index
    %668 = vector.load %arg5[%c0_270, %c0_271, %c0_272] : memref<1x72x32xf32, #tpu.memory_space<vmem>>, vector<1x72x32xf32>
    %669 = vector.shape_cast %668 : vector<1x72x32xf32> to vector<72x32xf32>
    %670 = vector.shape_cast %667 : vector<72x32xf32> to vector<1x72x32xf32>
    tpu.vector_store %arg5[%c0_270, %c0_271, %c0_272], %670 {strides = array<i32>} : memref<1x72x32xf32, #tpu.memory_space<vmem>>, vector<1x72x32xf32>,
    return
  }
  func.func @transform_0(%arg0: i32) -> (i32, i32, i32) {
    %c0_i32 = arith.constant 0 : i32
    %c0_i32_0 = arith.constant 0 : i32
    %c0_i32_1 = arith.constant 0 : i32
    return %arg0, %c0_i32, %c0_i32_0 : i32, i32, i32
  }
  func.func @transform_1(%arg0: i32) -> (i32, i32) {
    %c0_i32 = arith.constant 0 : i32
    %c0_i32_0 = arith.constant 0 : i32
    %c0_i32_1 = arith.constant 0 : i32
    return %c0_i32, %c0_i32_0 : i32, i32
  }
  func.func @transform_2(%arg0: i32) -> (i32, i32) {
    %c0_i32 = arith.constant 0 : i32
    %c0_i32_0 = arith.constant 0 : i32
    %c0_i32_1 = arith.constant 0 : i32
    return %c0_i32, %c0_i32_0 : i32, i32
  }
  func.func @transform_3(%arg0: i32) -> (i32, i32) {
    %c0_i32 = arith.constant 0 : i32
    %c0_i32_0 = arith.constant 0 : i32
    %c0_i32_1 = arith.constant 0 : i32
    return %c0_i32, %c0_i32_0 : i32, i32
  }
  func.func @transform_4(%arg0: i32) -> (i32, i32, i32) {
    %c0_i32 = arith.constant 0 : i32
    %c0_i32_0 = arith.constant 0 : i32
    %c0_i32_1 = arith.constant 0 : i32
    return %arg0, %c0_i32, %c0_i32_0 : i32, i32, i32
  }
}

</mosaic_0001>

<bundles_post_ra>
// kernel: tpu_custom_call.1
= control target key start
LH: loop header
LB: loop body
LE: loop exit
PB: predicated region body
PF: predicated region fallthrough
CT: control target
= control target key end

     0   :  { %9 = vsyncpa [#allocation6], 0  ;;  %s13411_s0 = inlined_call_operand.hbm [shape: f32[2,72,112], index: 0, kind: input, shape index: {}]   ;;  %s13412_s1 = inlined_call_operand.vmem [shape: f32[32,288], index: 1, kind: input, shape index: {}]   ;;  %s13413_s2 = inlined_call_operand.vmem [shape: f32[64,32], index: 2, kind: input, shape index: {}]   ;;  %s13414_s3 = inlined_call_operand.hbm [shape: f32[32,128], index: 3, kind: input, shape index: {}]   ;;  %s13415_s4 = inlined_call_operand.vmem [shape: f32[2,72,32], index: 4, kind: output, shape index: {}]  }
   0x1   :  { %11 = vsyncpa [#allocation6 + $0x1], 0 }
   0x2   :  { %12 = vsyncpa [#allocation8], 0  ;;  %s8696_s15 = smov 0   ;;  %s8698_s16 = smov 0  }
   0x3   :  { %s8700_s17 = smov 0   ;;  %s8702_s18 = smov 0  }
   0x4 LB: > { %s8715_s19 = sadd.s32 4294967295, %s8610_s18   ;;  %p38_p0 = scmp.ne.s32.totalorder %s8602_s16, %s8598_s15  ;;  %s8610_s18 = sphi %s8702_s18, %s14659_s18   ;;  %s8606_s17 = sphi %s8700_s17, %s14658_s17   ;;  %s8602_s16 = sphi %s8698_s16, %s14657_s16   ;;  %s8598_s15 = sphi %s8696_s15, %s14656_s15  }
   0x5   : > { %p13416_p1 = scmp.eq.s32.totalorder %s8715_s19, 0  ;;  %p7252_p2 = scmp.ge.s32.totalorder %s8610_s18, 1 }
   0x6   : > { %p138_p3 = scmp.lt.s32.totalorder %s8610_s18, 3  ;;  %s8612_s22 = smov [#allocation7]  }
   0x7   : > { %p8723_p4 = por %p13416_p1, %p38_p0  ;;  %s156_s23 = sshll.u32 %s8612_s22, 4  ;;  %s157_s23 = int_to_ptr.vmem [resolvable:$true] %s156_s23 }
   0x8   : > { %p8727_p5 = pnand %p7252_p2, %p138_p3  ;;  %s8740_s25 = sadd.s32 1, %s8610_s18  }
   0x9   : > { %s13565_s20 = scalar_select %p8723_p4, 1, 0 }
   0xa   : > { %s13566_s21 = scalar_select %p8727_p5, 1, 0 }
   0xb   : > { %p7814_p6 = pneg %p8727_p5  ;;  %s25_s26 = sadd.s32 1, %s8606_s17 }
   0xc   : > { %s22_s27 = ssub.s32 %s8610_s18, %s8740_s25  ;;  %s8529_s28 = scalar_lea.vmem %s157_s23, 512 }
   0xd   : > { %p8735_p7 = pnand %p7814_p6, %p13416_p1  ;;  %p8530_p9 = scmp.ne.s32.totalorder %s157_s23, %s8529_s28 }
   0xe   : > { %p8537_p12 = scmp.lt.s32.totalorder %s157_s23, %s157_s23  ;;  %p8538_p13 = scmp.lt.s32.totalorder %s8529_s28, %s8529_s28 }
   0xf   : > { %p8520_p8 = pneg %p8735_p7 }
  0x10   : > { %p8539_p0 = por %p8538_p13, %p8537_p12 }
  0x11   : > { %p8532_p10 = pnand %p8530_p9, %p8520_p8 }
  0x13   : > { %p8533_p11 = pneg %p8532_p10 }
  0x15   : > { %p8540_p2 = pnand %p8539_p0, %p8533_p11 }
  0x17   : > { %8543 = shalt.err (!%p8540_p2)
}
  0x18   : > { %s8613_s29 = smov 128   ;;  %s8614_s30 = smov 8  }
  0x19   : > { %7817 = dma.hbm_to_vmem [thread:$0]  (!%p8735_p7), %s13414_s3, 512, %s157_s23, [#allocation8], %s8613_s29, %s8613_s29, %s8614_s30  }
  0x1a   : > { %p23_p3 = scmp.eq.s32.totalorder %s22_s27, 0  ;;  %p32_p6 = scmp.ne.s32.totalorder %s8606_s17, %s8602_s16 }
  0x1b   : > { %p33_p8 = scmp.eq.s32.totalorder %s8610_s18, 0  ;;  %p7823_p9 = scmp.lt.s32.totalorder %s8610_s18, 2 }
  0x1c   : > { %s8760_s7 = scalar_select %p23_p3, %s8606_s17, %s25_s26  }
  0x1d   : > { %p34_p10 = por %p33_p8, %p32_p6  ;;  %s170_s8 = sand.u32 1, %s8606_s17  }
  0x1e   : > { %s7804_s9 = smul.u32 72, %s170_s8  ;;  %s8775_s23 = scalar_lea.sflag [#allocation6], %s170_s8 }
  0x1f   : > { %s7805_s10 = smul.u32 1152, %s8610_s18  ;;  %p8764_p11 = pnand %p7823_p9, %p34_p10 }
  0x20   : > { %s174_s15 = scalar_lea.vmem [#allocation5], %s7804_s9  ;;  %s8549_s27 = scalar_lea.hbm %s13411_s0, 2304 }
  0x21   : > { %s8771_s14 = scalar_lea.hbm %s13411_s0, %s7805_s10  ;;  %s181_s22 = sshll.u32 %s174_s15, 4  ;;  %s8773_s22 = int_to_ptr.vmem [resolvable:$true] %s181_s22 }
  0x22   : > { %s8544_s18 = scalar_lea.hbm %s8771_s14, 1152  ;;  %p8546_p12 = pneg %p8764_p11 }
  0x23   : > { %p8545_p7 = scmp.ne.s32.totalorder %s8771_s14, %s8544_s18  ;;  %p8550_p2 = scmp.lt.s32.totalorder %s8771_s14, %s13411_s0 }
  0x24   : > { %p8551_p3 = scmp.lt.s32.totalorder %s8549_s27, %s8544_s18 }
  0x25   : > { %p8547_p13 = pnand %p8546_p12, %p8545_p7 }
  0x26   : > { %p8552_p6 = por %p8551_p3, %p8550_p2 }
  0x27   : > { %p8548_p0 = pneg %p8547_p13 }
  0x29   : > { %p8553_p8 = pnand %p8552_p6, %p8548_p0 }
  0x2b   : > { %8556 = shalt.err (!%p8553_p8)
}
  0x2c   : > { %s8557_s6 = scalar_lea.vmem %s8773_s22, 1152  ;;  %s8615_s8 = smov [#allocation5]  }
  0x2d   : > { %p8558_p9 = scmp.ne.s32.totalorder %s8773_s22, %s8557_s6  ;;  %s8562_s9 = sshll.u32 %s8615_s8, 4  ;;  %s8563_s9 = int_to_ptr.vmem [resolvable:$false] %s8562_s9 }
  0x2e   : > { %s8564_s10 = scalar_lea.vmem %s8563_s9, 2304  ;;  %p8565_p13 = scmp.lt.s32.totalorder %s8773_s22, %s8563_s9 }
  0x2f   : > { %p8560_p10 = pnand %p8558_p9, %p8546_p12  ;;  %p8566_p1 = scmp.lt.s32.totalorder %s8564_s10, %s8557_s6 }
  0x31   : > { %p8561_p7 = pneg %p8560_p10  ;;  %p8567_p4 = por %p8566_p1, %p8565_p13 }
  0x33   : > { %p8568_p5 = pnand %p8567_p4, %p8561_p7 }
  0x35   : > { %8571 = shalt.err (!%p8568_p5)
}
  0x36   : > { %7821 = dma.hbm_to_vmem [thread:$0]  (!%p8764_p11), %s8771_s14, 1152, %s8773_s22, %s8775_s23, %s8613_s29, %s8613_s29, %s8614_s30  }
  0x37   : > { %p13569_p12 = scmp.ne.s32.totalorder %s13566_s21, 0 }
  0x39   : > { %193 = sbr.rel (%p13569_p12) target bundleno = 4035 (0xfc3), region = 36 }
  0x3e   : > { %s195_s12 = sand.u32 1, %s8602_s16   ;;  %p13570_p1 = scmp.ne.s32.totalorder %s13565_s20, 0 }
  0x3f   : > { %s7806_s13 = smul.u32 72, %s195_s12  ;;  %s196_s15 = scalar_lea.sflag [#allocation6], %s195_s12 }
  0x41   : > { %s8802_s18 = scalar_lea.vmem [#allocation5], %s7806_s13 }
  0x42   : > { %8589 = dma.done.wait (%p13570_p1), %s196_s15, 1152  }
  0x43   : > { %8591 = vsyncadd (%p13570_p1), %s196_s15, 4294966144  ;;  %p13571_p4 = scmp.eq.s32.totalorder %s8715_s19, 0 }
  0x45   : > { %8593 = dma.done.wait (%p13571_p4), [#allocation8], 512   ;;  %p13572_p5 = pmov %p13571_p4 }
  0x46   : > { %v8813_v0 = vld [vmem:[%s8802_s18] sm:$0xff]  ;;  %v8816_v1 = vld [vmem:[%s8802_s18 + $0x10] sm:$0xff]  ;;  %s8616_s21 = smov 96   ;;  %v8823_v2 = vld [vmem:[%s8802_s18 + $0x8] sm:$0xff]  ;;  %v13419_v6 = vmov 0.0   ;;  %vm8618_vm0 = vmmov 0  }
  0x47   : > { %8595 = vsyncadd (%p13572_p5), [#allocation8], 4294966784  ;;  %289 = vrot.lane.b32.xlu0 %v8813_v0, %s8616_s21  ;;  %293 = vrot.lane.b32.xlu1 %v8816_v1, %s8616_s21  ;;  %v8826_v3 = vld [vmem:[%s8802_s18 + $0x18] sm:$0xff]  ;;  %v8833_v4 = vld [vmem:[%s8802_s18 + $0x20] sm:$0xff]  ;;  %vm329_vm1 = vcmask 261120   ;;  %vm1049_vm2 = vcmask 785408  }
  0x48   : > { %v8836_v5 = vld [vmem:[%s8802_s18 + $0x28] sm:$0xff]  ;;  %7505 = vmatprep.subr.mxu1 %v13419_v6  ;;  %7470 = vmatprep.subr.mxu0 %v13419_v6  ;;  %v8848_v8 = vld [vmem:[%s8802_s18 + $0x30] sm:$0xff]  ;;  %v8851_v9 = vld [vmem:[%s8802_s18 + $0x38] sm:$0xff]  ;;  %1195 = vst.msk [vmem:[#allocation2] sm:$0xff] %vm329_vm1, %v13419_v6  ;;  %s8619_s22 = smov 64   ;;  %vm615_vm3 = vcmask 523648  }
  0x49   : > { %v237_v7 = vld [vmem:[%s13412_s1 + $0x48] sm:$0xff]  ;;  %v236_v10 = vld [vmem:[%s13412_s1 + $0x30] sm:$0xff]  ;;  %v8862_v11 = vld [vmem:[%s8802_s18 + $0x40] sm:$0xff]  ;;  %7513 = vmatprep.mubr.msk.f32.mxu1 %vm8618_vm0, %v13419_v6  ;;  %1196 = vst.msk [vmem:[#allocation2 + $0x8] sm:$0xff] %vm329_vm1, %v13419_v6  ;;  %7478 = vmatprep.mubr.msk.f32.mxu0 %vm8618_vm0, %v13419_v6  ;;  %s8621_s23 = smov 80   ;;  %vm1015_vm4 = vcmask 392192  }
  0x4a   : > { %7471 = vmatpush3.msra.mxu0 %v237_v7  ;;  %v235_v12 = vld [vmem:[%s13412_s1 + $0x18] sm:$0xff]  ;;  %v234_v13 = vld [vmem:[%s13412_s1] sm:$0xff]  ;;  %1197 = vst.msk [vmem:[#allocation2 + $0x10] sm:$0xff] %vm329_vm1, %v13419_v6  ;;  %1198 = vst.msk [vmem:[#allocation2 + $0x18] sm:$0xff] %vm329_vm1, %v13419_v6  ;;  %vm697_vm5 = vcmask 130048   ;;  %vm2451_vm6 = vcmask 1043456  }
  0x4b   : > { %291 = vrot.lane.b32.xlu0 %v8823_v2, %s8616_s21  ;;  %295 = vrot.lane.b32.xlu1 %v8826_v3, %s8616_s21  ;;  %1199 = vst.msk [vmem:[#allocation2 + $0x20] sm:$0xff] %vm329_vm1, %v13419_v6  ;;  %1200 = vst.msk [vmem:[#allocation2 + $0x28] sm:$0xff] %vm329_vm1, %v13419_v6  ;;  %v242_v14 = vld [vmem:[%s13412_s1 + $0x10] sm:$0xff]  ;;  %v238_v15 = vld [vmem:[%s13412_s1 + $0x8] sm:$0xff]  ;;  %s8647_s24 = smov 48   ;;  %vm2435_vm7 = vcmask 588800  }
  0x4c   : > { %7472 = vmatprep.subr.mxu0 %v13419_v6  ;;  %1201 = vst.msk [vmem:[#allocation2 + $0x30] sm:$0xff] %vm329_vm1, %v13419_v6  ;;  %1202 = vst.msk [vmem:[#allocation2 + $0x38] sm:$0xff] %vm329_vm1, %v13419_v6  ;;  %v243_v16 = vld [vmem:[%s13412_s1 + $0x28] sm:$0xff]  ;;  %v239_v17 = vld [vmem:[%s13412_s1 + $0x20] sm:$0xff]  ;;  %vm6875_vm8 = vcmask 523264   ;;  %p228_p11 = scmp.lt.s32.totalorder %s8715_s19, 1 }
  0x4d   : > { %7473 = vmatpush3.msra.mxu0 %v236_v10  ;;  %1203 = vst.msk [vmem:[#allocation2 + $0x40] sm:$0xff] %vm329_vm1, %v13419_v6  ;;  %v244_v18 = vld [vmem:[%s13412_s1 + $0x40] sm:$0xff]  ;;  %v240_v19 = vld [vmem:[%s13412_s1 + $0x38] sm:$0xff]  ;;  %v241_v21 = vld [vmem:[%s13412_s1 + $0x50] sm:$0xff] }
  0x4e   : > { %7474 = vmatprep.subr.mxu0 %v13419_v6  ;;  %v245_v20 = vld [vmem:[%s13412_s1 + $0x58] sm:$0xff]  ;;  %v7269_v56 = vld [vmem:[#allocation7 + $0x7] ss:$0 sm:$0xff]  ;;  %s14661_s19 = smov (!%p228_p11, %s8715_s19), 1 }
  0x4f   : > { %297 = vrot.lane.b32.xlu0 %v8833_v4, %s8616_s21  ;;  %299 = vrot.lane.b32.xlu1 %v8836_v5, %s8616_s21  ;;  %s7807_s15 = smul.u32 72, %s14661_s19 }
  0x50   : > { %7475 = vmatpush3.msra.mxu0 %v235_v12 }
  0x51   : > { %7476 = vmatprep.subr.mxu0 %v13419_v6  ;;  %s13370_s30 = scalar_lea.vmem %s13415_s4, %s7807_s15 }
  0x52   : > { %7477 = vmatpush3.msra.mxu0 %v234_v13 }
  0x53   : > { %301 = vrot.lane.b32.xlu0 %v8848_v8, %s8616_s21  ;;  %303 = vrot.lane.b32.xlu1 %v8851_v9, %s8616_s21 }
  0x54   : > { %7540 = vmatprep.subr.mxu0 %v13419_v6  ;;  %7479 = vmatmul.mubr.msk.f32.vlgmr.msra.gmra.mxu0 %vm329_vm1, %v8813_v0 }
  0x55   : > { %7481 = vmatprep.mubr.msk.f32.mxu0 %vm8618_vm0, %v13419_v6 }
  0x57   : > { %305 = vrot.lane.b32.xlu0 %v8862_v11, %s8616_s21  ;;  %466 = vrot.lane.b32.xlu1 %v234_v13, %s8616_s21 }
  0x58   : > { %7482 = vmatmul.mubr.msk.f32.gmra.mxu0 %vm329_vm1, %v8823_v2 }
  0x59   : > { %7484 = vmatprep.mubr.msk.f32.mxu0 %vm8618_vm0, %v13419_v6 }
  0x5b   : > { %468 = vrot.lane.b32.xlu0 %v235_v12, %s8616_s21  ;;  %470 = vrot.lane.b32.xlu1 %v236_v10, %s8616_s21 }
  0x5c   : > { %7485 = vmatmul.mubr.msk.f32.gmra.mxu0 %vm329_vm1, %v8816_v1 }
  0x5d   : > { %7487 = vmatprep.mubr.msk.f32.mxu0 %vm8618_vm0, %v13419_v6 }
  0x5f   : > { %472 = vrot.lane.b32.xlu0 %v237_v7, %s8616_s21  ;;  %1033 = vrot.lane.b32.xlu1 %v238_v15, %s8616_s21 }
  0x60   : > { %7488 = vmatmul.mubr.msk.f32.gmra.mxu0 %vm329_vm1, %v8826_v3 }
  0x61   : > { %7490 = vmatprep.mubr.msk.f32.mxu0 %vm8618_vm0, %v13419_v6 }
  0x63   : > { %1035 = vrot.lane.b32.xlu0 %v242_v14, %s8616_s21  ;;  %1037 = vrot.lane.b32.xlu1 %v239_v17, %s8616_s21 }
  0x64   : > { %7491 = vmatmul.mubr.msk.f32.gmra.mxu0 %vm329_vm1, %v8833_v4 }
  0x65   : > { %7493 = vmatprep.mubr.msk.f32.mxu0 %vm8618_vm0, %v13419_v6 }
  0x67   : > { %1039 = vrot.lane.b32.xlu0 %v243_v16, %s8616_s21  ;;  %1041 = vrot.lane.b32.xlu1 %v240_v19, %s8616_s21 }
  0x68   : > { %7494 = vmatmul.mubr.msk.f32.gmra.mxu0 %vm329_vm1, %v8836_v5 }
  0x69   : > { %7496 = vmatprep.mubr.msk.f32.mxu0 %vm8618_vm0, %v13419_v6 }
  0x6b   : > { %1043 = vrot.lane.b32.xlu0 %v244_v18, %s8616_s21  ;;  %1045 = vrot.lane.b32.xlu1 %v241_v21, %s8616_s21 }
  0x6c   : > { %7497 = vmatmul.mubr.msk.f32.gmra.mxu0 %vm329_vm1, %v8848_v8 }
  0x6d   : > { %7499 = vmatprep.mubr.msk.f32.mxu0 %vm8618_vm0, %v13419_v6 }
  0x6f   : > { %1047 = vrot.lane.b32.xlu0 %v245_v20, %s8616_s21 }
  0x70   : > { %7500 = vmatmul.mubr.msk.f32.gmra.mxu0 %vm329_vm1, %v8851_v9 }
  0x71   : > { %7502 = vmatprep.mubr.msk.f32.mxu0 %vm8618_vm0, %v13419_v6 }
  0x74   : > { %7503 = vmatmul.mubr.msk.f32.gmra.mxu0 %vm329_vm1, %v8862_v11 }
  0x75   : > { %7544 = vmatprep.mubr.msk.f32.mxu0 %vm8618_vm0, %v13419_v6 }
  0xb9   : > { %v290_v22 = vpop.permute.xlu0 %289  ;;  %v294_v23 = vpop.permute.xlu1 %293 }
  0xba   : > { %v316_v35 = vadd.f32 %v290_v22, %v8813_v0  ;;  %v318_v37 = vadd.f32 %v294_v23, %v8816_v1 }
  0xbd   : > { %v292_v24 = vpop.permute.xlu0 %291  ;;  %v296_v25 = vpop.permute.xlu1 %295 }
  0xbe   : > { %v317_v36 = vadd.f32 %v292_v24, %v8823_v2  ;;  %v319_v38 = vadd.f32 %v296_v25, %v8826_v3 }
  0xc1   : > { %v298_v26 = vpop.permute.xlu0 %297  ;;  %v300_v27 = vpop.permute.xlu1 %299 }
  0xc2   : > { %v320_v39 = vadd.f32 %v298_v26, %v8833_v4  ;;  %v321_v40 = vadd.f32 %v300_v27, %v8836_v5 }
  0xc5   : > { %v302_v28 = vpop.permute.xlu0 %301  ;;  %v304_v29 = vpop.permute.xlu1 %303 }
  0xc6   : > { %v322_v41 = vadd.f32 %v302_v28, %v8848_v8  ;;  %v323_v42 = vadd.f32 %v304_v29, %v8851_v9 }
  0xc9   : > { %v306_v30 = vpop.permute.xlu0 %305  ;;  %v467_v31 = vpop.permute.xlu1 %466 }
  0xca   : > { %v324_v43 = vadd.f32 %v306_v30, %v8862_v11 }
  0xcd   : > { %v469_v32 = vpop.permute.xlu0 %468  ;;  %v471_v34 = vpop.permute.xlu1 %470 }
  0xd1   : > { %v473_v33 = vpop.permute.xlu0 %472  ;;  %v1034_v45 = vpop.permute.xlu1 %1033 }
  0xd2   : > { %7506 = vmatpush3.msra.mxu1 %v473_v33 }
  0xd3   : > { %7507 = vmatprep.subr.mxu1 %v13419_v6 }
  0xd4   : > { %7508 = vmatpush3.msra.mxu1 %v471_v34 }
  0xd5   : > { %7509 = vmatprep.subr.mxu1 %v13419_v6  ;;  %v1036_v44 = vpop.permute.xlu0 %1035  ;;  %v1038_v47 = vpop.permute.xlu1 %1037 }
  0xd6   : > { %7510 = vmatpush3.msra.mxu1 %v469_v32  ;;  %v1050_v55 = vsel %vm1049_vm2, %v1034_v45, %v1036_v44 }
  0xd7   : > { %7511 = vmatprep.subr.mxu1 %v13419_v6 }
  0xd8   : > { %7512 = vmatpush3.msra.mxu1 %v467_v31 }
  0xd9   : > { %7514 = vmatmul.mubr.msk.f32.vlgmr.msra.gmra.mxu1 %vm329_vm1, %v316_v35  ;;  %7571 = vmatprep.subr.mxu1 %v13419_v6  ;;  %v1040_v46 = vpop.permute.xlu0 %1039  ;;  %v1042_v49 = vpop.permute.xlu1 %1041 }
  0xda   : > { %7516 = vmatprep.mubr.msk.f32.mxu1 %vm8618_vm0, %v13419_v6  ;;  %v1051_v54 = vsel %vm1049_vm2, %v1038_v47, %v1040_v46 }
  0xdd   : > { %7517 = vmatmul.mubr.msk.f32.gmra.mxu1 %vm329_vm1, %v317_v36  ;;  %v1044_v48 = vpop.permute.xlu0 %1043  ;;  %v1046_v51 = vpop.permute.xlu1 %1045 }
  0xde   : > { %7519 = vmatprep.mubr.msk.f32.mxu1 %vm8618_vm0, %v13419_v6  ;;  %v1052_v52 = vsel %vm1049_vm2, %v1042_v49, %v1044_v48 }
  0xe1   : > { %7520 = vmatmul.mubr.msk.f32.gmra.mxu1 %vm329_vm1, %v318_v37  ;;  %v1048_v50 = vpop.permute.xlu0 %1047 }
  0xe2   : > { %7522 = vmatprep.mubr.msk.f32.mxu1 %vm8618_vm0, %v13419_v6  ;;  %v1053_v53 = vsel %vm1049_vm2, %v1046_v51, %v1048_v50  ;;  %v13437_v51 = vmov 0  }
  0xe3   : > { %7572 = vmatpush3.msra.mxu1 %v1053_v53  ;;  %7915 = vset.pattern.permute.xlu1 %v13437_v51 }
  0xe4   : > { %7573 = vmatprep.subr.mxu1 %v13419_v6  ;;  %7937 = vset.pattern.permute.xlu0 %v13437_v51 }
  0xe5   : > { %7523 = vmatmul.mubr.msk.f32.gmra.mxu1 %vm329_vm1, %v319_v38 }
  0xe6   : > { %7525 = vmatprep.mubr.msk.f32.mxu1 %vm8618_vm0, %v13419_v6  ;;  %7574 = vmatpush3.msra.mxu1 %v1052_v52 }
  0xe7   : > { %7575 = vmatprep.subr.mxu1 %v13419_v6 }
  0xe8   : > { %7576 = vmatpush3.msra.mxu1 %v1051_v54 }
  0xe9   : > { %7526 = vmatmul.mubr.msk.f32.gmra.mxu1 %vm329_vm1, %v320_v39  ;;  %7577 = vmatprep.subr.mxu1 %v13419_v6 }
  0xea   : > { %7528 = vmatprep.mubr.msk.f32.mxu1 %vm8618_vm0, %v13419_v6  ;;  %7578 = vmatpush3.msra.mxu1 %v1050_v55 }
  0xeb   : > { %7636 = vmatprep.subr.bf16.mxu1 %v13419_v6 }
  0xed   : > { %7529 = vmatmul.mubr.msk.f32.gmra.mxu1 %vm329_vm1, %v321_v40 }
  0xee   : > { %7531 = vmatprep.mubr.msk.f32.mxu1 %vm8618_vm0, %v13419_v6 }
  0xf1   : > { %7532 = vmatmul.mubr.msk.f32.gmra.mxu1 %vm329_vm1, %v322_v41 }
  0xf2   : > { %7534 = vmatprep.mubr.msk.f32.mxu1 %vm8618_vm0, %v13419_v6 }
  0xf5   : > { %7535 = vmatmul.mubr.msk.f32.gmra.mxu1 %vm329_vm1, %v323_v42 }
  0xf6   : > { %7537 = vmatprep.mubr.msk.f32.mxu1 %vm8618_vm0, %v13419_v6 }
  0xf9   : > { %7538 = vmatmul.mubr.msk.f32.gmra.mxu1 %vm329_vm1, %v324_v43 }
  0xfa   : > { %7579 = vmatprep.mubr.msk.f32.mxu1 %vm8618_vm0, %v13419_v6 }
 0x199   : > { %v571_v57 = vpop.f32.mrf.mxu1 }
 0x19a   : > { %v9013_v58 = vadd.f32 %v7269_v56, %v571_v57  ;;  %v254_v57 = vld [vmem:[#allocation7 + $0x10] sm:$0xff] }
 0x19b   : > { %v7515_v59 = vpop.f32.mrf.mxu1 }
 0x19c   : > { %943 = vrot.lane.b32.xlu1 %v9013_v58, %s8619_s22  ;;  %v616_v30 = vsel %vm615_vm3, %v9013_v58, -inf }
 0x19d   : > { %v576_v60 = vpop.f32.mrf.mxu1 }
 0x19e   : > { %v9017_v61 = vadd.f32 %v7269_v56, %v576_v60 }
 0x19f   : > { %v7518_v62 = vpop.f32.mrf.mxu1 }
 0x1a0   : > { %945 = vrot.lane.b32.xlu0 %v9017_v61, %s8619_s22  ;;  %v619_v29 = vsel %vm615_vm3, %v9017_v61, -inf }
 0x1a1   : > { %v581_v63 = vpop.f32.mrf.mxu1 }
 0x1a2   : > { %v582_v28 = vadd.f32 %v7269_v56, %v581_v63 }
 0x1a3   : > { %v7521_v7 = vpop.f32.mrf.mxu1 }
 0x1a4   : > { %v622_v31 = vsel %vm615_vm3, %v582_v28, -inf }
 0x1a5   : > { %v586_v10 = vpop.f32.mrf.mxu1 }
 0x1a6   : > { %v587_v32 = vadd.f32 %v7269_v56, %v586_v10 }
 0x1a7   : > { %v7524_v12 = vpop.f32.mrf.mxu1 }
 0x1a8   : > { %v625_v33 = vsel %vm615_vm3, %v587_v32, -inf }
 0x1a9   : > { %v591_v13 = vpop.f32.mrf.mxu1 }
 0x1aa   : > { %v9021_v14 = vadd.f32 %v7269_v56, %v591_v13 }
 0x1ab   : > { %v7527_v15 = vpop.f32.mrf.mxu1 }
 0x1ac   : > { %v628_v34 = vsel %vm615_vm3, %v9021_v14, -inf }
 0x1ad   : > { %v596_v16 = vpop.f32.mrf.mxu1 }
 0x1ae   : > { %v9023_v17 = vadd.f32 %v7269_v56, %v596_v16 }
 0x1af   : > { %v7530_v18 = vpop.f32.mrf.mxu1 }
 0x1b0   : > { %v631_v35 = vsel %vm615_vm3, %v9023_v17, -inf }
 0x1b1   : > { %v601_v19 = vpop.f32.mrf.mxu1 }
 0x1b2   : > { %v9025_v20 = vadd.f32 %v7269_v56, %v601_v19 }
 0x1b3   : > { %v7533_v21 = vpop.f32.mrf.mxu1 }
 0x1b4   : > { %v634_v36 = vsel %vm615_vm3, %v9025_v20, -inf }
 0x1b5   : > { %v606_v22 = vpop.f32.mrf.mxu1 }
 0x1b6   : > { %v9027_v23 = vadd.f32 %v7269_v56, %v606_v22 }
 0x1b7   : > { %v7536_v24 = vpop.f32.mrf.mxu1 }
 0x1b8   : > { %v637_v37 = vsel %vm615_vm3, %v9027_v23, -inf }
 0x1b9   : > { %v611_v25 = vpop.f32.mrf.mxu1 }
 0x1ba   : > { %v9029_v26 = vadd.f32 %v7269_v56, %v611_v25  ;;  %v255_v56 = vld [vmem:[#allocation7 + $0x18] sm:$0xff] }
 0x1bb   : > { %v7539_v27 = vpop.f32.mrf.mxu1  ;;  %7541 = vmatpush3.msra.mxu0 %v255_v56  ;;  %v13429_v56 = vmov 17  }
 0x1bc   : > { %v640_v38 = vsel %vm615_vm3, %v9029_v26, -inf  ;;  %7542 = vmatprep.subr.mxu0 %v13419_v6 }
 0x1bd   : > { %7543 = vmatpush3.msra.mxu0 %v254_v57  ;;  %v414_v57 = vpop.f32.mrf.mxu0 }
 0x1be   : > { %7606 = vmatprep.subr.bf16.mxu0 %v13419_v6 }
 0x1bf   : > { %620 = vmax.xlane.f32.xlu0 %v619_v29 }
 0x1c0   : > { %617 = vmax.xlane.f32.xlu1 %v616_v30 }
 0x1c3   : > { %623 = vmax.xlane.f32.xlu0 %v622_v31 }
 0x1d1   : > { %947 = vrot.lane.b32.xlu1 %v582_v28, %s8619_s22 }
 0x1d9   : > { %949 = vrot.lane.b32.xlu0 %v587_v32, %s8619_s22 }
 0x1f5   : > { %626 = vmax.xlane.f32.xlu1 %v625_v33 }
 0x1f8   : > { %629 = vmax.xlane.f32.xlu0 %v628_v34 }
 0x206   : > { %951 = vrot.lane.b32.xlu1 %v9021_v14, %s8619_s22 }
 0x20e   : > { %953 = vrot.lane.b32.xlu0 %v9023_v17, %s8619_s22  ;;  %v944_v41 = vpop.permute.xlu1 %943 }
 0x20f   : > { %v970_v46 = vadd.f32 %v944_v41, %v8813_v0  ;;  %v13441_v41 = vmov 4  }
 0x212   : > { %v946_v39 = vpop.permute.xlu0 %945 }
 0x213   : > { %v971_v44 = vadd.f32 %v946_v39, %v8823_v2 }
 0x22a   : > { %632 = vmax.xlane.f32.xlu1 %v631_v35 }
 0x22d   : > { %635 = vmax.xlane.f32.xlu0 %v634_v36 }
 0x23b   : > { %955 = vrot.lane.b32.xlu1 %v9025_v20, %s8619_s22 }
 0x243   : > { %957 = vrot.lane.b32.xlu0 %v9027_v23, %s8619_s22 }
 0x248   : > { %v621_v40 = vpop.xlane.xlu0 %620 }
 0x249   : > { %v618_v43 = vpop.xlane.xlu1 %617 }
 0x24c   : > { %v624_v42 = vpop.xlane.xlu0 %623 }
 0x24d   : > { %v948_v48 = vpop.permute.xlu1 %947  ;;  %v645_v55 = vsub.f32 %v582_v28, %v624_v42  ;;  %v13443_v42 = vmov 8  }
 0x24e   : > { %v972_v49 = vadd.f32 %v948_v48, %v8816_v1  ;;  %v643_v1 = vsub.f32 %v9013_v58, %v618_v43  ;;  %v13447_v43 = vmov 12   ;;  %v13463_v48 = vmov 32  }
 0x24f   : > { %v656_v59 = vmul.f32 1.442695, %v645_v55  ;;  %v13431_v55 = vmov 13  }
 0x250   : > { %v950_v45 = vpop.permute.xlu0 %949  ;;  %v652_v54 = vmul.f32 1.442695, %v643_v1  ;;  %v13439_v1 = vmov 5  }
 0x251   : > { %v973_v47 = vadd.f32 %v950_v45, %v8826_v3  ;;  %v13457_v45 = vmov 20  }
 0x252   : > { %8349 = vpow2.f32 %v652_v54  ;;  %v13435_v54 = vmov 9  }
 0x253   : > { %8351 = vpow2.f32 %v656_v59  ;;  %v13425_v59 = vmov 21  }
 0x25f   : > { %638 = vmax.xlane.f32.xlu1 %v637_v37  ;;  %v9081_v15 = vpop.eup %8349 }
 0x260   : > { %v9085_v16 = vpop.eup %8351 }
 0x262   : > { %641 = vmax.xlane.f32.xlu0 %v640_v38 }
 0x270   : > { %959 = vrot.lane.b32.xlu1 %v9029_v26, %s8619_s22 }
 0x274   : > { %990 = vrot.lane.b32.xlu1 %v971_v44, %s8619_s22  ;;  %v13453_v44 = vmov 16  }
 0x278   : > { %994 = vrot.lane.b32.xlu1 %v973_v47, %s8619_s22  ;;  %988 = vrot.lane.b32.xlu0 %v970_v46, %s8619_s22  ;;  %v13459_v46 = vmov 24   ;;  %v13461_v47 = vmov 28  }
 0x27c   : > { %992 = vrot.lane.b32.xlu0 %v972_v49, %s8619_s22  ;;  %v13455_v49 = vmov 36  }
 0x27e   : > { %v627_v50 = vpop.xlane.xlu1 %626 }
 0x27f   : > { %v646_v60 = vsub.f32 %v587_v32, %v627_v50 }
 0x281   : > { %v630_v2 = vpop.xlane.xlu0 %629 }
 0x282   : > { %v952_v52 = vpop.permute.xlu1 %951  ;;  %v647_v19 = vsub.f32 %v9021_v14, %v630_v2 }
 0x283   : > { %v974_v0 = vadd.f32 %v952_v52, %v8833_v4  ;;  %v13451_v52 = vmov 40  }
 0x284   : > { %v660_v22 = vmul.f32 1.442695, %v647_v19 }
 0x285   : > { %v954_v3 = vpop.permute.xlu0 %953  ;;  %996 = vrot.lane.b32.xlu0 %v974_v0, %s8619_s22 }
 0x286   : > { %v975_v53 = vadd.f32 %v954_v3, %v8836_v5  ;;  %v658_v5 = vmul.f32 1.442695, %v646_v60  ;;  %v13449_v3 = vmov 44   ;;  %v7480_v60 = vpop.f32.mrf.mxu0 }
 0x288   : > { %998 = vrot.lane.b32.xlu1 %v975_v53, %s8619_s22  ;;  %8353 = vpow2.f32 %v658_v5  ;;  %v13445_v53 = vmov 1  }
 0x2b3   : > { %v633_v4 = vpop.xlane.xlu1 %632 }
 0x2b4   : > { %v648_v63 = vsub.f32 %v9023_v17, %v633_v4  ;;  %v644_v17 = vsub.f32 %v9017_v61, %v621_v40  ;;  %v419_v4 = vpop.f32.mrf.mxu0 }
 0x2b6   : > { %v636_v62 = vpop.xlane.xlu0 %635  ;;  %v662_v12 = vmul.f32 1.442695, %v648_v63  ;;  %v654_v18 = vmul.f32 1.442695, %v644_v17  ;;  %v7483_v5 = vpop.f32.mrf.mxu0  ;;  %v13421_v63 = vmov 25  }
 0x2b7   : > { %v956_v58 = vpop.permute.xlu1 %955  ;;  %v649_v21 = vsub.f32 %v9025_v20, %v636_v62  ;;  %v9208_v62 = vld [vmem:[#allocation7 + $0x6] ss:$0 sm:$0xff] }
 0x2b8   : > { %v976_v7 = vadd.f32 %v956_v58, %v8848_v8  ;;  %8355 = vpow2.f32 %v662_v12  ;;  %v9089_v8 = vpop.eup %8353  ;;  %v415_v58 = vadd.f32 %v9208_v62, %v414_v57 }
 0x2b9   : > { %8357 = vpow2.f32 %v654_v18  ;;  %v664_v24 = vmul.f32 1.442695, %v649_v21 }
 0x2ba   : > { %v958_v10 = vpop.permute.xlu0 %957  ;;  %1000 = vrot.lane.b32.xlu0 %v976_v7, %s8619_s22  ;;  %8359 = vpow2.f32 %v660_v22  ;;  %v424_v7 = vpop.f32.mrf.mxu0  ;;  %7580 = vmatmul.mubr.msk.f32.vlgmr.msra.gmra.mxu1 %vm329_vm1, %v415_v58 }
 0x2bb   : > { %v977_v13 = vadd.f32 %v958_v10, %v8851_v9  ;;  %8361 = vpow2.f32 %v664_v24  ;;  %v420_v10 = vadd.f32 %v9208_v62, %v419_v4  ;;  %7582 = vmatprep.mubr.msk.f32.mxu1 %vm8618_vm0, %v13419_v6  ;;  %v425_v18 = vadd.f32 %v9208_v62, %v424_v7 }
 0x2bc   : > { %v7486_v12 = vpop.f32.mrf.mxu0  ;;  %v13427_v24 = vmov 33  }
 0x2bd   : > { %1002 = vrot.lane.b32.xlu1 %v977_v13, %s8619_s22  ;;  %v13423_v13 = vmov 29  }
 0x2be   : > { %v429_v17 = vpop.f32.mrf.mxu0  ;;  %7583 = vmatmul.mubr.msk.f32.gmra.mxu1 %vm329_vm1, %v420_v10 }
 0x2bf   : > { %7585 = vmatprep.mubr.msk.f32.mxu1 %vm8618_vm0, %v13419_v6 }
 0x2c0   : > { %v7489_v19 = vpop.f32.mrf.mxu0 }
 0x2c1   : > { %679 = vrot.lane.b32.xlu1 %v9081_v15, %s8621_s23 }
 0x2c2   : > { %v434_v22 = vpop.f32.mrf.mxu0  ;;  %7586 = vmatmul.mubr.msk.f32.gmra.mxu1 %vm329_vm1, %v425_v18 }
 0x2c3   : > { %7588 = vmatprep.mubr.msk.f32.mxu1 %vm8618_vm0, %v13419_v6 }
 0x2c5   : > { %683 = vrot.lane.b32.xlu1 %v9085_v16, %s8621_s23  ;;  %v9093_v9 = vpop.eup %8355 }
 0x2c9   : > { %685 = vrot.lane.b32.xlu1 %v9089_v8, %s8621_s23 }
 0x2cd   : > { %689 = vrot.lane.b32.xlu1 %v9093_v9, %s8621_s23 }
 0x2e8   : > { %v639_v25 = vpop.xlane.xlu1 %638 }
 0x2e9   : > { %v650_v27 = vsub.f32 %v9027_v23, %v639_v25  ;;  %v9106_v23 = vpop.eup %8357  ;;  %v7492_v25 = vpop.f32.mrf.mxu0 }
 0x2eb   : > { %v666_v28 = vmul.f32 1.442695, %v650_v27  ;;  %v642_v29 = vpop.xlane.xlu0 %641 }
 0x2ec   : > { %v651_v30 = vsub.f32 %v9029_v26, %v642_v29  ;;  %v960_v31 = vpop.permute.xlu1 %959  ;;  %v9112_v26 = vpop.eup %8359 }
 0x2ed   : > { %8363 = vpow2.f32 %v666_v28  ;;  %v978_v61 = vadd.f32 %v960_v31, %v8862_v11  ;;  %v9117_v35 = vpop.eup %8361  ;;  %v430_v28 = vadd.f32 %v9208_v62, %v429_v17  ;;  %v439_v29 = vpop.f32.mrf.mxu0  ;;  %v13433_v31 = vmov 37  }
 0x2ee   : > { %v668_v14 = vmul.f32 1.442695, %v651_v30 }
 0x2ef   : > { %v989_v32 = vpop.permute.xlu0 %988  ;;  %1004 = vrot.lane.b32.xlu0 %v978_v61, %s8619_s22  ;;  %v7495_v61 = vpop.f32.mrf.mxu0  ;;  %7589 = vmatmul.mubr.msk.f32.gmra.mxu1 %vm329_vm1, %v430_v28 }
 0x2f0   : > { %8365 = vpow2.f32 %v668_v14  ;;  %1016 = vst.msk [vmem:[#allocation3] sm:$0xff] %vm1015_vm4, %v989_v32  ;;  %v991_v20 = vpop.permute.xlu1 %990  ;;  %v435_v14 = vadd.f32 %v9208_v62, %v434_v22  ;;  %7591 = vmatprep.mubr.msk.f32.mxu1 %vm8618_vm0, %v13419_v6 }
 0x2f1   : > { %1017 = vst.msk [vmem:[#allocation3 + $0x8] sm:$0xff] %vm1015_vm4, %v991_v20  ;;  %v444_v32 = vpop.f32.mrf.mxu0 }
 0x2f2   : > { %v445_v57 = vadd.f32 %v9208_v62, %v444_v32 }
 0x2f3   : > { %v993_v33 = vpop.permute.xlu0 %992  ;;  %681 = vrot.lane.b32.xlu0 %v9106_v23, %s8621_s23  ;;  %v7498_v20 = vpop.f32.mrf.mxu0  ;;  %7592 = vmatmul.mubr.msk.f32.gmra.mxu1 %vm329_vm1, %v435_v14 }
 0x2f4   : > { %1018 = vst.msk [vmem:[#allocation3 + $0x10] sm:$0xff] %vm1015_vm4, %v993_v33  ;;  %v995_v11 = vpop.permute.xlu1 %994  ;;  %7594 = vmatprep.mubr.msk.f32.mxu1 %vm8618_vm0, %v13419_v6 }
 0x2f5   : > { %1019 = vst.msk [vmem:[#allocation3 + $0x18] sm:$0xff] %vm1015_vm4, %v995_v11 }
 0x2f7   : > { %v997_v34 = vpop.permute.xlu0 %996  ;;  %687 = vrot.lane.b32.xlu0 %v9112_v26, %s8621_s23  ;;  %v9128_v39 = vld [vmem:[#allocation3] sm:$0xff] }
 0x2f8   : > { %1020 = vst.msk [vmem:[#allocation3 + $0x20] sm:$0xff] %vm1015_vm4, %v997_v34  ;;  %v9133_v40 = vld [vmem:[#allocation3 + $0x8] sm:$0xff]  ;;  %v449_v34 = vpop.f32.mrf.mxu0 }
 0x2f9   : > { %v450_v5 = vadd.f32 %v9208_v62, %v449_v34 }
 0x2fa   : > { %v9119_v36 = vpop.eup %8363  ;;  %v999_v37 = vpop.permute.xlu1 %998 }
 0x2fb   : > { %1021 = vst.msk [vmem:[#allocation3 + $0x28] sm:$0xff] %vm1015_vm4, %v999_v37  ;;  %693 = vrot.lane.b32.xlu1 %v9119_v36, %s8621_s23  ;;  %691 = vrot.lane.b32.xlu0 %v9117_v35, %s8621_s23  ;;  %v9250_v33 = vld [vmem:[#allocation3 + $0x10] sm:$0xff]  ;;  %v440_v37 = vadd.f32 %v9208_v62, %v439_v29 }
 0x2fd   : > { %v9126_v38 = vpop.eup %8365  ;;  %7595 = vmatmul.mubr.msk.f32.gmra.mxu1 %vm329_vm1, %v440_v37 }
 0x2fe   : > { %7597 = vmatprep.mubr.msk.f32.mxu1 %vm8618_vm0, %v13419_v6 }
 0x2ff   : > { %1219 = vperm.xlu1 %7915, %v9128_v39   ;;  %695 = vrot.lane.b32.xlu0 %v9126_v38, %s8621_s23 }
 0x301   : > { %7598 = vmatmul.mubr.msk.f32.gmra.mxu1 %vm329_vm1, %v445_v57 }
 0x302   : > { %7600 = vmatprep.mubr.msk.f32.mxu1 %vm8618_vm0, %v13419_v6 }
 0x303   : > { %7916 = vset.pattern.permute.xlu1 %v13441_v41  ;;  %1224 = vperm.xlu0 %7937, %v9133_v40  }
 0x304   : > { %1303 = vperm.xlu1 %7916, %v9128_v39  }
 0x305   : > { %7601 = vmatmul.mubr.msk.f32.gmra.mxu1 %vm329_vm1, %v450_v5 }
 0x306   : > { %7603 = vmatprep.mubr.msk.f32.mxu1 %vm8618_vm0, %v13419_v6 }
 0x307   : > { %7938 = vset.pattern.permute.xlu0 %v13441_v41 }
 0x308   : > { %7917 = vset.pattern.permute.xlu1 %v13443_v42  ;;  %1307 = vperm.xlu0 %7938, %v9133_v40  }
 0x309   : > { %1379 = vperm.xlu1 %7917, %v9128_v39  }
 0x30c   : > { %7939 = vset.pattern.permute.xlu0 %v13443_v42 }
 0x30d   : > { %7918 = vset.pattern.permute.xlu1 %v13447_v43  ;;  %1383 = vperm.xlu0 %7939, %v9133_v40  }
 0x30e   : > { %1541 = vperm.xlu1 %7918, %v9128_v39  }
 0x311   : > { %7940 = vset.pattern.permute.xlu0 %v13447_v43 }
 0x312   : > { %7919 = vset.pattern.permute.xlu1 %v13453_v44  ;;  %1545 = vperm.xlu0 %7940, %v9133_v40  }
 0x313   : > { %1613 = vperm.xlu1 %7919, %v9128_v39  }
 0x316   : > { %7941 = vset.pattern.permute.xlu0 %v13453_v44 }
 0x317   : > { %7920 = vset.pattern.permute.xlu1 %v13457_v45  ;;  %1617 = vperm.xlu0 %7941, %v9133_v40  }
 0x318   : > { %1685 = vperm.xlu1 %7920, %v9128_v39  }
 0x31b   : > { %7942 = vset.pattern.permute.xlu0 %v13457_v45 }
 0x31c   : > { %7921 = vset.pattern.permute.xlu1 %v13459_v46  ;;  %1689 = vperm.xlu0 %7942, %v9133_v40  }
 0x31d   : > { %1833 = vperm.xlu1 %7921, %v9128_v39  }
 0x320   : > { %7943 = vset.pattern.permute.xlu0 %v13459_v46 }
 0x321   : > { %7922 = vset.pattern.permute.xlu1 %v13461_v47  ;;  %1837 = vperm.xlu0 %7943, %v9133_v40  }
 0x322   : > { %1909 = vperm.xlu1 %7922, %v9128_v39  }
 0x325   : > { %7944 = vset.pattern.permute.xlu0 %v13461_v47 }
 0x326   : > { %7923 = vset.pattern.permute.xlu1 %v13463_v48  ;;  %1913 = vperm.xlu0 %7944, %v9133_v40  }
 0x327   : > { %1985 = vperm.xlu1 %7923, %v9128_v39  }
 0x32a   : > { %7945 = vset.pattern.permute.xlu0 %v13463_v48 }
 0x32b   : > { %7924 = vset.pattern.permute.xlu1 %v13455_v49  ;;  %1989 = vperm.xlu0 %7945, %v9133_v40  }
 0x32c   : > { %v1001_v50 = vpop.permute.xlu0 %1000  ;;  %2129 = vperm.xlu1 %7924, %v9128_v39  }
 0x32d   : > { %1022 = vst.msk [vmem:[#allocation3 + $0x30] sm:$0xff] %vm1015_vm4, %v1001_v50 }
 0x32f   : > { %7946 = vset.pattern.permute.xlu0 %v13455_v49  ;;  %v1003_v2 = vpop.permute.xlu1 %1002 }
 0x330   : > { %1023 = vst.msk [vmem:[#allocation3 + $0x38] sm:$0xff] %vm1015_vm4, %v1003_v2  ;;  %7925 = vset.pattern.permute.xlu1 %v13451_v52  ;;  %2133 = vperm.xlu0 %7946, %v9133_v40  }
 0x331   : > { %2201 = vperm.xlu1 %7925, %v9128_v39  }
 0x333   : > { %v680_v0 = vpop.permute.xlu1 %679 }
 0x334   : > { %7947 = vset.pattern.permute.xlu0 %v13451_v52  ;;  %7545 = vmatmul.mubr.msk.f32.vlgmr.msra.gmra.mxu0 %vm697_vm5, %v680_v0 }
 0x335   : > { %7926 = vset.pattern.permute.xlu1 %v13449_v3  ;;  %2205 = vperm.xlu0 %7947, %v9133_v40  }
 0x336   : > { %2273 = vperm.xlu1 %7926, %v9128_v39   ;;  %7547 = vmatprep.mubr.msk.f32.mxu0 %vm8618_vm0, %v13419_v6 }
 0x337   : > { %v684_v30 = vpop.permute.xlu1 %683 }
 0x339   : > { %7948 = vset.pattern.permute.xlu0 %v13449_v3 }
 0x33a   : > { %7927 = vset.pattern.permute.xlu1 %v13445_v53  ;;  %2277 = vperm.xlu0 %7948, %v9133_v40  }
 0x33b   : > { %2556 = vperm.xlu1 %7927, %v9128_v39   ;;  %v686_v11 = vpop.permute.xlu1 %685 }
 0x33e   : > { %7949 = vset.pattern.permute.xlu0 %v13445_v53 }
 0x33f   : > { %7928 = vset.pattern.permute.xlu1 %v13439_v1  ;;  %2561 = vperm.xlu0 %7949, %v9133_v40   ;;  %v690_v2 = vpop.permute.xlu1 %689 }
 0x340   : > { %2636 = vperm.xlu1 %7928, %v9128_v39  }
 0x343   : > { %7950 = vset.pattern.permute.xlu0 %v13439_v1 }
 0x344   : > { %7929 = vset.pattern.permute.xlu1 %v13435_v54  ;;  %2640 = vperm.xlu0 %7950, %v9133_v40  }
 0x345   : > { %2708 = vperm.xlu1 %7929, %v9128_v39  }
 0x348   : > { %7951 = vset.pattern.permute.xlu0 %v13435_v54 }
 0x349   : > { %7930 = vset.pattern.permute.xlu1 %v13431_v55  ;;  %2712 = vperm.xlu0 %7951, %v9133_v40  }
 0x34a   : > { %2870 = vperm.xlu1 %7930, %v9128_v39  }
 0x34d   : > { %7952 = vset.pattern.permute.xlu0 %v13431_v55 }
 0x34e   : > { %7931 = vset.pattern.permute.xlu1 %v13429_v56  ;;  %2874 = vperm.xlu0 %7952, %v9133_v40  }
 0x34f   : > { %2942 = vperm.xlu1 %7931, %v9128_v39  }
 0x352   : > { %7953 = vset.pattern.permute.xlu0 %v13429_v56 }
 0x353   : > { %7932 = vset.pattern.permute.xlu1 %v13425_v59  ;;  %2946 = vperm.xlu0 %7953, %v9133_v40  }
 0x354   : > { %3014 = vperm.xlu1 %7932, %v9128_v39  }
 0x357   : > { %7954 = vset.pattern.permute.xlu0 %v13425_v59 }
 0x358   : > { %7933 = vset.pattern.permute.xlu1 %v13421_v63  ;;  %3018 = vperm.xlu0 %7954, %v9133_v40  }
 0x359   : > { %3158 = vperm.xlu1 %7933, %v9128_v39  }
 0x35c   : > { %7955 = vset.pattern.permute.xlu0 %v13421_v63 }
 0x35d   : > { %7934 = vset.pattern.permute.xlu1 %v13423_v13  ;;  %3162 = vperm.xlu0 %7955, %v9133_v40  }
 0x35e   : > { %3230 = vperm.xlu1 %7934, %v9128_v39  }
 0x361   : > { %v1005_v21 = vpop.permute.xlu0 %1004  ;;  %7956 = vset.pattern.permute.xlu0 %v13423_v13 }
 0x362   : > { %1024 = vst.msk [vmem:[#allocation3 + $0x40] sm:$0xff] %vm1015_vm4, %v1005_v21  ;;  %7935 = vset.pattern.permute.xlu1 %v13427_v24  ;;  %3234 = vperm.xlu0 %7956, %v9133_v40  }
 0x363   : > { %3302 = vperm.xlu1 %7935, %v9128_v39  }
 0x365   : > { %v682_v27 = vpop.permute.xlu0 %681 }
 0x366   : > { %7957 = vset.pattern.permute.xlu0 %v13427_v24  ;;  %7548 = vmatmul.mubr.msk.f32.gmra.mxu0 %vm697_vm5, %v682_v27 }
 0x367   : > { %7936 = vset.pattern.permute.xlu1 %v13433_v31  ;;  %3306 = vperm.xlu0 %7957, %v9133_v40  }
 0x368   : > { %3446 = vperm.xlu1 %7936, %v9128_v39   ;;  %7550 = vmatprep.mubr.msk.f32.mxu0 %vm8618_vm0, %v13419_v6  ;;  %v9262_v39 = vld [vmem:[#allocation3 + $0x20] sm:$0xff] }
 0x369   : > { %v688_v50 = vpop.permute.xlu0 %687 }
 0x36a   : > { %7551 = vmatmul.mubr.msk.f32.gmra.mxu0 %vm697_vm5, %v684_v30 }
 0x36b   : > { %7958 = vset.pattern.permute.xlu0 %v13433_v31  ;;  %7553 = vmatprep.mubr.msk.f32.mxu0 %vm8618_vm0, %v13419_v6 }
 0x36c   : > { %7959 = vset.pattern.permute.xlu1 %v13437_v51  ;;  %3450 = vperm.xlu0 %7958, %v9133_v40   ;;  %v7501_v40 = vpop.f32.mrf.mxu0 }
 0x36d   : > { %1229 = vperm.xlu1 %7959, %v9250_v33   ;;  %v694_v4 = vpop.permute.xlu1 %693  ;;  %v692_v58 = vpop.permute.xlu0 %691 }
 0x36e   : > { %7554 = vmatmul.mubr.msk.f32.gmra.mxu0 %vm697_vm5, %v686_v11  ;;  %v454_v0 = vpop.f32.mrf.mxu0 }
 0x36f   : > { %7556 = vmatprep.mubr.msk.f32.mxu0 %vm8618_vm0, %v13419_v6  ;;  %v455_v10 = vadd.f32 %v9208_v62, %v454_v0 }
 0x370   : > { %8003 = vset.pattern.permute.xlu0 %v13437_v51  ;;  %v7504_v60 = vpop.f32.mrf.mxu0 }
 0x371   : > { %7960 = vset.pattern.permute.xlu1 %v13441_v41  ;;  %1239 = vperm.xlu0 %8003, %v9262_v39   ;;  %v696_v17 = vpop.permute.xlu0 %695 }
 0x372   : > { %1311 = vperm.xlu1 %7960, %v9250_v33   ;;  %7557 = vmatmul.mubr.msk.f32.gmra.mxu0 %vm697_vm5, %v688_v50 }
 0x373   : > { %7559 = vmatprep.mubr.msk.f32.mxu0 %vm8618_vm0, %v13419_v6  ;;  %7604 = vmatmul.mubr.msk.f32.gmra.mxu1 %vm329_vm1, %v455_v10 }
 0x374   : > { %7646 = vmatprep.mubr.msk.bf16.mxu1 %vm8618_vm0, %v13419_v6 }
 0x375   : > { %8004 = vset.pattern.permute.xlu0 %v13441_v41 }
 0x376   : > { %7961 = vset.pattern.permute.xlu1 %v13443_v42  ;;  %1319 = vperm.xlu0 %8004, %v9262_v39  }
 0x377   : > { %7560 = vmatmul.mubr.msk.f32.gmra.mxu0 %vm697_vm5, %v690_v2  ;;  %1387 = vperm.xlu1 %7961, %v9250_v33  }
 0x378   : > { %7562 = vmatprep.mubr.msk.f32.mxu0 %vm8618_vm0, %v13419_v6 }
 0x37a   : > { %8005 = vset.pattern.permute.xlu0 %v13443_v42  ;;  %v9287_v7 = vpop.permute.xlu1 %1219 }
 0x37b   : > { %7563 = vmatmul.mubr.msk.f32.gmra.mxu0 %vm697_vm5, %v692_v58  ;;  %7962 = vset.pattern.permute.xlu1 %v13447_v43 }
 0x37c   : > { %1395 = vperm.xlu0 %8005, %v9262_v39   ;;  %1549 = vperm.xlu1 %7962, %v9250_v33  }
 0x37d   : > { %7565 = vmatprep.mubr.msk.f32.mxu0 %vm8618_vm0, %v13419_v6 }
 0x37e   : > { %v9330_v21 = vpop.permute.xlu0 %1224 }
 0x37f   : > { %7566 = vmatmul.mubr.msk.f32.gmra.mxu0 %vm697_vm5, %v694_v4  ;;  %v9300_v12 = vpop.permute.xlu1 %1303 }
 0x380   : > { %8006 = vset.pattern.permute.xlu0 %v13447_v43  ;;  %7963 = vset.pattern.permute.xlu1 %v13453_v44 }
 0x381   : > { %1557 = vperm.xlu0 %8006, %v9262_v39   ;;  %1621 = vperm.xlu1 %7963, %v9250_v33  }
 0x382   : > { %7568 = vmatprep.mubr.msk.f32.mxu0 %vm8618_vm0, %v13419_v6 }
 0x383   : > { %7569 = vmatmul.mubr.msk.f32.gmra.mxu0 %vm697_vm5, %v696_v17  ;;  %v9340_v25 = vpop.permute.xlu0 %1307 }
 0x384   : > { %v9312_v62 = vpop.permute.xlu1 %1379  ;;  %7616 = vmatprep.mubr.msk.bf16.mxu0 %vm8618_vm0, %v13419_v6 }
 0x385   : > { %8007 = vset.pattern.permute.xlu0 %v13453_v44  ;;  %7964 = vset.pattern.permute.xlu1 %v13457_v45 }
 0x386   : > { %1629 = vperm.xlu0 %8007, %v9262_v39   ;;  %1693 = vperm.xlu1 %7964, %v9250_v33  }
 0x388   : > { %v9348_v28 = vpop.permute.xlu0 %1383 }
 0x389   : > { %v9320_v18 = vpop.permute.xlu1 %1541  ;;  %13576 = vst [vmem:[#allocation14_spill] sm:$0xff] %v9348_v28  ;;  %v13466_v28 = vmov 45  }
 0x38a   : > { %13573 = vst [vmem:[#allocation11_spill] sm:$0xff] %v9320_v18  ;;  %8008 = vset.pattern.permute.xlu0 %v13457_v45  ;;  %7965 = vset.pattern.permute.xlu1 %v13459_v46 }
 0x38b   : > { %1701 = vperm.xlu0 %8008, %v9262_v39   ;;  %1841 = vperm.xlu1 %7965, %v9250_v33  }
 0x38d   : > { %v9356_v30 = vpop.permute.xlu0 %1545 }
 0x38e   : > { %v9326_v19 = vpop.permute.xlu1 %1613  ;;  %13578 = vst [vmem:[#allocation16_spill] sm:$0xff] %v9356_v30 }
 0x38f   : > { %8009 = vset.pattern.permute.xlu0 %v13459_v46  ;;  %7966 = vset.pattern.permute.xlu1 %v13461_v47 }
 0x390   : > { %1849 = vperm.xlu0 %8009, %v9262_v39   ;;  %1917 = vperm.xlu1 %7966, %v9250_v33  }
 0x392   : > { %v9366_v32 = vpop.permute.xlu0 %1617 }
 0x393   : > { %v9334_v22 = vpop.permute.xlu1 %1685  ;;  %13581 = vst [vmem:[#allocation19_spill] sm:$0xff] %v9366_v32 }
 0x394   : > { %13574 = vst [vmem:[#allocation12_spill] sm:$0xff] %v9334_v22  ;;  %8010 = vset.pattern.permute.xlu0 %v13461_v47  ;;  %7967 = vset.pattern.permute.xlu1 %v13463_v48 }
 0x395   : > { %1925 = vperm.xlu0 %8010, %v9262_v39   ;;  %1993 = vperm.xlu1 %7967, %v9250_v33  }
 0x397   : > { %v9376_v11 = vpop.permute.xlu0 %1689 }
 0x398   : > { %v9342_v27 = vpop.permute.xlu1 %1833  ;;  %13583 = vst [vmem:[#allocation21_spill] sm:$0xff] %v9376_v11 }
 0x399   : > { %13575 = vst [vmem:[#allocation13_spill] sm:$0xff] %v9342_v27  ;;  %8011 = vset.pattern.permute.xlu0 %v13463_v48  ;;  %7968 = vset.pattern.permute.xlu1 %v13455_v49 }
 0x39a   : > { %2001 = vperm.xlu0 %8011, %v9262_v39   ;;  %2137 = vperm.xlu1 %7968, %v9250_v33  }
 0x39c   : > { %v9386_v37 = vpop.permute.xlu0 %1837 }
 0x39d   : > { %v9350_v29 = vpop.permute.xlu1 %1909  ;;  %13585 = vst [vmem:[#allocation23_spill] sm:$0xff] %v9386_v37 }
 0x39e   : > { %13577 = vst [vmem:[#allocation15_spill] sm:$0xff] %v9350_v29  ;;  %8012 = vset.pattern.permute.xlu0 %v13455_v49  ;;  %7969 = vset.pattern.permute.xlu1 %v13451_v52 }
 0x39f   : > { %2145 = vperm.xlu0 %8012, %v9262_v39   ;;  %2209 = vperm.xlu1 %7969, %v9250_v33  }
 0x3a1   : > { %v9394_v50 = vpop.permute.xlu0 %1913 }
 0x3a2   : > { %v9358_v61 = vpop.permute.xlu1 %1985  ;;  %13587 = vst [vmem:[#allocation25_spill] sm:$0xff] %v9394_v50 }
 0x3a3   : > { %13579 = vst [vmem:[#allocation17_spill] sm:$0xff] %v9358_v61  ;;  %8013 = vset.pattern.permute.xlu0 %v13451_v52  ;;  %7970 = vset.pattern.permute.xlu1 %v13449_v3 }
 0x3a4   : > { %2217 = vperm.xlu0 %8013, %v9262_v39   ;;  %2281 = vperm.xlu1 %7970, %v9250_v33  }
 0x3a6   : > { %v9402_v0 = vpop.permute.xlu0 %1989 }
 0x3a7   : > { %v9364_v14 = vpop.permute.xlu1 %2129  ;;  %13589 = vst [vmem:[#allocation27_spill] sm:$0xff] %v9402_v0 }
 0x3a8   : > { %13580 = vst [vmem:[#allocation18_spill] sm:$0xff] %v9364_v14  ;;  %8014 = vset.pattern.permute.xlu0 %v13449_v3  ;;  %7971 = vset.pattern.permute.xlu1 %v13445_v53 }
 0x3a9   : > { %2289 = vperm.xlu0 %8014, %v9262_v39   ;;  %2566 = vperm.xlu1 %7971, %v9250_v33  }
 0x3ab   : > { %v9412_v4 = vpop.permute.xlu0 %2133 }
 0x3ac   : > { %v9372_v20 = vpop.permute.xlu1 %2201  ;;  %13592 = vst [vmem:[#allocation30_spill] sm:$0xff] %v9412_v4 }
 0x3ad   : > { %13582 = vst [vmem:[#allocation20_spill] sm:$0xff] %v9372_v20  ;;  %8015 = vset.pattern.permute.xlu0 %v13445_v53  ;;  %7972 = vset.pattern.permute.xlu1 %v13439_v1 }
 0x3ae   : > { %2576 = vperm.xlu0 %8015, %v9262_v39   ;;  %2644 = vperm.xlu1 %7972, %v9250_v33  }
 0x3b0   : > { %v9422_v58 = vpop.permute.xlu0 %2205 }
 0x3b1   : > { %v9380_v34 = vpop.permute.xlu1 %2273  ;;  %13594 = vst [vmem:[#allocation32_spill] sm:$0xff] %v9422_v58 }
 0x3b2   : > { %13584 = vst [vmem:[#allocation22_spill] sm:$0xff] %v9380_v34  ;;  %8016 = vset.pattern.permute.xlu0 %v13439_v1  ;;  %7973 = vset.pattern.permute.xlu1 %v13435_v54 }
 0x3b3   : > { %2652 = vperm.xlu0 %8016, %v9262_v39   ;;  %2716 = vperm.xlu1 %7973, %v9250_v33  }
 0x3b5   : > { %v9432_v17 = vpop.permute.xlu0 %2277 }
 0x3b6   : > { %v9388_v40 = vpop.permute.xlu1 %2556  ;;  %13596 = vst [vmem:[#allocation34_spill] sm:$0xff] %v9432_v17 }
 0x3b7   : > { %13586 = vst [vmem:[#allocation24_spill] sm:$0xff] %v9388_v40  ;;  %8017 = vset.pattern.permute.xlu0 %v13435_v54  ;;  %7974 = vset.pattern.permute.xlu1 %v13431_v55 }
 0x3b8   : > { %2724 = vperm.xlu0 %8017, %v9262_v39   ;;  %2878 = vperm.xlu1 %7974, %v9250_v33  }
 0x3bb   : > { %v9396_v2 = vpop.permute.xlu1 %2636 }
 0x3bc   : > { %13588 = vst [vmem:[#allocation26_spill] sm:$0xff] %v9396_v2  ;;  %8018 = vset.pattern.permute.xlu0 %v13431_v55  ;;  %7975 = vset.pattern.permute.xlu1 %v13429_v56  ;;  %v9454_v55 = vld [vmem:[#allocation3 + $0x30] sm:$0xff] }
 0x3bd   : > { %2886 = vperm.xlu0 %8018, %v9262_v39   ;;  %2950 = vperm.xlu1 %7975, %v9250_v33  }
 0x3c0   : > { %v9404_v57 = vpop.permute.xlu1 %2708 }
 0x3c1   : > { %13590 = vst [vmem:[#allocation28_spill] sm:$0xff] %v9404_v57  ;;  %8019 = vset.pattern.permute.xlu0 %v13429_v56  ;;  %7976 = vset.pattern.permute.xlu1 %v13425_v59 }
 0x3c2   : > { %2958 = vperm.xlu0 %8019, %v9262_v39   ;;  %3022 = vperm.xlu1 %7976, %v9250_v33  }
 0x3c5   : > { %v9410_v60 = vpop.permute.xlu1 %2870 }
 0x3c6   : > { %13591 = vst [vmem:[#allocation29_spill] sm:$0xff] %v9410_v60  ;;  %8020 = vset.pattern.permute.xlu0 %v13425_v59  ;;  %7977 = vset.pattern.permute.xlu1 %v13421_v63  ;;  %v9444_v59 = vld [vmem:[#allocation3 + $0x18] sm:$0xff] }
 0x3c7   : > { %3030 = vperm.xlu0 %8020, %v9262_v39   ;;  %3166 = vperm.xlu1 %7977, %v9250_v33  }
 0x3ca   : > { %v9418_v5 = vpop.permute.xlu1 %2942 }
 0x3cb   : > { %13593 = vst [vmem:[#allocation31_spill] sm:$0xff] %v9418_v5  ;;  %8021 = vset.pattern.permute.xlu0 %v13421_v63  ;;  %7978 = vset.pattern.permute.xlu1 %v13423_v13  ;;  %v9440_v63 = vpop.permute.xlu0 %2561  ;;  %v13645_v5 = vmov 29  }
 0x3cc   : > { %3174 = vperm.xlu0 %8021, %v9262_v39   ;;  %3238 = vperm.xlu1 %7978, %v9250_v33   ;;  %13598 = vst [vmem:[#allocation36_spill] sm:$0xff] %v9440_v63  ;;  %v1151_v63 = vpop.f32.mrf.mxu1 }
 0x3ce   : > { %v7581_v17 = vpop.f32.mrf.mxu1 }
 0x3cf   : > { %v9426_v10 = vpop.permute.xlu1 %3014  ;;  %v9646_v17 = vld [vmem:[#allocation3 + $0x40] sm:$0xff] }
 0x3d0   : > { %13595 = vst [vmem:[#allocation33_spill] sm:$0xff] %v9426_v10  ;;  %8022 = vset.pattern.permute.xlu0 %v13423_v13  ;;  %7979 = vset.pattern.permute.xlu1 %v13427_v24  ;;  %v1156_v4 = vpop.f32.mrf.mxu1 }
 0x3d1   : > { %3246 = vperm.xlu0 %8022, %v9262_v39   ;;  %3310 = vperm.xlu1 %7979, %v9250_v33   ;;  %v9642_v58 = vpack.c.bf16 %v1156_v4, %v1151_v63  ;;  %v13660_v63 = vmov 8  }
 0x3d2   : > { %v7584_v34 = vpop.f32.mrf.mxu1 }
 0x3d3   : > { %13655 = vst [vmem:[#allocation79_spill] sm:$0xff] %v9642_v58 }
 0x3d4   : > { %v9434_v6 = vpop.permute.xlu1 %3158  ;;  %v1161_v14 = vpop.f32.mrf.mxu1 }
 0x3d5   : > { %13597 = vst [vmem:[#allocation35_spill] sm:$0xff] %v9434_v6  ;;  %8023 = vset.pattern.permute.xlu0 %v13427_v24  ;;  %7980 = vset.pattern.permute.xlu1 %v13433_v31  ;;  %v9450_v24 = vpop.permute.xlu0 %2640 }
 0x3d6   : > { %3318 = vperm.xlu0 %8023, %v9262_v39   ;;  %3454 = vperm.xlu1 %7980, %v9250_v33   ;;  %13600 = vst [vmem:[#allocation38_spill] sm:$0xff] %v9450_v24  ;;  %v7587_v20 = vpop.f32.mrf.mxu1 }
 0x3d7   : > { %v13663_v20 = vmov 12  }
 0x3d8   : > { %v1166_v34 = vpop.f32.mrf.mxu1 }
 0x3d9   : > { %v9442_v13 = vpop.permute.xlu1 %3230 }
 0x3da   : > { %13599 = vst [vmem:[#allocation37_spill] sm:$0xff] %v9442_v13  ;;  %8024 = vset.pattern.permute.xlu0 %v13433_v31  ;;  %7981 = vset.pattern.permute.xlu1 %v13437_v51  ;;  %v9462_v31 = vpop.permute.xlu0 %2712  ;;  %v7590_v4 = vpop.f32.mrf.mxu1 }
 0x3db   : > { %3462 = vperm.xlu0 %8024, %v9262_v39   ;;  %1234 = vperm.xlu1 %7981, %v9444_v59   ;;  %13603 = vst [vmem:[#allocation41_spill] sm:$0xff] %v9462_v31  ;;  %v13667_v4 = vmov 16  }
 0x3de   : > { %v9452_v56 = vpop.permute.xlu1 %3302 }
 0x3df   : > { %13601 = vst [vmem:[#allocation39_spill] sm:$0xff] %v9452_v56  ;;  %8047 = vset.pattern.permute.xlu0 %v13437_v51  ;;  %7982 = vset.pattern.permute.xlu1 %v13441_v41  ;;  %v9472_v51 = vpop.permute.xlu0 %2874 }
 0x3e0   : > { %1249 = vperm.xlu0 %8047, %v9454_v55   ;;  %1315 = vperm.xlu1 %7982, %v9444_v59   ;;  %13605 = vst [vmem:[#allocation43_spill] sm:$0xff] %v9472_v51 }
 0x3e3   : > { %v9460_v33 = vpop.permute.xlu1 %3446 }
 0x3e4   : > { %13602 = vst [vmem:[#allocation40_spill] sm:$0xff] %v9460_v33  ;;  %8048 = vset.pattern.permute.xlu0 %v13441_v41  ;;  %7983 = vset.pattern.permute.xlu1 %v13443_v42  ;;  %v9482_v41 = vpop.permute.xlu0 %2946  ;;  %v13628_v33 = vmov 5  }
 0x3e5   : > { %1327 = vperm.xlu0 %8048, %v9454_v55   ;;  %1391 = vperm.xlu1 %7983, %v9444_v59   ;;  %13607 = vst [vmem:[#allocation45_spill] sm:$0xff] %v9482_v41 }
 0x3e8   : > { %v9468_v54 = vpop.permute.xlu1 %1229 }
 0x3e9   : > { %13604 = vst [vmem:[#allocation42_spill] sm:$0xff] %v9468_v54  ;;  %8049 = vset.pattern.permute.xlu0 %v13443_v42  ;;  %7984 = vset.pattern.permute.xlu1 %v13447_v43 }
 0x3ea   : > { %1403 = vperm.xlu0 %8049, %v9454_v55   ;;  %1553 = vperm.xlu1 %7984, %v9444_v59  }
 0x3ed   : > { %v9476_v1 = vpop.permute.xlu1 %1311 }
 0x3ee   : > { %13606 = vst [vmem:[#allocation44_spill] sm:$0xff] %v9476_v1  ;;  %8050 = vset.pattern.permute.xlu0 %v13447_v43  ;;  %7985 = vset.pattern.permute.xlu1 %v13453_v44  ;;  %v9492_v43 = vpop.permute.xlu0 %3018  ;;  %v13625_v1 = vmov 1  }
 0x3ef   : > { %1565 = vperm.xlu0 %8050, %v9454_v55   ;;  %1625 = vperm.xlu1 %7985, %v9444_v59   ;;  %13609 = vst [vmem:[#allocation47_spill] sm:$0xff] %v9492_v43 }
 0x3f2   : > { %v9484_v42 = vpop.permute.xlu1 %1387 }
 0x3f3   : > { %13608 = vst [vmem:[#allocation46_spill] sm:$0xff] %v9484_v42  ;;  %8051 = vset.pattern.permute.xlu0 %v13453_v44  ;;  %7986 = vset.pattern.permute.xlu1 %v13457_v45  ;;  %v9500_v44 = vpop.permute.xlu0 %3162  ;;  %v13622_v42 = vmov 44  }
 0x3f4   : > { %1637 = vperm.xlu0 %8051, %v9454_v55   ;;  %1697 = vperm.xlu1 %7986, %v9444_v59   ;;  %v9490_v53 = vpop.f32.mrf.mxu0  ;;  %13611 = vst [vmem:[#allocation49_spill] sm:$0xff] %v9500_v44  ;;  %v13636_v44 = vmov 17  }
 0x3f6   : > { %v7546_v3 = vpop.f32.mrf.mxu0 }
 0x3f7   : > { %v9494_v52 = vpop.permute.xlu1 %1549 }
 0x3f8   : > { %13610 = vst [vmem:[#allocation48_spill] sm:$0xff] %v9494_v52  ;;  %8052 = vset.pattern.permute.xlu0 %v13457_v45  ;;  %7987 = vset.pattern.permute.xlu1 %v13459_v46  ;;  %v9510_v45 = vpop.permute.xlu0 %3234 }
 0x3f9   : > { %1709 = vperm.xlu0 %8052, %v9454_v55   ;;  %1845 = vperm.xlu1 %7987, %v9444_v59   ;;  %13614 = vst [vmem:[#allocation52_spill] sm:$0xff] %v9510_v45 }
 0x3fc   : > { %v9502_v49 = vpop.permute.xlu1 %1621  ;;  %v9520_v52 = vpop.permute.xlu0 %3306 }
 0x3fd   : > { %13612 = vst [vmem:[#allocation50_spill] sm:$0xff] %v9502_v49  ;;  %8053 = vset.pattern.permute.xlu0 %v13459_v46  ;;  %7988 = vset.pattern.permute.xlu1 %v13461_v47  ;;  %v13616_v46 = vmov 36   ;;  %13617 = vst [vmem:[#allocation54_spill] sm:$0xff] %v9520_v52  ;;  %v13631_v52 = vmov 9  }
 0x3fe   : > { %1857 = vperm.xlu0 %8053, %v9454_v55   ;;  %1921 = vperm.xlu1 %7988, %v9444_v59  }
 0x401   : > { %v9508_v3 = vpop.permute.xlu1 %1693 }
 0x402   : > { %13613 = vst [vmem:[#allocation51_spill] sm:$0xff] %v9508_v3  ;;  %8054 = vset.pattern.permute.xlu0 %v13461_v47  ;;  %7989 = vset.pattern.permute.xlu1 %v13463_v48  ;;  %v13619_v47 = vmov 40  }
 0x403   : > { %1933 = vperm.xlu0 %8054, %v9454_v55   ;;  %1997 = vperm.xlu1 %7989, %v9444_v59  }
 0x406   : > { %v9516_v49 = vpop.permute.xlu1 %1841 }
 0x407   : > { %13615 = vst [vmem:[#allocation53_spill] sm:$0xff] %v9516_v49  ;;  %8055 = vset.pattern.permute.xlu0 %v13463_v48  ;;  %7990 = vset.pattern.permute.xlu1 %v13616_v46  ;;  %v9530_v49 = vpop.permute.xlu0 %3450 }
 0x408   : > { %2009 = vperm.xlu0 %8055, %v9454_v55   ;;  %2141 = vperm.xlu1 %7990, %v9444_v59   ;;  %13620 = vst [vmem:[#allocation56_spill] sm:$0xff] %v9530_v49 }
 0x40b   : > { %v9524_v3 = vpop.permute.xlu1 %1917 }
 0x40c   : > { %13618 = vst [vmem:[#allocation55_spill] sm:$0xff] %v9524_v3  ;;  %8056 = vset.pattern.permute.xlu0 %v13616_v46  ;;  %7991 = vset.pattern.permute.xlu1 %v13619_v47  ;;  %v9538_v3 = vpop.permute.xlu0 %1239 }
 0x40d   : > { %2153 = vperm.xlu0 %8056, %v9454_v55   ;;  %2213 = vperm.xlu1 %7991, %v9444_v59   ;;  %13623 = vst [vmem:[#allocation58_spill] sm:$0xff] %v9538_v3 }
 0x410   : > { %v9532_v48 = vpop.permute.xlu1 %1993 }
 0x411   : > { %13621 = vst [vmem:[#allocation57_spill] sm:$0xff] %v9532_v48  ;;  %8057 = vset.pattern.permute.xlu0 %v13619_v47  ;;  %7992 = vset.pattern.permute.xlu1 %v13622_v42  ;;  %v9546_v48 = vpop.permute.xlu0 %1319 }
 0x412   : > { %2225 = vperm.xlu0 %8057, %v9454_v55   ;;  %2285 = vperm.xlu1 %7992, %v9444_v59   ;;  %13626 = vst [vmem:[#allocation60_spill] sm:$0xff] %v9546_v48  ;;  %v13633_v48 = vmov 13  }
 0x415   : > { %v9540_v54 = vpop.permute.xlu1 %2137  ;;  %v9556_v3 = vpop.permute.xlu0 %1395 }
 0x416   : > { %13624 = vst [vmem:[#allocation59_spill] sm:$0xff] %v9540_v54  ;;  %8058 = vset.pattern.permute.xlu0 %v13622_v42  ;;  %7993 = vset.pattern.permute.xlu1 %v13625_v1  ;;  %13630 = vst [vmem:[#allocation63_spill] sm:$0xff] %v9556_v3 }
 0x417   : > { %2297 = vperm.xlu0 %8058, %v9454_v55   ;;  %2571 = vperm.xlu1 %7993, %v9444_v59  }
 0x419   : > { %v9566_v56 = vpop.permute.xlu0 %1557 }
 0x41a   : > { %v9548_v49 = vpop.permute.xlu1 %2209  ;;  %13634 = vst [vmem:[#allocation65_spill] sm:$0xff] %v9566_v56 }
 0x41b   : > { %13627 = vst [vmem:[#allocation61_spill] sm:$0xff] %v9548_v49  ;;  %8059 = vset.pattern.permute.xlu0 %v13625_v1  ;;  %7994 = vset.pattern.permute.xlu1 %v13628_v33 }
 0x41c   : > { %2586 = vperm.xlu0 %8059, %v9454_v55   ;;  %2648 = vperm.xlu1 %7994, %v9444_v59  }
 0x41d   : > { %v9580_v56 = vpop.permute.xlu0 %1629 }
 0x41e   : > { %13637 = vst [vmem:[#allocation67_spill] sm:$0xff] %v9580_v56 }
 0x41f   : > { %v9554_v54 = vpop.permute.xlu1 %2281 }
 0x420   : > { %13629 = vst [vmem:[#allocation62_spill] sm:$0xff] %v9554_v54  ;;  %8060 = vset.pattern.permute.xlu0 %v13628_v33  ;;  %7995 = vset.pattern.permute.xlu1 %v13631_v52 }
 0x421   : > { %2660 = vperm.xlu0 %8060, %v9454_v55   ;;  %2720 = vperm.xlu1 %7995, %v9444_v59   ;;  %v9590_v10 = vpop.permute.xlu0 %1701 }
 0x422   : > { %13640 = vst [vmem:[#allocation69_spill] sm:$0xff] %v9590_v10 }
 0x424   : > { %v9562_v49 = vpop.permute.xlu1 %2566 }
 0x425   : > { %13632 = vst [vmem:[#allocation64_spill] sm:$0xff] %v9562_v49  ;;  %8061 = vset.pattern.permute.xlu0 %v13631_v52  ;;  %7996 = vset.pattern.permute.xlu1 %v13633_v48  ;;  %v9602_v60 = vpop.permute.xlu0 %1849 }
 0x426   : > { %2732 = vperm.xlu0 %8061, %v9454_v55   ;;  %2882 = vperm.xlu1 %7996, %v9444_v59   ;;  %v9570_v54 = vpop.f32.mrf.mxu0  ;;  %13643 = vst [vmem:[#allocation71_spill] sm:$0xff] %v9602_v60  ;;  %v13648_v60 = vmov 33  }
 0x428   : > { %v7549_v3 = vpop.f32.mrf.mxu0 }
 0x429   : > { %v9572_v45 = vpop.permute.xlu1 %2644  ;;  %v9612_v31 = vpop.permute.xlu0 %1925 }
 0x42a   : > { %13635 = vst [vmem:[#allocation66_spill] sm:$0xff] %v9572_v45  ;;  %8062 = vset.pattern.permute.xlu0 %v13633_v48  ;;  %7997 = vset.pattern.permute.xlu1 %v13636_v44  ;;  %v9576_v49 = vpop.f32.mrf.mxu0  ;;  %v13639_v45 = vmov 21   ;;  %13646 = vst [vmem:[#allocation73_spill] sm:$0xff] %v9612_v31  ;;  %v13650_v31 = vmov 37  }
 0x42b   : > { %2894 = vperm.xlu0 %8062, %v9454_v55   ;;  %2954 = vperm.xlu1 %7997, %v9444_v59  }
 0x42c   : > { %v7552_v6 = vpop.f32.mrf.mxu0 }
 0x42d   : > { %v9628_v40 = vpop.permute.xlu0 %2001 }
 0x42e   : > { %v9582_v43 = vpop.permute.xlu1 %2716  ;;  %v9585_v3 = vpop.f32.mrf.mxu0  ;;  %13651 = vst [vmem:[#allocation76_spill] sm:$0xff] %v9628_v40 }
 0x42f   : > { %13638 = vst [vmem:[#allocation68_spill] sm:$0xff] %v9582_v43  ;;  %8063 = vset.pattern.permute.xlu0 %v13636_v44  ;;  %7998 = vset.pattern.permute.xlu1 %v13639_v45  ;;  %v13642_v43 = vmov 25  }
 0x430   : > { %2966 = vperm.xlu0 %8063, %v9454_v55   ;;  %3026 = vperm.xlu1 %7998, %v9444_v59   ;;  %v7555_v13 = vpop.f32.mrf.mxu0 }
 0x431   : > { %v9640_v40 = vpop.permute.xlu0 %2145 }
 0x432   : > { %v9592_v41 = vpop.f32.mrf.mxu0  ;;  %13654 = vst [vmem:[#allocation78_spill] sm:$0xff] %v9640_v40 }
 0x433   : > { %v9595_v6 = vpop.permute.xlu1 %2878 }
 0x434   : > { %8064 = vset.pattern.permute.xlu0 %v13639_v45  ;;  %13641 = vst [vmem:[#allocation70_spill] sm:$0xff] %v9595_v6  ;;  %7999 = vset.pattern.permute.xlu1 %v13642_v43  ;;  %v7558_v56 = vpop.f32.mrf.mxu0 }
 0x435   : > { %3038 = vperm.xlu0 %8064, %v9454_v55   ;;  %3170 = vperm.xlu1 %7999, %v9444_v59   ;;  %v9652_v0 = vpop.permute.xlu0 %2217 }
 0x436   : > { %13658 = vst [vmem:[#allocation81_spill] sm:$0xff] %v9652_v0  ;;  %v9666_v0 = vpack.c.bf16 %v1166_v34, %v1161_v14 }
 0x437   : > { %v9600_v51 = vpop.f32.mrf.mxu0 }
 0x438   : > { %v9604_v13 = vpop.permute.xlu1 %2950  ;;  %13664 = vst [vmem:[#allocation85_spill] sm:$0xff] %v9666_v0 }
 0x439   : > { %13644 = vst [vmem:[#allocation72_spill] sm:$0xff] %v9604_v13  ;;  %8065 = vset.pattern.permute.xlu0 %v13642_v43  ;;  %v7561_v10 = vpop.f32.mrf.mxu0  ;;  %8000 = vset.pattern.permute.xlu1 %v13645_v5 }
 0x43a   : > { %3182 = vperm.xlu0 %8065, %v9454_v55   ;;  %3242 = vperm.xlu1 %8000, %v9444_v59  }
 0x43b   : > { %v9610_v6 = vpop.f32.mrf.mxu0 }
 0x43d   : > { %v7564_v56 = vpop.f32.mrf.mxu0  ;;  %v9615_v57 = vpop.permute.xlu1 %3022 }
 0x43e   : > { %8066 = vset.pattern.permute.xlu0 %v13645_v5  ;;  %13647 = vst [vmem:[#allocation74_spill] sm:$0xff] %v9615_v57  ;;  %8001 = vset.pattern.permute.xlu1 %v13648_v60 }
 0x43f   : > { %3254 = vperm.xlu0 %8066, %v9454_v55   ;;  %v9619_v10 = vpop.f32.mrf.mxu0  ;;  %3314 = vperm.xlu1 %8001, %v9444_v59  }
 0x441   : > { %v7567_v13 = vpop.f32.mrf.mxu0 }
 0x442   : > { %v9622_v24 = vpop.permute.xlu1 %3166  ;;  %v9634_v13 = vld [vmem:[#allocation3 + $0x28] sm:$0xff] }
 0x443   : > { %13649 = vst [vmem:[#allocation75_spill] sm:$0xff] %v9622_v24  ;;  %8067 = vset.pattern.permute.xlu0 %v13648_v60  ;;  %v9625_v56 = vpop.f32.mrf.mxu0  ;;  %8002 = vset.pattern.permute.xlu1 %v13650_v31  ;;  %v13653_v24 = vmov 0  }
 0x444   : > { %3326 = vperm.xlu0 %8067, %v9454_v55   ;;  %3458 = vperm.xlu1 %8002, %v9444_v59  }
 0x445   : > { %v7570_v57 = vpop.f32.mrf.mxu0 }
 0x447   : > { %v9632_v2 = vpop.permute.xlu1 %3238 }
 0x448   : > { %13652 = vst [vmem:[#allocation77_spill] sm:$0xff] %v9632_v2  ;;  %8068 = vset.pattern.permute.xlu0 %v13650_v31  ;;  %8025 = vset.pattern.permute.xlu1 %v13653_v24  ;;  %v13657_v2 = vmov 4  }
 0x449   : > { %3470 = vperm.xlu0 %8068, %v9454_v55   ;;  %1244 = vperm.xlu1 %8025, %v9634_v13  }
 0x44c   : > { %v9644_v57 = vpop.permute.xlu1 %3310 }
 0x44d   : > { %13656 = vst [vmem:[#allocation80_spill] sm:$0xff] %v9644_v57  ;;  %8092 = vset.pattern.permute.xlu0 %v13653_v24  ;;  %8026 = vset.pattern.permute.xlu1 %v13657_v2  ;;  %v9660_v57 = vpop.permute.xlu0 %2289 }
 0x44e   : > { %1259 = vperm.xlu0 %8092, %v9646_v17   ;;  %1323 = vperm.xlu1 %8026, %v9634_v13   ;;  %13661 = vst [vmem:[#allocation83_spill] sm:$0xff] %v9660_v57 }
 0x451   : > { %v9654_v40 = vpop.permute.xlu1 %3454  ;;  %v9672_v27 = vpop.permute.xlu0 %2576 }
 0x452   : > { %13659 = vst [vmem:[#allocation82_spill] sm:$0xff] %v9654_v40  ;;  %8093 = vset.pattern.permute.xlu0 %v13657_v2  ;;  %8027 = vset.pattern.permute.xlu1 %v13660_v63  ;;  %v1171_v40 = vpop.f32.mrf.mxu1  ;;  %13666 = vst [vmem:[#allocation87_spill] sm:$0xff] %v9672_v27 }
 0x453   : > { %1335 = vperm.xlu0 %8093, %v9646_v17   ;;  %1399 = vperm.xlu1 %8027, %v9634_v13  }
 0x454   : > { %v7593_v50 = vpop.f32.mrf.mxu1 }
 0x455   : > { %v13670_v50 = vmov 20   ;;  %v9684_v27 = vpop.permute.xlu0 %2652 }
 0x456   : > { %v9662_v61 = vpop.permute.xlu1 %1234  ;;  %13671 = vst [vmem:[#allocation90_spill] sm:$0xff] %v9684_v27 }
 0x457   : > { %13662 = vst [vmem:[#allocation84_spill] sm:$0xff] %v9662_v61  ;;  %8094 = vset.pattern.permute.xlu0 %v13660_v63  ;;  %8028 = vset.pattern.permute.xlu1 %v13663_v20  ;;  %v1176_v61 = vpop.f32.mrf.mxu1 }
 0x458   : > { %1411 = vperm.xlu0 %8094, %v9646_v17   ;;  %1561 = vperm.xlu1 %8028, %v9634_v13   ;;  %v9678_v14 = vpack.c.bf16 %v1176_v61, %v1171_v40  ;;  %v13673_v61 = vmov 24  }
 0x459   : > { %v7596_v34 = vpop.f32.mrf.mxu1 }
 0x45a   : > { %13668 = vst [vmem:[#allocation88_spill] sm:$0xff] %v9678_v14 }
 0x45b   : > { %v9670_v37 = vpop.permute.xlu1 %1315 }
 0x45c   : > { %13665 = vst [vmem:[#allocation86_spill] sm:$0xff] %v9670_v37  ;;  %8095 = vset.pattern.permute.xlu0 %v13663_v20  ;;  %8029 = vset.pattern.permute.xlu1 %v13667_v4  ;;  %v1181_v37 = vpop.f32.mrf.mxu1 }
 0x45d   : > { %1573 = vperm.xlu0 %8095, %v9646_v17   ;;  %1633 = vperm.xlu1 %8029, %v9634_v13  }
 0x45e   : > { %v7599_v11 = vpop.f32.mrf.mxu1 }
 0x45f   : > { %v13677_v11 = vmov 28  }
 0x460   : > { %v9680_v57 = vpop.permute.xlu1 %1391  ;;  %v1186_v40 = vpop.f32.mrf.mxu1 }
 0x461   : > { %13669 = vst [vmem:[#allocation89_spill] sm:$0xff] %v9680_v57  ;;  %8096 = vset.pattern.permute.xlu0 %v13667_v4  ;;  %8030 = vset.pattern.permute.xlu1 %v13670_v50  ;;  %v9694_v34 = vpack.c.bf16 %v1186_v40, %v1181_v37  ;;  %v9696_v57 = vpop.permute.xlu0 %2724  ;;  %v13680_v37 = vmov 32  }
 0x462   : > { %1645 = vperm.xlu0 %8096, %v9646_v17   ;;  %1705 = vperm.xlu1 %8030, %v9634_v13   ;;  %13675 = vst [vmem:[#allocation93_spill] sm:$0xff] %v9696_v57  ;;  %v7602_v27 = vpop.f32.mrf.mxu1 }
 0x463   : > { %13674 = vst [vmem:[#allocation92_spill] sm:$0xff] %v9694_v34 }
 0x465   : > { %v9688_v29 = vpop.permute.xlu1 %1553 }
 0x466   : > { %13672 = vst [vmem:[#allocation91_spill] sm:$0xff] %v9688_v29  ;;  %8097 = vset.pattern.permute.xlu0 %v13670_v50  ;;  %8031 = vset.pattern.permute.xlu1 %v13673_v61  ;;  %v9704_v29 = vpop.permute.xlu0 %2886 }
 0x467   : > { %1717 = vperm.xlu0 %8097, %v9646_v17   ;;  %1853 = vperm.xlu1 %8031, %v9634_v13   ;;  %13678 = vst [vmem:[#allocation95_spill] sm:$0xff] %v9704_v29 }
 0x46a   : > { %v9698_v22 = vpop.permute.xlu1 %1625  ;;  %v9712_v27 = vpop.permute.xlu0 %2958 }
 0x46b   : > { %13676 = vst [vmem:[#allocation94_spill] sm:$0xff] %v9698_v22  ;;  %8098 = vset.pattern.permute.xlu0 %v13673_v61  ;;  %8032 = vset.pattern.permute.xlu1 %v13677_v11  ;;  %13681 = vst [vmem:[#allocation97_spill] sm:$0xff] %v9712_v27 }
 0x46c   : > { %1865 = vperm.xlu0 %8098, %v9646_v17   ;;  %1929 = vperm.xlu1 %8032, %v9634_v13  }
 0x46e   : > { %v9722_v29 = vpop.permute.xlu0 %3030 }
 0x46f   : > { %v9706_v30 = vpop.permute.xlu1 %1697  ;;  %13684 = vst [vmem:[#allocation100_spill] sm:$0xff] %v9722_v29 }
 0x470   : > { %13679 = vst [vmem:[#allocation96_spill] sm:$0xff] %v9706_v30  ;;  %8099 = vset.pattern.permute.xlu0 %v13677_v11  ;;  %8033 = vset.pattern.permute.xlu1 %v13680_v37  ;;  %v1191_v30 = vpop.f32.mrf.mxu1 }
 0x471   : > { %1941 = vperm.xlu0 %8099, %v9646_v17   ;;  %2005 = vperm.xlu1 %8033, %v9634_v13  }
 0x472   : > { %v7605_v27 = vpop.f32.mrf.mxu1  ;;  %v9732_v57 = vpop.permute.xlu0 %3174 }
 0x473   : > { %13686 = vst [vmem:[#allocation102_spill] sm:$0xff] %v9732_v57 }
 0x474   : > { %v9714_v40 = vpop.permute.xlu1 %1845 }
 0x475   : > { %13682 = vst [vmem:[#allocation98_spill] sm:$0xff] %v9714_v40  ;;  %8100 = vset.pattern.permute.xlu0 %v13680_v37  ;;  %8034 = vset.pattern.permute.xlu1 %v13616_v46 }
 0x476   : > { %2017 = vperm.xlu0 %8100, %v9646_v17   ;;  %2149 = vperm.xlu1 %8034, %v9634_v13   ;;  %v9742_v27 = vpop.permute.xlu0 %3246 }
 0x477   : > { %13688 = vst [vmem:[#allocation104_spill] sm:$0xff] %v9742_v27 }
 0x479   : > { %v9720_v22 = vpop.permute.xlu1 %1921 }
 0x47a   : > { %13683 = vst [vmem:[#allocation99_spill] sm:$0xff] %v9720_v22  ;;  %8101 = vset.pattern.permute.xlu0 %v13616_v46  ;;  %8035 = vset.pattern.permute.xlu1 %v13619_v47 }
 0x47b   : > { %2161 = vperm.xlu0 %8101, %v9646_v17   ;;  %2221 = vperm.xlu1 %8035, %v9634_v13  }
 0x47e   : > { %v9728_v40 = vpop.permute.xlu1 %1997 }
 0x47f   : > { %13685 = vst [vmem:[#allocation101_spill] sm:$0xff] %v9728_v40  ;;  %8102 = vset.pattern.permute.xlu0 %v13619_v47  ;;  %8036 = vset.pattern.permute.xlu1 %v13622_v42 }
 0x480   : > { %2233 = vperm.xlu0 %8102, %v9646_v17   ;;  %2293 = vperm.xlu1 %8036, %v9634_v13  }
 0x483   : > { %v9736_v22 = vpop.permute.xlu1 %2141 }
 0x484   : > { %13687 = vst [vmem:[#allocation103_spill] sm:$0xff] %v9736_v22  ;;  %8103 = vset.pattern.permute.xlu0 %v13622_v42  ;;  %8037 = vset.pattern.permute.xlu1 %v13625_v1  ;;  %v9750_v22 = vpop.permute.xlu0 %3318 }
 0x485   : > { %2305 = vperm.xlu0 %8103, %v9646_v17   ;;  %2581 = vperm.xlu1 %8037, %v9634_v13   ;;  %13690 = vst [vmem:[#allocation106_spill] sm:$0xff] %v9750_v22 }
 0x488   : > { %v9744_v40 = vpop.permute.xlu1 %2213 }
 0x489   : > { %13689 = vst [vmem:[#allocation105_spill] sm:$0xff] %v9744_v40  ;;  %8104 = vset.pattern.permute.xlu0 %v13625_v1  ;;  %8038 = vset.pattern.permute.xlu1 %v13628_v33  ;;  %v9758_v40 = vpop.permute.xlu0 %3462 }
 0x48a   : > { %2596 = vperm.xlu0 %8104, %v9646_v17   ;;  %2656 = vperm.xlu1 %8038, %v9634_v13   ;;  %13692 = vst [vmem:[#allocation108_spill] sm:$0xff] %v9758_v40 }
 0x48d   : > { %v9752_v57 = vpop.permute.xlu1 %2285  ;;  %v9768_v22 = vpop.permute.xlu0 %1249 }
 0x48e   : > { %13691 = vst [vmem:[#allocation107_spill] sm:$0xff] %v9752_v57  ;;  %8105 = vset.pattern.permute.xlu0 %v13628_v33  ;;  %8039 = vset.pattern.permute.xlu1 %v13631_v52  ;;  %13695 = vst [vmem:[#allocation111_spill] sm:$0xff] %v9768_v22  ;;  %v9790_v22 = vpack.c.bf16 %v1191_v30, %v1191_v30 }
 0x48f   : > { %2668 = vperm.xlu0 %8105, %v9646_v17   ;;  %2728 = vperm.xlu1 %8039, %v9634_v13  }
 0x490   : > { %13700 = vst [vmem:[#allocation116_spill] sm:$0xff] %v9790_v22  ;;  %v2453_v29 = vsel %vm2451_vm6, %v9790_v22, 0 }
 0x491   : > { %v9778_v40 = vpop.permute.xlu0 %1327  ;;  %7607 = vmatpush3.bf16.msra.mxu0 %v2453_v29 }
 0x492   : > { %v9760_v27 = vpop.permute.xlu1 %2571  ;;  %13697 = vst [vmem:[#allocation113_spill] sm:$0xff] %v9778_v40 }
 0x493   : > { %13693 = vst [vmem:[#allocation109_spill] sm:$0xff] %v9760_v27  ;;  %8106 = vset.pattern.permute.xlu0 %v13631_v52  ;;  %8040 = vset.pattern.permute.xlu1 %v13633_v48 }
 0x494   : > { %2740 = vperm.xlu0 %8106, %v9646_v17   ;;  %2890 = vperm.xlu1 %8040, %v9634_v13  }
 0x497   : > { %v9766_v57 = vpop.permute.xlu1 %2648 }
 0x498   : > { %13694 = vst [vmem:[#allocation110_spill] sm:$0xff] %v9766_v57  ;;  %8107 = vset.pattern.permute.xlu0 %v13633_v48  ;;  %8041 = vset.pattern.permute.xlu1 %v13636_v44 }
 0x499   : > { %2902 = vperm.xlu0 %8107, %v9646_v17   ;;  %2962 = vperm.xlu1 %8041, %v9634_v13  }
 0x49c   : > { %v9774_v27 = vpop.permute.xlu1 %2720 }
 0x49d   : > { %13696 = vst [vmem:[#allocation112_spill] sm:$0xff] %v9774_v27  ;;  %8108 = vset.pattern.permute.xlu0 %v13636_v44  ;;  %8042 = vset.pattern.permute.xlu1 %v13639_v45  ;;  %v9788_v27 = vpop.permute.xlu0 %1403 }
 0x49e   : > { %2974 = vperm.xlu0 %8108, %v9646_v17   ;;  %3034 = vperm.xlu1 %8042, %v9634_v13   ;;  %13699 = vst [vmem:[#allocation115_spill] sm:$0xff] %v9788_v27  ;;  %v13703_v27 = vmov 0.0  }
 0x49f   : > { %7608 = vmatprep.subr.bf16.mxu0 %v13703_v27 }
 0x4a0   : > { %7609 = vmatpush3.bf16.msra.mxu0 %v9694_v34 }
 0x4a1   : > { %v9782_v57 = vpop.permute.xlu1 %2882  ;;  %7610 = vmatprep.subr.bf16.mxu0 %v13703_v27 }
 0x4a2   : > { %13698 = vst [vmem:[#allocation114_spill] sm:$0xff] %v9782_v57  ;;  %8109 = vset.pattern.permute.xlu0 %v13639_v45  ;;  %8043 = vset.pattern.permute.xlu1 %v13642_v43  ;;  %v9800_v57 = vpop.permute.xlu0 %1565 }
 0x4a3   : > { %3046 = vperm.xlu0 %8109, %v9646_v17   ;;  %3178 = vperm.xlu1 %8043, %v9634_v13   ;;  %13702 = vst [vmem:[#allocation118_spill] sm:$0xff] %v9800_v57  ;;  %v9823_v57 = vld [vmem:[#allocation3 + $0x38] sm:$0xff] }
 0x4a4   : > { %7611 = vmatpush3.bf16.msra.mxu0 %v9678_v14 }
 0x4a5   : > { %7612 = vmatprep.subr.bf16.mxu0 %v13703_v27 }
 0x4a6   : > { %v9792_v40 = vpop.permute.xlu1 %2954 }
 0x4a7   : > { %13701 = vst [vmem:[#allocation117_spill] sm:$0xff] %v9792_v40  ;;  %8110 = vset.pattern.permute.xlu0 %v13642_v43  ;;  %8044 = vset.pattern.permute.xlu1 %v13645_v5  ;;  %v9811_v40 = vpop.permute.xlu0 %1637 }
 0x4a8   : > { %3190 = vperm.xlu0 %8110, %v9646_v17   ;;  %3250 = vperm.xlu1 %8044, %v9634_v13   ;;  %13705 = vst [vmem:[#allocation120_spill] sm:$0xff] %v9811_v40  ;;  %v13465_v40 = vmov 41  }
 0x4a9   : > { %7613 = vmatpush3.bf16.msra.mxu0 %v9666_v0 }
 0x4aa   : > { %7614 = vmatprep.subr.bf16.mxu0 %v13703_v27 }
 0x4ab   : > { %v9803_v30 = vpop.permute.xlu1 %3026  ;;  %v9825_v32 = vpop.permute.xlu0 %1709 }
 0x4ac   : > { %13704 = vst [vmem:[#allocation119_spill] sm:$0xff] %v9803_v30  ;;  %8111 = vset.pattern.permute.xlu0 %v13645_v5  ;;  %8045 = vset.pattern.permute.xlu1 %v13648_v60  ;;  %13708 = vst [vmem:[#allocation123_spill] sm:$0xff] %v9825_v32  ;;  %v9839_v32 = vld [vmem:[#allocation3 + $0x8] sm:$0xff] }
 0x4ad   : > { %3262 = vperm.xlu0 %8111, %v9646_v17   ;;  %3322 = vperm.xlu1 %8045, %v9634_v13  }
 0x4ae   : > { %7615 = vmatpush3.bf16.msra.mxu0 %v9642_v58 }
 0x4af   : > { %7666 = vmatprep.subr.bf16.mxu0 %v13703_v27 }
 0x4b0   : > { %v9813_v29 = vpop.permute.xlu1 %3170 }
 0x4b1   : > { %13706 = vst [vmem:[#allocation121_spill] sm:$0xff] %v9813_v29  ;;  %8112 = vset.pattern.permute.xlu0 %v13648_v60  ;;  %8046 = vset.pattern.permute.xlu1 %v13650_v31 }
 0x4b2   : > { %3334 = vperm.xlu0 %8112, %v9646_v17   ;;  %3466 = vperm.xlu1 %8046, %v9634_v13  }
 0x4b5   : > { %v9821_v30 = vpop.permute.xlu1 %3242 }
 0x4b6   : > { %13707 = vst [vmem:[#allocation122_spill] sm:$0xff] %v9821_v30  ;;  %8113 = vset.pattern.permute.xlu0 %v13650_v31  ;;  %8069 = vset.pattern.permute.xlu1 %v13653_v24  ;;  %v9837_v30 = vpop.permute.xlu0 %1857 }
 0x4b7   : > { %3478 = vperm.xlu0 %8113, %v9646_v17   ;;  %1254 = vperm.xlu1 %8069, %v9823_v57   ;;  %13710 = vst [vmem:[#allocation125_spill] sm:$0xff] %v9837_v30 }
 0x4ba   : > { %v9833_v29 = vpop.permute.xlu1 %3314 }
 0x4bb   : > { %13709 = vst [vmem:[#allocation124_spill] sm:$0xff] %v9833_v29  ;;  %8114 = vset.pattern.permute.xlu0 %v13465_v40  ;;  %8070 = vset.pattern.permute.xlu1 %v13657_v2  ;;  %v9850_v40 = vpop.permute.xlu0 %1933 }
 0x4bc   : > { %3522 = vperm.xlu0 %8114, %v9839_v32   ;;  %1331 = vperm.xlu1 %8070, %v9823_v57   ;;  %13712 = vst [vmem:[#allocation127_spill] sm:$0xff] %v9850_v40 }
 0x4bf   : > { %v9845_v18 = vpop.permute.xlu1 %3458  ;;  %v9857_v30 = vpop.permute.xlu0 %2009 }
 0x4c0   : > { %13711 = vst [vmem:[#allocation126_spill] sm:$0xff] %v9845_v18  ;;  %3534 = vperm.xlu0 %8114, %v9262_v39   ;;  %8071 = vset.pattern.permute.xlu1 %v13660_v63  ;;  %13714 = vst [vmem:[#allocation129_spill] sm:$0xff] %v9857_v30 }
 0x4c1   : > { %1407 = vperm.xlu1 %8071, %v9823_v57  }
 0x4c4   : > { %3542 = vperm.xlu0 %8114, %v9454_v55   ;;  %v9853_v29 = vpop.permute.xlu1 %1244 }
 0x4c5   : > { %13713 = vst [vmem:[#allocation128_spill] sm:$0xff] %v9853_v29  ;;  %8072 = vset.pattern.permute.xlu1 %v13663_v20  ;;  %v9866_v29 = vpop.permute.xlu0 %2153 }
 0x4c6   : > { %1569 = vperm.xlu1 %8072, %v9823_v57   ;;  %13716 = vst [vmem:[#allocation131_spill] sm:$0xff] %v9866_v29 }
 0x4c8   : > { %3550 = vperm.xlu0 %8114, %v9646_v17  }
 0x4c9   : > { %v9860_v18 = vpop.permute.xlu1 %1323 }
 0x4ca   : > { %13715 = vst [vmem:[#allocation130_spill] sm:$0xff] %v9860_v18  ;;  %8073 = vset.pattern.permute.xlu1 %v13667_v4  ;;  %v9875_v4 = vpop.permute.xlu0 %2225 }
 0x4cb   : > { %1641 = vperm.xlu1 %8073, %v9823_v57   ;;  %13719 = vst [vmem:[#allocation134_spill] sm:$0xff] %v9875_v4 }
 0x4cc   : > { %8116 = vset.pattern.permute.xlu0 %v13466_v28 }
 0x4cd   : > { %3594 = vperm.xlu0 %8116, %v9839_v32  }
 0x4ce   : > { %v9868_v40 = vpop.permute.xlu1 %1399 }
 0x4cf   : > { %13717 = vst [vmem:[#allocation132_spill] sm:$0xff] %v9868_v40  ;;  %8074 = vset.pattern.permute.xlu1 %v13670_v50  ;;  %v9884_v50 = vpop.permute.xlu0 %2297 }
 0x4d0   : > { %1713 = vperm.xlu1 %8074, %v9823_v57   ;;  %13721 = vst [vmem:[#allocation136_spill] sm:$0xff] %v9884_v50 }
 0x4d1   : > { %3606 = vperm.xlu0 %8116, %v9262_v39  }
 0x4d3   : > { %v9873_v18 = vpop.permute.xlu1 %1561 }
 0x4d4   : > { %13718 = vst [vmem:[#allocation133_spill] sm:$0xff] %v9873_v18  ;;  %8075 = vset.pattern.permute.xlu1 %v13673_v61  ;;  %v13469_v61 = vmov 18   ;;  %v9894_v18 = vpop.permute.xlu0 %2586 }
 0x4d5   : > { %3614 = vperm.xlu0 %8116, %v9454_v55   ;;  %1861 = vperm.xlu1 %8075, %v9823_v57   ;;  %13723 = vst [vmem:[#allocation138_spill] sm:$0xff] %v9894_v18  ;;  %v13905_v18 = vld [vmem:[#allocation38_spill] sm:$0xff] }
 0x4d8   : > { %v9880_v28 = vpop.permute.xlu1 %1633 }
 0x4d9   : > { %13720 = vst [vmem:[#allocation135_spill] sm:$0xff] %v9880_v28  ;;  %3622 = vperm.xlu0 %8116, %v9646_v17   ;;  %8076 = vset.pattern.permute.xlu1 %v13677_v11  ;;  %v13470_v28 = vmov 30  }
 0x4da   : > { %1937 = vperm.xlu1 %8076, %v9823_v57  }
 0x4dd   : > { %3754 = vrot.lane.b32.xlu0 %v9666_v0, %s8616_s21  ;;  %v9889_v39 = vpop.permute.xlu1 %1705  ;;  %v9902_v0 = vld [vmem:[#allocation3] sm:$0xff] }
 0x4de   : > { %13722 = vst [vmem:[#allocation137_spill] sm:$0xff] %v9889_v39  ;;  %8077 = vset.pattern.permute.xlu1 %v13680_v37  ;;  %8121 = vset.pattern.permute.xlu0 %v13469_v61  ;;  %v9905_v37 = vpop.permute.xlu0 %2660 }
 0x4df   : > { %2013 = vperm.xlu1 %8077, %v9823_v57   ;;  %13725 = vst [vmem:[#allocation140_spill] sm:$0xff] %v9905_v37 }
 0x4e1   : > { %3758 = vrot.lane.b32.xlu0 %v9694_v34, %s8616_s21 }
 0x4e2   : > { %v9898_v11 = vpop.permute.xlu1 %1853  ;;  %v9912_v39 = vpop.permute.xlu0 %2732 }
 0x4e3   : > { %13724 = vst [vmem:[#allocation139_spill] sm:$0xff] %v9898_v11  ;;  %8078 = vset.pattern.permute.xlu1 %v13616_v46  ;;  %13727 = vst [vmem:[#allocation142_spill] sm:$0xff] %v9912_v39  ;;  %v827_v46 = vmax.f32 %v9570_v54, 1e-20  ;;  %v831_v54 = vmax.f32 %v9600_v51, 1e-20 }
 0x4e4   : > { %2157 = vperm.xlu1 %8078, %v9823_v57  }
 0x4e5   : > { %4271 = vperm.xlu0 %8121, %v9902_v0   ;;  %8367 = vrcp.f32 %v827_v46  ;;  %v833_v46 = vmax.f32 %v9619_v10, 1e-20  ;;  %v13472_v10 = vmov 34  }
 0x4e7   : > { %v9907_v61 = vpop.permute.xlu1 %1929 }
 0x4e8   : > { %13726 = vst [vmem:[#allocation141_spill] sm:$0xff] %v9907_v61  ;;  %8079 = vset.pattern.permute.xlu1 %v13619_v47  ;;  %v9923_v47 = vpop.permute.xlu0 %2894 }
 0x4e9   : > { %4283 = vperm.xlu0 %8121, %v9444_v59   ;;  %2229 = vperm.xlu1 %8079, %v9823_v57   ;;  %13730 = vst [vmem:[#allocation145_spill] sm:$0xff] %v9923_v47 }
 0x4ec   : > { %v9914_v11 = vpop.permute.xlu1 %2005 }
 0x4ed   : > { %13728 = vst [vmem:[#allocation143_spill] sm:$0xff] %v9914_v11  ;;  %4291 = vperm.xlu0 %8121, %v9634_v13   ;;  %8080 = vset.pattern.permute.xlu1 %v13622_v42  ;;  %v829_v11 = vmax.f32 %v9585_v3, 1e-20 }
 0x4ee   : > { %2301 = vperm.xlu1 %8080, %v9823_v57  }
 0x4ef   : > { %8369 = vrcp.f32 %v829_v11 }
 0x4f0   : > { %8371 = vrcp.f32 %v831_v54 }
 0x4f1   : > { %4299 = vperm.xlu0 %8121, %v9823_v57   ;;  %v9921_v61 = vpop.permute.xlu1 %2149  ;;  %8373 = vrcp.f32 %v833_v46 }
 0x4f2   : > { %13729 = vst [vmem:[#allocation144_spill] sm:$0xff] %v9921_v61  ;;  %8081 = vset.pattern.permute.xlu1 %v13625_v1  ;;  %v9934_v61 = vpop.permute.xlu0 %2966  ;;  %v8368_v11 = vpop.eup %8367 }
 0x4f3   : > { %2591 = vperm.xlu1 %8081, %v9823_v57   ;;  %13732 = vst [vmem:[#allocation147_spill] sm:$0xff] %v9934_v61 }
 0x4f5   : > { %8126 = vset.pattern.permute.xlu0 %v13470_v28 }
 0x4f6   : > { %4563 = vperm.xlu0 %8126, %v9839_v32   ;;  %v9930_v42 = vpop.permute.xlu1 %2221  ;;  %v9944_v28 = vpop.permute.xlu0 %3038 }
 0x4f7   : > { %13731 = vst [vmem:[#allocation146_spill] sm:$0xff] %v9930_v42  ;;  %8082 = vset.pattern.permute.xlu1 %v13628_v33  ;;  %13734 = vst [vmem:[#allocation149_spill] sm:$0xff] %v9944_v28 }
 0x4f8   : > { %2664 = vperm.xlu1 %8082, %v9823_v57  }
 0x4fa   : > { %5084 = vrot.lane.b32.xlu0 %v9790_v22, %s8619_s22  ;;  %v9953_v54 = vpop.permute.xlu0 %3182 }
 0x4fb   : > { %v9939_v3 = vpop.permute.xlu1 %2293  ;;  %13736 = vst [vmem:[#allocation151_spill] sm:$0xff] %v9953_v54 }
 0x4fc   : > { %13733 = vst [vmem:[#allocation148_spill] sm:$0xff] %v9939_v3  ;;  %8083 = vset.pattern.permute.xlu1 %v13631_v52  ;;  %v8370_v3 = vpop.eup %8369 }
 0x4fd   : > { %2736 = vperm.xlu1 %8083, %v9823_v57   ;;  %v8372_v46 = vpop.eup %8371 }
 0x4fe   : > { %4571 = vperm.xlu0 %8126, %v9444_v59  }
 0x500   : > { %v9947_v51 = vpop.permute.xlu1 %2581 }
 0x501   : > { %13735 = vst [vmem:[#allocation150_spill] sm:$0xff] %v9947_v51  ;;  %8084 = vset.pattern.permute.xlu1 %v13633_v48  ;;  %v9960_v51 = vpop.permute.xlu0 %3254 }
 0x502   : > { %855 = vrot.lane.b32.xlu0 %v8368_v11, %s8647_s24  ;;  %2898 = vperm.xlu1 %8084, %v9823_v57   ;;  %13738 = vst [vmem:[#allocation153_spill] sm:$0xff] %v9960_v51  ;;  %v13892_v51 = vld [vmem:[#allocation23_spill] sm:$0xff] }
 0x503   : > { %8139 = vset.pattern.permute.xlu0 %v13472_v10  ;;  %v8374_v10 = vpop.eup %8373 }
 0x505   : > { %v9955_v42 = vpop.permute.xlu1 %2656 }
 0x506   : > { %13737 = vst [vmem:[#allocation152_spill] sm:$0xff] %v9955_v42  ;;  %859 = vrot.lane.b32.xlu0 %v8370_v3, %s8647_s24  ;;  %8085 = vset.pattern.permute.xlu1 %v13636_v44  ;;  %v9970_v3 = vpop.permute.xlu0 %3326 }
 0x507   : > { %2970 = vperm.xlu1 %8085, %v9823_v57   ;;  %13741 = vst [vmem:[#allocation156_spill] sm:$0xff] %v9970_v3 }
 0x50a   : > { %863 = vrot.lane.b32.xlu0 %v8372_v46, %s8647_s24  ;;  %v9963_v11 = vpop.permute.xlu1 %2728  ;;  %v13474_v46 = vmov 2  }
 0x50b   : > { %13739 = vst [vmem:[#allocation154_spill] sm:$0xff] %v9963_v11  ;;  %8086 = vset.pattern.permute.xlu1 %v13639_v45  ;;  %v9978_v45 = vpop.permute.xlu0 %3470 }
 0x50c   : > { %3042 = vperm.xlu1 %8086, %v9823_v57   ;;  %13743 = vst [vmem:[#allocation158_spill] sm:$0xff] %v9978_v45 }
 0x50e   : > { %867 = vrot.lane.b32.xlu0 %v8374_v10, %s8647_s24 }
 0x50f   : > { %v9968_v42 = vpop.permute.xlu1 %2890 }
 0x510   : > { %13740 = vst [vmem:[#allocation155_spill] sm:$0xff] %v9968_v42  ;;  %8087 = vset.pattern.permute.xlu1 %v13642_v43  ;;  %v9988_v43 = vpop.permute.xlu0 %1259 }
 0x511   : > { %3186 = vperm.xlu1 %8087, %v9823_v57   ;;  %13745 = vst [vmem:[#allocation160_spill] sm:$0xff] %v9988_v43 }
 0x512   : > { %4643 = vperm.xlu0 %8139, %v9444_v59  }
 0x514   : > { %v9975_v44 = vpop.permute.xlu1 %2962 }
 0x515   : > { %13742 = vst [vmem:[#allocation157_spill] sm:$0xff] %v9975_v44  ;;  %8088 = vset.pattern.permute.xlu1 %v13645_v5 }
 0x516   : > { %8140 = vset.pattern.permute.xlu0 %v13474_v46  ;;  %3258 = vperm.xlu1 %8088, %v9823_v57   ;;  %v9995_v46 = vpop.permute.xlu0 %1335 }
 0x517   : > { %3885 = vperm.xlu0 %8140, %v9902_v0   ;;  %13747 = vst [vmem:[#allocation162_spill] sm:$0xff] %v9995_v46 }
 0x519   : > { %v9983_v10 = vpop.permute.xlu1 %3034 }
 0x51a   : > { %13744 = vst [vmem:[#allocation159_spill] sm:$0xff] %v9983_v10  ;;  %8089 = vset.pattern.permute.xlu1 %v13648_v60  ;;  %v13749_v60 = vmov 41   ;;  %v10002_v42 = vpop.permute.xlu0 %1411 }
 0x51b   : > { %3900 = vperm.xlu0 %8140, %v9444_v59   ;;  %3330 = vperm.xlu1 %8089, %v9823_v57   ;;  %13750 = vst [vmem:[#allocation164_spill] sm:$0xff] %v10002_v42 }
 0x51e   : > { %v9990_v5 = vpop.permute.xlu1 %3178  ;;  %v10012_v11 = vpop.permute.xlu0 %1573 }
 0x51f   : > { %13746 = vst [vmem:[#allocation161_spill] sm:$0xff] %v9990_v5  ;;  %3910 = vperm.xlu0 %8140, %v9634_v13   ;;  %8090 = vset.pattern.permute.xlu1 %v13650_v31  ;;  %v10006_v5 = vld [vmem:[#allocation3 + $0x10] sm:$0xff]  ;;  %13753 = vst [vmem:[#allocation167_spill] sm:$0xff] %v10012_v11 }
 0x520   : > { %3474 = vperm.xlu1 %8090, %v9823_v57  }
 0x523   : > { %3920 = vperm.xlu0 %8140, %v9823_v57   ;;  %v9998_v10 = vpop.permute.xlu1 %3250 }
 0x524   : > { %13748 = vst [vmem:[#allocation163_spill] sm:$0xff] %v9998_v10  ;;  %8091 = vset.pattern.permute.xlu1 %v13749_v60  ;;  %v10017_v60 = vpop.permute.xlu0 %1645 }
 0x525   : > { %3518 = vperm.xlu1 %8091, %v9902_v0   ;;  %13755 = vst [vmem:[#allocation169_spill] sm:$0xff] %v10017_v60 }
 0x528   : > { %v10004_v44 = vpop.permute.xlu1 %3322  ;;  %v10023_v40 = vpop.permute.xlu0 %1717 }
 0x529   : > { %13751 = vst [vmem:[#allocation165_spill] sm:$0xff] %v10004_v44  ;;  %3526 = vperm.xlu1 %8091, %v10006_v5   ;;  %v13757_v44 = vmov 45   ;;  %13758 = vst [vmem:[#allocation171_spill] sm:$0xff] %v10023_v40 }
 0x52d   : > { %3530 = vperm.xlu1 %8091, %v9444_v59   ;;  %v10010_v31 = vpop.permute.xlu1 %3466 }
 0x52e   : > { %13752 = vst [vmem:[#allocation166_spill] sm:$0xff] %v10010_v31  ;;  %v10029_v31 = vpop.permute.xlu0 %1865 }
 0x52f   : > { %13760 = vst [vmem:[#allocation173_spill] sm:$0xff] %v10029_v31 }
 0x531   : > { %3538 = vperm.xlu1 %8091, %v9634_v13  }
 0x532   : > { %v10015_v10 = vpop.permute.xlu1 %1254 }
 0x533   : > { %13754 = vst [vmem:[#allocation168_spill] sm:$0xff] %v10015_v10  ;;  %v10034_v10 = vpop.permute.xlu0 %1941 }
 0x534   : > { %13762 = vst [vmem:[#allocation175_spill] sm:$0xff] %v10034_v10 }
 0x535   : > { %3546 = vperm.xlu1 %8091, %v9823_v57  }
 0x537   : > { %v10020_v42 = vpop.permute.xlu1 %1331  ;;  %v10042_v40 = vpop.permute.xlu0 %2017 }
 0x538   : > { %13756 = vst [vmem:[#allocation170_spill] sm:$0xff] %v10020_v42  ;;  %13765 = vst [vmem:[#allocation178_spill] sm:$0xff] %v10042_v40 }
 0x539   : > { %8115 = vset.pattern.permute.xlu1 %v13757_v44 }
 0x53a   : > { %3590 = vperm.xlu1 %8115, %v9902_v0  }
 0x53c   : > { %v10026_v46 = vpop.permute.xlu1 %1407 }
 0x53d   : > { %13759 = vst [vmem:[#allocation172_spill] sm:$0xff] %v10026_v46  ;;  %v13766_v46 = vmov 2  }
 0x53e   : > { %3598 = vperm.xlu1 %8115, %v10006_v5  }
 0x541   : > { %v10031_v11 = vpop.permute.xlu1 %1569 }
 0x542   : > { %13761 = vst [vmem:[#allocation174_spill] sm:$0xff] %v10031_v11  ;;  %3602 = vperm.xlu1 %8115, %v9444_v59   ;;  %v10049_v59 = vpop.permute.xlu0 %2161 }
 0x543   : > { %13768 = vst [vmem:[#allocation180_spill] sm:$0xff] %v10049_v59 }
 0x546   : > { %3610 = vperm.xlu1 %8115, %v9634_v13   ;;  %v10037_v42 = vpop.permute.xlu1 %1641 }
 0x547   : > { %13763 = vst [vmem:[#allocation176_spill] sm:$0xff] %v10037_v42  ;;  %v8424_v42 = vld [vmem:[#allocation3 + $0x20] sm:$0xff] }
 0x54a   : > { %3618 = vperm.xlu1 %8115, %v9823_v57   ;;  %v10057_v57 = vpop.permute.xlu0 %2233 }
 0x54b   : > { %v10040_v44 = vpop.permute.xlu1 %1713  ;;  %13770 = vst [vmem:[#allocation182_spill] sm:$0xff] %v10057_v57 }
 0x54c   : > { %13764 = vst [vmem:[#allocation177_spill] sm:$0xff] %v10040_v44 }
 0x54e   : > { %3752 = vrot.lane.b32.xlu1 %v9642_v58, %s8616_s21  ;;  %v10062_v58 = vpop.permute.xlu0 %2305 }
 0x54f   : > { %8117 = vset.pattern.permute.xlu1 %v13766_v46  ;;  %13772 = vst [vmem:[#allocation184_spill] sm:$0xff] %v10062_v58  ;;  %v13481_v58 = vmov 6  }
 0x550   : > { %v10047_v11 = vpop.permute.xlu1 %1861 }
 0x551   : > { %13767 = vst [vmem:[#allocation179_spill] sm:$0xff] %v10047_v11 }
 0x552   : > { %3756 = vrot.lane.b32.xlu1 %v9678_v14, %s8616_s21  ;;  %v10067_v14 = vpop.permute.xlu0 %2596 }
 0x553   : > { %13774 = vst [vmem:[#allocation186_spill] sm:$0xff] %v10067_v14 }
 0x555   : > { %v10053_v13 = vpop.permute.xlu1 %1937 }
 0x556   : > { %13769 = vst [vmem:[#allocation181_spill] sm:$0xff] %v10053_v13  ;;  %3760 = vrot.lane.b32.xlu1 %v9790_v22, %s8616_s21  ;;  %v10074_v57 = vpop.permute.xlu0 %2668  ;;  %s8666_s21 = smov 32  }
 0x557   : > { %13777 = vst [vmem:[#allocation189_spill] sm:$0xff] %v10074_v57 }
 0x55a   : > { %v10059_v44 = vpop.permute.xlu1 %2013  ;;  %3890 = vperm.xlu1 %8117, %v9839_v32  }
 0x55b   : > { %13771 = vst [vmem:[#allocation183_spill] sm:$0xff] %v10059_v44 }
 0x55e   : > { %3895 = vperm.xlu1 %8117, %v10006_v5  }
 0x55f   : > { %v10065_v11 = vpop.permute.xlu1 %2157 }
 0x560   : > { %13773 = vst [vmem:[#allocation185_spill] sm:$0xff] %v10065_v11  ;;  %v10081_v11 = vpop.permute.xlu0 %2740 }
 0x561   : > { %13779 = vst [vmem:[#allocation191_spill] sm:$0xff] %v10081_v11 }
 0x562   : > { %3905 = vperm.xlu1 %8117, %v8424_v42  }
 0x564   : > { %v10069_v13 = vpop.permute.xlu1 %2229 }
 0x565   : > { %13775 = vst [vmem:[#allocation187_spill] sm:$0xff] %v10069_v13  ;;  %v10086_v13 = vpop.permute.xlu0 %2902 }
 0x566   : > { %3915 = vperm.xlu1 %8117, %v9454_v55   ;;  %13781 = vst [vmem:[#allocation193_spill] sm:$0xff] %v10086_v13 }
 0x569   : > { %v10072_v22 = vpop.permute.xlu1 %2301  ;;  %v10091_v57 = vpop.permute.xlu0 %2974 }
 0x56a   : > { %13776 = vst [vmem:[#allocation188_spill] sm:$0xff] %v10072_v22  ;;  %3925 = vperm.xlu1 %8117, %v9646_v17   ;;  %13783 = vst [vmem:[#allocation195_spill] sm:$0xff] %v10091_v57  ;;  %v8425_v57 = vld [vmem:[#allocation3 + $0x30] sm:$0xff] }
 0x56e   : > { %v10077_v44 = vpop.permute.xlu1 %2591  ;;  %8118 = vset.pattern.permute.xlu1 %v13481_v58  ;;  %v10096_v58 = vpop.permute.xlu0 %3046 }
 0x56f   : > { %13778 = vst [vmem:[#allocation190_spill] sm:$0xff] %v10077_v44  ;;  %3969 = vperm.xlu1 %8118, %v9839_v32   ;;  %13785 = vst [vmem:[#allocation197_spill] sm:$0xff] %v10096_v58 }
 0x573   : > { %v10083_v14 = vpop.permute.xlu1 %2664  ;;  %3973 = vperm.xlu1 %8118, %v10006_v5  }
 0x574   : > { %13780 = vst [vmem:[#allocation192_spill] sm:$0xff] %v10083_v14  ;;  %v13483_v14 = vmov 10  }
 0x577   : > { %3981 = vperm.xlu1 %8118, %v8424_v42  }
 0x578   : > { %v10088_v22 = vpop.permute.xlu1 %2736 }
 0x579   : > { %13782 = vst [vmem:[#allocation194_spill] sm:$0xff] %v10088_v22  ;;  %v10104_v22 = vpop.permute.xlu0 %3190 }
 0x57a   : > { %13788 = vst [vmem:[#allocation200_spill] sm:$0xff] %v10104_v22 }
 0x57b   : > { %3989 = vperm.xlu1 %8118, %v9454_v55  }
 0x57d   : > { %v10093_v44 = vpop.permute.xlu1 %2898 }
 0x57e   : > { %13784 = vst [vmem:[#allocation196_spill] sm:$0xff] %v10093_v44  ;;  %v10109_v44 = vpop.permute.xlu0 %3262 }
 0x57f   : > { %3997 = vperm.xlu1 %8118, %v9646_v17   ;;  %13790 = vst [vmem:[#allocation202_spill] sm:$0xff] %v10109_v44 }
 0x582   : > { %v10098_v11 = vpop.permute.xlu1 %2970 }
 0x583   : > { %13786 = vst [vmem:[#allocation198_spill] sm:$0xff] %v10098_v11  ;;  %8119 = vset.pattern.permute.xlu1 %v13483_v14  ;;  %v10113_v11 = vpop.permute.xlu0 %3334 }
 0x584   : > { %4041 = vperm.xlu1 %8119, %v9839_v32   ;;  %13792 = vst [vmem:[#allocation204_spill] sm:$0xff] %v10113_v11 }
 0x587   : > { %v10102_v13 = vpop.permute.xlu1 %3042  ;;  %v10120_v22 = vpop.permute.xlu0 %3478 }
 0x588   : > { %13787 = vst [vmem:[#allocation199_spill] sm:$0xff] %v10102_v13  ;;  %4045 = vperm.xlu1 %8119, %v10006_v5   ;;  %v13485_v13 = vmov 14   ;;  %13794 = vst [vmem:[#allocation206_spill] sm:$0xff] %v10120_v22 }
 0x58b   : > { %v10125_v44 = vpop.permute.xlu0 %3522 }
 0x58c   : > { %v10107_v55 = vpop.permute.xlu1 %3186  ;;  %4053 = vperm.xlu1 %8119, %v8424_v42  }
 0x58d   : > { %13789 = vst [vmem:[#allocation201_spill] sm:$0xff] %v10107_v55 }
 0x590   : > { %4061 = vperm.xlu1 %8119, %v8425_v57  }
 0x591   : > { %v10111_v58 = vpop.permute.xlu1 %3258 }
 0x592   : > { %13791 = vst [vmem:[#allocation203_spill] sm:$0xff] %v10111_v58 }
 0x594   : > { %4069 = vperm.xlu1 %8119, %v9646_v17  }
 0x596   : > { %v10116_v14 = vpop.permute.xlu1 %3330 }
 0x597   : > { %13793 = vst [vmem:[#allocation205_spill] sm:$0xff] %v10116_v14  ;;  %v10131_v14 = vpop.permute.xlu0 %3534 }
 0x598   : > { %8120 = vset.pattern.permute.xlu1 %v13485_v13  ;;  %13797 = vst [vmem:[#allocation209_spill] sm:$0xff] %v10131_v14 }
 0x599   : > { %4203 = vperm.xlu1 %8120, %v9839_v32  }
 0x59b   : > { %v10122_v55 = vpop.permute.xlu1 %3474  ;;  %v10136_v13 = vpop.permute.xlu0 %3542 }
 0x59c   : > { %13795 = vst [vmem:[#allocation207_spill] sm:$0xff] %v10122_v55  ;;  %13799 = vst [vmem:[#allocation211_spill] sm:$0xff] %v10136_v13  ;;  %v13801_v55 = vmov 18  }
 0x59d   : > { %4207 = vperm.xlu1 %8120, %v10006_v5  }
 0x59f   : > { %v10144_v10 = vpop.permute.xlu0 %3550 }
 0x5a0   : > { %v10127_v58 = vpop.permute.xlu1 %3518  ;;  %13803 = vst [vmem:[#allocation214_spill] sm:$0xff] %v10144_v10 }
 0x5a1   : > { %4215 = vperm.xlu1 %8120, %v8424_v42  }
 0x5a3   : > { %v10149_v14 = vpop.permute.xlu0 %3594 }
 0x5a4   : > { %v10129_v11 = vpop.permute.xlu1 %3526 }
 0x5a5   : > { %13796 = vst [vmem:[#allocation208_spill] sm:$0xff] %v10129_v11  ;;  %4223 = vperm.xlu1 %8120, %v8425_v57  }
 0x5a8   : > { %v10133_v59 = vpop.permute.xlu1 %3530 }
 0x5a9   : > { %13798 = vst [vmem:[#allocation210_spill] sm:$0xff] %v10133_v59  ;;  %4231 = vperm.xlu1 %8120, %v9646_v17  }
 0x5ac   : > { %v10138_v22 = vpop.permute.xlu1 %3538 }
 0x5ad   : > { %13800 = vst [vmem:[#allocation212_spill] sm:$0xff] %v10138_v22  ;;  %8122 = vset.pattern.permute.xlu1 %v13801_v55  ;;  %v10155_v22 = vpop.permute.xlu0 %3606 }
 0x5ae   : > { %4275 = vperm.xlu1 %8122, %v9839_v32   ;;  %13806 = vst [vmem:[#allocation217_spill] sm:$0xff] %v10155_v22  ;;  %v13811_v22 = vmov 30  }
 0x5b0   : > { %v10142_v40 = vpop.permute.xlu1 %3546 }
 0x5b1   : > { %13802 = vst [vmem:[#allocation213_spill] sm:$0xff] %v10142_v40  ;;  %v13489_v40 = vmov 22   ;;  %v10162_v10 = vpop.permute.xlu0 %3614 }
 0x5b2   : > { %4279 = vperm.xlu1 %8122, %v10006_v5   ;;  %13808 = vst [vmem:[#allocation219_spill] sm:$0xff] %v10162_v10 }
 0x5b5   : > { %v10147_v31 = vpop.permute.xlu1 %3590 }
 0x5b6   : > { %4287 = vperm.xlu1 %8122, %v8424_v42  }
 0x5b9   : > { %v10151_v60 = vpop.permute.xlu1 %3598 }
 0x5ba   : > { %13804 = vst [vmem:[#allocation215_spill] sm:$0xff] %v10151_v60  ;;  %4295 = vperm.xlu1 %8122, %v8425_v57   ;;  %v10167_v60 = vpop.permute.xlu0 %3622 }
 0x5bb   : > { %13810 = vst [vmem:[#allocation221_spill] sm:$0xff] %v10167_v60 }
 0x5bd   : > { %v10153_v13 = vpop.permute.xlu1 %3602 }
 0x5be   : > { %13805 = vst [vmem:[#allocation216_spill] sm:$0xff] %v10153_v13  ;;  %4303 = vperm.xlu1 %8122, %v9646_v17   ;;  %v13491_v13 = vmov 26  }
 0x5c1   : > { %v10158_v55 = vpop.permute.xlu1 %3610 }
 0x5c2   : > { %13807 = vst [vmem:[#allocation218_spill] sm:$0xff] %v10158_v55  ;;  %8123 = vset.pattern.permute.xlu1 %v13489_v40  ;;  %v3755_v55 = vpop.permute.xlu0 %3754 }
 0x5c3   : > { %4347 = vperm.xlu1 %8123, %v9839_v32  }
 0x5c5   : > { %v10164_v42 = vpop.permute.xlu1 %3618 }
 0x5c6   : > { %13809 = vst [vmem:[#allocation220_spill] sm:$0xff] %v10164_v42  ;;  %v13812_v42 = vmov 34   ;;  %v3759_v59 = vpop.permute.xlu0 %3758 }
 0x5c7   : > { %4351 = vperm.xlu1 %8123, %v10006_v5  }
 0x5c9   : > { %v3753_v57 = vpop.permute.xlu1 %3752 }
 0x5cb   : > { %8124 = vset.pattern.permute.xlu1 %v13491_v13 }
 0x5cc   : > { %4491 = vperm.xlu1 %8124, %v9839_v32  }
 0x5cd   : > { %v3757_v17 = vpop.permute.xlu1 %3756 }
 0x5d0   : > { %8125 = vset.pattern.permute.xlu1 %v13811_v22 }
 0x5d1   : > { %4559 = vperm.xlu1 %8125, %v9902_v0   ;;  %v3761_v40 = vpop.permute.xlu1 %3760 }
 0x5d2   : > { %v3782_v10 = vsel %vm2451_vm6, %v3761_v40, 0 }
 0x5d3   : > { %7637 = vmatpush3.bf16.msra.mxu1 %v3782_v10  ;;  %v13493_v10 = vmov 38  }
 0x5d4   : > { %7638 = vmatprep.subr.bf16.mxu1 %v13703_v27 }
 0x5d5   : > { %8127 = vset.pattern.permute.xlu1 %v13812_v42  ;;  %v10176_v60 = vpop.permute.xlu1 %3890 }
 0x5d6   : > { %13813 = vst [vmem:[#allocation222_spill] sm:$0xff] %v10176_v60  ;;  %4631 = vperm.xlu1 %8127, %v9902_v0   ;;  %v13495_v60 = vmov 42  }
 0x5d7   : > { %7639 = vmatpush3.bf16.msra.mxu1 %v3759_v59 }
 0x5d8   : > { %7640 = vmatprep.subr.bf16.mxu1 %v13703_v27 }
 0x5d9   : > { %v10180_v13 = vpop.permute.xlu1 %3895 }
 0x5da   : > { %13814 = vst [vmem:[#allocation223_spill] sm:$0xff] %v10180_v13  ;;  %4635 = vperm.xlu1 %8127, %v9839_v32   ;;  %v13822_v13 = vmov 26  }
 0x5db   : > { %7641 = vmatpush3.bf16.msra.mxu1 %v3757_v17 }
 0x5dc   : > { %7642 = vmatprep.subr.bf16.mxu1 %v13703_v27 }
 0x5dd   : > { %v10184_v40 = vpop.permute.xlu1 %3905 }
 0x5de   : > { %13815 = vst [vmem:[#allocation224_spill] sm:$0xff] %v10184_v40  ;;  %8128 = vset.pattern.permute.xlu1 %v13493_v10  ;;  %v13497_v40 = vmov 46  }
 0x5df   : > { %4779 = vperm.xlu1 %8128, %v9839_v32   ;;  %7643 = vmatpush3.bf16.msra.mxu1 %v3755_v55 }
 0x5e0   : > { %7644 = vmatprep.subr.bf16.mxu1 %v13703_v27 }
 0x5e1   : > { %v10189_v59 = vpop.permute.xlu1 %3915 }
 0x5e2   : > { %13816 = vst [vmem:[#allocation225_spill] sm:$0xff] %v10189_v59  ;;  %v13820_v59 = vmov 22  }
 0x5e3   : > { %8129 = vset.pattern.permute.xlu1 %v13495_v60  ;;  %7645 = vmatpush3.bf16.msra.mxu1 %v3753_v57  ;;  %v10204_v57 = vld [vmem:[#allocation3 + $0x18] sm:$0xff] }
 0x5e4   : > { %4847 = vperm.xlu1 %8129, %v9902_v0   ;;  %7696 = vmatprep.subr.bf16.mxu1 %v13703_v27 }
 0x5e5   : > { %v10194_v17 = vpop.permute.xlu1 %3925 }
 0x5e6   : > { %13817 = vst [vmem:[#allocation226_spill] sm:$0xff] %v10194_v17  ;;  %v826_v17 = vmax.f32 %v9490_v53, 1e-20  ;;  %v830_v53 = vmax.f32 %v9592_v41, 1e-20 }
 0x5e8   : > { %8130 = vset.pattern.permute.xlu1 %v13497_v40  ;;  %8375 = vrcp.f32 %v826_v17 }
 0x5e9   : > { %4919 = vperm.xlu1 %8130, %v9902_v0  }
 0x5ea   : > { %v10198_v55 = vpop.permute.xlu1 %3969 }
 0x5eb   : > { %13818 = vst [vmem:[#allocation227_spill] sm:$0xff] %v10198_v55 }
 0x5ed   : > { %4923 = vperm.xlu1 %8130, %v9839_v32  }
 0x5ee   : > { %v10201_v10 = vpop.permute.xlu1 %3973 }
 0x5ef   : > { %13819 = vst [vmem:[#allocation228_spill] sm:$0xff] %v10201_v10  ;;  %v828_v10 = vmax.f32 %v9576_v49, 1e-20 }
 0x5f1   : > { %8131 = vset.pattern.permute.xlu1 %v13820_v59  ;;  %8377 = vrcp.f32 %v828_v10  ;;  %v832_v10 = vmax.f32 %v9610_v6, 1e-20  ;;  %v13504_v6 = vmov 15  }
 0x5f2   : > { %4355 = vperm.xlu1 %8131, %v10204_v57   ;;  %v10207_v60 = vpop.permute.xlu1 %3981  ;;  %8379 = vrcp.f32 %v830_v53 }
 0x5f3   : > { %13821 = vst [vmem:[#allocation229_spill] sm:$0xff] %v10207_v60  ;;  %v13500_v60 = vmov 3   ;;  %8381 = vrcp.f32 %v832_v10 }
 0x5f6   : > { %8132 = vset.pattern.permute.xlu1 %v13822_v13  ;;  %v10211_v40 = vpop.permute.xlu1 %3989 }
 0x5f7   : > { %13823 = vst [vmem:[#allocation230_spill] sm:$0xff] %v10211_v40  ;;  %4499 = vperm.xlu1 %8132, %v10204_v57   ;;  %v8376_v40 = vpop.eup %8375 }
 0x5fa   : > { %v10214_v55 = vpop.permute.xlu1 %3997 }
 0x5fb   : > { %13824 = vst [vmem:[#allocation231_spill] sm:$0xff] %v10214_v55  ;;  %8133 = vset.pattern.permute.xlu1 %v13811_v22 }
 0x5fc   : > { %4567 = vperm.xlu1 %8133, %v10006_v5  }
 0x5ff   : > { %v10219_v11 = vpop.permute.xlu1 %4041 }
 0x600   : > { %13825 = vst [vmem:[#allocation232_spill] sm:$0xff] %v10219_v11  ;;  %8134 = vset.pattern.permute.xlu1 %v13500_v60  ;;  %v8378_v11 = vpop.eup %8377  ;;  %v13502_v60 = vmov 7  }
 0x601   : > { %5209 = vperm.xlu1 %8134, %v9902_v0   ;;  %v8380_v53 = vpop.eup %8379 }
 0x602   : > { %v8382_v10 = vpop.eup %8381 }
 0x603   : > { %v10224_v17 = vpop.permute.xlu1 %4045 }
 0x604   : > { %13826 = vst [vmem:[#allocation233_spill] sm:$0xff] %v10224_v17  ;;  %v13510_v17 = vmov 23  }
 0x605   : > { %853 = vrot.lane.b32.xlu1 %v8376_v40, %s8647_s24  ;;  %v834_v40 = vmax.f32 %v9625_v56, 1e-20 }
 0x607   : > { %v10227_v49 = vpop.permute.xlu1 %4053  ;;  %8383 = vrcp.f32 %v834_v40 }
 0x608   : > { %13827 = vst [vmem:[#allocation234_spill] sm:$0xff] %v10227_v49 }
 0x609   : > { %5214 = vperm.xlu1 %8134, %v9839_v32  }
 0x60b   : > { %v10231_v55 = vpop.permute.xlu1 %4061 }
 0x60c   : > { %13828 = vst [vmem:[#allocation235_spill] sm:$0xff] %v10231_v55  ;;  %v10252_v55 = vpop.permute.xlu0 %4271 }
 0x60d   : > { %857 = vrot.lane.b32.xlu1 %v8378_v11, %s8647_s24  ;;  %13834 = vst [vmem:[#allocation241_spill] sm:$0xff] %v10252_v55 }
 0x60e   : > { %8135 = vset.pattern.permute.xlu1 %v13502_v60 }
 0x60f   : > { %v10235_v41 = vpop.permute.xlu1 %4069 }
 0x610   : > { %13829 = vst [vmem:[#allocation236_spill] sm:$0xff] %v10235_v41  ;;  %v13506_v41 = vmov 19  }
 0x611   : > { %5293 = vperm.xlu1 %8135, %v9839_v32  }
 0x614   : > { %v10239_v49 = vpop.permute.xlu1 %4203 }
 0x615   : > { %13830 = vst [vmem:[#allocation237_spill] sm:$0xff] %v10239_v49  ;;  %861 = vrot.lane.b32.xlu1 %v8380_v53, %s8647_s24  ;;  %v8384_v53 = vpop.eup %8383 }
 0x616   : > { %8136 = vset.pattern.permute.xlu1 %v13504_v6  ;;  %v10258_v6 = vpop.permute.xlu0 %4283 }
 0x617   : > { %13836 = vst [vmem:[#allocation243_spill] sm:$0xff] %v10258_v6 }
 0x618   : > { %v10243_v11 = vpop.permute.xlu1 %4207 }
 0x619   : > { %13831 = vst [vmem:[#allocation238_spill] sm:$0xff] %v10243_v11  ;;  %5523 = vperm.xlu1 %8136, %v9902_v0  }
 0x61c   : > { %v10246_v60 = vpop.permute.xlu1 %4215 }
 0x61d   : > { %13832 = vst [vmem:[#allocation239_spill] sm:$0xff] %v10246_v60  ;;  %865 = vrot.lane.b32.xlu1 %v8382_v10, %s8647_s24  ;;  %v10263_v10 = vpop.permute.xlu0 %4291  ;;  %v13841_v60 = vmov 38  }
 0x61e   : > { %8137 = vset.pattern.permute.xlu1 %v13506_v41  ;;  %13838 = vst [vmem:[#allocation245_spill] sm:$0xff] %v10263_v10 }
 0x620   : > { %v10250_v56 = vpop.permute.xlu1 %4223 }
 0x621   : > { %13833 = vst [vmem:[#allocation240_spill] sm:$0xff] %v10250_v56  ;;  %5595 = vperm.xlu1 %8137, %v9902_v0  }
 0x624   : > { %v10255_v40 = vpop.permute.xlu1 %4231 }
 0x625   : > { %13835 = vst [vmem:[#allocation242_spill] sm:$0xff] %v10255_v40  ;;  %869 = vrot.lane.b32.xlu1 %v8384_v53, %s8647_s24  ;;  %v10272_v40 = vpop.permute.xlu0 %4299 }
 0x626   : > { %13842 = vst [vmem:[#allocation248_spill] sm:$0xff] %v10272_v40 }
 0x629   : > { %v10260_v11 = vpop.permute.xlu1 %4275  ;;  %5599 = vperm.xlu1 %8137, %v9839_v32   ;;  %v10278_v49 = vpop.permute.xlu0 %4563 }
 0x62a   : > { %13837 = vst [vmem:[#allocation244_spill] sm:$0xff] %v10260_v11  ;;  %13844 = vst [vmem:[#allocation250_spill] sm:$0xff] %v10278_v49  ;;  %v13512_v49 = vmov 27  }
 0x62d   : > { %v10265_v41 = vpop.permute.xlu1 %4279  ;;  %8138 = vset.pattern.permute.xlu1 %v13812_v42  ;;  %v13887_v42 = vld [vmem:[#allocation12_spill] sm:$0xff] }
 0x62e   : > { %13839 = vst [vmem:[#allocation246_spill] sm:$0xff] %v10265_v41  ;;  %4639 = vperm.xlu1 %8138, %v10006_v5   ;;  %v13846_v41 = vmov 42  }
 0x631   : > { %v10269_v56 = vpop.permute.xlu1 %4287 }
 0x632   : > { %13840 = vst [vmem:[#allocation247_spill] sm:$0xff] %v10269_v56  ;;  %8141 = vset.pattern.permute.xlu1 %v13841_v60  ;;  %v10286_v56 = vpop.permute.xlu0 %5084 }
 0x633   : > { %4783 = vperm.xlu1 %8141, %v10006_v5   ;;  %13848 = vst [vmem:[#allocation253_spill] sm:$0xff] %v10286_v56  ;;  %v13508_v5 = vmov 11   ;;  %v13923_v56 = vld [vmem:[#allocation56_spill] sm:$0xff] }
 0x635   : > { %v10275_v53 = vpop.permute.xlu1 %4295 }
 0x636   : > { %13843 = vst [vmem:[#allocation249_spill] sm:$0xff] %v10275_v53  ;;  %v10294_v40 = vpop.permute.xlu0 %4571 }
 0x637   : > { %4787 = vperm.xlu1 %8141, %v10204_v57   ;;  %13850 = vst [vmem:[#allocation255_spill] sm:$0xff] %v10294_v40 }
 0x639   : > { %v10280_v10 = vpop.permute.xlu1 %4303 }
 0x63a   : > { %13845 = vst [vmem:[#allocation251_spill] sm:$0xff] %v10280_v10 }
 0x63b   : > { %8142 = vset.pattern.permute.xlu1 %v13846_v41  ;;  %v13889_v41 = vld [vmem:[#allocation15_spill] sm:$0xff] }
 0x63c   : > { %4859 = vperm.xlu1 %8142, %v10204_v57   ;;  %v856_v57 = vpop.permute.xlu0 %855 }
 0x63e   : > { %v10284_v11 = vpop.permute.xlu1 %4347 }
 0x63f   : > { %13847 = vst [vmem:[#allocation252_spill] sm:$0xff] %v10284_v11 }
 0x640   : > { %5082 = vrot.lane.b32.xlu1 %v9694_v34, %s8619_s22 }
 0x641   : > { %8143 = vset.pattern.permute.xlu1 %v13508_v5  ;;  %v860_v5 = vpop.permute.xlu0 %859 }
 0x642   : > { %v10291_v53 = vpop.permute.xlu1 %4351 }
 0x643   : > { %13849 = vst [vmem:[#allocation254_spill] sm:$0xff] %v10291_v53 }
 0x644   : > { %5365 = vperm.xlu1 %8143, %v9839_v32  }
 0x647   : > { %v10296_v10 = vpop.permute.xlu1 %4491 }
 0x648   : > { %13851 = vst [vmem:[#allocation256_spill] sm:$0xff] %v10296_v10  ;;  %8144 = vset.pattern.permute.xlu1 %v13510_v17  ;;  %v881_v10 = vmul.f32 %v9106_v23, %v856_v57  ;;  %v864_v17 = vpop.permute.xlu0 %863 }
 0x649   : > { %5667 = vperm.xlu1 %8144, %v9902_v0  }
 0x64c   : > { %v10300_v11 = vpop.permute.xlu1 %4559 }
 0x64d   : > { %13852 = vst [vmem:[#allocation257_spill] sm:$0xff] %v10300_v11  ;;  %8145 = vset.pattern.permute.xlu1 %v13512_v49  ;;  %v883_v11 = vmul.f32 %v9089_v8, %v860_v5  ;;  %v868_v49 = vpop.permute.xlu0 %867 }
 0x64e   : > { %5811 = vperm.xlu1 %8145, %v9902_v0   ;;  %v885_v0 = vmul.f32 %v9093_v9, %v864_v17  ;;  %v887_v23 = vmul.f32 %v9119_v36, %v868_v49 }
 0x651   : > { %v10304_v53 = vpop.permute.xlu1 %4631 }
 0x652   : > { %13853 = vst [vmem:[#allocation258_spill] sm:$0xff] %v10304_v53  ;;  %5815 = vperm.xlu1 %8145, %v9839_v32  }
 0x655   : > { %v10308_v40 = vpop.permute.xlu1 %4635 }
 0x656   : > { %13854 = vst [vmem:[#allocation259_spill] sm:$0xff] %v10308_v40  ;;  %900 = vrot.lane.b32.xlu1 %v881_v10, %s8621_s23 }
 0x657   : > { %8146 = vset.pattern.permute.xlu1 %v13653_v24 }
 0x65a   : > { %v10313_v6 = vpop.permute.xlu1 %4779  ;;  %904 = vrot.lane.b32.xlu1 %v883_v11, %s8621_s23 }
 0x65b   : > { %13855 = vst [vmem:[#allocation260_spill] sm:$0xff] %v10313_v6 }
 0x65e   : > { %908 = vrot.lane.b32.xlu1 %v885_v0, %s8621_s23 }
 0x65f   : > { %v10318_v32 = vpop.permute.xlu1 %4847 }
 0x660   : > { %13856 = vst [vmem:[#allocation261_spill] sm:$0xff] %v10318_v32 }
 0x662   : > { %912 = vrot.lane.b32.xlu1 %v887_v23, %s8621_s23 }
 0x664   : > { %v10322_v10 = vpop.permute.xlu1 %4919 }
 0x665   : > { %13857 = vst [vmem:[#allocation262_spill] sm:$0xff] %v10322_v10 }
 0x668   : > { %v10324_v57 = vpop.permute.xlu1 %4923 }
 0x669   : > { %13858 = vst [vmem:[#allocation263_spill] sm:$0xff] %v10324_v57 }
 0x66d   : > { %v10326_v8 = vpop.permute.xlu1 %4355 }
 0x66e   : > { %13859 = vst [vmem:[#allocation264_spill] sm:$0xff] %v10326_v8 }
 0x672   : > { %v10328_v5 = vpop.permute.xlu1 %4499 }
 0x673   : > { %13860 = vst [vmem:[#allocation265_spill] sm:$0xff] %v10328_v5 }
 0x677   : > { %v10330_v11 = vpop.permute.xlu1 %4567 }
 0x678   : > { %13861 = vst [vmem:[#allocation266_spill] sm:$0xff] %v10330_v11 }
 0x67c   : > { %v10332_v9 = vpop.permute.xlu1 %5209 }
 0x67d   : > { %13862 = vst [vmem:[#allocation267_spill] sm:$0xff] %v10332_v9 }
 0x680   : > { %v854_v17 = vpop.permute.xlu1 %853 }
 0x681   : > { %v880_v0 = vmul.f32 %v9081_v15, %v854_v17 }
 0x683   : > { %898 = vrot.lane.b32.xlu0 %v880_v0, %s8621_s23 }
 0x684   : > { %v10336_v36 = vpop.permute.xlu1 %5214 }
 0x685   : > { %13863 = vst [vmem:[#allocation268_spill] sm:$0xff] %v10336_v36 }
 0x688   : > { %v858_v49 = vpop.permute.xlu1 %857 }
 0x689   : > { %v882_v23 = vmul.f32 %v9085_v16, %v858_v49 }
 0x68b   : > { %902 = vrot.lane.b32.xlu0 %v882_v23, %s8621_s23 }
 0x68c   : > { %v10340_v57 = vpop.permute.xlu1 %5293 }
 0x68d   : > { %13864 = vst [vmem:[#allocation269_spill] sm:$0xff] %v10340_v57 }
 0x690   : > { %v862_v8 = vpop.permute.xlu1 %861 }
 0x691   : > { %v884_v10 = vmul.f32 %v9112_v26, %v862_v8 }
 0x693   : > { %906 = vrot.lane.b32.xlu0 %v884_v10, %s8621_s23 }
 0x694   : > { %v10344_v9 = vpop.permute.xlu1 %5523 }
 0x695   : > { %13865 = vst [vmem:[#allocation270_spill] sm:$0xff] %v10344_v9 }
 0x698   : > { %v866_v11 = vpop.permute.xlu1 %865 }
 0x699   : > { %v886_v15 = vmul.f32 %v9117_v35, %v866_v11 }
 0x69b   : > { %910 = vrot.lane.b32.xlu0 %v886_v15, %s8621_s23 }
 0x69c   : > { %v10348_v17 = vpop.permute.xlu1 %5595 }
 0x69d   : > { %13866 = vst [vmem:[#allocation271_spill] sm:$0xff] %v10348_v17 }
 0x6a0   : > { %v870_v0 = vpop.permute.xlu1 %869 }
 0x6a1   : > { %v888_v16 = vmul.f32 %v9126_v38, %v870_v0 }
 0x6a3   : > { %914 = vrot.lane.b32.xlu0 %v888_v16, %s8621_s23 }
 0x6a4   : > { %v10352_v49 = vpop.permute.xlu1 %5599 }
 0x6a5   : > { %13867 = vst [vmem:[#allocation272_spill] sm:$0xff] %v10352_v49 }
 0x6a9   : > { %v10354_v23 = vpop.permute.xlu1 %4639 }
 0x6aa   : > { %13868 = vst [vmem:[#allocation273_spill] sm:$0xff] %v10354_v23 }
 0x6ae   : > { %v10356_v26 = vpop.permute.xlu1 %4783 }
 0x6af   : > { %13869 = vst [vmem:[#allocation274_spill] sm:$0xff] %v10356_v26  ;;  %v10374_v26 = vpop.permute.xlu0 %4643 }
 0x6b0   : > { %13877 = vst [vmem:[#allocation282_spill] sm:$0xff] %v10374_v26  ;;  %v13886_v26 = vld [vmem:[#allocation16_spill] sm:$0xff] }
 0x6b2   : > { %v10358_v10 = vpop.permute.xlu1 %4787 }
 0x6b3   : > { %13870 = vst [vmem:[#allocation275_spill] sm:$0xff] %v10358_v10  ;;  %v10378_v23 = vpop.permute.xlu0 %3885 }
 0x6b4   : > { %13878 = vst [vmem:[#allocation283_spill] sm:$0xff] %v10378_v23 }
 0x6b7   : > { %v10360_v8 = vpop.permute.xlu1 %4859 }
 0x6b8   : > { %13871 = vst [vmem:[#allocation276_spill] sm:$0xff] %v10360_v8 }
 0x6bb   : > { %v10362_v35 = vpop.permute.xlu1 %5082 }
 0x6bc   : > { %13872 = vst [vmem:[#allocation277_spill] sm:$0xff] %v10362_v35 }
 0x6bf   : > { %v10364_v11 = vpop.permute.xlu1 %5365 }
 0x6c0   : > { %13873 = vst [vmem:[#allocation278_spill] sm:$0xff] %v10364_v11  ;;  %v10426_v11 = vld [vmem:[#allocation7 + $0x2] ss:$0 sm:$0xff] }
 0x6c1   : > { %v1414_v5 = vsub.f32 %v10426_v11, %v9312_v62  ;;  %v13884_v62 = vld [vmem:[#allocation11_spill] sm:$0xff]  ;;  %v1720_v22 = vsub.f32 %v10426_v11, %v13887_v42 }
 0x6c3   : > { %v1423_v53 = vand.u32 2147483647, %v1414_v5  ;;  %v1729_v45 = vand.u32 2147483647, %v1720_v22 }
 0x6c4   : > { %v10366_v15 = vpop.permute.xlu1 %5667 }
 0x6c5   : > { %13874 = vst [vmem:[#allocation279_spill] sm:$0xff] %v10366_v15  ;;  %v10380_v15 = vpop.permute.xlu0 %3900 }
 0x6c6   : > { %13879 = vst [vmem:[#allocation284_spill] sm:$0xff] %v10380_v15  ;;  %v13885_v15 = vld [vmem:[#allocation19_spill] sm:$0xff] }
 0x6c9   : > { %v10368_v9 = vpop.permute.xlu1 %5811 }
 0x6ca   : > { %13875 = vst [vmem:[#allocation280_spill] sm:$0xff] %v10368_v9  ;;  %v10382_v9 = vpop.permute.xlu0 %3910 }
 0x6cb   : > { %13880 = vst [vmem:[#allocation285_spill] sm:$0xff] %v10382_v9  ;;  %v10422_v9 = vld [vmem:[#allocation7 + $0x1] ss:$0 sm:$0xff] }
 0x6cc   : > { %v1338_v36 = vsub.f32 %v10422_v9, %v9300_v12  ;;  %v1648_v6 = vsub.f32 %v10422_v9, %v9326_v19  ;;  %v1649_v19 = vsub.f32 %v10422_v9, %v13885_v15  ;;  %v1432_v15 = vsub.f32 1.0, %v1423_v53 }
 0x6cd   : > { %v10370_v38 = vpop.permute.xlu1 %5815 }
 0x6ce   : > { %13876 = vst [vmem:[#allocation281_spill] sm:$0xff] %v10370_v38  ;;  %v10384_v38 = vpop.permute.xlu0 %3920  ;;  %v1347_v32 = vand.u32 2147483647, %v1338_v36  ;;  %v1657_v55 = vand.u32 2147483647, %v1648_v6 }
 0x6cf   : > { %13881 = vst [vmem:[#allocation286_spill] sm:$0xff] %v10384_v38  ;;  %v10418_v38 = vld [vmem:[#allocation7] ss:$0 sm:$0xff] }
 0x6d0   : > { %v1263_v17 = vsub.f32 %v10418_v38, %v9330_v21  ;;  %v1576_v36 = vsub.f32 %v10418_v38, %v13884_v62  ;;  %v1356_v23 = vsub.f32 1.0, %v1347_v32  ;;  %v10462_v32 = vld [vmem:[#allocation7 + $0x5] ss:$0 sm:$0xff]  ;;  %v1666_v43 = vsub.f32 1.0, %v1657_v55 }
 0x6d1   : > { %v901_v0 = vpop.permute.xlu1 %900 }
 0x6d2   : > { %926 = vst.msk [vmem:[#allocation4 + $0x8] sm:$0xff] %vm697_vm5, %v901_v0  ;;  %v1272_v12 = vand.u32 2147483647, %v1263_v17  ;;  %v1577_v17 = vsub.f32 %v10418_v38, %v13886_v26  ;;  %v1585_v42 = vand.u32 2147483647, %v1576_v36  ;;  %v1441_v36 = vmax.f32 %v1432_v15, 0.0 }
 0x6d3   : > { %v1658_v26 = vand.u32 2147483647, %v1649_v19  ;;  %v13893_v19 = vld [vmem:[#allocation25_spill] sm:$0xff]  ;;  %v1675_v15 = vmax.f32 %v1666_v43, 0.0  ;;  %v13895_v43 = vld [vmem:[#allocation27_spill] sm:$0xff] }
 0x6d4   : > { %v1281_v5 = vsub.f32 1.0, %v1272_v12  ;;  %v1586_v59 = vand.u32 2147483647, %v1577_v17  ;;  %v1594_v55 = vsub.f32 1.0, %v1585_v42 }
 0x6d5   : > { %v905_v16 = vpop.permute.xlu1 %904  ;;  %v1667_v17 = vsub.f32 1.0, %v1658_v26 }
 0x6d6   : > { %928 = vst.msk [vmem:[#allocation4 + $0x18] sm:$0xff] %vm697_vm5, %v905_v16  ;;  %v1290_v3 = vmax.f32 %v1281_v5, 0.0  ;;  %v1603_v42 = vmax.f32 %v1594_v55, 0.0  ;;  %v13898_v55 = vld [vmem:[#allocation32_spill] sm:$0xff] }
 0x6d7   : > { %v1676_v26 = vmax.f32 %v1667_v17, 0.0 }
 0x6d9   : > { %v909_v10 = vpop.permute.xlu1 %908 }
 0x6da   : > { %930 = vst.msk [vmem:[#allocation4 + $0x28] sm:$0xff] %vm697_vm5, %v909_v10  ;;  %v1451_v10 = vld [vmem:[#allocation4 + $0x8] sm:$0xff] }
 0x6dd   : > { %v913_v8 = vpop.permute.xlu1 %912 }
 0x6de   : > { %932 = vst.msk [vmem:[#allocation4 + $0x38] sm:$0xff] %vm697_vm5, %v913_v8 }
 0x6f5   : > { %v899_v0 = vpop.permute.xlu0 %898 }
 0x6f6   : > { %925 = vst.msk [vmem:[#allocation4] sm:$0xff] %vm697_vm5, %v899_v0 }
 0x6fd   : > { %v903_v16 = vpop.permute.xlu0 %902  ;;  %v1450_v49 = vld [vmem:[#allocation4] sm:$0xff] }
 0x6fe   : > { %927 = vst.msk [vmem:[#allocation4 + $0x10] sm:$0xff] %vm697_vm5, %v903_v16  ;;  %1479 = vperm.xlu1 %8146, %v1450_v49   ;;  %4137 = vperm.xlu0 %8140, %v1450_v49  }
 0x702   : > { %8147 = vset.pattern.permute.xlu1 %v13657_v2  ;;  %8154 = vset.pattern.permute.xlu0 %v13653_v24 }
 0x703   : > { %1775 = vperm.xlu1 %8147, %v1450_v49   ;;  %1484 = vperm.xlu0 %8154, %v1451_v10  }
 0x705   : > { %v907_v8 = vpop.permute.xlu0 %906 }
 0x706   : > { %929 = vst.msk [vmem:[#allocation4 + $0x20] sm:$0xff] %vm697_vm5, %v907_v8  ;;  %v13882_v8 = vmov 6  }
 0x707   : > { %8148 = vset.pattern.permute.xlu1 %v13660_v63  ;;  %8155 = vset.pattern.permute.xlu0 %v13657_v2 }
 0x708   : > { %2075 = vperm.xlu1 %8148, %v1450_v49   ;;  %1779 = vperm.xlu0 %8155, %v1451_v10  }
 0x70c   : > { %8149 = vset.pattern.permute.xlu1 %v13663_v20  ;;  %8156 = vset.pattern.permute.xlu0 %v13660_v63 }
 0x70d   : > { %v911_v0 = vpop.permute.xlu0 %910  ;;  %2363 = vperm.xlu1 %8149, %v1450_v49   ;;  %2079 = vperm.xlu0 %8156, %v1451_v10  }
 0x70e   : > { %931 = vst.msk [vmem:[#allocation4 + $0x30] sm:$0xff] %vm697_vm5, %v911_v0  ;;  %v10409_v0 = vld [vmem:[#allocation4 + $0x18] sm:$0xff] }
 0x711   : > { %8150 = vset.pattern.permute.xlu1 %v13625_v1  ;;  %8157 = vset.pattern.permute.xlu0 %v13663_v20 }
 0x712   : > { %2808 = vperm.xlu1 %8150, %v1450_v49   ;;  %2367 = vperm.xlu0 %8157, %v1451_v10  }
 0x715   : > { %v915_v16 = vpop.permute.xlu0 %914 }
 0x716   : > { %933 = vst.msk [vmem:[#allocation4 + $0x40] sm:$0xff] %vm697_vm5, %v915_v16  ;;  %8151 = vset.pattern.permute.xlu1 %v13628_v33  ;;  %8158 = vset.pattern.permute.xlu0 %v13625_v1  ;;  %v10416_v16 = vld [vmem:[#allocation4 + $0x20] sm:$0xff] }
 0x717   : > { %3104 = vperm.xlu1 %8151, %v1450_v49   ;;  %2813 = vperm.xlu0 %8158, %v1451_v10  }
 0x71b   : > { %8152 = vset.pattern.permute.xlu1 %v13631_v52  ;;  %8159 = vset.pattern.permute.xlu0 %v13628_v33 }
 0x71c   : > { %3392 = vperm.xlu1 %8152, %v1450_v49   ;;  %3108 = vperm.xlu0 %8159, %v1451_v10  }
 0x720   : > { %8153 = vset.pattern.permute.xlu1 %v13633_v48  ;;  %8160 = vset.pattern.permute.xlu0 %v13631_v52 }
 0x721   : > { %3680 = vperm.xlu1 %8153, %v1450_v49   ;;  %3396 = vperm.xlu0 %8160, %v1451_v10   ;;  %v10414_v49 = vld [vmem:[#allocation4 + $0x10] sm:$0xff] }
 0x725   : > { %8162 = vset.pattern.permute.xlu1 %v13766_v46  ;;  %8161 = vset.pattern.permute.xlu0 %v13633_v48 }
 0x726   : > { %4142 = vperm.xlu1 %8162, %v1451_v10   ;;  %3684 = vperm.xlu0 %8161, %v1451_v10  }
 0x72a   : > { %8163 = vset.pattern.permute.xlu1 %v13882_v8  ;;  %8181 = vset.pattern.permute.xlu0 %v13766_v46  ;;  %v1365_v8 = vmax.f32 %v1356_v23, 0.0 }
 0x72b   : > { %4437 = vperm.xlu1 %8163, %v1451_v10   ;;  %4152 = vperm.xlu0 %8181, %v10409_v0   ;;  %v1262_v10 = vsub.f32 %v10418_v38, %v9287_v7  ;;  %v1339_v7 = vsub.f32 %v10422_v9, %v9340_v25  ;;  %v13883_v25 = vld [vmem:[#allocation14_spill] sm:$0xff] }
 0x72c   : > { %v1415_v40 = vsub.f32 %v10426_v11, %v13883_v25 }
 0x72d   : > { %v1271_v57 = vand.u32 2147483647, %v1262_v10  ;;  %v1348_v10 = vand.u32 2147483647, %v1339_v7  ;;  %v10458_v7 = vld [vmem:[#allocation7 + $0x3] ss:$0 sm:$0xff] }
 0x72e   : > { %13888 = vst [vmem:[#allocation14_spill] sm:$0xff] %v10458_v7  ;;  %v1424_v6 = vand.u32 2147483647, %v1415_v40  ;;  %v1869_v28 = vsub.f32 %v10458_v7, %v13892_v51 }
 0x72f   : > { %8164 = vset.pattern.permute.xlu1 %v13653_v24  ;;  %8182 = vset.pattern.permute.xlu0 %v13653_v24  ;;  %v1280_v21 = vsub.f32 1.0, %v1271_v57  ;;  %v10456_v57 = vld [vmem:[#allocation7 + $0x4] ss:$0 sm:$0xff]  ;;  %v1357_v62 = vsub.f32 1.0, %v1348_v10  ;;  %v13891_v10 = vld [vmem:[#allocation13_spill] sm:$0xff] }
 0x730   : > { %1489 = vperm.xlu1 %8164, %v10414_v49   ;;  %1499 = vperm.xlu0 %8182, %v10416_v16   ;;  %v1944_v12 = vsub.f32 %v10456_v57, %v13889_v41  ;;  %v1868_v54 = vsub.f32 %v10458_v7, %v13891_v10  ;;  %v1945_v47 = vsub.f32 %v10456_v57, %v13893_v19  ;;  %v13894_v41 = vld [vmem:[#allocation17_spill] sm:$0xff]  ;;  %v1433_v22 = vsub.f32 1.0, %v1424_v6 }
 0x731   : > { %v1289_v25 = vmax.f32 %v1280_v21, 0.0  ;;  %v13890_v21 = vld [vmem:[#allocation21_spill] sm:$0xff]  ;;  %v1366_v40 = vmax.f32 %v1357_v62, 0.0  ;;  %v2020_v23 = vsub.f32 %v10462_v32, %v13894_v41  ;;  %v1595_v62 = vsub.f32 1.0, %v1586_v59 }
 0x732   : > { %v1721_v53 = vsub.f32 %v10426_v11, %v13890_v21  ;;  %v1953_v5 = vand.u32 2147483647, %v1944_v12  ;;  %v1738_v21 = vsub.f32 1.0, %v1729_v45  ;;  %v1877_v19 = vand.u32 2147483647, %v1868_v54  ;;  %v13896_v54 = vld [vmem:[#allocation20_spill] sm:$0xff] }
 0x733   : > { %v1459_v51 = vmul.f32 %v1365_v8, %v1289_v25  ;;  %v1878_v61 = vand.u32 2147483647, %v1869_v28  ;;  %v1460_v41 = vmul.f32 %v1366_v40, %v1290_v3  ;;  %v1954_v60 = vand.u32 2147483647, %v1945_v47 }
 0x734   : > { %8165 = vset.pattern.permute.xlu1 %v13657_v2  ;;  %8183 = vset.pattern.permute.xlu0 %v13657_v2  ;;  %v1730_v10 = vand.u32 2147483647, %v1721_v53  ;;  %v2029_v39 = vand.u32 2147483647, %v2020_v23  ;;  %v1442_v6 = vmax.f32 %v1433_v22, 0.0  ;;  %v1962_v12 = vsub.f32 1.0, %v1953_v5 }
 0x735   : > { %1783 = vperm.xlu1 %8165, %v10414_v49   ;;  %1791 = vperm.xlu0 %8183, %v10416_v16   ;;  %v10482_v37 = vmul.f32 %v1459_v51, %v1441_v36  ;;  %v1604_v8 = vmax.f32 %v1595_v62, 0.0  ;;  %v1747_v59 = vmax.f32 %v1738_v21, 0.0  ;;  %v2021_v45 = vsub.f32 %v10462_v32, %v13895_v43  ;;  %v13897_v23 = vld [vmem:[#allocation18_spill] sm:$0xff] }
 0x736   : > { %v2236_v28 = vsub.f32 %v10456_v57, %v13896_v54  ;;  %v1756_v47 = vmul.f32 %v1675_v15, %v1603_v42  ;;  %v1739_v3 = vsub.f32 1.0, %v1730_v10  ;;  %v1886_v25 = vsub.f32 1.0, %v1877_v19  ;;  %v13899_v62 = vld [vmem:[#allocation22_spill] sm:$0xff] }
 0x737   : > { %v1887_v53 = vsub.f32 1.0, %v1878_v61  ;;  %v1963_v40 = vsub.f32 1.0, %v1954_v60  ;;  %v2038_v36 = vsub.f32 1.0, %v2029_v39  ;;  %v2164_v22 = vsub.f32 %v10458_v7, %v13897_v23  ;;  %v13900_v15 = vld [vmem:[#allocation30_spill] sm:$0xff] }
 0x738   : > { %v2237_v17 = vsub.f32 %v10456_v57, %v13898_v55  ;;  %v1757_v5 = vmul.f32 %v1676_v26, %v1604_v8  ;;  %v1971_v51 = vmax.f32 %v1962_v12, 0.0  ;;  %v2308_v21 = vsub.f32 %v10462_v32, %v13899_v62  ;;  %v13901_v26 = vld [vmem:[#allocation26_spill] sm:$0xff] }
 0x739   : > { %8166 = vset.pattern.permute.xlu1 %v13660_v63  ;;  %8184 = vset.pattern.permute.xlu0 %v13660_v63  ;;  %v10498_v43 = vmul.f32 %v1460_v41, %v1442_v6  ;;  %v2030_v54 = vand.u32 2147483647, %v2021_v45  ;;  %v2165_v10 = vsub.f32 %v10458_v7, %v13900_v15  ;;  %v2245_v61 = vand.u32 2147483647, %v2236_v28  ;;  %v13902_v55 = vld [vmem:[#allocation34_spill] sm:$0xff]  ;;  %v13904_v15 = vld [vmem:[#allocation36_spill] sm:$0xff] }
 0x73a   : > { %2083 = vperm.xlu1 %8166, %v10414_v49   ;;  %2091 = vperm.xlu0 %8184, %v10416_v16   ;;  %v10504_v39 = vmul.f32 %v1756_v47, %v1747_v59  ;;  %v1748_v60 = vmax.f32 %v1739_v3, 0.0  ;;  %v1895_v19 = vmax.f32 %v1886_v25, 0.0  ;;  %v1896_v42 = vmax.f32 %v1887_v53, 0.0  ;;  %v13903_v47 = vld [vmem:[#allocation24_spill] sm:$0xff] }
 0x73b   : > { %v2671_v12 = vsub.f32 %v10422_v9, %v13901_v26  ;;  %v1972_v41 = vmax.f32 %v1963_v40, 0.0  ;;  %v2047_v6 = vmax.f32 %v2038_v36, 0.0  ;;  %v2173_v8 = vand.u32 2147483647, %v2164_v22  ;;  %v13906_v36 = vld [vmem:[#allocation28_spill] sm:$0xff] }
 0x73c   : > { %v2246_v45 = vand.u32 2147483647, %v2237_v17  ;;  %v2056_v28 = vmul.f32 %v1971_v51, %v1895_v19  ;;  %v2317_v23 = vand.u32 2147483647, %v2308_v21  ;;  %v2309_v59 = vsub.f32 %v10462_v32, %v13902_v55 }
 0x73d   : > { %v2599_v3 = vsub.f32 %v10418_v38, %v13903_v47  ;;  %v2039_v25 = vsub.f32 1.0, %v2030_v54  ;;  %v2174_v53 = vand.u32 2147483647, %v2165_v10  ;;  %v2254_v62 = vsub.f32 1.0, %v2245_v61 }
 0x73e   : > { %8167 = vset.pattern.permute.xlu1 %v13663_v20  ;;  %8185 = vset.pattern.permute.xlu0 %v13663_v20  ;;  %v2600_v26 = vsub.f32 %v10418_v38, %v13904_v15  ;;  %v2680_v34 = vand.u32 2147483647, %v2671_v12  ;;  %v2672_v40 = vsub.f32 %v10422_v9, %v13905_v18  ;;  %v2743_v22 = vsub.f32 %v10426_v11, %v13906_v36  ;;  %v13907_v12 = vld [vmem:[#allocation41_spill] sm:$0xff] }
 0x73f   : > { %2371 = vperm.xlu1 %8167, %v10414_v49   ;;  %2379 = vperm.xlu0 %8185, %v10416_v16   ;;  %v10522_v17 = vmul.f32 %v1757_v5, %v1748_v60  ;;  %v2057_v51 = vmul.f32 %v1972_v41, %v1896_v42  ;;  %v2182_v21 = vsub.f32 1.0, %v2173_v8  ;;  %v2255_v54 = vsub.f32 1.0, %v2246_v45  ;;  %v13908_v8 = vld [vmem:[#allocation31_spill] sm:$0xff] }
 0x740   : > { %v10526_v10 = vmul.f32 %v2056_v28, %v2047_v6  ;;  %v2326_v61 = vsub.f32 1.0, %v2317_v23  ;;  %v2318_v18 = vand.u32 2147483647, %v2309_v59  ;;  %v2608_v19 = vand.u32 2147483647, %v2599_v3  ;;  %v13909_v6 = vld [vmem:[#allocation29_spill] sm:$0xff] }
 0x741   : > { %v2744_v55 = vsub.f32 %v10426_v11, %v13907_v12  ;;  %v2048_v47 = vmax.f32 %v2039_v25, 0.0  ;;  %v2183_v15 = vsub.f32 1.0, %v2174_v53  ;;  %v2263_v36 = vmax.f32 %v2254_v62, 0.0  ;;  %v13910_v23 = vld [vmem:[#allocation43_spill] sm:$0xff]  ;;  %v10538_v3 = vld [vmem:[#allocation4 + $0x28] sm:$0xff] }
 0x742   : > { %v2609_v5 = vand.u32 2147483647, %v2600_v26  ;;  %v2689_v60 = vsub.f32 1.0, %v2680_v34  ;;  %v2681_v42 = vand.u32 2147483647, %v2672_v40  ;;  %v2977_v45 = vsub.f32 %v10422_v9, %v13908_v8 }
 0x743   : > { %8168 = vset.pattern.permute.xlu1 %v13625_v1  ;;  %8186 = vset.pattern.permute.xlu0 %v13625_v1  ;;  %v2752_v41 = vand.u32 2147483647, %v2743_v22  ;;  %v2191_v50 = vmax.f32 %v2182_v21, 0.0  ;;  %v2264_v29 = vmax.f32 %v2255_v54, 0.0  ;;  %v2905_v28 = vsub.f32 %v10418_v38, %v13909_v6  ;;  %v13911_v21 = vld [vmem:[#allocation45_spill] sm:$0xff] }
 0x744   : > { %2818 = vperm.xlu1 %8168, %v10414_v49   ;;  %2828 = vperm.xlu0 %8186, %v10416_v16   ;;  %v2906_v59 = vsub.f32 %v10418_v38, %v13910_v23  ;;  %v2335_v34 = vmax.f32 %v2326_v61, 0.0  ;;  %v2327_v25 = vsub.f32 1.0, %v2318_v18  ;;  %v2617_v53 = vsub.f32 1.0, %v2608_v19 }
 0x745   : > { %v2753_v62 = vand.u32 2147483647, %v2744_v55  ;;  %v2192_v26 = vmax.f32 %v2183_v15, 0.0  ;;  %v2344_v40 = vmul.f32 %v2263_v36, %v2191_v50  ;;  %v2618_v22 = vsub.f32 1.0, %v2609_v5  ;;  %v10548_v50 = vld [vmem:[#allocation4 + $0x30] sm:$0xff] }
 0x746   : > { %v2978_v54 = vsub.f32 %v10422_v9, %v13911_v21  ;;  %v2698_v12 = vmax.f32 %v2689_v60, 0.0  ;;  %v2690_v8 = vsub.f32 1.0, %v2681_v42  ;;  %v2761_v6 = vsub.f32 1.0, %v2752_v41  ;;  %v13912_v60 = vld [vmem:[#allocation33_spill] sm:$0xff] }
 0x747   : > { %v2986_v23 = vand.u32 2147483647, %v2977_v45  ;;  %v2345_v4 = vmul.f32 %v2264_v29, %v2192_v26  ;;  %v2914_v30 = vand.u32 2147483647, %v2905_v28  ;;  %v2915_v61 = vand.u32 2147483647, %v2906_v59 }
 0x748   : > { %8169 = vset.pattern.permute.xlu1 %v13628_v33  ;;  %8187 = vset.pattern.permute.xlu0 %v13628_v33  ;;  %v10544_v18 = vmul.f32 %v2057_v51, %v2048_v47  ;;  %v2336_v19 = vmax.f32 %v2327_v25, 0.0  ;;  %v2626_v55 = vmax.f32 %v2617_v53, 0.0  ;;  %v10550_v15 = vmul.f32 %v2344_v40, %v2335_v34  ;;  %v13913_v42 = vld [vmem:[#allocation37_spill] sm:$0xff]  ;;  %v13914_v34 = vld [vmem:[#allocation47_spill] sm:$0xff] }
 0x749   : > { %3112 = vperm.xlu1 %8169, %v10414_v49   ;;  %3120 = vperm.xlu0 %8187, %v10416_v16   ;;  %v2627_v36 = vmax.f32 %v2618_v22, 0.0  ;;  %v2987_v5 = vand.u32 2147483647, %v2978_v54  ;;  %v3049_v29 = vsub.f32 %v10426_v11, %v13912_v60  ;;  %v3265_v51 = vsub.f32 %v10456_v57, %v13913_v42  ;;  %v13916_v22 = vld [vmem:[#allocation49_spill] sm:$0xff]  ;;  %v13917_v54 = vld [vmem:[#allocation52_spill] sm:$0xff]  ;;  %v13918_v42 = vld [vmem:[#allocation39_spill] sm:$0xff] }
 0x74a   : > { %v2788_v47 = vmul.f32 %v2698_v12, %v2626_v55  ;;  %v2699_v41 = vmax.f32 %v2690_v8, 0.0  ;;  %v2770_v45 = vmax.f32 %v2761_v6, 0.0  ;;  %v2995_v28 = vsub.f32 1.0, %v2986_v23 }
 0x74b   : > { %v2923_v59 = vsub.f32 1.0, %v2914_v30  ;;  %v2924_v25 = vsub.f32 1.0, %v2915_v61  ;;  %v3050_v53 = vsub.f32 %v10426_v11, %v13914_v34  ;;  %v3194_v21 = vsub.f32 %v10458_v7, %v13916_v22 }
 0x74c   : > { %v3266_v60 = vsub.f32 %v10456_v57, %v13917_v54  ;;  %v3337_v12 = vsub.f32 %v10462_v32, %v13918_v42  ;;  %v2996_v8 = vsub.f32 1.0, %v2987_v5  ;;  %v3058_v6 = vand.u32 2147483647, %v3049_v29 }
 0x74d   : > { %8170 = vset.pattern.permute.xlu1 %v13631_v52  ;;  %8188 = vset.pattern.permute.xlu0 %v13631_v52  ;;  %v3274_v30 = vand.u32 2147483647, %v3265_v51  ;;  %v10570_v23 = vmul.f32 %v2345_v4, %v2336_v19  ;;  %v2789_v61 = vmul.f32 %v2699_v41, %v2627_v36  ;;  %v3004_v55 = vmax.f32 %v2995_v28, 0.0  ;;  %v13922_v28 = vld [vmem:[#allocation40_spill] sm:$0xff] }
 0x74e   : > { %3400 = vperm.xlu1 %8170, %v10414_v49   ;;  %3408 = vperm.xlu0 %8188, %v10416_v16   ;;  %v2932_v5 = vmax.f32 %v2923_v59, 0.0  ;;  %v2933_v29 = vmax.f32 %v2924_v25, 0.0  ;;  %v3059_v51 = vand.u32 2147483647, %v3050_v53  ;;  %v3203_v54 = vand.u32 2147483647, %v3194_v21 }
 0x74f   : > { %v3275_v42 = vand.u32 2147483647, %v3266_v60  ;;  %v3346_v13 = vand.u32 2147483647, %v3337_v12  ;;  %v3005_v19 = vmax.f32 %v2996_v8, 0.0  ;;  %v3067_v36 = vsub.f32 1.0, %v3058_v6 }
 0x750   : > { %v3283_v41 = vsub.f32 1.0, %v3274_v30  ;;  %v3085_v35 = vmul.f32 %v3004_v55, %v2932_v5  ;;  %v3068_v25 = vsub.f32 1.0, %v3059_v51  ;;  %v13926_v21 = vld [vmem:[#allocation60_spill] sm:$0xff]  ;;  %v13927_v6 = vld [vmem:[#allocation58_spill] sm:$0xff] }
 0x751   : > { %v1342_v60 = vsub.f32 %v10422_v9, %v13926_v21  ;;  %v3284_v12 = vsub.f32 1.0, %v3275_v42  ;;  %v3355_v8 = vsub.f32 1.0, %v3346_v13  ;;  %v1266_v30 = vsub.f32 %v10418_v38, %v13927_v6 }
 0x752   : > { %8171 = vset.pattern.permute.xlu1 %v13633_v48  ;;  %8189 = vset.pattern.permute.xlu0 %v13633_v48  ;;  %v3076_v55 = vmax.f32 %v3067_v36, 0.0  ;;  %v3077_v21 = vmax.f32 %v3068_v25, 0.0  ;;  %v13929_v36 = vld [vmem:[#allocation63_spill] sm:$0xff] }
 0x753   : > { %3688 = vperm.xlu1 %8171, %v10414_v49   ;;  %3696 = vperm.xlu0 %8189, %v10416_v16   ;;  %v1275_v42 = vand.u32 2147483647, %v1266_v30 }
 0x754   : > { %v10608_v6 = vmul.f32 %v3085_v35, %v3076_v55 }
 0x756   : > { %13932 = vst [vmem:[#allocation16_spill] sm:$0xff] %v10608_v6 }
 0x757   : > { %8172 = vset.pattern.permute.xlu1 %v13766_v46  ;;  %8199 = vset.pattern.permute.xlu0 %v13766_v46 }
 0x758   : > { %4147 = vperm.xlu1 %8172, %v10414_v49   ;;  %4162 = vperm.xlu0 %8199, %v10538_v3   ;;  %v2762_v49 = vsub.f32 1.0, %v2753_v62  ;;  %v13915_v62 = vld [vmem:[#allocation35_spill] sm:$0xff] }
 0x759   : > { %v3193_v26 = vsub.f32 %v10458_v7, %v13915_v62  ;;  %v10576_v62 = vmul.f32 %v2788_v47, %v2770_v45  ;;  %v3482_v47 = vsub.f32 %v10458_v7, %v13923_v56  ;;  %v13924_v45 = vld [vmem:[#allocation44_spill] sm:$0xff]  ;;  %v3212_v56 = vsub.f32 1.0, %v3203_v54 }
 0x75a   : > { %v2771_v40 = vmax.f32 %v2762_v49, 0.0  ;;  %v13919_v49 = vld [vmem:[#allocation54_spill] sm:$0xff]  ;;  %v1340_v59 = vsub.f32 %v10422_v9, %v13924_v45  ;;  %v3293_v54 = vmax.f32 %v3284_v12, 0.0 }
 0x75b   : > { %v3338_v34 = vsub.f32 %v10462_v32, %v13919_v49  ;;  %13920 = vst [vmem:[#allocation11_spill] sm:$0xff] %v10576_v62  ;;  %v3202_v22 = vand.u32 2147483647, %v3193_v26  ;;  %v3481_v49 = vsub.f32 %v10458_v7, %v13922_v28  ;;  %v13925_v26 = vld [vmem:[#allocation42_spill] sm:$0xff]  ;;  %v3221_v13 = vmax.f32 %v3212_v56, 0.0 }
 0x75c   : > { %8173 = vset.pattern.permute.xlu1 %v13653_v24  ;;  %8200 = vset.pattern.permute.xlu0 %v13653_v24  ;;  %v10578_v4 = vmul.f32 %v2789_v61, %v2771_v40  ;;  %v1264_v40 = vsub.f32 %v10418_v38, %v13925_v26  ;;  %v3086_v61 = vmul.f32 %v3005_v19, %v2933_v29  ;;  %v1349_v28 = vand.u32 2147483647, %v1340_v59  ;;  %v13928_v45 = vld [vmem:[#allocation46_spill] sm:$0xff] }
 0x75d   : > { %1494 = vperm.xlu1 %8173, %v10409_v0   ;;  %1509 = vperm.xlu0 %8200, %v10548_v50   ;;  %v3347_v27 = vand.u32 2147483647, %v3338_v34  ;;  %v3211_v53 = vsub.f32 1.0, %v3202_v22  ;;  %v3292_v34 = vmax.f32 %v3283_v41, 0.0  ;;  %v3490_v5 = vand.u32 2147483647, %v3481_v49 }
 0x75e   : > { %13921 = vst [vmem:[#allocation19_spill] sm:$0xff] %v10578_v4  ;;  %v3491_v22 = vand.u32 2147483647, %v3482_v47  ;;  %v1416_v26 = vsub.f32 %v10426_v11, %v13928_v45  ;;  %v1273_v62 = vand.u32 2147483647, %v1264_v40  ;;  %v3364_v29 = vmax.f32 %v3355_v8, 0.0 }
 0x75f   : > { %v3356_v51 = vsub.f32 1.0, %v3347_v27  ;;  %v3220_v4 = vmax.f32 %v3211_v53, 0.0  ;;  %v3499_v19 = vsub.f32 1.0, %v3490_v5  ;;  %v1418_v41 = vsub.f32 %v10426_v11, %v13929_v36  ;;  %v13930_v49 = vld [vmem:[#allocation48_spill] sm:$0xff]  ;;  %v13931_v12 = vld [vmem:[#allocation50_spill] sm:$0xff]  ;;  %v13941_v36 = vld [vmem:[#allocation69_spill] sm:$0xff] }
 0x760   : > { %v1578_v47 = vsub.f32 %v10418_v38, %v13930_v49  ;;  %v3500_v25 = vsub.f32 1.0, %v3491_v22  ;;  %v1358_v53 = vsub.f32 1.0, %v1349_v28  ;;  %v1425_v40 = vand.u32 2147483647, %v1416_v26  ;;  %v13942_v49 = vld [vmem:[#allocation55_spill] sm:$0xff] }
 0x761   : > { %8174 = vset.pattern.permute.xlu1 %v13657_v2  ;;  %8201 = vset.pattern.permute.xlu0 %v13657_v2  ;;  %v3373_v27 = vmul.f32 %v3292_v34, %v3220_v4  ;;  %v3365_v59 = vmax.f32 %v3356_v51, 0.0  ;;  %v1650_v8 = vsub.f32 %v10422_v9, %v13931_v12  ;;  %v3374_v30 = vmul.f32 %v3293_v54, %v3221_v13  ;;  %v13939_v13 = vld [vmem:[#allocation65_spill] sm:$0xff] }
 0x762   : > { %1787 = vperm.xlu1 %8174, %v10409_v0   ;;  %1799 = vperm.xlu0 %8201, %v10548_v50   ;;  %v1284_v4 = vsub.f32 1.0, %v1275_v42  ;;  %v10612_v34 = vmul.f32 %v3086_v61, %v3077_v21  ;;  %v10616_v51 = vmax.f32 %v3499_v19, 0.0  ;;  %v1427_v22 = vand.u32 2147483647, %v1418_v41 }
 0x763   : > { %v10614_v5 = vmul.f32 %v3373_v27, %v3364_v29  ;;  %v10622_v35 = vmax.f32 %v3500_v25, 0.0  ;;  %v1367_v55 = vmax.f32 %v1358_v53, 0.0  ;;  %v1434_v45 = vsub.f32 1.0, %v1425_v40  ;;  %v13940_v27 = vld [vmem:[#allocation51_spill] sm:$0xff]  ;;  %v13943_v40 = vld [vmem:[#allocation73_spill] sm:$0xff] }
 0x764   : > { %13933 = vst [vmem:[#allocation12_spill] sm:$0xff] %v10612_v34  ;;  %13935 = vst [vmem:[#allocation21_spill] sm:$0xff] %v10616_v51  ;;  %v10624_v26 = vmul.f32 %v3374_v30, %v3365_v59  ;;  %v1580_v54 = vsub.f32 %v10418_v38, %v13939_v13  ;;  %v1659_v29 = vand.u32 2147483647, %v1650_v8  ;;  %v1293_v42 = vmax.f32 %v1284_v4, 0.0  ;;  %v13944_v8 = vld [vmem:[#allocation53_spill] sm:$0xff] }
 0x765   : > { %13934 = vst [vmem:[#allocation15_spill] sm:$0xff] %v10614_v5  ;;  %13937 = vst [vmem:[#allocation13_spill] sm:$0xff] %v10622_v35  ;;  %v1722_v19 = vsub.f32 %v10426_v11, %v13940_v27  ;;  %v1724_v41 = vsub.f32 %v10426_v11, %v13941_v36  ;;  %v1436_v25 = vsub.f32 1.0, %v1427_v22  ;;  %v10640_v12 = vmax.f32 %v1434_v45, 0.0  ;;  %v13945_v4 = vld [vmem:[#allocation57_spill] sm:$0xff]  ;;  %v13946_v13 = vld [vmem:[#allocation71_spill] sm:$0xff] }
 0x766   : > { %8175 = vset.pattern.permute.xlu1 %v13660_v63  ;;  %8202 = vset.pattern.permute.xlu0 %v13660_v63  ;;  %v1351_v63 = vand.u32 2147483647, %v1342_v60  ;;  %v1282_v60 = vsub.f32 1.0, %v1273_v62  ;;  %v1587_v62 = vand.u32 2147483647, %v1578_v47  ;;  %13938 = vst [vmem:[#allocation23_spill] sm:$0xff] %v10624_v26  ;;  %v1946_v47 = vsub.f32 %v10456_v57, %v13942_v49 }
 0x767   : > { %2087 = vperm.xlu1 %8175, %v10409_v0   ;;  %2099 = vperm.xlu0 %8202, %v10548_v50   ;;  %v1870_v30 = vsub.f32 %v10458_v7, %v13944_v8  ;;  %v1733_v45 = vand.u32 2147483647, %v1724_v41  ;;  %v13947_v36 = vld [vmem:[#allocation61_spill] sm:$0xff] }
 0x768   : > { %v1360_v56 = vsub.f32 1.0, %v1351_v63  ;;  %v13936_v63 = vld [vmem:[#allocation67_spill] sm:$0xff]  ;;  %v1291_v61 = vmax.f32 %v1282_v60, 0.0  ;;  %v1596_v53 = vsub.f32 1.0, %v1587_v62  ;;  %v1948_v60 = vsub.f32 %v10456_v57, %v13943_v40 }
 0x769   : > { %v1652_v28 = vsub.f32 %v10422_v9, %v13936_v63  ;;  %v2022_v63 = vsub.f32 %v10462_v32, %v13945_v4  ;;  %v1589_v62 = vand.u32 2147483647, %v1580_v54  ;;  %v1955_v27 = vand.u32 2147483647, %v1946_v47 }
 0x76a   : > { %v1369_v21 = vmax.f32 %v1360_v56, 0.0  ;;  %v10638_v56 = vmul.f32 %v1367_v55, %v1291_v61  ;;  %v1872_v55 = vsub.f32 %v10458_v7, %v13946_v13  ;;  %v1731_v61 = vand.u32 2147483647, %v1722_v19  ;;  %v13950_v13 = vld [vmem:[#allocation59_spill] sm:$0xff] }
 0x76b   : > { %8176 = vset.pattern.permute.xlu1 %v13663_v20  ;;  %8203 = vset.pattern.permute.xlu0 %v13663_v20  ;;  %v1661_v59 = vand.u32 2147483647, %v1652_v28  ;;  %v1668_v28 = vsub.f32 1.0, %v1659_v29  ;;  %v2238_v49 = vsub.f32 %v10456_v57, %v13947_v36  ;;  %v1445_v40 = vmax.f32 %v1436_v25, 0.0  ;;  %v13949_v29 = vld [vmem:[#allocation76_spill] sm:$0xff] }
 0x76c   : > { %2375 = vperm.xlu1 %8176, %v10409_v0   ;;  %2387 = vperm.xlu0 %8203, %v10548_v50   ;;  %v10648_v22 = vmul.f32 %v1369_v21, %v1293_v42  ;;  %v1605_v8 = vmax.f32 %v1596_v53, 0.0  ;;  %v1879_v21 = vand.u32 2147483647, %v1870_v30  ;;  %v2031_v54 = vand.u32 2147483647, %v2022_v63  ;;  %v13951_v53 = vld [vmem:[#allocation78_spill] sm:$0xff] }
 0x76d   : > { %v1670_v4 = vsub.f32 1.0, %v1661_v59  ;;  %v2024_v42 = vsub.f32 %v10462_v32, %v13949_v29  ;;  %v2166_v19 = vsub.f32 %v10458_v7, %v13950_v13  ;;  %v1598_v41 = vsub.f32 1.0, %v1589_v62 }
 0x76e   : > { %v1677_v47 = vmax.f32 %v1668_v28, 0.0  ;;  %v1881_v25 = vand.u32 2147483647, %v1872_v55  ;;  %v2168_v59 = vsub.f32 %v10458_v7, %v13951_v53  ;;  %v1742_v30 = vsub.f32 1.0, %v1733_v45 }
 0x76f   : > { %v1964_v63 = vsub.f32 1.0, %v1955_v27  ;;  %v2247_v36 = vand.u32 2147483647, %v2238_v49  ;;  %v1679_v29 = vmax.f32 %v1670_v4, 0.0  ;;  %v1888_v28 = vsub.f32 1.0, %v1879_v21 }
 0x770   : > { %8177 = vset.pattern.permute.xlu1 %v13625_v1  ;;  %8204 = vset.pattern.permute.xlu0 %v13625_v1  ;;  %v2040_v55 = vsub.f32 1.0, %v2031_v54  ;;  %v2033_v35 = vand.u32 2147483647, %v2024_v42  ;;  %v2175_v53 = vand.u32 2147483647, %v2166_v19  ;;  %v1607_v51 = vmax.f32 %v1598_v41, 0.0 }
 0x771   : > { %2823 = vperm.xlu1 %8177, %v10409_v0   ;;  %2838 = vperm.xlu0 %8204, %v10548_v50   ;;  %v1890_v45 = vsub.f32 1.0, %v1881_v25  ;;  %v2177_v27 = vand.u32 2147483647, %v2168_v59  ;;  %v1973_v49 = vmax.f32 %v1964_v63, 0.0  ;;  %v2256_v4 = vsub.f32 1.0, %v2247_v36 }
 0x772   : > { %v1897_v19 = vmax.f32 %v1888_v28, 0.0  ;;  %v2042_v41 = vsub.f32 1.0, %v2033_v35 }
 0x773   : > { %v1899_v25 = vmax.f32 %v1890_v45, 0.0  ;;  %v2186_v59 = vsub.f32 1.0, %v2177_v27  ;;  %v13959_v27 = vld [vmem:[#allocation87_spill] sm:$0xff] }
 0x775   : > { %8178 = vset.pattern.permute.xlu1 %v13628_v33  ;;  %8205 = vset.pattern.permute.xlu0 %v13628_v33  ;;  %v1957_v33 = vand.u32 2147483647, %v1948_v60  ;;  %v1740_v60 = vsub.f32 1.0, %v1731_v61  ;;  %v1758_v61 = vmul.f32 %v1677_v47, %v1605_v8  ;;  %v2049_v8 = vmax.f32 %v2040_v55, 0.0 }
 0x776   : > { %3116 = vperm.xlu1 %8178, %v10409_v0   ;;  %3128 = vperm.xlu0 %8205, %v10548_v50   ;;  %v2184_v47 = vsub.f32 1.0, %v2175_v53  ;;  %v10705_v53 = vmax.f32 %v2186_v59, 0.0  ;;  %v10725_v59 = vld [vmem:[#allocation4 + $0x40] sm:$0xff] }
 0x777   : > { %v1966_v13 = vsub.f32 1.0, %v1957_v33  ;;  %v1749_v33 = vmax.f32 %v1740_v60, 0.0  ;;  %v10679_v60 = vmul.f32 %v10648_v22, %v1445_v40 }
 0x779   : > { %v10654_v26 = vpop.permute.xlu0 %4137  ;;  %v10656_v5 = vpop.permute.xlu1 %1479  ;;  %v1975_v21 = vmax.f32 %v1966_v13, 0.0  ;;  %13954 = vst [vmem:[#allocation17_spill] sm:$0xff] %v10679_v60  ;;  %v10691_v63 = vmul.f32 %v1758_v61, %v1749_v33  ;;  %v2193_v13 = vmax.f32 %v2184_v47, 0.0  ;;  %v13958_v61 = vld [vmem:[#allocation64_spill] sm:$0xff]  ;;  %v2603_v33 = vsub.f32 %v10418_v38, %v13959_v27 }
 0x77a   : > { %13948 = vst [vmem:[#allocation25_spill] sm:$0xff] %v10654_v26  ;;  %8179 = vset.pattern.permute.xlu1 %v13631_v52  ;;  %8206 = vset.pattern.permute.xlu0 %v13631_v52  ;;  %v13952_v26 = vld [vmem:[#allocation81_spill] sm:$0xff]  ;;  %v13953_v52 = vld [vmem:[#allocation62_spill] sm:$0xff]  ;;  %v2601_v45 = vsub.f32 %v10418_v38, %v13958_v61 }
 0x77b   : > { %3404 = vperm.xlu1 %8179, %v10409_v0   ;;  %3416 = vperm.xlu0 %8206, %v10548_v50   ;;  %v2240_v1 = vsub.f32 %v10456_v57, %v13952_v26  ;;  %v2310_v62 = vsub.f32 %v10462_v32, %v13953_v52  ;;  %v1751_v26 = vmax.f32 %v1742_v30, 0.0  ;;  %v1760_v52 = vmul.f32 %v1679_v29, %v1607_v51  ;;  %v13956_v29 = vld [vmem:[#allocation66_spill] sm:$0xff] }
 0x77c   : > { %v2058_v30 = vmul.f32 %v1973_v49, %v1897_v19  ;;  %v2265_v51 = vmax.f32 %v2256_v4, 0.0  ;;  %v10693_v36 = vmul.f32 %v1975_v21, %v1899_v25  ;;  %v13961_v4 = vld [vmem:[#allocation68_spill] sm:$0xff]  ;;  %v1522_v25 = vmul.f32 %v10656_v5, %v10482_v37 }
 0x77d   : > { %v2249_v54 = vand.u32 2147483647, %v2240_v1  ;;  %v2319_v42 = vand.u32 2147483647, %v2310_v62  ;;  %v10687_v1 = vld [vmem:[#allocation4 + $0x38] sm:$0xff]  ;;  %v10689_v35 = vmul.f32 %v1760_v52, %v1751_v26  ;;  %v13960_v26 = vld [vmem:[#allocation90_spill] sm:$0xff]  ;;  %v2745_v52 = vsub.f32 %v10426_v11, %v13961_v4 }
 0x77e   : > { %v10672_v34 = vpop.permute.xlu0 %1484  ;;  %v1776_v6 = vpop.permute.xlu1 %1775  ;;  %v13957_v62 = vld [vmem:[#allocation83_spill] sm:$0xff]  ;;  %v10703_v55 = vmul.f32 %v2058_v30, %v2049_v8  ;;  %v10713_v49 = vmul.f32 %v2265_v51, %v2193_v13  ;;  %v2612_v37 = vand.u32 2147483647, %v2603_v33  ;;  %v3553_v51 = vsub.f32 %v10456_v57, %v10127_v58 }
 0x77f   : > { %8180 = vset.pattern.permute.xlu1 %v13633_v48  ;;  %8207 = vset.pattern.permute.xlu0 %v13633_v48  ;;  %13955 = vst [vmem:[#allocation27_spill] sm:$0xff] %v10689_v35  ;;  %v2258_v22 = vsub.f32 1.0, %v2249_v54  ;;  %v2328_v40 = vsub.f32 1.0, %v2319_v42  ;;  %v2312_v28 = vsub.f32 %v10462_v32, %v13957_v62  ;;  %v1810_v21 = vmul.f32 %v1776_v6, %v10504_v39 }
 0x780   : > { %3692 = vperm.xlu1 %8180, %v10409_v0   ;;  %3704 = vperm.xlu0 %8207, %v10548_v50   ;;  %v10683_v0 = vmul.f32 %v10638_v56, %v10640_v12  ;;  %v2673_v56 = vsub.f32 %v10422_v9, %v13956_v29  ;;  %v10699_v12 = vmax.f32 %v2042_v41, 0.0  ;;  %v1523_v39 = vmul.f32 %v10672_v34, %v10498_v43  ;;  %v13962_v34 = vld [vmem:[#allocation93_spill] sm:$0xff] }
 0x781   : > { %v2267_v8 = vmax.f32 %v2258_v22, 0.0  ;;  %v10719_v41 = vmax.f32 %v2328_v40, 0.0  ;;  %v2321_v30 = vand.u32 2147483647, %v2312_v28  ;;  %v2610_v6 = vand.u32 2147483647, %v2601_v45 }
 0x782   : > { %v2682_v47 = vand.u32 2147483647, %v2673_v56  ;;  %v2754_v22 = vand.u32 2147483647, %v2745_v52  ;;  %v1819_v40 = vadd.f32 %v1810_v21, %v1522_v25  ;;  %v2621_v27 = vsub.f32 1.0, %v2612_v37 }
 0x783   : > { %v1780_v7 = vpop.permute.xlu0 %1779  ;;  %v2076_v48 = vpop.permute.xlu1 %2075  ;;  %v2330_v28 = vsub.f32 1.0, %v2321_v30 }
 0x784   : > { %8190 = vset.pattern.permute.xlu1 %v13766_v46  ;;  %8217 = vset.pattern.permute.xlu0 %v13766_v46  ;;  %v1811_v54 = vmul.f32 %v1780_v7, %v10522_v17  ;;  %v2110_v7 = vmul.f32 %v2076_v48, %v10526_v10  ;;  %v2691_v43 = vsub.f32 1.0, %v2682_v47  ;;  %v2747_v48 = vsub.f32 %v10426_v11, %v13962_v34  ;;  %v13964_v47 = vld [vmem:[#allocation72_spill] sm:$0xff]  ;;  %v13966_v34 = vld [vmem:[#allocation253_spill] sm:$0xff] }
 0x785   : > { %4157 = vperm.xlu1 %8190, %v10416_v16   ;;  %4172 = vperm.xlu0 %8217, %v10687_v1   ;;  %v2675_v16 = vsub.f32 %v10422_v9, %v13960_v26  ;;  %v3554_v10 = vsub.f32 %v10456_v57, %v10125_v44  ;;  %v3562_v26 = vand.u32 2147483647, %v3553_v51  ;;  %v3626_v44 = vsub.f32 %v10462_v32, %v10149_v14 }
 0x786   : > { %v1820_v29 = vadd.f32 %v1811_v54, %v1523_v39  ;;  %v2119_v58 = vadd.f32 %v2110_v7, %v1819_v40  ;;  %v2700_v52 = vmax.f32 %v2691_v43, 0.0  ;;  %v2979_v25 = vsub.f32 %v10422_v9, %v13964_v47 }
 0x787   : > { %v2684_v5 = vand.u32 2147483647, %v2675_v16  ;;  %v3563_v54 = vand.u32 2147483647, %v3554_v10  ;;  %v2339_v14 = vmax.f32 %v2330_v28, 0.0  ;;  %v3571_v37 = vsub.f32 1.0, %v3562_v26 }
 0x788   : > { %v2080_v42 = vpop.permute.xlu0 %2079  ;;  %v2364_v19 = vpop.permute.xlu1 %2363  ;;  %v2630_v51 = vmax.f32 %v2621_v27, 0.0  ;;  %v10769_v28 = vand.u32 2147483647, %v2979_v25  ;;  %v10778_v26 = vmul.f32 %v10693_v36, %v10699_v12  ;;  %v13976_v25 = vld [vmem:[#allocation75_spill] sm:$0xff] }
 0x789   : > { %8191 = vset.pattern.permute.xlu1 %v13653_v24  ;;  %8218 = vset.pattern.permute.xlu0 %v13653_v24  ;;  %v2111_v17 = vmul.f32 %v2080_v42, %v10544_v18  ;;  %v2398_v56 = vmul.f32 %v2364_v19, %v10550_v15  ;;  %v3625_v18 = vsub.f32 %v10462_v32, %v10147_v31  ;;  %v2619_v15 = vsub.f32 1.0, %v2610_v6 }
 0x78a   : > { %1504 = vperm.xlu1 %8191, %v10538_v3   ;;  %1519 = vperm.xlu0 %8218, %v10725_v59   ;;  %v2693_v33 = vsub.f32 1.0, %v2684_v5  ;;  %v2763_v31 = vsub.f32 1.0, %v2754_v22  ;;  %v2756_v19 = vand.u32 2147483647, %v2747_v48  ;;  %v13965_v5 = vmov 8   ;;  %13970 = vst [vmem:[#allocation20_spill] sm:$0xff] %v10778_v26 }
 0x78b   : > { %v2120_v61 = vadd.f32 %v2111_v17, %v1820_v29  ;;  %v2407_v16 = vadd.f32 %v2398_v56, %v2119_v58  ;;  %v3634_v42 = vand.u32 2147483647, %v3625_v18  ;;  %v2348_v17 = vmul.f32 %v2267_v8, %v10705_v53  ;;  %v13967_v18 = vld [vmem:[#allocation95_spill] sm:$0xff] }
 0x78c   : > { %v2628_v6 = vmax.f32 %v2619_v15, 0.0  ;;  %v2702_v22 = vmax.f32 %v2693_v33, 0.0  ;;  %v2772_v40 = vmax.f32 %v2763_v31, 0.0  ;;  %v3635_v29 = vand.u32 2147483647, %v3626_v44 }
 0x78d   : > { %v2368_v13 = vpop.permute.xlu0 %2367  ;;  %v10742_v62 = vpop.permute.xlu1 %2808  ;;  %v3572_v43 = vsub.f32 1.0, %v3563_v54  ;;  %v5106_v53 = vsel %vm2451_vm6, %v13966_v34, 0  ;;  %v3643_v8 = vsub.f32 1.0, %v3634_v42  ;;  %v2765_v10 = vsub.f32 1.0, %v2756_v19  ;;  %v13974_v54 = vld [vmem:[#allocation100_spill] sm:$0xff]  ;;  %v13975_v19 = vld [vmem:[#allocation277_spill] sm:$0xff] }
 0x78e   : > { %v2399_v45 = vmul.f32 %v2368_v13, %v10570_v23  ;;  %8192 = vset.pattern.permute.xlu1 %v13657_v2  ;;  %8219 = vset.pattern.permute.xlu0 %v13657_v2  ;;  %v13963_v23 = vld [vmem:[#allocation70_spill] sm:$0xff]  ;;  %v2790_v48 = vmul.f32 %v2700_v52, %v2628_v6  ;;  %v2909_v13 = vsub.f32 %v10418_v38, %v13967_v18  ;;  %v13968_v58 = vmov 0.0  }
 0x78f   : > { %1795 = vperm.xlu1 %8192, %v10538_v3   ;;  %1807 = vperm.xlu0 %8219, %v10725_v59   ;;  %v2907_v21 = vsub.f32 %v10418_v38, %v13963_v23  ;;  %v3580_v15 = vmax.f32 %v3571_v37, 0.0  ;;  %v10782_v38 = vmul.f32 %v10713_v49, %v10719_v41  ;;  %v10784_v31 = vmul.f32 %v2702_v22, %v2630_v51  ;;  %v13973_v52 = vld [vmem:[#allocation74_spill] sm:$0xff]  ;;  %v13979_v37 = vld [vmem:[#allocation21_spill] sm:$0xff]  ;;  %v13980_v22 = vld [vmem:[#allocation104_spill] sm:$0xff] }
 0x790   : > { %v2408_v4 = vadd.f32 %v2399_v45, %v2120_v61  ;;  %v13969_v61 = vld [vmem:[#allocation97_spill] sm:$0xff]  ;;  %v3644_v44 = vsub.f32 1.0, %v3635_v29  ;;  %v3051_v36 = vsub.f32 %v10426_v11, %v13973_v52  ;;  %v3581_v12 = vmax.f32 %v3572_v43, 0.0 }
 0x791   : > { %v10762_v56 = vand.u32 2147483647, %v2907_v21  ;;  %v2981_v45 = vsub.f32 %v10422_v9, %v13969_v61  ;;  %v10788_v9 = vmul.f32 %v2348_v17, %v2339_v14  ;;  %v3652_v23 = vmax.f32 %v3643_v8, 0.0  ;;  %v13978_v14 = vld [vmem:[#allocation77_spill] sm:$0xff] }
 0x792   : > { %v2430_v30 = vpack.c.bf16 %v2408_v4, %v2407_v16  ;;  %v10755_v39 = vpop.permute.xlu0 %2813  ;;  %v3105_v7 = vpop.permute.xlu1 %3104  ;;  %v10790_v16 = vmul.f32 %v2790_v48, %v2772_v40  ;;  %v2774_v49 = vmax.f32 %v2765_v10, 0.0  ;;  %v2918_v41 = vand.u32 2147483647, %v2909_v13  ;;  %v13983_v10 = vld [vmem:[#allocation13_spill] sm:$0xff]  ;;  %v13984_v13 = vld [vmem:[#allocation11_spill] sm:$0xff] }
 0x793   : > { %8193 = vset.pattern.permute.xlu1 %v13965_v5  ;;  %8220 = vset.pattern.permute.xlu0 %v13965_v5  ;;  %13971 = vst [vmem:[#allocation18_spill] sm:$0xff] %v10788_v9  ;;  %v2925_v4 = vsub.f32 1.0, %v10762_v56  ;;  %v2997_v21 = vsub.f32 1.0, %v10769_v28  ;;  %v3053_v42 = vsub.f32 %v10426_v11, %v13974_v54  ;;  %v2990_v47 = vand.u32 2147483647, %v2981_v45  ;;  %v13981_v56 = vld [vmem:[#allocation16_spill] sm:$0xff] }
 0x794   : > { %2095 = vperm.xlu1 %8193, %v10538_v3   ;;  %2107 = vperm.xlu0 %8220, %v10725_v59   ;;  %13972 = vst [vmem:[#allocation32_spill] sm:$0xff] %v10790_v16  ;;  %v3267_v6 = vsub.f32 %v10456_v57, %v13978_v14  ;;  %v3661_v51 = vmul.f32 %v3580_v15, %v13979_v37  ;;  %v3653_v29 = vmax.f32 %v3644_v44, 0.0  ;;  %v13982_v11 = vld [vmem:[#allocation12_spill] sm:$0xff]  ;;  %v3060_v48 = vand.u32 2147483647, %v3051_v36 }
 0x795   : > { %7617 = vmatmul.mubr.msk.bf16.vlgmr.msra.gmra.mxu0 %vm2435_vm7, %v2430_v30  ;;  %v13977_v30 = vld [vmem:[#allocation14_spill] sm:$0xff]  ;;  %v3269_v40 = vsub.f32 %v10456_v57, %v13980_v22  ;;  %v3139_v43 = vmul.f32 %v3105_v7, %v13981_v56  ;;  %v3662_v18 = vmul.f32 %v3581_v12, %v13983_v10  ;;  %v2851_v28 = vmul.f32 %v10742_v62, %v13984_v13  ;;  %v13986_v57 = vld [vmem:[#allocation19_spill] sm:$0xff] }
 0x796   : > { %7667 = vmatpush3.bf16.msra.mxu0 %v5106_v53  ;;  %7620 = vmatprep.mubr.msk.bf16.mxu0 %vm8618_vm0, %v13968_v58  ;;  %v3195_v17 = vsub.f32 %v13977_v30, %v13976_v25  ;;  %v3670_v61 = vmul.f32 %v3661_v51, %v3652_v23  ;;  %v13985_v45 = vmov 1   ;;  %v3062_v15 = vand.u32 2147483647, %v3053_v42  ;;  %v13987_v7 = vld [vmem:[#allocation15_spill] sm:$0xff]  ;;  %v13989_v12 = vld [vmem:[#allocation102_spill] sm:$0xff] }
 0x797   : > { %v3109_v27 = vpop.permute.xlu0 %3108  ;;  %7668 = vmatprep.subr.bf16.mxu0 %v13968_v58  ;;  %v3393_v33 = vpop.permute.xlu1 %3392  ;;  %v2852_v44 = vmul.f32 %v10755_v39, %v13986_v57  ;;  %v2999_v36 = vsub.f32 1.0, %v2990_v47  ;;  %v3197_v62 = vsub.f32 %v13977_v30, %v13989_v12  ;;  %v3276_v23 = vand.u32 2147483647, %v3267_v6  ;;  %v10843_v12 = vld [vmem:[#allocation7 + $0x3] ss:$0 sm:$0xff] }
 0x798   : > { %8194 = vset.pattern.permute.xlu1 %v13663_v20  ;;  %8221 = vset.pattern.permute.xlu0 %v13663_v20  ;;  %v3140_v34 = vmul.f32 %v3109_v27, %v13982_v11  ;;  %v3427_v52 = vmul.f32 %v3393_v33, %v13987_v7  ;;  %v13988_v27 = vld [vmem:[#allocation23_spill] sm:$0xff]  ;;  %v3148_v42 = vadd.f32 %v3139_v43, %v2851_v28  ;;  %v2927_v51 = vsub.f32 1.0, %v2918_v41  ;;  %v13993_v28 = vld [vmem:[#allocation106_spill] sm:$0xff] }
 0x799   : > { %2383 = vperm.xlu1 %8194, %v10538_v3   ;;  %2395 = vperm.xlu0 %8221, %v10725_v59   ;;  %v3671_v39 = vmul.f32 %v3662_v18, %v3653_v29  ;;  %v3069_v33 = vsub.f32 1.0, %v3060_v48  ;;  %v3204_v22 = vand.u32 2147483647, %v3195_v17  ;;  %v3278_v56 = vand.u32 2147483647, %v3269_v40 }
 0x79a   : > { %7669 = vmatpush3.bf16.msra.mxu0 %v13975_v19  ;;  %v13990_v19 = vld [vmem:[#allocation80_spill] sm:$0xff]  ;;  %v3149_v14 = vadd.f32 %v3140_v34, %v2852_v44  ;;  %v3071_v10 = vsub.f32 1.0, %v3062_v15  ;;  %v3436_v47 = vadd.f32 %v3427_v52, %v3148_v42  ;;  %v13992_v30 = vmov 5   ;;  %v10832_v18 = vld [vmem:[#allocation7 + $0x5] ss:$0 sm:$0xff] }
 0x79b   : > { %7670 = vmatprep.subr.bf16.mxu0 %v13968_v58  ;;  %v3339_v25 = vsub.f32 %v10462_v32, %v13990_v19  ;;  %v2934_v32 = vmax.f32 %v2925_v4, 0.0  ;;  %v3006_v6 = vmax.f32 %v2997_v21, 0.0  ;;  %v3008_v43 = vmax.f32 %v2999_v36, 0.0  ;;  %v10847_v19 = vld [vmem:[#allocation7 + $0x1] ss:$0 sm:$0xff] }
 0x79c   : > { %v3397_v53 = vpop.permute.xlu0 %3396  ;;  %v3681_v8 = vpop.permute.xlu1 %3680  ;;  %v3206_v34 = vand.u32 2147483647, %v3197_v62  ;;  %v3285_v41 = vsub.f32 1.0, %v3276_v23  ;;  %v3287_v48 = vsub.f32 1.0, %v3278_v56  ;;  %v10837_v4 = vmul.f32 %v10784_v31, %v2774_v49  ;;  %v13997_v62 = vld [vmem:[#allocation82_spill] sm:$0xff] }
 0x79d   : > { %8195 = vset.pattern.permute.xlu1 %v13985_v45  ;;  %8222 = vset.pattern.permute.xlu0 %v13985_v45  ;;  %v3428_v54 = vmul.f32 %v3397_v53, %v13988_v27  ;;  %v3715_v37 = vmul.f32 %v3681_v8, %v3670_v61  ;;  %v3348_v17 = vand.u32 2147483647, %v3339_v25  ;;  %v2936_v8 = vmax.f32 %v2927_v51, 0.0  ;;  %v13998_v25 = vld [vmem:[#allocation86_spill] sm:$0xff]  ;;  %v10857_v56 = vld [vmem:[#allocation7] ss:$0 sm:$0xff] }
 0x79e   : > { %2833 = vperm.xlu1 %8195, %v10538_v3   ;;  %2848 = vperm.xlu0 %8222, %v10725_v59   ;;  %v3341_v61 = vsub.f32 %v10832_v18, %v13993_v28  ;;  %13994 = vst [vmem:[#allocation30_spill] sm:$0xff] %v10837_v4  ;;  %v3078_v21 = vmax.f32 %v3069_v33, 0.0  ;;  %v3080_v15 = vmax.f32 %v3071_v10, 0.0  ;;  %v3213_v44 = vsub.f32 1.0, %v3204_v22 }
 0x79f   : > { %v3437_v13 = vadd.f32 %v3428_v54, %v3149_v14  ;;  %v3724_v40 = vadd.f32 %v3715_v37, %v3436_v47  ;;  %v3087_v54 = vmul.f32 %v3006_v6, %v2934_v32  ;;  %v3215_v36 = vsub.f32 1.0, %v3206_v34  ;;  %v10861_v47 = vld [vmem:[#allocation7 + $0x2] ss:$0 sm:$0xff] }
 0x7a0   : > { %v3483_v23 = vsub.f32 %v10843_v12, %v13997_v62  ;;  %v1341_v31 = vsub.f32 %v10847_v19, %v13998_v25  ;;  %v13999_v49 = vmov 9   ;;  %v3089_v42 = vmul.f32 %v3008_v43, %v2936_v8  ;;  %v14003_v6 = vld [vmem:[#allocation111_spill] sm:$0xff] }
 0x7a1   : > { %v3685_v11 = vpop.permute.xlu0 %3684  ;;  %v10826_v53 = vpop.permute.xlu1 %4142  ;;  %v3294_v14 = vmax.f32 %v3285_v41, 0.0  ;;  %v3357_v37 = vsub.f32 1.0, %v3348_v17  ;;  %v3296_v33 = vmax.f32 %v3287_v48, 0.0  ;;  %v3350_v22 = vand.u32 2147483647, %v3341_v61 }
 0x7a2   : > { %13991 = vst [vmem:[#allocation22_spill] sm:$0xff] %v10826_v53  ;;  %v3716_v57 = vmul.f32 %v3685_v11, %v3671_v39  ;;  %8196 = vset.pattern.permute.xlu1 %v13992_v30  ;;  %8223 = vset.pattern.permute.xlu0 %v13992_v30  ;;  %v14000_v39 = vld [vmem:[#allocation113_spill] sm:$0xff]  ;;  %v14001_v11 = vld [vmem:[#allocation84_spill] sm:$0xff]  ;;  %v3222_v32 = vmax.f32 %v3213_v44, 0.0  ;;  %v1268_v43 = vsub.f32 %v10857_v56, %v14003_v6  ;;  %v3224_v17 = vmax.f32 %v3215_v36, 0.0 }
 0x7a3   : > { %3124 = vperm.xlu1 %8196, %v10538_v3   ;;  %3136 = vperm.xlu0 %8223, %v10725_v59   ;;  %v1344_v51 = vsub.f32 %v10847_v19, %v14000_v39  ;;  %v1265_v10 = vsub.f32 %v10857_v56, %v14001_v11  ;;  %v10868_v34 = vmul.f32 %v3089_v42, %v3080_v15  ;;  %v1350_v48 = vand.u32 2147483647, %v1341_v31  ;;  %v14008_v15 = vld [vmem:[#allocation115_spill] sm:$0xff]  ;;  %v14012_v6 = vld [vmem:[#allocation120_spill] sm:$0xff] }
 0x7a4   : > { %v3725_v29 = vadd.f32 %v3716_v57, %v3437_v13  ;;  %v14002_v13 = vld [vmem:[#allocation89_spill] sm:$0xff]  ;;  %v10870_v41 = vmul.f32 %v3087_v54, %v3078_v21  ;;  %v3375_v44 = vmul.f32 %v3294_v14, %v3222_v32  ;;  %v1420_v21 = vsub.f32 %v10861_v47, %v14008_v15  ;;  %v14010_v39 = vld [vmem:[#allocation91_spill] sm:$0xff] }
 0x7a5   : > { %v1417_v57 = vsub.f32 %v10861_v47, %v14002_v13  ;;  %14004 = vst [vmem:[#allocation24_spill] sm:$0xff] %v10868_v34  ;;  %v1353_v62 = vand.u32 2147483647, %v1344_v51  ;;  %v14009_v54 = vmov 13   ;;  %v3377_v36 = vmul.f32 %v3296_v33, %v3224_v17  ;;  %v14014_v17 = vld [vmem:[#allocation96_spill] sm:$0xff] }
 0x7a6   : > { %v3742_v7 = vpack.c.bf16 %v3725_v29, %v3724_v40  ;;  %v10839_v52 = vpop.permute.xlu0 %4152  ;;  %v10841_v27 = vpop.permute.xlu1 %4437  ;;  %14005 = vst [vmem:[#allocation36_spill] sm:$0xff] %v10870_v41  ;;  %v3492_v40 = vand.u32 2147483647, %v3483_v23  ;;  %v14006_v29 = vld [vmem:[#allocation108_spill] sm:$0xff]  ;;  %v3359_v23 = vsub.f32 1.0, %v3350_v22  ;;  %v1579_v14 = vsub.f32 %v10857_v56, %v14010_v39 }
 0x7a7   : > { %13995 = vst [vmem:[#allocation26_spill] sm:$0xff] %v10839_v52  ;;  %13996 = vst [vmem:[#allocation34_spill] sm:$0xff] %v10841_v27  ;;  %8197 = vset.pattern.permute.xlu1 %v13999_v49  ;;  %8224 = vset.pattern.permute.xlu0 %v13999_v49  ;;  %v3485_v8 = vsub.f32 %v10843_v12, %v14006_v29  ;;  %v1274_v25 = vand.u32 2147483647, %v1265_v10  ;;  %v1426_v42 = vand.u32 2147483647, %v1417_v57 }
 0x7a8   : > { %3412 = vperm.xlu1 %8197, %v10538_v3   ;;  %3424 = vperm.xlu0 %8224, %v10725_v59   ;;  %v1277_v31 = vand.u32 2147483647, %v1268_v43  ;;  %v3501_v11 = vsub.f32 1.0, %v3492_v40  ;;  %v1359_v32 = vsub.f32 1.0, %v1350_v48  ;;  %v1654_v33 = vsub.f32 %v10847_v19, %v14012_v6  ;;  %v14013_v57 = vld [vmem:[#allocation118_spill] sm:$0xff]  ;;  %v14016_v40 = vld [vmem:[#allocation123_spill] sm:$0xff] }
 0x7a9   : > { %7647 = vmatmul.mubr.msk.bf16.vlgmr.msra.gmra.mxu1 %vm2435_vm7, %v3742_v7  ;;  %v3366_v7 = vmax.f32 %v3357_v37, 0.0  ;;  %v14011_v37 = vld [vmem:[#allocation94_spill] sm:$0xff]  ;;  %v3494_v13 = vand.u32 2147483647, %v3485_v8  ;;  %v1362_v22 = vsub.f32 1.0, %v1353_v62  ;;  %v1723_v43 = vsub.f32 %v10861_v47, %v14014_v17  ;;  %v10907_v52 = vld [vmem:[#allocation3] sm:$0xff] }
 0x7aa   : > { %7650 = vmatprep.mubr.msk.bf16.mxu1 %vm8618_vm0, %v13968_v58  ;;  %v1651_v51 = vsub.f32 %v10847_v19, %v14011_v37  ;;  %v1429_v10 = vand.u32 2147483647, %v1420_v21  ;;  %v1283_v39 = vsub.f32 1.0, %v1274_v25  ;;  %v1435_v37 = vsub.f32 1.0, %v1426_v42 }
 0x7ab   : > { %v10876_v28 = vpop.permute.xlu0 %1499  ;;  %v10878_v61 = vpop.permute.xlu1 %1489  ;;  %v1726_v8 = vsub.f32 %v10861_v47, %v14016_v40  ;;  %v13526_v48 = vmov 47   ;;  %v10904_v62 = vmul.f32 %v3375_v44, %v3366_v7  ;;  %v3368_v21 = vmax.f32 %v3359_v23, 0.0 }
 0x7ac   : > { %14007 = vst [vmem:[#allocation38_spill] sm:$0xff] %v10876_v28  ;;  %8198 = vset.pattern.permute.xlu1 %v14009_v54  ;;  %8225 = vset.pattern.permute.xlu0 %v14009_v54  ;;  %v1286_v6 = vsub.f32 1.0, %v1277_v31  ;;  %v1660_v17 = vand.u32 2147483647, %v1651_v51  ;;  %v10910_v25 = vmax.f32 %v3501_v11, 0.0  ;;  %v3503_v42 = vsub.f32 1.0, %v3494_v13 }
 0x7ad   : > { %3700 = vperm.xlu1 %8198, %v10538_v3   ;;  %3712 = vperm.xlu0 %8225, %v10725_v59   ;;  %v1582_v3 = vsub.f32 %v10857_v56, %v14013_v57  ;;  %14017 = vst [vmem:[#allocation41_spill] sm:$0xff] %v10904_v62  ;;  %v1588_v57 = vand.u32 2147483647, %v1579_v14  ;;  %v1368_v40 = vmax.f32 %v1359_v32, 0.0  ;;  %v1663_v27 = vand.u32 2147483647, %v1654_v33 }
 0x7ae   : > { %v1371_v53 = vmax.f32 %v1362_v22, 0.0  ;;  %v1438_v4 = vsub.f32 1.0, %v1429_v10  ;;  %v1732_v44 = vand.u32 2147483647, %v1723_v43  ;;  %v1292_v7 = vmax.f32 %v1283_v39, 0.0  ;;  %v14018_v14 = vld [vmem:[#allocation98_spill] sm:$0xff] }
 0x7af   : > { %v1444_v23 = vmax.f32 %v1435_v37, 0.0  ;;  %v1735_v31 = vand.u32 2147483647, %v1726_v8  ;;  %v1871_v51 = vsub.f32 %v10843_v12, %v14018_v14  ;;  %v1295_v9 = vmax.f32 %v1286_v6, 0.0  ;;  %v10918_v13 = vld [vmem:[#allocation7 + $0x4] ss:$0 sm:$0xff] }
 0x7b0   : > { %v10896_v29 = vpop.permute.xlu0 %1791  ;;  %v10898_v15 = vpop.permute.xlu1 %1783  ;;  %v1597_v11 = vsub.f32 1.0, %v1588_v57  ;;  %v1669_v26 = vsub.f32 1.0, %v1660_v17  ;;  %v14020_v32 = vld [vmem:[#allocation99_spill] sm:$0xff]  ;;  %v14021_v22 = vmov 26   ;;  %v10924_v10 = vmax.f32 %v3503_v42, 0.0 }
 0x7b1   : > { %14015 = vst [vmem:[#allocation28_spill] sm:$0xff] %v10896_v29  ;;  %8208 = vset.pattern.permute.xlu1 %v13766_v46  ;;  %8234 = vset.pattern.permute.xlu0 %v13526_v48  ;;  %v1591_v48 = vand.u32 2147483647, %v1582_v3  ;;  %v1947_v33 = vsub.f32 %v10918_v13, %v14020_v32  ;;  %v1462_v3 = vmul.f32 %v1368_v40, %v1292_v7  ;;  %v1672_v43 = vsub.f32 1.0, %v1663_v27  ;;  %v14024_v32 = vld [vmem:[#allocation127_spill] sm:$0xff]  ;;  %v14025_v27 = vld [vmem:[#allocation125_spill] sm:$0xff] }
 0x7b2   : > { %4167 = vperm.xlu1 %8208, %v10548_v50   ;;  %6243 = vperm.xlu0 %8234, %v10907_v52   ;;  %14022 = vst [vmem:[#allocation29_spill] sm:$0xff] %v10924_v10  ;;  %v10928_v39 = vmul.f32 %v3377_v36, %v3368_v21  ;;  %v1465_v37 = vmul.f32 %v1371_v53, %v1295_v9  ;;  %v1447_v8 = vmax.f32 %v1438_v4, 0.0  ;;  %v1741_v57 = vsub.f32 1.0, %v1732_v44  ;;  %v14027_v53 = vld [vmem:[#allocation101_spill] sm:$0xff]  ;;  %v14033_v28 = vld [vmem:[#allocation131_spill] sm:$0xff] }
 0x7b3   : > { %v1600_v6 = vsub.f32 1.0, %v1591_v48  ;;  %v1744_v17 = vsub.f32 1.0, %v1735_v31  ;;  %v1880_v14 = vand.u32 2147483647, %v1871_v51  ;;  %v1606_v42 = vmax.f32 %v1597_v11, 0.0  ;;  %v14028_v48 = vld [vmem:[#allocation129_spill] sm:$0xff] }
 0x7b4   : > { %14023 = vst [vmem:[#allocation43_spill] sm:$0xff] %v10928_v39  ;;  %v1678_v40 = vmax.f32 %v1669_v26, 0.0  ;;  %v1874_v7 = vsub.f32 %v10843_v12, %v14025_v27  ;;  %v1956_v10 = vand.u32 2147483647, %v1947_v33  ;;  %v1681_v9 = vmax.f32 %v1672_v43, 0.0  ;;  %v14029_v44 = vld [vmem:[#allocation105_spill] sm:$0xff] }
 0x7b5   : > { %v10914_v50 = vpop.permute.xlu0 %2091  ;;  %v10916_v34 = vpop.permute.xlu1 %2083  ;;  %v2023_v4 = vsub.f32 %v10832_v18, %v14027_v53  ;;  %v2026_v21 = vsub.f32 %v10832_v18, %v14028_v48  ;;  %v10946_v31 = vld [vmem:[#allocation3 + $0x10] sm:$0xff]  ;;  %v1609_v26 = vmax.f32 %v1600_v6, 0.0  ;;  %v1750_v51 = vmax.f32 %v1741_v57, 0.0  ;;  %v14030_v11 = vld [vmem:[#allocation134_spill] sm:$0xff]  ;;  %v14032_v53 = vld [vmem:[#allocation103_spill] sm:$0xff] }
 0x7b6   : > { %14019 = vst [vmem:[#allocation31_spill] sm:$0xff] %v10914_v50  ;;  %8209 = vset.pattern.permute.xlu1 %v13653_v24  ;;  %8235 = vset.pattern.permute.xlu0 %v14021_v22  ;;  %v1950_v24 = vsub.f32 %v10918_v13, %v14024_v32  ;;  %v10932_v22 = vmul.f32 %v1462_v3, %v1444_v23  ;;  %v1753_v43 = vmax.f32 %v1744_v17, 0.0  ;;  %v1889_v32 = vsub.f32 1.0, %v1880_v14  ;;  %v14037_v14 = vld [vmem:[#allocation107_spill] sm:$0xff] }
 0x7b7   : > { %4487 = vperm.xlu0 %8235, %v10907_v52   ;;  %1514 = vperm.xlu1 %8209, %v10687_v1   ;;  %v2239_v23 = vsub.f32 %v10918_v13, %v14029_v44  ;;  %v2242_v33 = vsub.f32 %v10918_v13, %v14030_v11  ;;  %v10953_v3 = vmul.f32 %v1465_v37, %v1447_v8  ;;  %v1883_v39 = vand.u32 2147483647, %v1874_v7  ;;  %v10961_v37 = vld [vmem:[#allocation3 + $0x28] sm:$0xff] }
 0x7b8   : > { %v1959_v27 = vand.u32 2147483647, %v1950_v24  ;;  %v2167_v48 = vsub.f32 %v10843_v12, %v14032_v53  ;;  %v1759_v44 = vmul.f32 %v1678_v40, %v1606_v42  ;;  %v1762_v6 = vmul.f32 %v1681_v9, %v1609_v26  ;;  %14035 = vst [vmem:[#allocation47_spill] sm:$0xff] %v10961_v37 }
 0x7b9   : > { %14031 = vst [vmem:[#allocation33_spill] sm:$0xff] %v10953_v3  ;;  %v2032_v57 = vand.u32 2147483647, %v2023_v4  ;;  %v2035_v60 = vand.u32 2147483647, %v2026_v21  ;;  %v2311_v24 = vsub.f32 %v10832_v18, %v14037_v14  ;;  %v1898_v40 = vmax.f32 %v1889_v32, 0.0 }
 0x7ba   : > { %v10936_v50 = vpop.permute.xlu0 %2379  ;;  %v10938_v36 = vpop.permute.xlu1 %2371  ;;  %v2248_v11 = vand.u32 2147483647, %v2239_v23  ;;  %v2251_v17 = vand.u32 2147483647, %v2242_v33  ;;  %v1968_v7 = vsub.f32 1.0, %v1959_v27  ;;  %v10974_v4 = vmul.f32 %v1762_v6, %v1753_v43  ;;  %v14040_v33 = vld [vmem:[#allocation109_spill] sm:$0xff] }
 0x7bb   : > { %14026 = vst [vmem:[#allocation45_spill] sm:$0xff] %v10936_v50  ;;  %4495 = vperm.xlu0 %8235, %v10946_v31   ;;  %8210 = vset.pattern.permute.xlu1 %v13657_v2  ;;  %v1965_v50 = vsub.f32 1.0, %v1956_v10  ;;  %v2170_v2 = vsub.f32 %v10843_v12, %v14033_v28  ;;  %v14038_v10 = vld [vmem:[#allocation136_spill] sm:$0xff]  ;;  %v10971_v28 = vmul.f32 %v1759_v44, %v1750_v51  ;;  %v2176_v9 = vand.u32 2147483647, %v2167_v48  ;;  %v14043_v48 = vld [vmem:[#allocation110_spill] sm:$0xff] }
 0x7bc   : > { %1803 = vperm.xlu1 %8210, %v10687_v1   ;;  %v2314_v42 = vsub.f32 %v10832_v18, %v14038_v10  ;;  %14039 = vst [vmem:[#allocation49_spill] sm:$0xff] %v10974_v4  ;;  %v1892_v21 = vsub.f32 1.0, %v1883_v39  ;;  %v2602_v53 = vsub.f32 %v10857_v56, %v14040_v33  ;;  %v2041_v14 = vsub.f32 1.0, %v2032_v57  ;;  %v14042_v51 = vld [vmem:[#allocation92_spill] sm:$0xff] }
 0x7bd   : > { %v1974_v23 = vmax.f32 %v1965_v50, 0.0  ;;  %v2179_v26 = vand.u32 2147483647, %v2170_v2  ;;  %v2044_v3 = vsub.f32 1.0, %v2035_v60  ;;  %v2257_v10 = vsub.f32 1.0, %v2248_v11  ;;  %v14046_v6 = vld [vmem:[#allocation140_spill] sm:$0xff] }
 0x7be   : > { %v2260_v32 = vsub.f32 1.0, %v2251_v17  ;;  %v2320_v27 = vand.u32 2147483647, %v2311_v24  ;;  %v2323_v43 = vand.u32 2147483647, %v2314_v42  ;;  %v2674_v50 = vsub.f32 %v10847_v19, %v14043_v48 }
 0x7bf   : > { %v10959_v29 = vpop.permute.xlu0 %2828  ;;  %4507 = vperm.xlu0 %8235, %v10961_v37   ;;  %v10964_v8 = vpop.permute.xlu1 %2818  ;;  %v1977_v2 = vmax.f32 %v1968_v7, 0.0  ;;  %v2185_v60 = vsub.f32 1.0, %v2176_v9  ;;  %v2677_v57 = vsub.f32 %v10847_v19, %v14046_v6  ;;  %v1901_v17 = vmax.f32 %v1892_v21, 0.0  ;;  %v10994_v7 = vld [vmem:[#allocation3 + $0x38] sm:$0xff] }
 0x7c0   : > { %14034 = vst [vmem:[#allocation37_spill] sm:$0xff] %v10959_v29  ;;  %14036 = vst [vmem:[#allocation35_spill] sm:$0xff] %v10964_v8  ;;  %8211 = vset.pattern.permute.xlu1 %v13965_v5  ;;  %v14041_v29 = vld [vmem:[#allocation138_spill] sm:$0xff]  ;;  %v2059_v24 = vmul.f32 %v1974_v23, %v1898_v40  ;;  %v2188_v42 = vsub.f32 1.0, %v2179_v26  ;;  %v2611_v33 = vand.u32 2147483647, %v2602_v53 }
 0x7c1   : > { %2103 = vperm.xlu1 %8211, %v10687_v1   ;;  %v2605_v5 = vsub.f32 %v10857_v56, %v14041_v29  ;;  %v14047_v29 = vld [vmem:[#allocation112_spill] sm:$0xff]  ;;  %v2053_v48 = vmax.f32 %v2044_v3, 0.0  ;;  %v2266_v4 = vmax.f32 %v2257_v10, 0.0  ;;  %v2269_v9 = vmax.f32 %v2260_v32, 0.0 }
 0x7c2   : > { %v2746_v11 = vsub.f32 %v10861_v47, %v14047_v29  ;;  %v2329_v6 = vsub.f32 1.0, %v2320_v27  ;;  %v2332_v35 = vsub.f32 1.0, %v2323_v43  ;;  %v2683_v29 = vand.u32 2147483647, %v2674_v50 }
 0x7c3   : > { %6406 = vrot.lane.b32.xlu0 %v14042_v51, %s8666_s21  ;;  %v2050_v51 = vmax.f32 %v2041_v14, 0.0  ;;  %v2062_v37 = vmul.f32 %v1977_v2, %v1901_v17  ;;  %v2686_v21 = vand.u32 2147483647, %v2677_v57  ;;  %v2197_v53 = vmax.f32 %v2188_v42, 0.0  ;;  %v14050_v14 = vld [vmem:[#allocation142_spill] sm:$0xff] }
 0x7c4   : > { %v10984_v39 = vpop.permute.xlu0 %3120  ;;  %v10986_v44 = vpop.permute.xlu1 %3112  ;;  %v2755_v40 = vand.u32 2147483647, %v2746_v11  ;;  %v2620_v3 = vsub.f32 1.0, %v2611_v33  ;;  %v2749_v10 = vsub.f32 %v10861_v47, %v14050_v14  ;;  %v14052_v43 = vmov 38   ;;  %v14054_v14 = vld [vmem:[#allocation117_spill] sm:$0xff] }
 0x7c5   : > { %14044 = vst [vmem:[#allocation52_spill] sm:$0xff] %v10984_v39  ;;  %14045 = vst [vmem:[#allocation39_spill] sm:$0xff] %v10986_v44  ;;  %8212 = vset.pattern.permute.xlu1 %v13663_v20  ;;  %v2614_v39 = vand.u32 2147483647, %v2605_v5  ;;  %v2194_v20 = vmax.f32 %v2185_v60, 0.0  ;;  %v14051_v5 = vld [vmem:[#allocation114_spill] sm:$0xff]  ;;  %v11008_v50 = vmul.f32 %v2062_v37, %v2053_v48  ;;  %v11010_v2 = vmul.f32 %v2059_v24, %v2050_v51 }
 0x7c6   : > { %2391 = vperm.xlu1 %8212, %v10687_v1   ;;  %v2908_v62 = vsub.f32 %v10857_v56, %v14051_v5  ;;  %v2350_v60 = vmul.f32 %v2269_v9, %v2197_v53  ;;  %v2338_v57 = vmax.f32 %v2329_v6, 0.0  ;;  %v2341_v11 = vmax.f32 %v2332_v35, 0.0  ;;  %v14056_v48 = vld [vmem:[#allocation122_spill] sm:$0xff]  ;;  %v14059_v6 = vld [vmem:[#allocation145_spill] sm:$0xff] }
 0x7c7   : > { %4515 = vperm.xlu0 %8235, %v10994_v7   ;;  %v2347_v32 = vmul.f32 %v2266_v4, %v2194_v20  ;;  %v2623_v27 = vsub.f32 1.0, %v2614_v39  ;;  %14053 = vst [vmem:[#allocation56_spill] sm:$0xff] %v11008_v50  ;;  %v2692_v17 = vsub.f32 1.0, %v2683_v29  ;;  %v2695_v42 = vsub.f32 1.0, %v2686_v21  ;;  %v14055_v4 = vld [vmem:[#allocation147_spill] sm:$0xff]  ;;  %v14061_v53 = vld [vmem:[#allocation149_spill] sm:$0xff] }
 0x7c8   : > { %v2764_v33 = vsub.f32 1.0, %v2755_v40  ;;  %v2983_v39 = vsub.f32 %v10847_v19, %v14055_v4  ;;  %v2629_v20 = vmax.f32 %v2620_v3, 0.0  ;;  %v2758_v5 = vand.u32 2147483647, %v2749_v10  ;;  %v14060_v21 = vld [vmem:[#allocation119_spill] sm:$0xff]  ;;  %v14062_v3 = vld [vmem:[#allocation121_spill] sm:$0xff] }
 0x7c9   : > { %v10997_v23 = vpop.permute.xlu0 %3408  ;;  %v10999_v26 = vpop.permute.xlu1 %3400  ;;  %v2917_v37 = vand.u32 2147483647, %v2908_v62  ;;  %v3268_v24 = vsub.f32 %v10918_v13, %v14056_v48  ;;  %v2632_v9 = vmax.f32 %v2623_v27, 0.0  ;;  %v2911_v29 = vsub.f32 %v10857_v56, %v14059_v6  ;;  %v14063_v4 = vld [vmem:[#allocation153_spill] sm:$0xff]  ;;  %v11036_v50 = vld [vmem:[#allocation3 + $0x20] sm:$0xff] }
 0x7ca   : > { %14048 = vst [vmem:[#allocation54_spill] sm:$0xff] %v10997_v23  ;;  %14049 = vst [vmem:[#allocation40_spill] sm:$0xff] %v10999_v26  ;;  %8213 = vset.pattern.permute.xlu1 %v13985_v45  ;;  %v2980_v45 = vsub.f32 %v10847_v19, %v14054_v14  ;;  %v3052_v40 = vsub.f32 %v10861_v47, %v14060_v21  ;;  %v3055_v14 = vsub.f32 %v10861_v47, %v14061_v53  ;;  %v14065_v23 = vld [vmem:[#allocation151_spill] sm:$0xff] }
 0x7cb   : > { %8264 = vset.pattern.permute.xlu0 %v14052_v43  ;;  %2843 = vperm.xlu1 %8213, %v10687_v1   ;;  %v2701_v62 = vmax.f32 %v2692_v17, 0.0  ;;  %v3196_v10 = vsub.f32 %v10843_v12, %v14062_v3  ;;  %v3271_v48 = vsub.f32 %v10918_v13, %v14063_v4  ;;  %v14064_v43 = vld [vmem:[#allocation124_spill] sm:$0xff]  ;;  %v2704_v6 = vmax.f32 %v2695_v42, 0.0 }
 0x7cc   : > { %4775 = vperm.xlu0 %8264, %v10907_v52   ;;  %v3340_v27 = vsub.f32 %v10832_v18, %v14064_v43  ;;  %v2773_v21 = vmax.f32 %v2764_v33, 0.0  ;;  %v2989_v53 = vand.u32 2147483647, %v2980_v45  ;;  %v2767_v17 = vsub.f32 1.0, %v2758_v5 }
 0x7cd   : > { %v3199_v3 = vsub.f32 %v10843_v12, %v14065_v23  ;;  %v2920_v4 = vand.u32 2147483647, %v2911_v29  ;;  %v3061_v26 = vand.u32 2147483647, %v3052_v40  ;;  %v3064_v8 = vand.u32 2147483647, %v3055_v14 }
 0x7ce   : > { %v11019_v51 = vpop.permute.xlu0 %3696  ;;  %v11021_v35 = vpop.permute.xlu1 %3688  ;;  %v11046_v44 = vmul.f32 %v2347_v32, %v2338_v57  ;;  %v2791_v41 = vmul.f32 %v2701_v62, %v2629_v20  ;;  %v3205_v42 = vand.u32 2147483647, %v3196_v10  ;;  %v3280_v33 = vand.u32 2147483647, %v3271_v48 }
 0x7cf   : > { %14057 = vst [vmem:[#allocation44_spill] sm:$0xff] %v11019_v51  ;;  %14058 = vst [vmem:[#allocation42_spill] sm:$0xff] %v11021_v35  ;;  %8214 = vset.pattern.permute.xlu1 %v13992_v30  ;;  %v2992_v30 = vand.u32 2147483647, %v2983_v39  ;;  %v2926_v51 = vsub.f32 1.0, %v2917_v37  ;;  %v11048_v39 = vld [vmem:[#allocation3 + $0x30] sm:$0xff]  ;;  %v11055_v29 = vmul.f32 %v2350_v60, %v2341_v11  ;;  %v2794_v32 = vmul.f32 %v2704_v6, %v2632_v9 }
 0x7d0   : > { %4791 = vperm.xlu0 %8264, %v11036_v50   ;;  %3132 = vperm.xlu1 %8214, %v10687_v1   ;;  %v3277_v35 = vand.u32 2147483647, %v3268_v24  ;;  %v3349_v45 = vand.u32 2147483647, %v3340_v27  ;;  %v2998_v23 = vsub.f32 1.0, %v2989_v53  ;;  %v14068_v37 = vld [vmem:[#allocation156_spill] sm:$0xff]  ;;  %v11057_v40 = vmul.f32 %v2791_v41, %v2773_v21 }
 0x7d1   : > { %v3001_v5 = vsub.f32 1.0, %v2992_v30  ;;  %v3343_v24 = vsub.f32 %v10832_v18, %v14068_v37  ;;  %14069 = vst [vmem:[#allocation46_spill] sm:$0xff] %v11055_v29  ;;  %v3208_v57 = vand.u32 2147483647, %v3199_v3  ;;  %v2776_v14 = vmax.f32 %v2767_v17, 0.0  ;;  %v14071_v6 = vld [vmem:[#allocation126_spill] sm:$0xff] }
 0x7d2   : > { %v3286_v20 = vsub.f32 1.0, %v3277_v35  ;;  %v2935_v62 = vmax.f32 %v2926_v51, 0.0  ;;  %v2929_v10 = vsub.f32 1.0, %v2920_v4  ;;  %v3070_v48 = vsub.f32 1.0, %v3061_v26  ;;  %v14072_v51 = vld [vmem:[#allocation158_spill] sm:$0xff]  ;;  %v14073_v21 = vld [vmem:[#allocation128_spill] sm:$0xff] }
 0x7d3   : > { %v11042_v43 = vpop.permute.xlu0 %4162  ;;  %v11044_v16 = vpop.permute.xlu1 %4147  ;;  %v3073_v27 = vsub.f32 1.0, %v3064_v8  ;;  %v3289_v53 = vsub.f32 1.0, %v3280_v33  ;;  %v3358_v30 = vsub.f32 1.0, %v3349_v45  ;;  %v14070_v37 = vmov 46  }
 0x7d4   : > { %14066 = vst [vmem:[#allocation60_spill] sm:$0xff] %v11042_v43  ;;  %14067 = vst [vmem:[#allocation58_spill] sm:$0xff] %v11044_v16  ;;  %4799 = vperm.xlu0 %8264, %v11048_v39   ;;  %8215 = vset.pattern.permute.xlu1 %v13999_v49  ;;  %v3214_v49 = vsub.f32 1.0, %v3205_v42  ;;  %v3007_v60 = vmax.f32 %v2998_v23, 0.0  ;;  %v3010_v11 = vmax.f32 %v3001_v5, 0.0  ;;  %v3484_v41 = vsub.f32 %v10843_v12, %v14071_v6  ;;  %v14074_v42 = vld [vmem:[#allocation160_spill] sm:$0xff] }
 0x7d5   : > { %3420 = vperm.xlu1 %8215, %v10687_v1   ;;  %v3352_v9 = vand.u32 2147483647, %v3343_v24  ;;  %v3217_v26 = vsub.f32 1.0, %v3208_v57  ;;  %v3295_v8 = vmax.f32 %v3286_v20, 0.0  ;;  %v3487_v35 = vsub.f32 %v10843_v12, %v14072_v51 }
 0x7d6   : > { %v1267_v17 = vsub.f32 %v10857_v56, %v14073_v21  ;;  %v2938_v3 = vmax.f32 %v2929_v10, 0.0  ;;  %v3079_v4 = vmax.f32 %v3070_v48, 0.0  ;;  %v1270_v33 = vsub.f32 %v10857_v56, %v14074_v42 }
 0x7d7   : > { %v11073_v45 = vmul.f32 %v2794_v32, %v2776_v14  ;;  %v3082_v23 = vmax.f32 %v3073_v27, 0.0  ;;  %v3223_v5 = vmax.f32 %v3214_v49, 0.0  ;;  %v3367_v24 = vmax.f32 %v3358_v30, 0.0  ;;  %v14076_v49 = vld [vmem:[#allocation162_spill] sm:$0xff] }
 0x7d8   : > { %v11059_v43 = vpop.permute.xlu0 %1509  ;;  %8273 = vset.pattern.permute.xlu0 %v14070_v37  ;;  %v1495_v16 = vpop.permute.xlu1 %1494  ;;  %v3088_v57 = vmul.f32 %v3007_v60, %v2935_v62  ;;  %v3091_v20 = vmul.f32 %v3010_v11, %v2938_v3  ;;  %v3361_v6 = vsub.f32 1.0, %v3352_v9  ;;  %v11075_v51 = vand.u32 2147483647, %v3484_v41  ;;  %v14075_v62 = vld [vmem:[#allocation130_spill] sm:$0xff] }
 0x7d9   : > { %4935 = vperm.xlu0 %8273, %v11036_v50   ;;  %8216 = vset.pattern.permute.xlu1 %v14009_v54  ;;  %v3298_v54 = vmax.f32 %v3289_v53, 0.0  ;;  %v3226_v10 = vmax.f32 %v3217_v26, 0.0  ;;  %v3376_v48 = vmul.f32 %v3295_v8, %v3223_v5  ;;  %v11080_v21 = vand.u32 2147483647, %v3487_v35  ;;  %v14077_v26 = vld [vmem:[#allocation132_spill] sm:$0xff] }
 0x7da   : > { %3708 = vperm.xlu1 %8216, %v10687_v1   ;;  %v11082_v32 = vand.u32 2147483647, %v1267_v17  ;;  %v11085_v14 = vand.u32 2147483647, %v1270_v33  ;;  %v1343_v27 = vsub.f32 %v10847_v19, %v14075_v62  ;;  %v1346_v53 = vsub.f32 %v10847_v19, %v14076_v49  ;;  %v14078_v35 = vld [vmem:[#allocation164_spill] sm:$0xff]  ;;  %v14081_v62 = vld [vmem:[#allocation133_spill] sm:$0xff] }
 0x7db   : > { %v11092_v30 = vmul.f32 %v3088_v57, %v3079_v4  ;;  %v11094_v60 = vmul.f32 %v3298_v54, %v3226_v10  ;;  %v11096_v11 = vmul.f32 %v3091_v20, %v3082_v23  ;;  %v11098_v9 = vmul.f32 %v3376_v48, %v3367_v24  ;;  %v14080_v20 = vld [vmem:[#allocation135_spill] sm:$0xff]  ;;  %v11126_v48 = vld [vmem:[#allocation3 + $0x8] sm:$0xff] }
 0x7dc   : > { %v11100_v41 = vmax.f32 %v3361_v6, 0.0  ;;  %v1419_v8 = vsub.f32 %v10861_v47, %v14077_v26  ;;  %v1422_v17 = vsub.f32 %v10861_v47, %v14078_v35  ;;  %v14079_v3 = vmov 22   ;;  %v14082_v49 = vld [vmem:[#allocation208_spill] sm:$0xff]  ;;  %v14084_v26 = vld [vmem:[#allocation167_spill] sm:$0xff] }
 0x7dd   : > { %v11077_v29 = vpop.permute.xlu0 %1799  ;;  %4947 = vperm.xlu0 %8273, %v10994_v7   ;;  %v1788_v1 = vpop.permute.xlu1 %1787  ;;  %v1285_v4 = vsub.f32 1.0, %v11082_v32  ;;  %v1812_v42 = vmul.f32 %v10898_v15, %v10691_v63  ;;  %v1288_v54 = vsub.f32 1.0, %v11085_v14  ;;  %v1352_v24 = vand.u32 2147483647, %v1343_v27  ;;  %v14085_v35 = vld [vmem:[#allocation215_spill] sm:$0xff] }
 0x7de   : > { %8226 = vset.pattern.permute.xlu1 %v13766_v46  ;;  %v3502_v46 = vsub.f32 1.0, %v11075_v51  ;;  %v1813_v33 = vmul.f32 %v1788_v1, %v10971_v28  ;;  %v1355_v57 = vand.u32 2147483647, %v1346_v53  ;;  %v1653_v6 = vsub.f32 %v10847_v19, %v14080_v20 }
 0x7df   : > { %4177 = vperm.xlu1 %8226, %v10725_v59   ;;  %v13530_v10 = vmov 31   ;;  %v1524_v63 = vmul.f32 %v10878_v61, %v10683_v0  ;;  %v2112_v15 = vmul.f32 %v10916_v34, %v10703_v55  ;;  %v1525_v28 = vmul.f32 %v1495_v16, %v10932_v22  ;;  %v14083_v0 = vld [vmem:[#allocation210_spill] sm:$0xff] }
 0x7e0   : > { %v1428_v32 = vand.u32 2147483647, %v1419_v8  ;;  %v1431_v14 = vand.u32 2147483647, %v1422_v17  ;;  %v1581_v27 = vsub.f32 %v10857_v56, %v14081_v62  ;;  %v3555_v53 = vsub.f32 %v10918_v13, %v14082_v49 }
 0x7e1   : > { %8282 = vset.pattern.permute.xlu0 %v14079_v3  ;;  %v3556_v61 = vsub.f32 %v10918_v13, %v14083_v0  ;;  %v1821_v55 = vadd.f32 %v1812_v42, %v1524_v63  ;;  %v2400_v16 = vmul.f32 %v10938_v36, %v10782_v38  ;;  %v1822_v34 = vadd.f32 %v1813_v33, %v1525_v28  ;;  %v11146_v28 = vld [vmem:[#allocation4] sm:$0xff] }
 0x7e2   : > { %v11113_v23 = vpop.permute.xlu0 %2099  ;;  %4343 = vperm.xlu0 %8282, %v10907_v52   ;;  %v2088_v5 = vpop.permute.xlu1 %2087  ;;  %v1361_v22 = vsub.f32 1.0, %v1352_v24  ;;  %v1584_v8 = vsub.f32 %v10857_v56, %v14084_v26  ;;  %v3627_v17 = vsub.f32 %v10832_v18, %v14085_v35  ;;  %v1662_v62 = vand.u32 2147483647, %v1653_v6  ;;  %v14087_v26 = vld [vmem:[#allocation216_spill] sm:$0xff] }
 0x7e3   : > { %8227 = vset.pattern.permute.xlu1 %v13530_v10  ;;  %v2113_v1 = vmul.f32 %v2088_v5, %v11010_v2  ;;  %v1364_v2 = vsub.f32 1.0, %v1355_v57  ;;  %v2121_v49 = vadd.f32 %v2112_v15, %v1821_v55  ;;  %v14086_v38 = vmov 10  }
 0x7e4   : > { %5887 = vperm.xlu1 %8227, %v11126_v48   ;;  %v1437_v36 = vsub.f32 1.0, %v1428_v32  ;;  %v1440_v33 = vsub.f32 1.0, %v1431_v14  ;;  %v1590_v24 = vand.u32 2147483647, %v1581_v27  ;;  %v3564_v57 = vand.u32 2147483647, %v3555_v53 }
 0x7e5   : > { %v2122_v42 = vadd.f32 %v2113_v1, %v1822_v34  ;;  %v3565_v0 = vand.u32 2147483647, %v3556_v61  ;;  %v3628_v35 = vsub.f32 %v10832_v18, %v14087_v26  ;;  %v2409_v10 = vadd.f32 %v2400_v16, %v2121_v49  ;;  %v14088_v14 = vld [vmem:[#allocation169_spill] sm:$0xff] }
 0x7e6   : > { %4359 = vperm.xlu0 %8282, %v11036_v50   ;;  %v1370_v15 = vmax.f32 %v1361_v22, 0.0  ;;  %v1593_v1 = vand.u32 2147483647, %v1584_v8  ;;  %v3636_v55 = vand.u32 2147483647, %v3627_v17  ;;  %v1671_v32 = vsub.f32 1.0, %v1662_v62 }
 0x7e7   : > { %v11142_v5 = vpop.permute.xlu0 %2387  ;;  %v2376_v20 = vpop.permute.xlu1 %2375  ;;  %v1656_v27 = vsub.f32 %v10847_v19, %v14088_v14  ;;  %v14089_v53 = vld [vmem:[#allocation137_spill] sm:$0xff]  ;;  %v1294_v26 = vmax.f32 %v1285_v4, 0.0  ;;  %v1297_v16 = vmax.f32 %v1288_v54, 0.0  ;;  %v1446_v49 = vmax.f32 %v1437_v36, 0.0  ;;  %v11159_v62 = vld [vmem:[#allocation3 + $0x40] sm:$0xff] }
 0x7e8   : > { %v2401_v63 = vmul.f32 %v2376_v20, %v11046_v44  ;;  %8228 = vset.pattern.permute.xlu1 %v14086_v38  ;;  %v1373_v44 = vmax.f32 %v1364_v2, 0.0  ;;  %v1725_v34 = vsub.f32 %v10861_v47, %v14089_v53  ;;  %v1449_v22 = vmax.f32 %v1440_v33, 0.0 }
 0x7e9   : > { %4721 = vperm.xlu1 %8228, %v11146_v28   ;;  %v1599_v2 = vsub.f32 1.0, %v1590_v24  ;;  %v3574_v8 = vsub.f32 1.0, %v3565_v0  ;;  %v3637_v17 = vand.u32 2147483647, %v3628_v35  ;;  %v1602_v4 = vsub.f32 1.0, %v1593_v1 }
 0x7ea   : > { %v2410_v6 = vadd.f32 %v2401_v63, %v2122_v42  ;;  %4367 = vperm.xlu0 %8282, %v11048_v39   ;;  %v3573_v42 = vsub.f32 1.0, %v3564_v57  ;;  %v1464_v63 = vmul.f32 %v1370_v15, %v1294_v26  ;;  %v3645_v54 = vsub.f32 1.0, %v3636_v55 }
 0x7eb   : > { %v1467_v36 = vmul.f32 %v1373_v44, %v1297_v16  ;;  %v1680_v57 = vmax.f32 %v1671_v32, 0.0  ;;  %v1665_v33 = vand.u32 2147483647, %v1656_v27  ;;  %v11166_v24 = vand.u32 2147483647, %v1725_v34  ;;  %v11179_v27 = vld [vmem:[#allocation3 + $0x18] sm:$0xff] }
 0x7ec   : > { %v2431_v20 = vpack.c.bf16 %v2410_v6, %v2409_v10  ;;  %v2839_v61 = vpop.permute.xlu0 %2838  ;;  %v11156_v59 = vpop.permute.xlu1 %2823  ;;  %v3511_v10 = vmax.f32 %v3502_v46, 0.0  ;;  %v14090_v0 = vsub.f32 1.0, %v11080_v21  ;;  %v3582_v6 = vmax.f32 %v3573_v42, 0.0  ;;  %v14092_v16 = vld [vmem:[#allocation171_spill] sm:$0xff] }
 0x7ed   : > { %8229 = vset.pattern.permute.xlu1 %v14070_v37  ;;  %v3388_v15 = vmul.f32 %v11094_v60, %v11100_v41  ;;  %v11176_v1 = vmul.f32 %v1464_v63, %v1446_v49  ;;  %v1608_v44 = vmax.f32 %v1599_v2, 0.0  ;;  %v3583_v55 = vmax.f32 %v3574_v8, 0.0  ;;  %v14093_v42 = vld [vmem:[#allocation139_spill] sm:$0xff]  ;;  %v14145_v37 = vld [vmem:[#allocation212_spill] sm:$0xff] }
 0x7ee   : > { %4375 = vperm.xlu0 %8282, %v11159_v62   ;;  %4927 = vperm.xlu1 %8229, %v10946_v31   ;;  %v11172_v35 = vmax.f32 %v14090_v0, 0.0  ;;  %v3646_v32 = vsub.f32 1.0, %v3637_v17  ;;  %v14091_v14 = vmov 19   ;;  %v11182_v21 = vmul.f32 %v1467_v36, %v1449_v22  ;;  %v14094_v22 = vld [vmem:[#allocation141_spill] sm:$0xff] }
 0x7ef   : > { %7621 = vmatmul.mubr.msk.bf16.gmra.mxu0 %vm2435_vm7, %v2431_v20  ;;  %v11184_v53 = vmax.f32 %v1602_v4, 0.0  ;;  %v3654_v34 = vmax.f32 %v3645_v54, 0.0  ;;  %v11188_v60 = vmul.f32 %v1680_v57, %v1608_v44  ;;  %v1674_v41 = vsub.f32 1.0, %v1665_v33  ;;  %v14095_v4 = vld [vmem:[#allocation36_spill] sm:$0xff]  ;;  %v14096_v54 = vld [vmem:[#allocation39_spill] sm:$0xff] }
 0x7f0   : > { %7624 = vmatprep.mubr.msk.bf16.mxu0 %vm8618_vm0, %v13968_v58  ;;  %v1743_v26 = vsub.f32 1.0, %v11166_v24  ;;  %v1728_v49 = vsub.f32 %v10861_v47, %v14092_v16  ;;  %v1873_v2 = vsub.f32 %v10843_v12, %v14093_v42  ;;  %v1949_v8 = vsub.f32 %v10918_v13, %v14094_v22 }
 0x7f1   : > { %v3129_v51 = vpop.permute.xlu0 %3128  ;;  %v3117_v46 = vpop.permute.xlu1 %3116  ;;  %v3663_v17 = vmul.f32 %v3582_v6, %v10910_v25  ;;  %v3664_v63 = vmul.f32 %v3583_v55, %v3511_v10  ;;  %v3141_v36 = vmul.f32 %v14096_v54, %v14095_v4  ;;  %v13536_v24 = vmov 35   ;;  %v14097_v25 = vld [vmem:[#allocation32_spill] sm:$0xff]  ;;  %v14099_v10 = vld [vmem:[#allocation41_spill] sm:$0xff] }
 0x7f2   : > { %8291 = vset.pattern.permute.xlu0 %v14091_v14  ;;  %4931 = vperm.xlu1 %8229, %v11179_v27   ;;  %v3145_v20 = vmul.f32 %v3129_v51, %v11096_v11  ;;  %v2857_v11 = vmul.f32 %v2839_v61, %v11073_v45  ;;  %v3142_v57 = vmul.f32 %v3117_v46, %v11092_v30  ;;  %v14098_v45 = vld [vmem:[#allocation35_spill] sm:$0xff]  ;;  %v14100_v6 = vld [vmem:[#allocation40_spill] sm:$0xff] }
 0x7f3   : > { %5603 = vperm.xlu0 %8291, %v10946_v31   ;;  %v3655_v31 = vmax.f32 %v3646_v32, 0.0  ;;  %v3672_v51 = vmul.f32 %v3663_v17, %v3654_v34  ;;  %v2853_v61 = vmul.f32 %v14098_v45, %v14097_v25  ;;  %v3429_v55 = vmul.f32 %v14100_v6, %v14099_v10  ;;  %v14103_v17 = vld [vmem:[#allocation42_spill] sm:$0xff]  ;;  %v14104_v25 = vld [vmem:[#allocation175_spill] sm:$0xff]  ;;  %v14109_v10 = vld [vmem:[#allocation144_spill] sm:$0xff] }
 0x7f4   : > { %v3154_v44 = vadd.f32 %v3145_v20, %v2857_v11  ;;  %v2854_v30 = vmul.f32 %v11156_v59, %v11057_v40  ;;  %v11212_v32 = vmax.f32 %v1674_v41, 0.0  ;;  %v1882_v34 = vand.u32 2147483647, %v1873_v2  ;;  %v14101_v20 = vld [vmem:[#allocation173_spill] sm:$0xff]  ;;  %v14105_v40 = vld [vmem:[#allocation143_spill] sm:$0xff]  ;;  %v14106_v59 = vld [vmem:[#allocation178_spill] sm:$0xff] }
 0x7f5   : > { %v3150_v22 = vadd.f32 %v3141_v36, %v2853_v61  ;;  %v3717_v11 = vmul.f32 %v14103_v17, %v3672_v51  ;;  %v3673_v54 = vmul.f32 %v3664_v63, %v3655_v31  ;;  %v1952_v45 = vsub.f32 %v10918_v13, %v14104_v25 }
 0x7f6   : > { %v3417_v33 = vpop.permute.xlu0 %3416  ;;  %8230 = vset.pattern.permute.xlu1 %v13536_v24  ;;  %v3405_v0 = vpop.permute.xlu1 %3404  ;;  %v3151_v4 = vadd.f32 %v3142_v57, %v2854_v30  ;;  %v2028_v41 = vsub.f32 %v10832_v18, %v14106_v59  ;;  %v14108_v57 = vld [vmem:[#allocation146_spill] sm:$0xff]  ;;  %v1891_v61 = vsub.f32 1.0, %v1882_v34  ;;  %v2169_v6 = vsub.f32 %v10843_v12, %v14109_v10 }
 0x7f7   : > { %v3433_v16 = vmul.f32 %v3417_v33, %v3388_v15  ;;  %5611 = vperm.xlu0 %8291, %v11036_v50   ;;  %5959 = vperm.xlu1 %8230, %v11126_v48   ;;  %v3430_v46 = vmul.f32 %v3405_v0, %v11098_v9  ;;  %v1876_v15 = vsub.f32 %v10843_v12, %v14101_v20  ;;  %v1958_v33 = vand.u32 2147483647, %v1949_v8  ;;  %v14119_v10 = vld [vmem:[#allocation186_spill] sm:$0xff] }
 0x7f8   : > { %v2025_v9 = vsub.f32 %v10832_v18, %v14105_v40  ;;  %v13534_v0 = vmov 39   ;;  %v2241_v8 = vsub.f32 %v10918_v13, %v14108_v57  ;;  %v3438_v63 = vadd.f32 %v3429_v55, %v3150_v22  ;;  %v14111_v55 = vld [vmem:[#allocation152_spill] sm:$0xff] }
 0x7f9   : > { %v11216_v42 = vadd.f32 %v3433_v16, %v3154_v44  ;;  %v3439_v31 = vadd.f32 %v3430_v46, %v3151_v4  ;;  %v11232_v44 = vmax.f32 %v1743_v26, 0.0  ;;  %v1737_v16 = vand.u32 2147483647, %v1728_v49 }
 0x7fa   : > { %v3726_v20 = vadd.f32 %v3717_v11, %v3438_v63  ;;  %v1885_v25 = vand.u32 2147483647, %v1876_v15  ;;  %v1967_v40 = vsub.f32 1.0, %v1958_v33  ;;  %v1961_v59 = vand.u32 2147483647, %v1952_v45  ;;  %v14115_v33 = vld [vmem:[#allocation180_spill] sm:$0xff] }
 0x7fb   : > { %14102 = vst [vmem:[#allocation63_spill] sm:$0xff] %v11216_v42  ;;  %v11225_v2 = vpop.permute.xlu0 %3704  ;;  %5619 = vperm.xlu0 %8291, %v11048_v39   ;;  %8231 = vset.pattern.permute.xlu1 %v13534_v0  ;;  %v3693_v36 = vpop.permute.xlu1 %3692  ;;  %v14110_v39 = vld [vmem:[#allocation148_spill] sm:$0xff]  ;;  %v2676_v46 = vsub.f32 %v10847_v19, %v14111_v55  ;;  %v14112_v22 = vmov 6   ;;  %v2034_v26 = vand.u32 2147483647, %v2025_v9  ;;  %v1746_v15 = vsub.f32 1.0, %v1737_v16 }
 0x7fc   : > { %14107 = vst [vmem:[#allocation48_spill] sm:$0xff] %v11225_v2  ;;  %v3718_v51 = vmul.f32 %v3693_v36, %v3673_v54  ;;  %6099 = vperm.xlu1 %8231, %v10907_v52   ;;  %v2313_v30 = vsub.f32 %v10832_v18, %v14110_v39  ;;  %v2037_v4 = vand.u32 2147483647, %v2028_v41  ;;  %v2250_v49 = vand.u32 2147483647, %v2241_v8  ;;  %v14116_v19 = vld [vmem:[#allocation182_spill] sm:$0xff] }
 0x7fd   : > { %v13532_v36 = vmov 43   ;;  %v2172_v45 = vsub.f32 %v10843_v12, %v14115_v33  ;;  %v2244_v57 = vsub.f32 %v10918_v13, %v14116_v19  ;;  %v14117_v9 = vld [vmem:[#allocation150_spill] sm:$0xff]  ;;  %v2178_v8 = vand.u32 2147483647, %v2169_v6 }
 0x7fe   : > { %v3727_v17 = vadd.f32 %v3718_v51, %v3439_v31  ;;  %v2604_v41 = vsub.f32 %v10857_v56, %v14117_v9  ;;  %v2322_v63 = vand.u32 2147483647, %v2313_v30  ;;  %v14118_v31 = vld [vmem:[#allocation184_spill] sm:$0xff]  ;;  %v2607_v39 = vsub.f32 %v10857_v56, %v14119_v10 }
 0x7ff   : > { %8297 = vset.pattern.permute.xlu0 %v14112_v22  ;;  %v2316_v51 = vsub.f32 %v10832_v18, %v14118_v31  ;;  %v1900_v16 = vmax.f32 %v1891_v61, 0.0  ;;  %v1894_v12 = vsub.f32 1.0, %v1885_v25  ;;  %v1976_v55 = vmax.f32 %v1967_v40, 0.0 }
 0x800   : > { %v3743_v34 = vpack.c.bf16 %v3727_v17, %v3726_v20  ;;  %3965 = vperm.xlu0 %8297, %v10907_v52   ;;  %v11242_v54 = vpop.permute.xlu0 %4172  ;;  %8232 = vset.pattern.permute.xlu1 %v13532_v36  ;;  %v11245_v11 = vpop.permute.xlu1 %4157  ;;  %v1970_v20 = vsub.f32 1.0, %v1961_v59  ;;  %v2685_v17 = vand.u32 2147483647, %v2676_v46  ;;  %v2043_v33 = vsub.f32 1.0, %v2034_v26 }
 0x801   : > { %14113 = vst [vmem:[#allocation50_spill] sm:$0xff] %v11242_v54  ;;  %14114 = vst [vmem:[#allocation67_spill] sm:$0xff] %v11245_v11  ;;  %6171 = vperm.xlu1 %8232, %v10907_v52   ;;  %v2046_v52 = vsub.f32 1.0, %v2037_v4  ;;  %v2259_v6 = vsub.f32 1.0, %v2250_v49  ;;  %v1764_v18 = vmul.f32 %v11212_v32, %v11184_v53  ;;  %v2181_v30 = vand.u32 2147483647, %v2172_v45 }
 0x802   : > { %7651 = vmatmul.mubr.msk.bf16.gmra.mxu1 %vm2435_vm7, %v3743_v34  ;;  %v2253_v56 = vand.u32 2147483647, %v2244_v57  ;;  %v2613_v19 = vand.u32 2147483647, %v2604_v41  ;;  %v2187_v25 = vsub.f32 1.0, %v2178_v8  ;;  %v2331_v59 = vsub.f32 1.0, %v2322_v63 }
 0x803   : > { %7654 = vmatprep.mubr.msk.bf16.mxu1 %vm8618_vm0, %v13968_v58  ;;  %v2325_v46 = vand.u32 2147483647, %v2316_v51  ;;  %v2616_v40 = vand.u32 2147483647, %v2607_v39  ;;  %v1755_v26 = vmax.f32 %v1746_v15, 0.0  ;;  %v1903_v4 = vmax.f32 %v1894_v12, 0.0 }
 0x804   : > { %3977 = vperm.xlu0 %8297, %v11179_v27   ;;  %v1979_v49 = vmax.f32 %v1970_v20, 0.0  ;;  %v2694_v9 = vsub.f32 1.0, %v2685_v17  ;;  %v2061_v31 = vmul.f32 %v1976_v55, %v1900_v16  ;;  %v2052_v10 = vmax.f32 %v2043_v33, 0.0  ;;  %v14120_v53 = vld [vmem:[#allocation154_spill] sm:$0xff]  ;;  %v14121_v45 = vld [vmem:[#allocation47_spill] sm:$0xff]  ;;  %v11273_v16 = vld [vmem:[#allocation4 + $0x8] sm:$0xff] }
 0x805   : > { %v11264_v34 = vpop.permute.xlu0 %1519  ;;  %6175 = vperm.xlu1 %8232, %v11126_v48   ;;  %v1505_v61 = vpop.permute.xlu1 %1504  ;;  %v2268_v36 = vmax.f32 %v2259_v6, 0.0  ;;  %v2748_v32 = vsub.f32 %v10861_v47, %v14120_v53  ;;  %v2055_v57 = vmax.f32 %v2046_v52, 0.0  ;;  %v2190_v41 = vsub.f32 1.0, %v2181_v30  ;;  %14123 = vst [vmem:[#allocation65_spill] sm:$0xff] %v11273_v16  ;;  %v11276_v55 = vld [vmem:[#allocation7 + $0x1] ss:$0 sm:$0xff] }
 0x806   : > { %v2262_v0 = vsub.f32 1.0, %v2253_v56  ;;  %v2622_v24 = vsub.f32 1.0, %v2613_v19  ;;  %v14122_v8 = vmov 14   ;;  %v2196_v63 = vmax.f32 %v2187_v25, 0.0  ;;  %v14124_v33 = vld [vmem:[#allocation189_spill] sm:$0xff] }
 0x807   : > { %v2340_v51 = vmax.f32 %v2331_v59, 0.0  ;;  %v2334_v15 = vsub.f32 1.0, %v2325_v46  ;;  %v2625_v39 = vsub.f32 1.0, %v2616_v40  ;;  %v2064_v47 = vmul.f32 %v1979_v49, %v1903_v4 }
 0x808   : > { %3985 = vperm.xlu0 %8297, %v14121_v45   ;;  %v2703_v17 = vmax.f32 %v2694_v9, 0.0  ;;  %v2679_v52 = vsub.f32 %v11276_v55, %v14124_v33  ;;  %v1770_v6 = vmul.f32 %v11188_v60, %v11232_v44  ;;  %v2349_v30 = vmul.f32 %v2268_v36, %v2196_v63  ;;  %v14126_v60 = vld [vmem:[#allocation157_spill] sm:$0xff]  ;;  %v14127_v36 = vld [vmem:[#allocation88_spill] sm:$0xff]  ;;  %v11311_v63 = vld [vmem:[#allocation7] ss:$0 sm:$0xff] }
 0x809   : > { %8233 = vset.pattern.permute.xlu1 %v14122_v8  ;;  %v11282_v56 = vand.u32 2147483647, %v2748_v32  ;;  %v11284_v19 = vmul.f32 %v1764_v18, %v1755_v26  ;;  %v2070_v25 = vmul.f32 %v2061_v31, %v2052_v10  ;;  %v11287_v59 = vmax.f32 %v2190_v41, 0.0  ;;  %v14129_v31 = vld [vmem:[#allocation28_spill] sm:$0xff]  ;;  %v14133_v33 = vld [vmem:[#allocation163_spill] sm:$0xff]  ;;  %v14144_v8 = vld [vmem:[#allocation217_spill] sm:$0xff] }
 0x80a   : > { %v11271_v12 = vpop.permute.xlu0 %1807  ;;  %5013 = vperm.xlu1 %8233, %v11273_v16   ;;  %v1796_v20 = vpop.permute.xlu1 %1795  ;;  %v11289_v46 = vmax.f32 %v2262_v0, 0.0  ;;  %v2631_v40 = vmax.f32 %v2622_v24, 0.0  ;;  %v11291_v4 = vmul.f32 %v2064_v47, %v2055_v57  ;;  %v11293_v49 = vmax.f32 %v2334_v15, 0.0  ;;  %v14128_v0 = vld [vmem:[#allocation27_spill] sm:$0xff] }
 0x80b   : > { %v11295_v9 = vmax.f32 %v2625_v39, 0.0  ;;  %v2982_v44 = vsub.f32 %v11276_v55, %v14126_v60  ;;  %v2358_v18 = vmul.f32 %v2349_v30, %v2340_v51  ;;  %v11303_v26 = vand.u32 2147483647, %v2679_v52  ;;  %v14131_v15 = vld [vmem:[#allocation155_spill] sm:$0xff]  ;;  %v14134_v52 = vld [vmem:[#allocation17_spill] sm:$0xff] }
 0x80c   : > { %3993 = vperm.xlu0 %8297, %v10994_v7   ;;  %v11301_v7 = vmul.f32 %v2703_v17, %v2631_v40  ;;  %v1814_v24 = vmul.f32 %v14129_v31, %v14128_v0  ;;  %v1815_v10 = vmul.f32 %v1796_v20, %v1770_v6  ;;  %v14130_v57 = vmov 47   ;;  %v11315_v39 = vld [vmem:[#allocation7 + $0x2] ss:$0 sm:$0xff]  ;;  %v14135_v6 = vld [vmem:[#allocation38_spill] sm:$0xff]  ;;  %v14136_v40 = vld [vmem:[#allocation20_spill] sm:$0xff] }
 0x80d   : > { %14125 = vst [vmem:[#allocation51_spill] sm:$0xff] %v11295_v9  ;;  %v2766_v41 = vsub.f32 1.0, %v11282_v56  ;;  %v2910_v51 = vsub.f32 %v11311_v63, %v14131_v15  ;;  %v14132_v47 = vld [vmem:[#allocation159_spill] sm:$0xff]  ;;  %v3270_v20 = vsub.f32 %v10918_v13, %v14133_v33  ;;  %v1526_v30 = vmul.f32 %v14135_v6, %v14134_v52  ;;  %v14141_v6 = vld [vmem:[#allocation165_spill] sm:$0xff] }
 0x80e   : > { %5080 = vrot.lane.b32.xlu1 %v14127_v36, %s8619_s22  ;;  %v3054_v17 = vsub.f32 %v11315_v39, %v14132_v47  ;;  %v14137_v56 = vld [vmem:[#allocation31_spill] sm:$0xff]  ;;  %v1527_v0 = vmul.f32 %v1505_v61, %v11176_v1  ;;  %v2991_v11 = vand.u32 2147483647, %v2982_v44  ;;  %v14139_v47 = vld [vmem:[#allocation161_spill] sm:$0xff] }
 0x80f   : > { %v11307_v53 = vpop.permute.xlu0 %2107  ;;  %v2096_v32 = vpop.permute.xlu1 %2095  ;;  %8236 = vset.pattern.permute.xlu1 %v14130_v57  ;;  %v2114_v60 = vmul.f32 %v14137_v56, %v14136_v40  ;;  %v14138_v15 = vld [vmem:[#allocation191_spill] sm:$0xff]  ;;  %v14140_v57 = vld [vmem:[#allocation209_spill] sm:$0xff]  ;;  %v1823_v61 = vadd.f32 %v1814_v24, %v1526_v30  ;;  %v2919_v56 = vand.u32 2147483647, %v2910_v51  ;;  %v3279_v24 = vand.u32 2147483647, %v3270_v20 }
 0x810   : > { %4433 = vperm.xlu0 %8297, %v11146_v28   ;;  %v2115_v31 = vmul.f32 %v2096_v32, %v2070_v25  ;;  %v2751_v54 = vsub.f32 %v11315_v39, %v14138_v15  ;;  %v11329_v36 = vld [vmem:[#allocation7 + $0x3] ss:$0 sm:$0xff]  ;;  %v3557_v28 = vsub.f32 %v10918_v13, %v14140_v57  ;;  %v11336_v52 = vld [vmem:[#allocation7 + $0x5] ss:$0 sm:$0xff]  ;;  %v14142_v25 = vld [vmem:[#allocation18_spill] sm:$0xff]  ;;  %v1824_v44 = vadd.f32 %v1815_v10, %v1527_v0 }
 0x811   : > { %v3198_v33 = vsub.f32 %v11329_v36, %v14139_v47  ;;  %v3342_v1 = vsub.f32 %v11336_v52, %v14141_v6  ;;  %v14143_v32 = vld [vmem:[#allocation45_spill] sm:$0xff]  ;;  %v3063_v15 = vand.u32 2147483647, %v3054_v17  ;;  %v3629_v47 = vsub.f32 %v11336_v52, %v14144_v8  ;;  %v11346_v16 = vld [vmem:[#allocation4 + $0x18] sm:$0xff]  ;;  %v14147_v17 = vld [vmem:[#allocation166_spill] sm:$0xff] }
 0x812   : > { %6247 = vperm.xlu1 %8236, %v11126_v48   ;;  %v2402_v40 = vmul.f32 %v14143_v32, %v14142_v25  ;;  %v3558_v57 = vsub.f32 %v10918_v13, %v14145_v37  ;;  %14146 = vst [vmem:[#allocation69_spill] sm:$0xff] %v11346_v16  ;;  %v2123_v30 = vadd.f32 %v2114_v60, %v1823_v61  ;;  %v3000_v10 = vsub.f32 1.0, %v2991_v11  ;;  %v14148_v32 = vld [vmem:[#allocation116_spill] sm:$0xff]  ;;  %v14149_v37 = vld [vmem:[#allocation218_spill] sm:$0xff]  ;;  %v14150_v60 = vld [vmem:[#allocation193_spill] sm:$0xff] }
 0x813   : > { %v2124_v2 = vadd.f32 %v2115_v31, %v1824_v44  ;;  %v3207_v51 = vand.u32 2147483647, %v3198_v33  ;;  %v3486_v0 = vsub.f32 %v11329_v36, %v14147_v17  ;;  %v3566_v8 = vand.u32 2147483647, %v3557_v28  ;;  %v8450_v33 = vld [vmem:[#allocation4 + $0x28] sm:$0xff]  ;;  %v14151_v28 = vld [vmem:[#allocation195_spill] sm:$0xff] }
 0x814   : > { %4445 = vperm.xlu0 %8297, %v11346_v16   ;;  %v11349_v42 = vpop.permute.xlu0 %2395  ;;  %v2384_v6 = vpop.permute.xlu1 %2383  ;;  %v3351_v13 = vand.u32 2147483647, %v3342_v1  ;;  %v3630_v16 = vsub.f32 %v11336_v52, %v14149_v37  ;;  %v2411_v9 = vadd.f32 %v2402_v40, %v2123_v30  ;;  %v2928_v20 = vsub.f32 1.0, %v2919_v56 }
 0x815   : > { %v2403_v25 = vmul.f32 %v2384_v6, %v2358_v18  ;;  %v2913_v11 = vsub.f32 %v11311_v63, %v14150_v60  ;;  %v3638_v18 = vand.u32 2147483647, %v3629_v47  ;;  %v3567_v31 = vand.u32 2147483647, %v3558_v57 }
 0x816   : > { %6408 = vrot.lane.b32.xlu1 %v14148_v32, %s8666_s21  ;;  %v2985_v61 = vsub.f32 %v11276_v55, %v14151_v28  ;;  %v3072_v44 = vsub.f32 1.0, %v3063_v15  ;;  %v3288_v1 = vsub.f32 1.0, %v3279_v24  ;;  %v2775_v30 = vmax.f32 %v2766_v41, 0.0 }
 0x817   : > { %v2412_v38 = vadd.f32 %v2403_v25, %v2124_v2  ;;  %8237 = vset.pattern.permute.xlu1 %v14079_v3  ;;  %v2697_v2 = vsub.f32 1.0, %v11303_v26  ;;  %v3495_v56 = vand.u32 2147483647, %v3486_v0  ;;  %v3575_v25 = vsub.f32 1.0, %v3566_v8 }
 0x818   : > { %4453 = vperm.xlu0 %8297, %v8450_v33   ;;  %v3009_v47 = vmax.f32 %v3000_v10, 0.0  ;;  %v3216_v57 = vsub.f32 1.0, %v3207_v51  ;;  %v3360_v32 = vsub.f32 1.0, %v3351_v13  ;;  %v3639_v37 = vand.u32 2147483647, %v3630_v16  ;;  %v14154_v10 = vld [vmem:[#allocation197_spill] sm:$0xff] }
 0x819   : > { %v2432_v6 = vpack.c.bf16 %v2412_v38, %v2411_v9  ;;  %v11362_v17 = vpop.permute.xlu0 %2848  ;;  %v2834_v40 = vpop.permute.xlu1 %2833  ;;  %v2760_v60 = vand.u32 2147483647, %v2751_v54  ;;  %v2922_v15 = vand.u32 2147483647, %v2913_v11  ;;  %v3647_v24 = vsub.f32 1.0, %v3638_v18  ;;  %v8451_v9 = vld [vmem:[#allocation4 + $0x38] sm:$0xff] }
 0x81a   : > { %14152 = vst [vmem:[#allocation55_spill] sm:$0xff] %v11362_v17  ;;  %4363 = vperm.xlu1 %8237, %v14121_v45   ;;  %v3576_v38 = vsub.f32 1.0, %v3567_v31  ;;  %v2937_v26 = vmax.f32 %v2928_v20, 0.0  ;;  %v2994_v41 = vand.u32 2147483647, %v2985_v61  ;;  %v3081_v0 = vmax.f32 %v3072_v44, 0.0 }
 0x81b   : > { %7625 = vmatmul.mubr.msk.bf16.gmra.mxu0 %vm2435_vm7, %v2432_v6  ;;  %v3297_v8 = vmax.f32 %v3288_v1, 0.0  ;;  %v11369_v45 = vmax.f32 %v2697_v2, 0.0  ;;  %v3057_v16 = vsub.f32 %v11315_v39, %v14154_v10  ;;  %v3504_v51 = vsub.f32 1.0, %v3495_v56  ;;  %v14181_v17 = vld [vmem:[#allocation187_spill] sm:$0xff] }
 0x81c   : > { %4461 = vperm.xlu0 %8297, %v8451_v9   ;;  %7628 = vmatprep.mubr.msk.bf16.mxu0 %vm8618_vm0, %v13968_v58  ;;  %v3584_v13 = vmax.f32 %v3575_v25, 0.0  ;;  %v14156_v11 = vmov 26   ;;  %v3090_v31 = vmul.f32 %v3009_v47, %v2937_v26  ;;  %v3225_v33 = vmax.f32 %v3216_v57, 0.0  ;;  %v14158_v47 = vld [vmem:[#allocation200_spill] sm:$0xff] }
 0x81d   : > { %14153 = vst [vmem:[#allocation73_spill] sm:$0xff] %v11369_v45  ;;  %v3369_v28 = vmax.f32 %v3360_v32, 0.0  ;;  %v3648_v6 = vsub.f32 1.0, %v3639_v37  ;;  %v2769_v20 = vsub.f32 1.0, %v2760_v60  ;;  %v2931_v61 = vsub.f32 1.0, %v2922_v15  ;;  %v14159_v37 = vld [vmem:[#allocation29_spill] sm:$0xff] }
 0x81e   : > { %v11373_v54 = vpop.permute.xlu0 %3136  ;;  %8238 = vset.pattern.permute.xlu1 %v14156_v11  ;;  %v3125_v18 = vpop.permute.xlu1 %3124  ;;  %v3656_v44 = vmax.f32 %v3647_v24, 0.0  ;;  %v3585_v1 = vmax.f32 %v3576_v38, 0.0  ;;  %v14157_v2 = vmov 42   ;;  %v3003_v9 = vsub.f32 1.0, %v2994_v41  ;;  %v14160_v24 = vld [vmem:[#allocation24_spill] sm:$0xff]  ;;  %v14192_v45 = vld [vmem:[#allocation219_spill] sm:$0xff] }
 0x81f   : > { %14155 = vst [vmem:[#allocation53_spill] sm:$0xff] %v11373_v54  ;;  %4503 = vperm.xlu1 %8238, %v11036_v50   ;;  %v3378_v56 = vmul.f32 %v3297_v8, %v3225_v33  ;;  %v2802_v25 = vmul.f32 %v11301_v7, %v2775_v30  ;;  %v3099_v10 = vmul.f32 %v3090_v31, %v3081_v0  ;;  %v11380_v11 = vand.u32 2147483647, %v3057_v16  ;;  %v14161_v38 = vld [vmem:[#allocation52_spill] sm:$0xff] }
 0x820   : > { %8301 = vset.pattern.permute.xlu0 %v14157_v2  ;;  %v3201_v57 = vsub.f32 %v11329_v36, %v14158_v47  ;;  %v3513_v32 = vmax.f32 %v3504_v51, 0.0  ;;  %v3665_v60 = vmul.f32 %v3584_v13, %v14159_v37  ;;  %v3657_v15 = vmax.f32 %v3648_v6, 0.0  ;;  %v14165_v51 = vld [vmem:[#allocation30_spill] sm:$0xff]  ;;  %v14166_v13 = vld [vmem:[#allocation37_spill] sm:$0xff]  ;;  %v14167_v47 = vld [vmem:[#allocation43_spill] sm:$0xff] }
 0x821   : > { %4851 = vperm.xlu0 %8301, %v11126_v48   ;;  %v3143_v26 = vmul.f32 %v14161_v38, %v14160_v24  ;;  %v3144_v3 = vmul.f32 %v3125_v18, %v3099_v10  ;;  %v14163_v8 = vmov 30   ;;  %v3387_v7 = vmul.f32 %v3378_v56, %v3369_v28  ;;  %v14168_v37 = vld [vmem:[#allocation54_spill] sm:$0xff]  ;;  %v11399_v38 = vld [vmem:[#allocation3 + $0x10] sm:$0xff]  ;;  %v14170_v56 = vld [vmem:[#allocation44_spill] sm:$0xff] }
 0x822   : > { %v11390_v0 = vmax.f32 %v2769_v20, 0.0  ;;  %v11392_v16 = vmax.f32 %v2931_v61, 0.0  ;;  %v3666_v31 = vmul.f32 %v3585_v1, %v3513_v32  ;;  %v3674_v33 = vmul.f32 %v3665_v60, %v3656_v44  ;;  %v14169_v44 = vld [vmem:[#allocation168_spill] sm:$0xff]  ;;  %v14179_v20 = vld [vmem:[#allocation179_spill] sm:$0xff] }
 0x823   : > { %v11387_v41 = vpop.permute.xlu0 %3424  ;;  %8239 = vset.pattern.permute.xlu1 %v14163_v8  ;;  %v3413_v30 = vpop.permute.xlu1 %3412  ;;  %v2855_v6 = vmul.f32 %v14166_v13, %v14165_v51  ;;  %v3431_v18 = vmul.f32 %v14168_v37, %v14167_v47  ;;  %v2856_v10 = vmul.f32 %v2834_v40, %v2802_v25  ;;  %v11402_v28 = vmax.f32 %v3003_v9, 0.0  ;;  %v11410_v40 = vld [vmem:[#allocation7 + $0x4] ss:$0 sm:$0xff]  ;;  %v14171_v25 = vld [vmem:[#allocation202_spill] sm:$0xff]  ;;  %v14173_v13 = vld [vmem:[#allocation172_spill] sm:$0xff] }
 0x824   : > { %14162 = vst [vmem:[#allocation57_spill] sm:$0xff] %v11387_v41  ;;  %14164 = vst [vmem:[#allocation71_spill] sm:$0xff] %v11390_v0  ;;  %4575 = vperm.xlu1 %8239, %v11036_v50   ;;  %v3432_v24 = vmul.f32 %v3413_v30, %v3387_v7  ;;  %v11405_v61 = vand.u32 2147483647, %v3201_v57  ;;  %v1269_v50 = vsub.f32 %v11311_v63, %v14169_v44  ;;  %v14172_v30 = vld [vmem:[#allocation170_spill] sm:$0xff]  ;;  %v14174_v47 = vld [vmem:[#allocation176_spill] sm:$0xff] }
 0x825   : > { %4855 = vperm.xlu0 %8301, %v11399_v38   ;;  %v3152_v1 = vadd.f32 %v3143_v26, %v2855_v6  ;;  %v3719_v32 = vmul.f32 %v14170_v56, %v3674_v33  ;;  %v3153_v60 = vadd.f32 %v3144_v3, %v2856_v10  ;;  %v3675_v51 = vmul.f32 %v3666_v31, %v3657_v15  ;;  %v11422_v26 = vld [vmem:[#allocation3 + $0x28] sm:$0xff]  ;;  %v14176_v15 = vld [vmem:[#allocation181_spill] sm:$0xff]  ;;  %v11445_v0 = vld [vmem:[#allocation3 + $0x38] sm:$0xff] }
 0x826   : > { %v3273_v7 = vsub.f32 %v11410_v40, %v14171_v25  ;;  %v1345_v9 = vsub.f32 %v11276_v55, %v14172_v30  ;;  %v1421_v57 = vsub.f32 %v11315_v39, %v14173_v13  ;;  %v1655_v37 = vsub.f32 %v11276_v55, %v14174_v47  ;;  %v14177_v25 = vld [vmem:[#allocation174_spill] sm:$0xff]  ;;  %v14178_v13 = vld [vmem:[#allocation177_spill] sm:$0xff]  ;;  %v14184_v2 = vld [vmem:[#allocation188_spill] sm:$0xff] }
 0x827   : > { %v1951_v31 = vsub.f32 %v11410_v40, %v14176_v15  ;;  %v3440_v33 = vadd.f32 %v3431_v18, %v3152_v1  ;;  %v3441_v6 = vadd.f32 %v3432_v24, %v3153_v60  ;;  %v1278_v56 = vand.u32 2147483647, %v1269_v50 }
 0x828   : > { %v11420_v44 = vpop.permute.xlu0 %3712  ;;  %4579 = vperm.xlu1 %8239, %v11422_v26   ;;  %v3701_v3 = vpop.permute.xlu1 %3700  ;;  %v1583_v30 = vsub.f32 %v11311_v63, %v14177_v25  ;;  %v1727_v47 = vsub.f32 %v11315_v39, %v14178_v13  ;;  %v1875_v8 = vsub.f32 %v11329_v36, %v14179_v20  ;;  %v2243_v18 = vsub.f32 %v11410_v40, %v14181_v17  ;;  %v14183_v13 = vld [vmem:[#allocation185_spill] sm:$0xff] }
 0x829   : > { %14175 = vst [vmem:[#allocation61_spill] sm:$0xff] %v11420_v44  ;;  %v3720_v10 = vmul.f32 %v3701_v3, %v3675_v51  ;;  %4867 = vperm.xlu0 %8301, %v11422_v26   ;;  %v14180_v44 = vld [vmem:[#allocation183_spill] sm:$0xff]  ;;  %v3728_v24 = vadd.f32 %v3719_v32, %v3440_v33  ;;  %v2352_v50 = vmul.f32 %v11289_v46, %v11287_v59  ;;  %v1354_v60 = vand.u32 2147483647, %v1345_v9 }
 0x82a   : > { %v2027_v41 = vsub.f32 %v11336_v52, %v14180_v44  ;;  %v1430_v51 = vand.u32 2147483647, %v1421_v57  ;;  %v1664_v3 = vand.u32 2147483647, %v1655_v37  ;;  %v14182_v15 = vmov 3   ;;  %v14187_v32 = vld [vmem:[#allocation211_spill] sm:$0xff] }
 0x82b   : > { %v3729_v1 = vadd.f32 %v3720_v10, %v3441_v6  ;;  %v1960_v25 = vand.u32 2147483647, %v1951_v31  ;;  %v2171_v20 = vsub.f32 %v11329_v36, %v14183_v13  ;;  %v2315_v44 = vsub.f32 %v11336_v52, %v14184_v2  ;;  %v14188_v10 = vld [vmem:[#allocation204_spill] sm:$0xff] }
 0x82c   : > { %8240 = vset.pattern.permute.xlu1 %v14182_v15  ;;  %v11453_v46 = vand.u32 2147483647, %v3273_v7  ;;  %v3559_v9 = vsub.f32 %v11410_v40, %v14187_v32  ;;  %v1592_v57 = vand.u32 2147483647, %v1583_v30  ;;  %v1736_v37 = vand.u32 2147483647, %v1727_v47 }
 0x82d   : > { %v3744_v54 = vpack.c.bf16 %v3729_v1, %v3728_v24  ;;  %4875 = vperm.xlu0 %8301, %v11445_v0   ;;  %v11448_v17 = vpop.permute.xlu0 %6243  ;;  %5224 = vperm.xlu1 %8240, %v11179_v27   ;;  %v11451_v59 = vpop.permute.xlu1 %4167  ;;  %v1884_v31 = vand.u32 2147483647, %v1875_v8  ;;  %v2036_v2 = vand.u32 2147483647, %v2027_v41  ;;  %v2252_v33 = vand.u32 2147483647, %v2243_v18 }
 0x82e   : > { %14185 = vst [vmem:[#allocation76_spill] sm:$0xff] %v11448_v17  ;;  %14186 = vst [vmem:[#allocation59_spill] sm:$0xff] %v11451_v59  ;;  %v11458_v6 = vmul.f32 %v2352_v50, %v11293_v49  ;;  %v3345_v24 = vsub.f32 %v11336_v52, %v14188_v10  ;;  %v1287_v1 = vsub.f32 1.0, %v1278_v56  ;;  %v1363_v13 = vsub.f32 1.0, %v1354_v60 }
 0x82f   : > { %7655 = vmatmul.mubr.msk.bf16.gmra.mxu1 %vm2435_vm7, %v3744_v54  ;;  %v1673_v7 = vsub.f32 1.0, %v1664_v3  ;;  %v1439_v32 = vsub.f32 1.0, %v1430_v51  ;;  %v1969_v30 = vsub.f32 1.0, %v1960_v25  ;;  %v2180_v47 = vand.u32 2147483647, %v2171_v20 }
 0x830   : > { %7658 = vmatprep.mubr.msk.bf16.mxu1 %vm8618_vm0, %v13968_v58  ;;  %v2324_v8 = vand.u32 2147483647, %v2315_v44  ;;  %v14189_v41 = vmov 7   ;;  %v3568_v54 = vand.u32 2147483647, %v3559_v9  ;;  %v1601_v18 = vsub.f32 1.0, %v1592_v57 }
 0x831   : > { %4879 = vperm.xlu0 %8301, %v11159_v62   ;;  %8241 = vset.pattern.permute.xlu1 %v14189_v41  ;;  %v1745_v50 = vsub.f32 1.0, %v1736_v37  ;;  %v1893_v51 = vsub.f32 1.0, %v1884_v31  ;;  %v2045_v3 = vsub.f32 1.0, %v2036_v2  ;;  %v2261_v25 = vsub.f32 1.0, %v2252_v33  ;;  %v14195_v33 = vld [vmem:[#allocation206_spill] sm:$0xff] }
 0x832   : > { %v11468_v10 = vpop.permute.xlu0 %4487  ;;  %5297 = vperm.xlu1 %8241, %v11399_v38   ;;  %v1515_v56 = vpop.permute.xlu1 %1514  ;;  %v11472_v20 = vand.u32 2147483647, %v3345_v24  ;;  %v1296_v62 = vmax.f32 %v1287_v1, 0.0  ;;  %v1372_v44 = vmax.f32 %v1363_v13, 0.0  ;;  %v1682_v59 = vmax.f32 %v1673_v7, 0.0 }
 0x833   : > { %14190 = vst [vmem:[#allocation78_spill] sm:$0xff] %v11468_v10  ;;  %v1448_v17 = vmax.f32 %v1439_v32, 0.0  ;;  %v1978_v49 = vmax.f32 %v1969_v30, 0.0  ;;  %v2189_v9 = vsub.f32 1.0, %v2180_v47  ;;  %v2333_v57 = vsub.f32 1.0, %v2324_v8  ;;  %v14196_v47 = vld [vmem:[#allocation214_spill] sm:$0xff] }
 0x834   : > { %v14191_v37 = vmov 23   ;;  %v3577_v10 = vsub.f32 1.0, %v3568_v54  ;;  %v1610_v41 = vmax.f32 %v1601_v18, 0.0  ;;  %v1754_v15 = vmax.f32 %v1745_v50, 0.0  ;;  %v14197_v54 = vld [vmem:[#allocation190_spill] sm:$0xff]  ;;  %v14206_v8 = vld [vmem:[#allocation33_spill] sm:$0xff] }
 0x835   : > { %8304 = vset.pattern.permute.xlu0 %v14191_v37  ;;  %v3631_v60 = vsub.f32 %v11336_v52, %v14192_v45  ;;  %v14194_v2 = vmov 15   ;;  %v1902_v1 = vmax.f32 %v1893_v51, 0.0  ;;  %v2054_v13 = vmax.f32 %v2045_v3, 0.0 }
 0x836   : > { %5671 = vperm.xlu0 %8304, %v11126_v48   ;;  %v11478_v31 = vpop.permute.xlu0 %4495  ;;  %8242 = vset.pattern.permute.xlu1 %v14194_v2  ;;  %v2270_v7 = vmax.f32 %v2261_v25, 0.0  ;;  %v1466_v30 = vmul.f32 %v1372_v44, %v1296_v62  ;;  %v1763_v45 = vmul.f32 %v1682_v59, %v1610_v41  ;;  %v2606_v48 = vsub.f32 %v11311_v63, %v14197_v54  ;;  %v14198_v2 = vld [vmem:[#allocation198_spill] sm:$0xff]  ;;  %v11494_v62 = vld [vmem:[#allocation3 + $0x20] sm:$0xff]  ;;  %v14200_v44 = vld [vmem:[#allocation192_spill] sm:$0xff] }
 0x837   : > { %14193 = vst [vmem:[#allocation81_spill] sm:$0xff] %v11478_v31  ;;  %5531 = vperm.xlu1 %8242, %v11399_v38   ;;  %v1804_v32 = vpop.permute.xlu1 %1803  ;;  %v2063_v18 = vmul.f32 %v1978_v49, %v1902_v1  ;;  %v2198_v50 = vmax.f32 %v2189_v9, 0.0  ;;  %v2342_v31 = vmax.f32 %v2333_v57, 0.0  ;;  %v2984_v24 = vsub.f32 %v11276_v55, %v14198_v2  ;;  %v14201_v9 = vld [vmem:[#allocation194_spill] sm:$0xff]  ;;  %v14203_v2 = vld [vmem:[#allocation49_spill] sm:$0xff]  ;;  %v14204_v54 = vld [vmem:[#allocation199_spill] sm:$0xff] }
 0x838   : > { %v11490_v51 = vmax.f32 %v3577_v10, 0.0  ;;  %v11492_v3 = vand.u32 2147483647, %v3631_v60  ;;  %v1475_v25 = vmul.f32 %v1466_v30, %v1448_v17  ;;  %v1772_v37 = vmul.f32 %v1763_v45, %v1754_v15  ;;  %v14202_v17 = vld [vmem:[#allocation196_spill] sm:$0xff] }
 0x839   : > { %v2351_v41 = vmul.f32 %v2270_v7, %v2198_v50  ;;  %v2678_v49 = vsub.f32 %v11276_v55, %v14200_v44  ;;  %v2750_v57 = vsub.f32 %v11315_v39, %v14201_v9  ;;  %v2072_v10 = vmul.f32 %v2063_v18, %v2054_v13  ;;  %v14205_v50 = vld [vmem:[#allocation203_spill] sm:$0xff] }
 0x83a   : > { %5683 = vperm.xlu0 %8304, %v11494_v62   ;;  %v11497_v59 = vpop.permute.xlu0 %4507  ;;  %v11504_v60 = vand.u32 2147483647, %v2606_v48  ;;  %v2912_v15 = vsub.f32 %v11311_v63, %v14202_v17  ;;  %v1816_v1 = vmul.f32 %v11077_v29, %v14203_v2  ;;  %v1817_v30 = vmul.f32 %v1804_v32, %v1772_v37  ;;  %v14207_v48 = vld [vmem:[#allocation56_spill] sm:$0xff]  ;;  %v14209_v32 = vld [vmem:[#allocation205_spill] sm:$0xff] }
 0x83b   : > { %14199 = vst [vmem:[#allocation62_spill] sm:$0xff] %v11497_v59  ;;  %5535 = vperm.xlu1 %8242, %v11179_v27   ;;  %v2993_v7 = vand.u32 2147483647, %v2984_v24  ;;  %v3056_v55 = vsub.f32 %v11315_v39, %v14204_v54  ;;  %v3272_v44 = vsub.f32 %v11410_v40, %v14205_v50  ;;  %v2360_v9 = vmul.f32 %v2351_v41, %v2342_v31  ;;  %v11518_v59 = vld [vmem:[#allocation3 + $0x30] sm:$0xff] }
 0x83c   : > { %v2104_v45 = vpop.permute.xlu1 %2103  ;;  %v1528_v13 = vmul.f32 %v11059_v43, %v14206_v8  ;;  %v2116_v18 = vmul.f32 %v11113_v23, %v14207_v48  ;;  %v1529_v63 = vmul.f32 %v1515_v56, %v1475_v25  ;;  %v2687_v37 = vand.u32 2147483647, %v2678_v49  ;;  %v14208_v24 = vld [vmem:[#allocation201_spill] sm:$0xff]  ;;  %v14210_v8 = vld [vmem:[#allocation46_spill] sm:$0xff] }
 0x83d   : > { %v2117_v17 = vmul.f32 %v2104_v45, %v2072_v10  ;;  %v11523_v39 = vand.u32 2147483647, %v2750_v57  ;;  %v3200_v31 = vsub.f32 %v11329_v36, %v14208_v24  ;;  %v3344_v43 = vsub.f32 %v11336_v52, %v14209_v32  ;;  %v14211_v2 = vld [vmem:[#allocation213_spill] sm:$0xff] }
 0x83e   : > { %5691 = vperm.xlu0 %8304, %v11518_v59   ;;  %v11521_v29 = vpop.permute.xlu0 %6406  ;;  %v2921_v23 = vand.u32 2147483647, %v2912_v15  ;;  %v1825_v56 = vadd.f32 %v1816_v1, %v1528_v13  ;;  %v2404_v25 = vmul.f32 %v11142_v5, %v14210_v8  ;;  %v1826_v41 = vadd.f32 %v1817_v30, %v1529_v63  ;;  %v14214_v63 = vld [vmem:[#allocation207_spill] sm:$0xff] }
 0x83f   : > { %8243 = vset.pattern.permute.xlu1 %v14091_v14  ;;  %v3002_v10 = vsub.f32 1.0, %v2993_v7  ;;  %v3065_v49 = vand.u32 2147483647, %v3056_v55  ;;  %v3281_v57 = vand.u32 2147483647, %v3272_v44  ;;  %v3560_v45 = vsub.f32 %v11410_v40, %v14211_v2  ;;  %v14215_v55 = vld [vmem:[#allocation220_spill] sm:$0xff] }
 0x840   : > { %5607 = vperm.xlu1 %8243, %v11179_v27   ;;  %v2125_v50 = vadd.f32 %v2116_v18, %v1825_v56  ;;  %v1818_v48 = vmul.f32 %v11271_v12, %v11284_v19  ;;  %v2126_v24 = vadd.f32 %v2117_v17, %v1826_v41  ;;  %v14212_v1 = vmov 27   ;;  %v11550_v56 = vld [vmem:[#allocation4 + $0x10] sm:$0xff] }
 0x841   : > { %v2392_v54 = vpop.permute.xlu1 %2391  ;;  %v3209_v5 = vand.u32 2147483647, %v3200_v31  ;;  %v3353_v30 = vand.u32 2147483647, %v3344_v43  ;;  %v3488_v7 = vsub.f32 %v11329_v36, %v14214_v63  ;;  %v3632_v44 = vsub.f32 %v11336_v52, %v14215_v55 }
 0x842   : > { %v2405_v15 = vmul.f32 %v2392_v54, %v2360_v9  ;;  %8306 = vset.pattern.permute.xlu0 %v14212_v1  ;;  %v11538_v13 = vpop.permute.xlu0 %4515  ;;  %v2413_v18 = vadd.f32 %v2404_v25, %v2125_v50  ;;  %v1530_v12 = vmul.f32 %v11264_v34, %v11182_v21  ;;  %v2118_v19 = vmul.f32 %v11307_v53, %v11291_v4 }
 0x843   : > { %14213 = vst [vmem:[#allocation66_spill] sm:$0xff] %v11538_v13  ;;  %5819 = vperm.xlu0 %8306, %v11399_v38   ;;  %v2696_v17 = vsub.f32 1.0, %v2687_v37  ;;  %v2930_v31 = vsub.f32 1.0, %v2921_v23  ;;  %v3074_v32 = vsub.f32 1.0, %v3065_v49  ;;  %v3290_v43 = vsub.f32 1.0, %v3281_v57 }
 0x844   : > { %v2414_v9 = vadd.f32 %v2405_v15, %v2126_v24  ;;  %8244 = vset.pattern.permute.xlu1 %v14112_v22  ;;  %v3569_v8 = vand.u32 2147483647, %v3560_v45  ;;  %v1827_v41 = vadd.f32 %v1818_v48, %v1530_v12  ;;  %v2406_v25 = vmul.f32 %v11349_v42, %v11458_v6  ;;  %v14217_v6 = vld [vmem:[#allocation221_spill] sm:$0xff] }
 0x845   : > { %4441 = vperm.xlu1 %8244, %v11550_v56   ;;  %v2624_v4 = vsub.f32 1.0, %v11504_v60  ;;  %v2768_v53 = vsub.f32 1.0, %v11523_v39  ;;  %v3011_v37 = vmax.f32 %v3002_v10, 0.0  ;;  %v3218_v23 = vsub.f32 1.0, %v3209_v5 }
 0x846   : > { %v2433_v21 = vpack.c.bf16 %v2414_v9, %v2413_v18  ;;  %v11555_v34 = vpop.permute.xlu1 %2843  ;;  %v3362_v57 = vsub.f32 1.0, %v3353_v30  ;;  %v3497_v2 = vand.u32 2147483647, %v3488_v7  ;;  %v3641_v45 = vand.u32 2147483647, %v3632_v44 }
 0x847   : > { %5831 = vperm.xlu0 %8306, %v11422_v26   ;;  %v11560_v49 = vpop.permute.xlu0 %4775  ;;  %v2127_v54 = vadd.f32 %v2118_v19, %v1827_v41  ;;  %v3649_v42 = vsub.f32 1.0, %v11492_v3  ;;  %v3633_v50 = vsub.f32 %v11336_v52, %v14217_v6  ;;  %v2705_v60 = vmax.f32 %v2696_v17, 0.0 }
 0x848   : > { %14216 = vst [vmem:[#allocation83_spill] sm:$0xff] %v11560_v49  ;;  %7629 = vmatmul.mubr.msk.bf16.gmra.mxu0 %vm2435_vm7, %v2433_v21  ;;  %v2939_v48 = vmax.f32 %v2930_v31, 0.0  ;;  %v14218_v39 = vmov 34   ;;  %v3083_v10 = vmax.f32 %v3074_v32, 0.0  ;;  %v3299_v24 = vmax.f32 %v3290_v43, 0.0 }
 0x849   : > { %8245 = vset.pattern.permute.xlu1 %v14218_v39  ;;  %7632 = vmatprep.mubr.msk.bf16.mxu0 %vm8618_vm0, %v13968_v58  ;;  %v3578_v15 = vsub.f32 1.0, %v3569_v8  ;;  %v2415_v5 = vadd.f32 %v2406_v25, %v2127_v54  ;;  %v14219_v30 = vsub.f32 %v11410_v40, %v14196_v47  ;;  %v2633_v63 = vmax.f32 %v2624_v4, 0.0 }
 0x84a   : > { %4647 = vperm.xlu1 %8245, %v11494_v62   ;;  %v2777_v7 = vmax.f32 %v2768_v53, 0.0  ;;  %v3092_v52 = vmul.f32 %v3011_v37, %v2939_v48  ;;  %v3227_v18 = vmax.f32 %v3218_v23, 0.0  ;;  %v3371_v12 = vmax.f32 %v3362_v57, 0.0 }
 0x84b   : > { %v3570_v3 = vand.u32 2147483647, %v14219_v30  ;;  %5839 = vperm.xlu0 %8306, %v11445_v0   ;;  %v11574_v55 = vpop.permute.xlu0 %4791  ;;  %v3133_v44 = vpop.permute.xlu1 %3132  ;;  %v3506_v19 = vsub.f32 1.0, %v3497_v2  ;;  %v3650_v9 = vsub.f32 1.0, %v3641_v45  ;;  %v14221_v17 = vsub.f32 %v11329_v36, %v14195_v33  ;;  %v11586_v45 = vld [vmem:[#allocation3] sm:$0xff] }
 0x84c   : > { %14220 = vst [vmem:[#allocation64_spill] sm:$0xff] %v11574_v55  ;;  %v3658_v32 = vmax.f32 %v3649_v42, 0.0  ;;  %v3642_v43 = vand.u32 2147483647, %v3633_v50  ;;  %v2795_v40 = vmul.f32 %v2705_v60, %v2633_v63  ;;  %v3380_v47 = vmul.f32 %v3299_v24, %v3227_v18 }
 0x84d   : > { %v3498_v31 = vand.u32 2147483647, %v14221_v17  ;;  %v3587_v8 = vmax.f32 %v3578_v15, 0.0  ;;  %v2434_v41 = vpack.c.bf16 %v2415_v5, %v2415_v5  ;;  %v3101_v25 = vmul.f32 %v3092_v52, %v3083_v10  ;;  %v14228_v52 = vld [vmem:[#allocation51_spill] sm:$0xff] }
 0x84e   : > { %4651 = vperm.xlu1 %8245, %v11422_v26   ;;  %v3363_v21 = vsub.f32 1.0, %v11472_v20  ;;  %v3667_v4 = vmul.f32 %v11490_v51, %v11172_v35  ;;  %v3579_v53 = vsub.f32 1.0, %v3570_v3  ;;  %v2804_v37 = vmul.f32 %v2795_v40, %v2777_v7  ;;  %v2421_v7 = vld [vmem:[#allocation2] sm:$0xff] }
 0x84f   : > { %v14222_v23 = vmov 10   ;;  %v11584_v36 = vpop.permute.xlu0 %4799  ;;  %v3515_v33 = vmax.f32 %v3506_v19, 0.0  ;;  %v3659_v57 = vmax.f32 %v3650_v9, 0.0  ;;  %v3146_v2 = vmul.f32 %v3133_v44, %v3101_v25  ;;  %v14229_v44 = vld [vmem:[#allocation73_spill] sm:$0xff]  ;;  %v14232_v25 = vld [vmem:[#allocation71_spill] sm:$0xff] }
 0x850   : > { %8309 = vset.pattern.permute.xlu0 %v14222_v23  ;;  %14223 = vst [vmem:[#allocation87_spill] sm:$0xff] %v11584_v36  ;;  %7633 = vmatmul.mubr.msk.bf16.gmra.mxu0 %vm2435_vm7, %v2434_v41  ;;  %v3389_v54 = vmul.f32 %v3380_v47, %v3371_v12  ;;  %v3421_v20 = vpop.permute.xlu1 %3420  ;;  %v14224_v42 = vsub.f32 1.0, %v11380_v11  ;;  %v14225_v51 = vsub.f32 1.0, %v11453_v46  ;;  %v3507_v50 = vsub.f32 1.0, %v3498_v31  ;;  %v14230_v12 = vld [vmem:[#allocation48_spill] sm:$0xff] }
 0x851   : > { %4037 = vperm.xlu0 %8309, %v11586_v45   ;;  %v3651_v60 = vsub.f32 1.0, %v3642_v43  ;;  %7676 = vmatprep.mubr.msk.bf16.mxu0 %vm8618_vm0, %v13968_v58  ;;  %v3668_v48 = vmul.f32 %v3587_v8, %v3515_v33  ;;  %v3676_v10 = vmul.f32 %v3667_v4, %v3658_v32  ;;  %v2858_v24 = vmul.f32 %v11555_v34, %v2804_v37  ;;  %v14233_v4 = vld [vmem:[#allocation53_spill] sm:$0xff] }
 0x852   : > { %v3084_v35 = vmax.f32 %v14224_v42, 0.0  ;;  %v3300_v6 = vmax.f32 %v14225_v51, 0.0  ;;  %v3434_v15 = vmul.f32 %v3421_v20, %v3389_v54  ;;  %v14226_v5 = vmov 38  }
 0x853   : > { %8246 = vset.pattern.permute.xlu1 %v14226_v5  ;;  %v3093_v30 = vmul.f32 %v11402_v28, %v11392_v16  ;;  %v14227_v11 = vsub.f32 1.0, %v11405_v61  ;;  %v3372_v46 = vmax.f32 %v3363_v21, 0.0  ;;  %v3588_v63 = vmax.f32 %v3579_v53, 0.0 }
 0x854   : > { %4795 = vperm.xlu1 %8246, %v11422_v26   ;;  %v2796_v18 = vmul.f32 %v14229_v44, %v14228_v52  ;;  %v3721_v19 = vmul.f32 %v14230_v12, %v3676_v10  ;;  %v3155_v34 = vadd.f32 %v3146_v2, %v2858_v24  ;;  %v11607_v9 = vpop.permute.xlu0 %4935  ;;  %v3677_v17 = vmul.f32 %v3668_v48, %v3659_v57  ;;  %v2422_v2 = vld [vmem:[#allocation2 + $0x8] sm:$0xff] }
 0x855   : > { %v3228_v3 = vmax.f32 %v14227_v11, 0.0  ;;  %4049 = vperm.xlu0 %8309, %v11179_v27   ;;  %14231 = vst [vmem:[#allocation90_spill] sm:$0xff] %v11607_v9  ;;  %v3516_v28 = vmax.f32 %v3507_v50, 0.0  ;;  %v3660_v61 = vmax.f32 %v3651_v60, 0.0  ;;  %v3102_v31 = vmul.f32 %v3093_v30, %v3084_v35  ;;  %v2489_v32 = vpop.f32.mrf.mxu0  ;;  %v3709_v43 = vpop.permute.xlu1 %3708  ;;  %v14235_v57 = vld [vmem:[#allocation63_spill] sm:$0xff]  ;;  %v14240_v11 = vld [vmem:[#allocation61_spill] sm:$0xff] }
 0x856   : > { %v3443_v40 = vadd.f32 %v3434_v15, %v3155_v34  ;;  %v2527_v47 = vadd.f32 %v2489_v32, %v2421_v7  ;;  %v3722_v8 = vmul.f32 %v3709_v43, %v3677_v17  ;;  %v2805_v21 = vmul.f32 %v2796_v18, %v14232_v25  ;;  %v14237_v35 = vld [vmem:[#allocation55_spill] sm:$0xff]  ;;  %v8461_v32 = vld [vmem:[#allocation4 + $0x30] sm:$0xff] }
 0x857   : > { %v3381_v16 = vmul.f32 %v3300_v6, %v3228_v3  ;;  %v3669_v41 = vmul.f32 %v3588_v63, %v3516_v28  ;;  %v3147_v53 = vmul.f32 %v14233_v4, %v3102_v31  ;;  %v7618_v33 = vpop.f32.mrf.mxu0  ;;  %v14234_v27 = vmov 42   ;;  %v14238_v6 = vld [vmem:[#allocation57_spill] sm:$0xff] }
 0x858   : > { %8247 = vset.pattern.permute.xlu1 %v14234_v27  ;;  %v3730_v54 = vadd.f32 %v3721_v19, %v14235_v57  ;;  %2536 = vst.msk [vmem:[#allocation2] sm:$0xff] %vm329_vm1, %v2527_v47  ;;  %v3731_v20 = vadd.f32 %v3722_v8, %v3443_v40  ;;  %v11615_v42 = vpop.permute.xlu0 %4947  ;;  %v2859_v51 = vmul.f32 %v14237_v35, %v2805_v21  ;;  %v14241_v63 = vld [vmem:[#allocation85_spill] sm:$0xff]  ;;  %v14243_v44 = vmov 11   ;;  %v11653_v8 = vld [vmem:[#allocation3 + $0x18] sm:$0xff] }
 0x859   : > { %v3390_v37 = vmul.f32 %v3381_v16, %v3372_v46  ;;  %4057 = vperm.xlu0 %8309, %v11422_v26   ;;  %14236 = vst [vmem:[#allocation68_spill] sm:$0xff] %v11615_v42  ;;  %4863 = vperm.xlu1 %8247, %v11494_v62   ;;  %v3678_v60 = vmul.f32 %v3669_v41, %v3660_v61  ;;  %v2492_v48 = vpop.f32.mrf.mxu0  ;;  %v14244_v19 = vld [vmem:[#allocation65_spill] sm:$0xff]  ;;  %v11639_v16 = vld [vmem:[#allocation4 + $0x20] sm:$0xff]  ;;  %v14246_v28 = vmov 23   ;;  %v14251_v4 = vmov 3  }
 0x85a   : > { %v3745_v10 = vpack.c.bf16 %v3731_v20, %v3730_v54  ;;  %v2528_v24 = vadd.f32 %v2492_v48, %v2422_v2  ;;  %v11620_v15 = vpop.permute.xlu1 %4177  ;;  %v3156_v30 = vadd.f32 %v3147_v53, %v2859_v51  ;;  %v11668_v20 = vld [vmem:[#allocation4 + $0x8] sm:$0xff]  ;;  %v14255_v51 = vmov 31  }
 0x85b   : > { %v3435_v50 = vmul.f32 %v14238_v6, %v3390_v37  ;;  %14239 = vst [vmem:[#allocation93_spill] sm:$0xff] %v11620_v15  ;;  %v3723_v3 = vmul.f32 %v14240_v11, %v3678_v60  ;;  %v7619_v46 = vpop.f32.mrf.mxu0  ;;  %v14279_v13 = vmov 14   ;;  %v14287_v55 = vmov 47  }
 0x85c   : > { %2537 = vst.msk [vmem:[#allocation2 + $0x8] sm:$0xff] %vm329_vm1, %v2528_v24  ;;  %7659 = vmatmul.mubr.msk.bf16.gmra.mxu1 %vm2435_vm7, %v3745_v10  ;;  %v14258_v10 = vld [vmem:[#allocation69_spill] sm:$0xff] }
 0x85d   : > { %4065 = vperm.xlu0 %8309, %v11445_v0   ;;  %5078 = vrot.lane.b32.xlu1 %v14241_v63, %s8619_s22  ;;  %v3444_v7 = vadd.f32 %v3435_v50, %v3156_v30  ;;  %v11628_v52 = vpop.permute.xlu0 %4343  ;;  %v11690_v30 = vld [vmem:[#allocation4 + $0x20] sm:$0xff] }
 0x85e   : > { %14242 = vst [vmem:[#allocation70_spill] sm:$0xff] %v11628_v52  ;;  %8248 = vset.pattern.permute.xlu1 %v14243_v44  ;;  %7662 = vmatprep.mubr.msk.bf16.mxu1 %vm8618_vm0, %v13968_v58 }
 0x85f   : > { %v3732_v18 = vadd.f32 %v3723_v3, %v3444_v7  ;;  %v11633_v12 = vpop.permute.xlu1 %5887  ;;  %v3733_v43 = vld [vmem:[#allocation2] sm:$0xff]  ;;  %v14260_v3 = vmov 46   ;;  %v14261_v7 = vmov 7  }
 0x861   : > { %4725 = vperm.xlu0 %8309, %v14244_v19   ;;  %5369 = vperm.xlu1 %8248, %v11399_v38   ;;  %v11637_v34 = vpop.permute.xlu0 %4359  ;;  %v3746_v17 = vpack.c.bf16 %v3732_v18, %v3732_v18 }
 0x862   : > { %14245 = vst [vmem:[#allocation72_spill] sm:$0xff] %v11637_v34 }
 0x863   : > { %v3734_v53 = vld [vmem:[#allocation2 + $0x8] sm:$0xff] }
 0x864   : > { %v11643_v61 = vpop.permute.xlu1 %4721  ;;  %7663 = vmatmul.mubr.msk.bf16.gmra.mxu1 %vm2435_vm7, %v3746_v17  ;;  %v11706_v17 = vld [vmem:[#allocation4] sm:$0xff] }
 0x865   : > { %4737 = vperm.xlu0 %8309, %v11639_v16   ;;  %8249 = vset.pattern.permute.xlu1 %v14246_v28  ;;  %14247 = vst [vmem:[#allocation253_spill] sm:$0xff] %v11643_v61  ;;  %v11646_v31 = vpop.permute.xlu0 %4367 }
 0x866   : > { %14248 = vst [vmem:[#allocation95_spill] sm:$0xff] %v11646_v31  ;;  %5675 = vperm.xlu1 %8249, %v11399_v38   ;;  %7706 = vmatprep.mubr.msk.bf16.mxu1 %vm8618_vm0, %v13968_v58  ;;  %v14274_v31 = vmov 43  }
 0x869   : > { %4745 = vperm.xlu0 %8309, %v8461_v32   ;;  %v3818_v40 = vpop.f32.mrf.mxu1  ;;  %v11651_v47 = vpop.permute.xlu0 %4375 }
 0x86a   : > { %14249 = vst [vmem:[#allocation97_spill] sm:$0xff] %v11651_v47  ;;  %5679 = vperm.xlu1 %8249, %v11653_v8   ;;  %v3856_v41 = vadd.f32 %v3818_v40, %v3733_v43  ;;  %v11656_v25 = vpop.permute.xlu1 %4927  ;;  %v8463_v47 = vld [vmem:[#allocation3 + $0x8] sm:$0xff] }
 0x86b   : > { %14250 = vst [vmem:[#allocation74_spill] sm:$0xff] %v11656_v25  ;;  %v7648_v21 = vpop.f32.mrf.mxu1 }
 0x86c   : > { %3865 = vst.msk [vmem:[#allocation2] sm:$0xff] %vm329_vm1, %v3856_v41  ;;  %v11720_v21 = vld [vmem:[#allocation4 + $0x10] sm:$0xff] }
 0x86d   : > { %8311 = vset.pattern.permute.xlu0 %v14251_v4  ;;  %v3821_v37 = vpop.f32.mrf.mxu1 }
 0x86e   : > { %5219 = vperm.xlu0 %8311, %v11399_v38   ;;  %8250 = vset.pattern.permute.xlu1 %v14212_v1  ;;  %v3857_v33 = vadd.f32 %v3821_v37, %v3734_v53  ;;  %v11662_v2 = vpop.permute.xlu1 %4931  ;;  %v11664_v57 = vpop.permute.xlu0 %5603 }
 0x86f   : > { %14252 = vst [vmem:[#allocation100_spill] sm:$0xff] %v11662_v2  ;;  %14253 = vst [vmem:[#allocation277_spill] sm:$0xff] %v11664_v57  ;;  %5823 = vperm.xlu1 %8250, %v11653_v8   ;;  %v7649_v54 = vpop.f32.mrf.mxu1 }
 0x870   : > { %3866 = vst.msk [vmem:[#allocation2 + $0x8] sm:$0xff] %vm329_vm1, %v3857_v33 }
 0x872   : > { %5466 = vperm.xlu0 %8311, %v11668_v20   ;;  %v11671_v35 = vpop.permute.xlu0 %5611  ;;  %v11674_v6 = vpop.permute.xlu1 %5959 }
 0x873   : > { %14254 = vst [vmem:[#allocation75_spill] sm:$0xff] %v11671_v35  ;;  %8251 = vset.pattern.permute.xlu1 %v14255_v51 }
 0x874   : > { %5891 = vperm.xlu1 %8251, %v11399_v38  }
 0x876   : > { %5229 = vperm.xlu0 %8311, %v11494_v62   ;;  %v11678_v50 = vpop.permute.xlu0 %5619 }
 0x877   : > { %14256 = vst [vmem:[#allocation14_spill] sm:$0xff] %v11678_v50  ;;  %v11681_v60 = vpop.permute.xlu1 %6099  ;;  %v5437_v50 = vld [vmem:[#allocation4 + $0x28] sm:$0xff] }
 0x878   : > { %8252 = vset.pattern.permute.xlu1 %v14222_v23 }
 0x879   : > { %4729 = vperm.xlu1 %8252, %v11550_v56  }
 0x87a   : > { %5239 = vperm.xlu0 %8311, %v11518_v59  }
 0x87b   : > { %v11685_v48 = vpop.permute.xlu0 %3965 }
 0x87c   : > { %14257 = vst [vmem:[#allocation77_spill] sm:$0xff] %v11685_v48  ;;  %v11688_v24 = vpop.permute.xlu1 %6171 }
 0x87d   : > { %4733 = vperm.xlu1 %8252, %v14258_v10   ;;  %v14268_v10 = vmov 35  }
 0x87e   : > { %5481 = vperm.xlu0 %8311, %v11690_v30  }
 0x87f   : > { %v11693_v11 = vpop.permute.xlu0 %3977 }
 0x880   : > { %14259 = vst [vmem:[#allocation21_spill] sm:$0xff] %v11693_v11  ;;  %v11696_v46 = vpop.permute.xlu1 %6175 }
 0x881   : > { %8253 = vset.pattern.permute.xlu1 %v14260_v3 }
 0x882   : > { %8314 = vset.pattern.permute.xlu0 %v14261_v7  ;;  %4939 = vperm.xlu1 %8253, %v11422_v26  }
 0x883   : > { %5289 = vperm.xlu0 %8314, %v11586_v45   ;;  %v11701_v18 = vpop.permute.xlu0 %3985 }
 0x884   : > { %14262 = vst [vmem:[#allocation104_spill] sm:$0xff] %v11701_v18  ;;  %v2424_v18 = vld [vmem:[#allocation2 + $0x18] sm:$0xff] }
 0x885   : > { %v11704_v19 = vpop.permute.xlu1 %5013 }
 0x886   : > { %8254 = vset.pattern.permute.xlu1 %v14251_v4  ;;  %14263 = vst [vmem:[#allocation16_spill] sm:$0xff] %v11704_v19 }
 0x887   : > { %5301 = vperm.xlu0 %8314, %v11653_v8   ;;  %5461 = vperm.xlu1 %8254, %v11706_v17   ;;  %v11710_v32 = vpop.permute.xlu0 %3993 }
 0x888   : > { %14264 = vst [vmem:[#allocation12_spill] sm:$0xff] %v11710_v32 }
 0x889   : > { %v5081_v43 = vpop.permute.xlu1 %5080 }
 0x88a   : > { %7671 = vmatpush3.bf16.msra.mxu0 %v5081_v43 }
 0x88b   : > { %5309 = vperm.xlu0 %8314, %v11422_v26   ;;  %8255 = vset.pattern.permute.xlu1 %v14261_v7  ;;  %v11714_v40 = vpop.permute.xlu0 %4433 }
 0x88c   : > { %14265 = vst [vmem:[#allocation13_spill] sm:$0xff] %v11714_v40  ;;  %5757 = vperm.xlu1 %8255, %v11706_v17   ;;  %7672 = vmatprep.subr.bf16.mxu0 %v13968_v58 }
 0x88d   : > { %v11718_v41 = vpop.permute.xlu1 %6247 }
 0x88f   : > { %5765 = vperm.xlu0 %8314, %v11720_v21   ;;  %v11723_v53 = vpop.permute.xlu0 %4445 }
 0x890   : > { %14266 = vst [vmem:[#allocation11_spill] sm:$0xff] %v11723_v53  ;;  %5761 = vperm.xlu1 %8255, %v11668_v20   ;;  %v14300_v53 = vmov 30  }
 0x891   : > { %v6409_v37 = vpop.permute.xlu1 %6408 }
 0x892   : > { %v6430_v33 = vsel %vm2451_vm6, %v6409_v37, 0  ;;  %v14271_v37 = vmov 39  }
 0x893   : > { %5317 = vperm.xlu0 %8314, %v11445_v0   ;;  %v11728_v54 = vpop.permute.xlu0 %4453  ;;  %7697 = vmatpush3.bf16.msra.mxu1 %v6430_v33 }
 0x894   : > { %14267 = vst [vmem:[#allocation19_spill] sm:$0xff] %v11728_v54  ;;  %8256 = vset.pattern.permute.xlu1 %v14268_v10  ;;  %7698 = vmatprep.subr.bf16.mxu1 %v13968_v58  ;;  %v14282_v54 = vld [vmem:[#allocation79_spill] sm:$0xff] }
 0x895   : > { %5967 = vperm.xlu1 %8256, %v11653_v8   ;;  %v11733_v43 = vpop.permute.xlu1 %4363 }
 0x896   : > { %14269 = vst [vmem:[#allocation15_spill] sm:$0xff] %v11733_v43 }
 0x897   : > { %5777 = vperm.xlu0 %8314, %v5437_v50   ;;  %v11735_v15 = vpop.permute.xlu0 %4461  ;;  %7699 = vmatpush3.bf16.msra.mxu1 %v11521_v29 }
 0x898   : > { %14270 = vst [vmem:[#allocation23_spill] sm:$0xff] %v11735_v15  ;;  %7700 = vmatprep.subr.bf16.mxu1 %v13968_v58 }
 0x899   : > { %8257 = vset.pattern.permute.xlu1 %v14271_v37 }
 0x89a   : > { %6107 = vperm.xlu1 %8257, %v11399_v38   ;;  %v11742_v33 = vpop.permute.xlu1 %4503 }
 0x89b   : > { %8317 = vset.pattern.permute.xlu0 %v14271_v37  ;;  %14272 = vst [vmem:[#allocation102_spill] sm:$0xff] %v11742_v33  ;;  %v2423_v33 = vld [vmem:[#allocation2 + $0x10] sm:$0xff] }
 0x89c   : > { %6103 = vperm.xlu0 %8317, %v8463_v47   ;;  %v11744_v35 = vpop.permute.xlu0 %4851 }
 0x89d   : > { %14273 = vst [vmem:[#allocation80_spill] sm:$0xff] %v11744_v35  ;;  %v14359_v35 = vld [vmem:[#allocation244_spill] sm:$0xff] }
 0x89e   : > { %8258 = vset.pattern.permute.xlu1 %v14274_v31 }
 0x89f   : > { %6179 = vperm.xlu1 %8258, %v11399_v38   ;;  %v11749_v29 = vpop.permute.xlu1 %4575 }
 0x8a0   : > { %6111 = vperm.xlu0 %8317, %v11653_v8   ;;  %14275 = vst [vmem:[#allocation106_spill] sm:$0xff] %v11749_v29  ;;  %v11751_v15 = vpop.permute.xlu0 %4855 }
 0x8a1   : > { %14276 = vst [vmem:[#allocation82_spill] sm:$0xff] %v11751_v15 }
 0x8a3   : > { %6183 = vperm.xlu1 %8258, %v11653_v8   ;;  %v11755_v42 = vpop.permute.xlu1 %4579 }
 0x8a4   : > { %6123 = vperm.xlu0 %8317, %v11518_v59   ;;  %14277 = vst [vmem:[#allocation86_spill] sm:$0xff] %v11755_v42  ;;  %v11757_v36 = vpop.permute.xlu0 %4867  ;;  %v14285_v42 = vmov 15  }
 0x8a5   : > { %14278 = vst [vmem:[#allocation113_spill] sm:$0xff] %v11757_v36 }
 0x8a7   : > { %8259 = vset.pattern.permute.xlu1 %v14279_v13 }
 0x8a8   : > { %8319 = vset.pattern.permute.xlu0 %v14274_v31  ;;  %5017 = vperm.xlu1 %8259, %v11550_v56   ;;  %v11763_v32 = vpop.permute.xlu0 %4875  ;;  %v11765_v57 = vpop.permute.xlu1 %5224 }
 0x8a9   : > { %6187 = vperm.xlu0 %8319, %v11494_v62   ;;  %14280 = vst [vmem:[#allocation84_spill] sm:$0xff] %v11763_v32  ;;  %14281 = vst [vmem:[#allocation89_spill] sm:$0xff] %v11765_v57 }
 0x8ac   : > { %5076 = vrot.lane.b32.xlu1 %v14282_v54, %s8619_s22  ;;  %v11770_v9 = vpop.permute.xlu0 %4879 }
 0x8ad   : > { %6199 = vperm.xlu0 %8319, %v11445_v0   ;;  %14283 = vst [vmem:[#allocation111_spill] sm:$0xff] %v11770_v9  ;;  %8260 = vset.pattern.permute.xlu1 %v14243_v44  ;;  %v11773_v36 = vpop.permute.xlu1 %5297 }
 0x8ae   : > { %14284 = vst [vmem:[#allocation108_spill] sm:$0xff] %v11773_v36 }
 0x8af   : > { %v2497_v29 = vpop.f32.mrf.mxu0 }
 0x8b0   : > { %6045 = vperm.xlu1 %8260, %v11706_v17   ;;  %v2529_v56 = vadd.f32 %v2497_v29, %v2423_v33 }
 0x8b1   : > { %8322 = vset.pattern.permute.xlu0 %v14285_v42  ;;  %v7622_v32 = vpop.f32.mrf.mxu0  ;;  %v11777_v43 = vpop.permute.xlu0 %5671 }
 0x8b2   : > { %5527 = vperm.xlu0 %8322, %v8463_v47   ;;  %2538 = vst.msk [vmem:[#allocation2 + $0x10] sm:$0xff] %vm329_vm1, %v2529_v56  ;;  %v11780_v34 = vpop.permute.xlu1 %5531  ;;  %v11791_v32 = vld [vmem:[#allocation4 + $0x18] sm:$0xff] }
 0x8b3   : > { %14286 = vst [vmem:[#allocation115_spill] sm:$0xff] %v11780_v34  ;;  %v2500_v9 = vpop.f32.mrf.mxu0 }
 0x8b4   : > { %8261 = vset.pattern.permute.xlu1 %v14287_v55  ;;  %v2530_v36 = vadd.f32 %v2500_v9, %v2424_v18  ;;  %v14292_v18 = vmov 22  }
 0x8b5   : > { %6251 = vperm.xlu1 %8261, %v11399_v38   ;;  %v7623_v57 = vpop.f32.mrf.mxu0  ;;  %v11785_v33 = vpop.permute.xlu0 %5683 }
 0x8b6   : > { %6337 = vperm.xlu0 %8322, %v11668_v20   ;;  %14288 = vst [vmem:[#allocation91_spill] sm:$0xff] %v11785_v33  ;;  %2539 = vst.msk [vmem:[#allocation2 + $0x18] sm:$0xff] %vm329_vm1, %v2530_v36  ;;  %v11788_v47 = vpop.permute.xlu1 %5535  ;;  %v11799_v57 = vld [vmem:[#allocation3 + $0x40] sm:$0xff]  ;;  %v14296_v33 = vmov 26  }
 0x8b7   : > { %14289 = vst [vmem:[#allocation94_spill] sm:$0xff] %v11788_v47  ;;  %14293 = vst [vmem:[#allocation96_spill] sm:$0xff] %v11799_v57 }
 0x8b9   : > { %6255 = vperm.xlu1 %8261, %v11653_v8   ;;  %v11794_v29 = vpop.permute.xlu0 %5691 }
 0x8ba   : > { %6345 = vperm.xlu0 %8322, %v11791_v32   ;;  %14290 = vst [vmem:[#allocation120_spill] sm:$0xff] %v11794_v29  ;;  %v3735_v29 = vld [vmem:[#allocation2 + $0x10] sm:$0xff] }
 0x8bb   : > { %v11796_v9 = vpop.permute.xlu1 %5607 }
 0x8bc   : > { %14291 = vst [vmem:[#allocation118_spill] sm:$0xff] %v11796_v9 }
 0x8bd   : > { %8262 = vset.pattern.permute.xlu1 %v14292_v18 }
 0x8be   : > { %5555 = vperm.xlu0 %8322, %v11799_v57   ;;  %4371 = vperm.xlu1 %8262, %v11445_v0   ;;  %v11803_v36 = vpop.permute.xlu0 %5819 }
 0x8bf   : > { %14294 = vst [vmem:[#allocation123_spill] sm:$0xff] %v11803_v36 }
 0x8c0   : > { %v11805_v56 = vpop.permute.xlu1 %4441 }
 0x8c1   : > { %14295 = vst [vmem:[#allocation98_spill] sm:$0xff] %v11805_v56 }
 0x8c2   : > { %6353 = vperm.xlu0 %8322, %v5437_v50   ;;  %8263 = vset.pattern.permute.xlu1 %v14296_v33  ;;  %v11808_v34 = vpop.permute.xlu0 %5831  ;;  %v3826_v47 = vpop.f32.mrf.mxu1  ;;  %v3736_v50 = vld [vmem:[#allocation2 + $0x18] sm:$0xff] }
 0x8c3   : > { %14297 = vst [vmem:[#allocation99_spill] sm:$0xff] %v11808_v34  ;;  %4511 = vperm.xlu1 %8263, %v11518_v59   ;;  %v3858_v18 = vadd.f32 %v3826_v47, %v3735_v29 }
 0x8c4   : > { %v7652_v9 = vpop.f32.mrf.mxu1 }
 0x8c5   : > { %3867 = vst.msk [vmem:[#allocation2 + $0x10] sm:$0xff] %vm329_vm1, %v3858_v18  ;;  %v11813_v54 = vpop.permute.xlu1 %4647 }
 0x8c6   : > { %8330 = vset.pattern.permute.xlu0 %v14243_v44  ;;  %14298 = vst [vmem:[#allocation127_spill] sm:$0xff] %v11813_v54  ;;  %v11816_v36 = vpop.permute.xlu0 %5839  ;;  %v3829_v56 = vpop.f32.mrf.mxu1 }
 0x8c7   : > { %5361 = vperm.xlu0 %8330, %v11586_v45   ;;  %14299 = vst [vmem:[#allocation125_spill] sm:$0xff] %v11816_v36  ;;  %8265 = vset.pattern.permute.xlu1 %v14300_v53  ;;  %v3859_v34 = vadd.f32 %v3829_v56, %v3736_v50  ;;  %v2425_v50 = vld [vmem:[#allocation2 + $0x20] sm:$0xff] }
 0x8c8   : > { %4583 = vperm.xlu1 %8265, %v11518_v59   ;;  %v7653_v19 = vpop.f32.mrf.mxu1 }
 0x8c9   : > { %3868 = vst.msk [vmem:[#allocation2 + $0x18] sm:$0xff] %vm329_vm1, %v3859_v34  ;;  %v11821_v47 = vpop.permute.xlu1 %4651 }
 0x8ca   : > { %14301 = vst [vmem:[#allocation101_spill] sm:$0xff] %v11821_v47 }
 0x8cb   : > { %5373 = vperm.xlu0 %8330, %v11653_v8  }
 0x8cc   : > { %v11824_v29 = vpop.permute.xlu0 %4037  ;;  %4587 = vperm.xlu1 %8265, %v11445_v0  }
 0x8cd   : > { %14302 = vst [vmem:[#allocation129_spill] sm:$0xff] %v11824_v29 }
 0x8cf   : > { %6049 = vperm.xlu0 %8330, %v11668_v20   ;;  %v11828_v9 = vpop.permute.xlu1 %4795 }
 0x8d0   : > { %14303 = vst [vmem:[#allocation105_spill] sm:$0xff] %v11828_v9  ;;  %v11830_v18 = vpop.permute.xlu0 %4049  ;;  %8266 = vset.pattern.permute.xlu1 %v14251_v4 }
 0x8d1   : > { %14304 = vst [vmem:[#allocation134_spill] sm:$0xff] %v11830_v18  ;;  %5234 = vperm.xlu1 %8266, %v11422_v26   ;;  %v14349_v18 = vld [vmem:[#allocation222_spill] sm:$0xff] }
 0x8d3   : > { %6057 = vperm.xlu0 %8330, %v11791_v32  }
 0x8d4   : > { %v11835_v34 = vpop.permute.xlu0 %4057  ;;  %v11837_v19 = vpop.permute.xlu1 %4863 }
 0x8d5   : > { %14305 = vst [vmem:[#allocation103_spill] sm:$0xff] %v11835_v34  ;;  %14306 = vst [vmem:[#allocation131_spill] sm:$0xff] %v11837_v19  ;;  %8267 = vset.pattern.permute.xlu1 %v14261_v7 }
 0x8d6   : > { %5305 = vperm.xlu1 %8267, %v11494_v62  }
 0x8d7   : > { %6061 = vperm.xlu0 %8330, %v11690_v30  }
 0x8d8   : > { %v11842_v20 = vpop.permute.xlu0 %4065  ;;  %v5079_v56 = vpop.permute.xlu1 %5078 }
 0x8d9   : > { %14307 = vst [vmem:[#allocation107_spill] sm:$0xff] %v11842_v20  ;;  %7673 = vmatpush3.bf16.msra.mxu0 %v5079_v56  ;;  %v2426_v56 = vld [vmem:[#allocation2 + $0x28] sm:$0xff] }
 0x8da   : > { %8268 = vset.pattern.permute.xlu1 %v14285_v42  ;;  %7674 = vmatprep.subr.bf16.mxu0 %v13968_v58 }
 0x8db   : > { %5393 = vperm.xlu0 %8330, %v11799_v57   ;;  %5539 = vperm.xlu1 %8268, %v11494_v62   ;;  %v2505_v54 = vpop.f32.mrf.mxu0 }
 0x8dc   : > { %v11848_v36 = vpop.permute.xlu0 %4725  ;;  %v11850_v9 = vpop.permute.xlu1 %5369  ;;  %v2531_v47 = vadd.f32 %v2505_v54, %v2425_v50 }
 0x8dd   : > { %14308 = vst [vmem:[#allocation136_spill] sm:$0xff] %v11848_v36  ;;  %14309 = vst [vmem:[#allocation109_spill] sm:$0xff] %v11850_v9  ;;  %v7626_v30 = vpop.f32.mrf.mxu0 }
 0x8de   : > { %2540 = vst.msk [vmem:[#allocation2 + $0x20] sm:$0xff] %vm329_vm1, %v2531_v47 }
 0x8df   : > { %8332 = vset.pattern.permute.xlu0 %v14255_v51  ;;  %5543 = vperm.xlu1 %8268, %v11422_v26   ;;  %v2508_v19 = vpop.f32.mrf.mxu0 }
 0x8e0   : > { %5883 = vperm.xlu0 %8332, %v11586_v45   ;;  %v11856_v20 = vpop.permute.xlu0 %4737  ;;  %v2532_v61 = vadd.f32 %v2508_v19, %v2426_v56  ;;  %v14316_v19 = vld [vmem:[#allocation88_spill] sm:$0xff] }
 0x8e1   : > { %14310 = vst [vmem:[#allocation138_spill] sm:$0xff] %v11856_v20  ;;  %v11858_v34 = vpop.permute.xlu1 %5675  ;;  %v7627_v40 = vpop.f32.mrf.mxu0 }
 0x8e2   : > { %14311 = vst [vmem:[#allocation92_spill] sm:$0xff] %v11858_v34  ;;  %2541 = vst.msk [vmem:[#allocation2 + $0x28] sm:$0xff] %vm329_vm1, %v2532_v61 }
 0x8e3   : > { %8269 = vset.pattern.permute.xlu1 %v14091_v14 }
 0x8e4   : > { %5895 = vperm.xlu0 %8332, %v11653_v8   ;;  %v11863_v54 = vpop.permute.xlu0 %4745  ;;  %5615 = vperm.xlu1 %8269, %v11422_v26  }
 0x8e5   : > { %14312 = vst [vmem:[#allocation110_spill] sm:$0xff] %v11863_v54  ;;  %v11866_v47 = vpop.permute.xlu1 %5679  ;;  %v3737_v56 = vld [vmem:[#allocation2 + $0x20] sm:$0xff] }
 0x8e6   : > { %14313 = vst [vmem:[#allocation140_spill] sm:$0xff] %v11866_v47 }
 0x8e8   : > { %5915 = vperm.xlu0 %8332, %v11799_v57   ;;  %8270 = vset.pattern.permute.xlu1 %v14285_v42 }
 0x8e9   : > { %v11870_v50 = vpop.permute.xlu0 %5219  ;;  %6333 = vperm.xlu1 %8270, %v11706_v17  }
 0x8ea   : > { %14314 = vst [vmem:[#allocation112_spill] sm:$0xff] %v11870_v50  ;;  %v11873_v40 = vpop.permute.xlu1 %5823  ;;  %v3738_v50 = vld [vmem:[#allocation2 + $0x28] sm:$0xff] }
 0x8ec   : > { %8335 = vset.pattern.permute.xlu0 %v14268_v10 }
 0x8ed   : > { %5955 = vperm.xlu0 %8335, %v11586_v45   ;;  %v11877_v61 = vpop.permute.xlu0 %5466  ;;  %6404 = vrot.lane.b32.xlu1 %v14316_v19, %s8666_s21 }
 0x8ee   : > { %14315 = vst [vmem:[#allocation142_spill] sm:$0xff] %v11877_v61  ;;  %8271 = vset.pattern.permute.xlu1 %v14112_v22  ;;  %v5439_v22 = vld [vmem:[#allocation4 + $0x38] sm:$0xff] }
 0x8ef   : > { %v11882_v30 = vpop.permute.xlu1 %5891  ;;  %v3834_v54 = vpop.f32.mrf.mxu1 }
 0x8f0   : > { %14317 = vst [vmem:[#allocation114_spill] sm:$0xff] %v11882_v30  ;;  %v3860_v34 = vadd.f32 %v3834_v54, %v3737_v56  ;;  %v11918_v56 = vld [vmem:[#allocation3 + $0x28] sm:$0xff] }
 0x8f1   : > { %5963 = vperm.xlu0 %8335, %v11399_v38   ;;  %v11885_v17 = vpop.permute.xlu0 %5229  ;;  %4449 = vperm.xlu1 %8271, %v11639_v16   ;;  %v7656_v9 = vpop.f32.mrf.mxu1 }
 0x8f2   : > { %14318 = vst [vmem:[#allocation117_spill] sm:$0xff] %v11885_v17  ;;  %3869 = vst.msk [vmem:[#allocation2 + $0x20] sm:$0xff] %vm329_vm1, %v3860_v34 }
 0x8f3   : > { %v3837_v20 = vpop.f32.mrf.mxu1 }
 0x8f4   : > { %v11889_v47 = vpop.permute.xlu1 %4729  ;;  %v3861_v19 = vadd.f32 %v3837_v20, %v3738_v50 }
 0x8f5   : > { %14319 = vst [vmem:[#allocation147_spill] sm:$0xff] %v11889_v47  ;;  %5975 = vperm.xlu0 %8335, %v11422_v26   ;;  %v11892_v30 = vpop.permute.xlu0 %5239  ;;  %8272 = vset.pattern.permute.xlu1 %v14218_v39  ;;  %v7657_v54 = vpop.f32.mrf.mxu1 }
 0x8f6   : > { %14320 = vst [vmem:[#allocation122_spill] sm:$0xff] %v11892_v30  ;;  %4655 = vperm.xlu1 %8272, %v11518_v59   ;;  %3870 = vst.msk [vmem:[#allocation2 + $0x28] sm:$0xff] %vm329_vm1, %v3861_v19  ;;  %v2427_v54 = vld [vmem:[#allocation2 + $0x30] sm:$0xff] }
 0x8f8   : > { %v11897_v38 = vpop.permute.xlu1 %4733 }
 0x8f9   : > { %14321 = vst [vmem:[#allocation145_spill] sm:$0xff] %v11897_v38  ;;  %5987 = vperm.xlu0 %8335, %v11799_v57   ;;  %v11900_v9 = vpop.permute.xlu0 %5481 }
 0x8fa   : > { %14322 = vst [vmem:[#allocation119_spill] sm:$0xff] %v11900_v9  ;;  %4659 = vperm.xlu1 %8272, %v11445_v0  }
 0x8fd   : > { %8339 = vset.pattern.permute.xlu0 %v14279_v13  ;;  %v11904_v26 = vpop.permute.xlu1 %4939 }
 0x8fe   : > { %14323 = vst [vmem:[#allocation149_spill] sm:$0xff] %v11904_v26  ;;  %4199 = vperm.xlu0 %8339, %v11586_v45   ;;  %v11907_v34 = vpop.permute.xlu0 %5289  ;;  %8274 = vset.pattern.permute.xlu1 %v14226_v5  ;;  %v2428_v26 = vld [vmem:[#allocation2 + $0x38] sm:$0xff]  ;;  %v8466_v5 = vld [vmem:[#allocation4] sm:$0xff] }
 0x8ff   : > { %4803 = vperm.xlu1 %8274, %v11445_v0  }
 0x902   : > { %4211 = vperm.xlu0 %8339, %v11653_v8   ;;  %v11912_v20 = vpop.permute.xlu0 %5301  ;;  %v11914_v50 = vpop.permute.xlu1 %5461 }
 0x903   : > { %14324 = vst [vmem:[#allocation121_spill] sm:$0xff] %v11912_v20  ;;  %14325 = vst [vmem:[#allocation153_spill] sm:$0xff] %v11914_v50  ;;  %8275 = vset.pattern.permute.xlu1 %v14234_v27 }
 0x904   : > { %4871 = vperm.xlu1 %8275, %v11518_v59  }
 0x906   : > { %4219 = vperm.xlu0 %8339, %v11918_v56   ;;  %v11921_v45 = vpop.permute.xlu0 %5309 }
 0x907   : > { %14326 = vst [vmem:[#allocation124_spill] sm:$0xff] %v11921_v45  ;;  %v11923_v19 = vpop.permute.xlu1 %5757 }
 0x908   : > { %14327 = vst [vmem:[#allocation151_spill] sm:$0xff] %v11923_v19  ;;  %8276 = vset.pattern.permute.xlu1 %v14243_v44  ;;  %v2513_v8 = vpop.f32.mrf.mxu0 }
 0x909   : > { %5377 = vperm.xlu1 %8276, %v11494_v62   ;;  %v2533_v30 = vadd.f32 %v2513_v8, %v2427_v54  ;;  %v2429_v54 = vld [vmem:[#allocation2 + $0x40] sm:$0xff] }
 0x90a   : > { %4227 = vperm.xlu0 %8339, %v11445_v0   ;;  %v11928_v27 = vpop.permute.xlu0 %5765  ;;  %v7630_v17 = vpop.f32.mrf.mxu0 }
 0x90b   : > { %14328 = vst [vmem:[#allocation156_spill] sm:$0xff] %v11928_v27  ;;  %v11930_v9 = vpop.permute.xlu1 %5761  ;;  %2542 = vst.msk [vmem:[#allocation2 + $0x30] sm:$0xff] %vm329_vm1, %v2533_v30  ;;  %v8467_v27 = vld [vmem:[#allocation4 + $0x18] sm:$0xff] }
 0x90c   : > { %14329 = vst [vmem:[#allocation126_spill] sm:$0xff] %v11930_v9  ;;  %v2516_v45 = vpop.f32.mrf.mxu0 }
 0x90d   : > { %5381 = vperm.xlu1 %8276, %v11918_v56   ;;  %v2534_v20 = vadd.f32 %v2516_v45, %v2428_v26 }
 0x90e   : > { %5009 = vperm.xlu0 %8339, %v8466_v5   ;;  %v11934_v39 = vpop.permute.xlu0 %5317  ;;  %v7631_v47 = vpop.f32.mrf.mxu0 }
 0x90f   : > { %14330 = vst [vmem:[#allocation158_spill] sm:$0xff] %v11934_v39  ;;  %2543 = vst.msk [vmem:[#allocation2 + $0x38] sm:$0xff] %vm329_vm1, %v2534_v20  ;;  %v11960_v39 = vld [vmem:[#allocation3 + $0x38] sm:$0xff] }
 0x910   : > { %v11937_v0 = vpop.permute.xlu1 %5967  ;;  %v2521_v17 = vpop.f32.mrf.mxu0  ;;  %14336 = vst [vmem:[#allocation164_spill] sm:$0xff] %v11960_v39 }
 0x911   : > { %8277 = vset.pattern.permute.xlu1 %v14246_v28  ;;  %v2535_v8 = vadd.f32 %v2521_v17, %v2429_v54 }
 0x912   : > { %5021 = vperm.xlu0 %8339, %v8467_v27   ;;  %v11940_v30 = vpop.permute.xlu0 %5777  ;;  %5687 = vperm.xlu1 %8277, %v11918_v56   ;;  %v7634_v26 = vpop.f32.mrf.mxu0  ;;  %v8468_v27 = vld [vmem:[#allocation4 + $0x40] sm:$0xff] }
 0x913   : > { %14331 = vst [vmem:[#allocation128_spill] sm:$0xff] %v11940_v30  ;;  %2544 = vst.msk [vmem:[#allocation2 + $0x40] sm:$0xff] %vm329_vm1, %v2535_v8  ;;  %v3739_v8 = vld [vmem:[#allocation2 + $0x30] sm:$0xff] }
 0x914   : > { %v2524_v47 = vpop.f32.mrf.mxu0 }
 0x915   : > { %v11944_v5 = vpop.permute.xlu1 %6107 }
 0x916   : > { %14332 = vst [vmem:[#allocation160_spill] sm:$0xff] %v11944_v5  ;;  %5025 = vperm.xlu0 %8339, %v11639_v16   ;;  %8278 = vset.pattern.permute.xlu1 %v14212_v1  ;;  %v7635_v45 = vpop.f32.mrf.mxu0  ;;  %v3740_v30 = vld [vmem:[#allocation2 + $0x38] sm:$0xff] }
 0x917   : > { %v11948_v20 = vpop.permute.xlu0 %6103  ;;  %5827 = vperm.xlu1 %8278, %v11494_v62  }
 0x91a   : > { %5041 = vperm.xlu0 %8339, %v8468_v27   ;;  %v11951_v54 = vpop.permute.xlu1 %6179 }
 0x91b   : > { %14333 = vst [vmem:[#allocation130_spill] sm:$0xff] %v11951_v54  ;;  %v11953_v17 = vpop.permute.xlu0 %6111  ;;  %8279 = vset.pattern.permute.xlu1 %v14255_v51  ;;  %v11983_v51 = vld [vmem:[#allocation7 + $0x4] ss:$0 sm:$0xff] }
 0x91c   : > { %14334 = vst [vmem:[#allocation162_spill] sm:$0xff] %v11953_v17  ;;  %5899 = vperm.xlu1 %8279, %v11494_v62   ;;  %v3842_v26 = vpop.f32.mrf.mxu1 }
 0x91d   : > { %v3862_v47 = vadd.f32 %v3842_v26, %v3739_v8  ;;  %v11974_v26 = vld [vmem:[#allocation4 + $0x28] sm:$0xff] }
 0x91e   : > { %8342 = vset.pattern.permute.xlu0 %v14287_v55  ;;  %v11958_v16 = vpop.permute.xlu1 %6183  ;;  %v7660_v27 = vpop.f32.mrf.mxu1 }
 0x91f   : > { %14335 = vst [vmem:[#allocation132_spill] sm:$0xff] %v11958_v16  ;;  %6271 = vperm.xlu0 %8342, %v11960_v39   ;;  %v11963_v45 = vpop.permute.xlu0 %6123  ;;  %3871 = vst.msk [vmem:[#allocation2 + $0x30] sm:$0xff] %vm329_vm1, %v3862_v47  ;;  %v11977_v27 = vld [vmem:[#allocation7 + $0x1] ss:$0 sm:$0xff]  ;;  %v14340_v47 = vld [vmem:[#allocation241_spill] sm:$0xff] }
 0x920   : > { %14337 = vst [vmem:[#allocation135_spill] sm:$0xff] %v11963_v45  ;;  %5903 = vperm.xlu1 %8279, %v11918_v56   ;;  %v3845_v62 = vpop.f32.mrf.mxu1  ;;  %v3741_v16 = vld [vmem:[#allocation2 + $0x40] sm:$0xff]  ;;  %v14363_v39 = vld [vmem:[#allocation237_spill] sm:$0xff] }
 0x921   : > { %v3863_v5 = vadd.f32 %v3845_v62, %v3740_v30  ;;  %v4306_v30 = vsub.f32 %v11977_v27, %v14340_v47  ;;  %v14341_v62 = vld [vmem:[#allocation243_spill] sm:$0xff] }
 0x922   : > { %v7661_v54 = vpop.f32.mrf.mxu1  ;;  %v4309_v45 = vsub.f32 %v11977_v27, %v14341_v62 }
 0x923   : > { %6275 = vperm.xlu0 %8342, %v11799_v57   ;;  %v11968_v17 = vpop.permute.xlu1 %5017  ;;  %3872 = vst.msk [vmem:[#allocation2 + $0x38] sm:$0xff] %vm329_vm1, %v3863_v5  ;;  %v14343_v5 = vld [vmem:[#allocation255_spill] sm:$0xff]  ;;  %v14371_v57 = vld [vmem:[#allocation257_spill] sm:$0xff] }
 0x924   : > { %14338 = vst [vmem:[#allocation133_spill] sm:$0xff] %v11968_v17  ;;  %v11970_v8 = vpop.permute.xlu0 %6187  ;;  %8280 = vset.pattern.permute.xlu1 %v14222_v23  ;;  %v3850_v54 = vpop.f32.mrf.mxu1  ;;  %v4597_v1 = vsub.f32 %v11983_v51, %v14343_v5  ;;  %v4318_v62 = vand.u32 2147483647, %v4309_v45  ;;  %v11996_v5 = vld [vmem:[#allocation7 + $0x5] ss:$0 sm:$0xff] }
 0x925   : > { %14339 = vst [vmem:[#allocation208_spill] sm:$0xff] %v11970_v8  ;;  %4741 = vperm.xlu1 %8280, %v11974_v26   ;;  %v14342_v8 = vld [vmem:[#allocation250_spill] sm:$0xff]  ;;  %v3864_v28 = vadd.f32 %v3850_v54, %v3741_v16 }
 0x926   : > { %v4595_v23 = vsub.f32 %v11983_v51, %v14342_v8  ;;  %v7664_v38 = vpop.f32.mrf.mxu1  ;;  %v4315_v8 = vand.u32 2147483647, %v4306_v30  ;;  %v4606_v54 = vand.u32 2147483647, %v4597_v1  ;;  %v4327_v45 = vsub.f32 1.0, %v4318_v62  ;;  %v14353_v62 = vld [vmem:[#allocation223_spill] sm:$0xff] }
 0x927   : > { %8344 = vset.pattern.permute.xlu0 %v14251_v4  ;;  %v5077_v17 = vpop.permute.xlu1 %5076  ;;  %3873 = vst.msk [vmem:[#allocation2 + $0x40] sm:$0xff] %vm329_vm1, %v3864_v28  ;;  %v14345_v38 = vld [vmem:[#allocation282_spill] sm:$0xff]  ;;  %v12002_v28 = vld [vmem:[#allocation7] ss:$0 sm:$0xff] }
 0x928   : > { %5496 = vperm.xlu0 %8344, %v5439_v22   ;;  %v11990_v47 = vpop.permute.xlu0 %6199  ;;  %7675 = vmatpush3.bf16.msra.mxu0 %v5077_v17  ;;  %v3853_v36 = vpop.f32.mrf.mxu1  ;;  %v4604_v16 = vand.u32 2147483647, %v4595_v23  ;;  %v4669_v22 = vsub.f32 %v11996_v5, %v14345_v38  ;;  %v5440_v17 = vld [vmem:[#allocation4 + $0x40] sm:$0xff]  ;;  %v14348_v23 = vld [vmem:[#allocation227_spill] sm:$0xff]  ;;  %v4615_v25 = vsub.f32 1.0, %v4606_v54  ;;  %v12033_v29 = vmax.f32 %v4327_v45, 0.0 }
 0x929   : > { %14344 = vst [vmem:[#allocation210_spill] sm:$0xff] %v11990_v47  ;;  %8281 = vset.pattern.permute.xlu1 %v14260_v3  ;;  %7726 = vmatprep.subr.mxu0 %v13968_v58  ;;  %v14347_v3 = vld [vmem:[#allocation283_spill] sm:$0xff]  ;;  %v4001_v1 = vsub.f32 %v11977_v27, %v14348_v23  ;;  %v14352_v23 = vld [vmem:[#allocation284_spill] sm:$0xff]  ;;  %v14361_v45 = vld [vmem:[#allocation246_spill] sm:$0xff] }
 0x92a   : > { %4943 = vperm.xlu1 %8281, %v11518_v59   ;;  %v3928_v14 = vsub.f32 %v12002_v28, %v14347_v3  ;;  %v7665_v30 = vpop.f32.mrf.mxu1  ;;  %v4324_v59 = vsub.f32 1.0, %v4315_v8  ;;  %v4613_v38 = vsub.f32 1.0, %v4604_v16  ;;  %v4678_v2 = vand.u32 2147483647, %v4669_v22  ;;  %v12023_v54 = vld [vmem:[#allocation7 + $0x2] ss:$0 sm:$0xff] }
 0x92b   : > { %v12000_v47 = vpop.permute.xlu1 %6045  ;;  %v3929_v3 = vsub.f32 %v12002_v28, %v14349_v18  ;;  %v14350_v30 = vld [vmem:[#allocation228_spill] sm:$0xff]  ;;  %v3931_v52 = vsub.f32 %v12002_v28, %v14352_v23  ;;  %v3930_v16 = vsub.f32 %v12002_v28, %v14353_v62  ;;  %14358 = vst [vmem:[#allocation137_spill] sm:$0xff] %v12033_v29  ;;  %v12037_v49 = vmax.f32 %v4615_v25, 0.0 }
 0x92c   : > { %14346 = vst [vmem:[#allocation167_spill] sm:$0xff] %v12000_v47  ;;  %5501 = vperm.xlu0 %8344, %v5440_v17   ;;  %v3937_v15 = vand.u32 2147483647, %v3928_v14  ;;  %v4002_v11 = vsub.f32 %v11977_v27, %v14350_v30  ;;  %v14354_v22 = vld [vmem:[#allocation232_spill] sm:$0xff]  ;;  %v12029_v47 = vmax.f32 %v4324_v59, 0.0  ;;  %v12035_v23 = vmax.f32 %v4613_v38, 0.0 }
 0x92d   : > { %v12006_v36 = vpop.permute.xlu0 %5527  ;;  %v4073_v14 = vsub.f32 %v12023_v54, %v14354_v22  ;;  %v4010_v30 = vand.u32 2147483647, %v4001_v1  ;;  %v4687_v62 = vsub.f32 1.0, %v4678_v2  ;;  %v3938_v22 = vand.u32 2147483647, %v3929_v3  ;;  %v14364_v3 = vld [vmem:[#allocation252_spill] sm:$0xff] }
 0x92e   : > { %8283 = vset.pattern.permute.xlu1 %v14251_v4  ;;  %14356 = vst [vmem:[#allocation169_spill] sm:$0xff] %v12029_v47  ;;  %v3946_v19 = vsub.f32 1.0, %v3937_v15  ;;  %v4307_v59 = vsub.f32 %v11977_v27, %v14359_v35  ;;  %v3940_v1 = vand.u32 2147483647, %v3931_v52  ;;  %v4308_v38 = vsub.f32 %v11977_v27, %v14361_v45  ;;  %v14365_v35 = vld [vmem:[#allocation238_spill] sm:$0xff]  ;;  %v14367_v45 = vld [vmem:[#allocation256_spill] sm:$0xff] }
 0x92f   : > { %5471 = vperm.xlu1 %8283, %v11720_v21   ;;  %v4019_v25 = vsub.f32 1.0, %v4010_v30  ;;  %v4235_v15 = vsub.f32 %v12002_v28, %v14363_v39  ;;  %v12052_v48 = vmax.f32 %v4687_v62, 0.0  ;;  %v4236_v52 = vsub.f32 %v12002_v28, %v14365_v35 }
 0x930   : > { %8348 = vset.pattern.permute.xlu0 %v14285_v42  ;;  %v12017_v8 = vpop.permute.xlu1 %6251  ;;  %v14357_v42 = vld [vmem:[#allocation233_spill] sm:$0xff]  ;;  %v3947_v39 = vsub.f32 1.0, %v3938_v22  ;;  %v3949_v62 = vsub.f32 1.0, %v3940_v1  ;;  %v4317_v50 = vand.u32 2147483647, %v4308_v38  ;;  %v14373_v38 = vld [vmem:[#allocation259_spill] sm:$0xff] }
 0x931   : > { %14351 = vst [vmem:[#allocation215_spill] sm:$0xff] %v12017_v8  ;;  %6365 = vperm.xlu0 %8348, %v5440_v17   ;;  %v12027_v18 = vpop.permute.xlu0 %6337  ;;  %v4074_v8 = vsub.f32 %v12023_v54, %v14357_v42  ;;  %v4011_v17 = vand.u32 2147483647, %v4002_v11  ;;  %v4082_v42 = vand.u32 2147483647, %v4073_v14  ;;  %v4379_v11 = vsub.f32 %v12023_v54, %v14364_v3 }
 0x932   : > { %14355 = vst [vmem:[#allocation216_spill] sm:$0xff] %v12027_v18  ;;  %v3939_v18 = vand.u32 2147483647, %v3930_v16  ;;  %v14366_v16 = vld [vmem:[#allocation254_spill] sm:$0xff]  ;;  %v4316_v3 = vand.u32 2147483647, %v4307_v59 }
 0x933   : > { %5476 = vperm.xlu1 %8283, %v11791_v32   ;;  %v4083_v2 = vand.u32 2147483647, %v4074_v8  ;;  %v4380_v14 = vsub.f32 %v12023_v54, %v14366_v16  ;;  %v12063_v8 = vmax.f32 %v3946_v19, 0.0  ;;  %v4091_v35 = vsub.f32 1.0, %v4082_v42 }
 0x934   : > { %v12042_v47 = vpop.permute.xlu1 %6255  ;;  %v3948_v4 = vsub.f32 1.0, %v3939_v18  ;;  %v4028_v9 = vmax.f32 %v4019_v25, 0.0  ;;  %v4388_v53 = vand.u32 2147483647, %v4379_v11  ;;  %v3956_v22 = vmax.f32 %v3947_v39, 0.0 }
 0x935   : > { %14360 = vst [vmem:[#allocation171_spill] sm:$0xff] %v12042_v47  ;;  %v12046_v29 = vpop.permute.xlu0 %6345  ;;  %v12058_v47 = vld [vmem:[#allocation7 + $0x3] ss:$0 sm:$0xff]  ;;  %14368 = vst [vmem:[#allocation141_spill] sm:$0xff] %v12063_v8  ;;  %v4092_v58 = vsub.f32 1.0, %v4083_v2  ;;  %v4325_v59 = vsub.f32 1.0, %v4316_v3  ;;  %v4667_v25 = vsub.f32 %v11996_v5, %v14373_v38 }
 0x936   : > { %14362 = vst [vmem:[#allocation139_spill] sm:$0xff] %v12046_v29  ;;  %v4523_v30 = vsub.f32 %v12058_v47, %v14367_v45  ;;  %v4020_v29 = vsub.f32 1.0, %v4011_v17  ;;  %v4244_v45 = vand.u32 2147483647, %v4235_v15  ;;  %v4389_v19 = vand.u32 2147483647, %v4380_v14 }
 0x937   : > { %8284 = vset.pattern.permute.xlu1 %v14261_v7  ;;  %v4245_v7 = vand.u32 2147483647, %v4236_v52  ;;  %v12073_v18 = vmax.f32 %v3949_v62, 0.0  ;;  %v4100_v1 = vmax.f32 %v4091_v35, 0.0  ;;  %v4326_v42 = vsub.f32 1.0, %v4317_v50  ;;  %v12079_v15 = vld [vmem:[#allocation3 + $0x20] sm:$0xff] }
 0x938   : > { %5769 = vperm.xlu1 %8284, %v11791_v32   ;;  %v4532_v8 = vand.u32 2147483647, %v4523_v30  ;;  %v4029_v17 = vmax.f32 %v4020_v29, 0.0  ;;  %v4594_v32 = vsub.f32 %v11983_v51, %v14371_v57  ;;  %v3957_v29 = vmax.f32 %v3948_v4, 0.0  ;;  %v14376_v38 = vld [vmem:[#allocation258_spill] sm:$0xff] }
 0x939   : > { %v12066_v61 = vpop.permute.xlu0 %5555  ;;  %v12068_v16 = vpop.permute.xlu1 %4371  ;;  %14372 = vst [vmem:[#allocation32_spill] sm:$0xff] %v12073_v18  ;;  %v4118_v11 = vmul.f32 %v4028_v9, %v3956_v22  ;;  %v4253_v52 = vsub.f32 1.0, %v4244_v45  ;;  %v4397_v14 = vsub.f32 1.0, %v4388_v53  ;;  %v4101_v30 = vmax.f32 %v4092_v58, 0.0  ;;  %v14377_v18 = vld [vmem:[#allocation260_spill] sm:$0xff]  ;;  %v14379_v45 = vld [vmem:[#allocation265_spill] sm:$0xff] }
 0x93a   : > { %14369 = vst [vmem:[#allocation36_spill] sm:$0xff] %v12066_v61  ;;  %14370 = vst [vmem:[#allocation39_spill] sm:$0xff] %v12068_v16  ;;  %v4254_v39 = vsub.f32 1.0, %v4245_v7  ;;  %v4398_v3 = vsub.f32 1.0, %v4389_v19  ;;  %v4541_v62 = vsub.f32 1.0, %v4532_v8  ;;  %v4119_v50 = vmul.f32 %v4029_v17, %v3957_v29  ;;  %v14378_v7 = vld [vmem:[#allocation261_spill] sm:$0xff] }
 0x93b   : > { %v4334_v35 = vmax.f32 %v4325_v59, 0.0  ;;  %v4603_v61 = vand.u32 2147483647, %v4594_v32  ;;  %v4335_v16 = vmax.f32 %v4326_v42, 0.0  ;;  %v4811_v4 = vsub.f32 %v12058_v47, %v14377_v18 }
 0x93c   : > { %8285 = vset.pattern.permute.xlu1 %v14268_v10  ;;  %v4676_v10 = vand.u32 2147483647, %v4667_v25  ;;  %v12088_v9 = vmul.f32 %v4118_v11, %v4100_v1  ;;  %v4262_v53 = vmax.f32 %v4253_v52, 0.0  ;;  %v4406_v58 = vmax.f32 %v4397_v14, 0.0  ;;  %v14382_v11 = vld [vmem:[#allocation262_spill] sm:$0xff] }
 0x93d   : > { %v12077_v2 = vpop.permute.xlu0 %6353  ;;  %5971 = vperm.xlu1 %8285, %v12079_v15   ;;  %v4882_v8 = vsub.f32 %v11983_v51, %v14378_v7  ;;  %v4525_v19 = vsub.f32 %v12058_v47, %v14379_v45  ;;  %v4263_v17 = vmax.f32 %v4254_v39, 0.0  ;;  %v4407_v59 = vmax.f32 %v4398_v3, 0.0  ;;  %v14383_v45 = vld [vmem:[#allocation263_spill] sm:$0xff]  ;;  %v14384_v39 = vld [vmem:[#allocation264_spill] sm:$0xff] }
 0x93e   : > { %14374 = vst [vmem:[#allocation35_spill] sm:$0xff] %v12077_v2  ;;  %v12082_v57 = vpop.permute.xlu1 %4511  ;;  %v4666_v2 = vsub.f32 %v11996_v5, %v14376_v38  ;;  %v4550_v32 = vmax.f32 %v4541_v62, 0.0  ;;  %v12098_v18 = vmul.f32 %v4119_v50, %v4101_v30  ;;  %v4415_v42 = vmul.f32 %v4334_v35, %v4262_v53 }
 0x93f   : > { %14375 = vst [vmem:[#allocation41_spill] sm:$0xff] %v12082_v57  ;;  %v4612_v25 = vsub.f32 1.0, %v4603_v61  ;;  %v4954_v52 = vsub.f32 %v11996_v5, %v14382_v11  ;;  %v4416_v14 = vmul.f32 %v4335_v16, %v4263_v17  ;;  %v4685_v38 = vsub.f32 1.0, %v4676_v10  ;;  %v14387_v16 = vld [vmem:[#allocation271_spill] sm:$0xff]  ;;  %v14391_v17 = vld [vmem:[#allocation268_spill] sm:$0xff] }
 0x940   : > { %14380 = vst [vmem:[#allocation40_spill] sm:$0xff] %v12098_v18  ;;  %v4675_v29 = vand.u32 2147483647, %v4666_v2  ;;  %v4820_v7 = vand.u32 2147483647, %v4811_v4  ;;  %v4955_v57 = vsub.f32 %v11996_v5, %v14383_v45  ;;  %v4381_v3 = vsub.f32 %v12023_v54, %v14384_v39  ;;  %v14386_v2 = vld [vmem:[#allocation269_spill] sm:$0xff] }
 0x941   : > { %8286 = vset.pattern.permute.xlu1 %v14271_v37  ;;  %v4891_v37 = vand.u32 2147483647, %v4882_v8  ;;  %v4534_v30 = vand.u32 2147483647, %v4525_v19  ;;  %v12108_v62 = vmul.f32 %v4415_v42, %v4406_v58  ;;  %v4703_v61 = vmul.f32 %v12035_v23, %v4550_v32  ;;  %v14392_v32 = vld [vmem:[#allocation270_spill] sm:$0xff] }
 0x942   : > { %v12095_v22 = vpop.permute.xlu0 %5361  ;;  %6115 = vperm.xlu1 %8286, %v12079_v15   ;;  %v5325_v10 = vsub.f32 %v11977_v27, %v14386_v2  ;;  %v5630_v35 = vsub.f32 %v11977_v27, %v14387_v16  ;;  %v12118_v4 = vmul.f32 %v4416_v14, %v4407_v59  ;;  %v12122_v8 = vmax.f32 %v4612_v25, 0.0  ;;  %v14393_v59 = vld [vmem:[#allocation266_spill] sm:$0xff]  ;;  %v14394_v25 = vld [vmem:[#allocation267_spill] sm:$0xff] }
 0x943   : > { %v12100_v1 = vpop.permute.xlu1 %4583  ;;  %v4684_v58 = vsub.f32 1.0, %v4675_v29  ;;  %v4963_v19 = vand.u32 2147483647, %v4954_v52  ;;  %v5253_v42 = vsub.f32 %v12002_v28, %v14391_v17  ;;  %v4694_v11 = vmax.f32 %v4685_v38, 0.0  ;;  %v14397_v17 = vld [vmem:[#allocation272_spill] sm:$0xff] }
 0x944   : > { %14381 = vst [vmem:[#allocation173_spill] sm:$0xff] %v12100_v1  ;;  %14388 = vst [vmem:[#allocation175_spill] sm:$0xff] %v12118_v4  ;;  %v4829_v45 = vsub.f32 1.0, %v4820_v7  ;;  %v4964_v23 = vand.u32 2147483647, %v4955_v57  ;;  %v5558_v39 = vsub.f32 %v12002_v28, %v14392_v32  ;;  %v4900_v2 = vsub.f32 1.0, %v4891_v37 }
 0x945   : > { %14390 = vst [vmem:[#allocation178_spill] sm:$0xff] %v12122_v8  ;;  %v4390_v1 = vand.u32 2147483647, %v4381_v3  ;;  %v4543_v16 = vsub.f32 1.0, %v4534_v30  ;;  %v4596_v14 = vsub.f32 %v11983_v51, %v14393_v59  ;;  %v5252_v29 = vsub.f32 %v12002_v28, %v14394_v25  ;;  %v14395_v7 = vld [vmem:[#allocation278_spill] sm:$0xff] }
 0x946   : > { %v12110_v50 = vpop.permute.xlu0 %5373  ;;  %6119 = vperm.xlu1 %8286, %v11918_v56   ;;  %v5334_v52 = vand.u32 2147483647, %v5325_v10  ;;  %v5639_v38 = vand.u32 2147483647, %v5630_v35  ;;  %v5397_v57 = vsub.f32 %v12023_v54, %v14395_v7  ;;  %v12138_v37 = vmax.f32 %v4684_v58, 0.0 }
 0x947   : > { %14385 = vst [vmem:[#allocation42_spill] sm:$0xff] %v12110_v50  ;;  %v12120_v53 = vpop.permute.xlu1 %4587  ;;  %v4972_v3 = vsub.f32 1.0, %v4963_v19  ;;  %v5262_v30 = vand.u32 2147483647, %v5253_v42  ;;  %v5631_v32 = vsub.f32 %v11977_v27, %v14397_v17  ;;  %v4973_v50 = vsub.f32 1.0, %v4964_v23 }
 0x948   : > { %14389 = vst [vmem:[#allocation143_spill] sm:$0xff] %v12120_v53  ;;  %14396 = vst [vmem:[#allocation146_spill] sm:$0xff] %v12138_v37  ;;  %v5567_v25 = vand.u32 2147483647, %v5558_v39  ;;  %v12146_v10 = vmul.f32 %v4703_v61, %v4694_v11  ;;  %v12148_v35 = vmax.f32 %v4900_v2, 0.0  ;;  %v4399_v7 = vsub.f32 1.0, %v4390_v1 }
 0x949   : > { %v4552_v18 = vmax.f32 %v4543_v16, 0.0  ;;  %v4605_v4 = vand.u32 2147483647, %v4596_v14  ;;  %v5261_v19 = vand.u32 2147483647, %v5252_v29  ;;  %v5343_v42 = vsub.f32 1.0, %v5334_v52 }
 0x94a   : > { %v12130_v53 = vpop.permute.xlu0 %6049  ;;  %8287 = vset.pattern.permute.xlu1 %v14274_v31  ;;  %v12144_v31 = vmax.f32 %v4829_v45, 0.0  ;;  %v5648_v37 = vsub.f32 1.0, %v5639_v38  ;;  %v5406_v8 = vand.u32 2147483647, %v5397_v57  ;;  %v12154_v45 = vmax.f32 %v4972_v3, 0.0  ;;  %v14399_v61 = vld [vmem:[#allocation279_spill] sm:$0xff] }
 0x94b   : > { %6191 = vperm.xlu1 %8287, %v11918_v56   ;;  %v5271_v23 = vsub.f32 1.0, %v5262_v30  ;;  %v5640_v39 = vand.u32 2147483647, %v5631_v32  ;;  %v5702_v11 = vsub.f32 %v12023_v54, %v14399_v61  ;;  %v12159_v1 = vmax.f32 %v4973_v50, 0.0  ;;  %v14400_v16 = vld [vmem:[#allocation273_spill] sm:$0xff]  ;;  %v14401_v29 = vld [vmem:[#allocation274_spill] sm:$0xff] }
 0x94c   : > { %v12142_v59 = vpop.permute.xlu1 %5234  ;;  %v5576_v2 = vsub.f32 1.0, %v5567_v25  ;;  %v4668_v14 = vsub.f32 %v11996_v5, %v14400_v16  ;;  %v4812_v52 = vsub.f32 %v12058_v47, %v14401_v29  ;;  %v4705_v57 = vmul.f32 %v12037_v49, %v4552_v18  ;;  %v14404_v30 = vld [vmem:[#allocation275_spill] sm:$0xff] }
 0x94d   : > { %14398 = vst [vmem:[#allocation144_spill] sm:$0xff] %v12142_v59  ;;  %v4614_v3 = vsub.f32 1.0, %v4605_v4  ;;  %v4813_v17 = vsub.f32 %v12058_v47, %v14404_v30  ;;  %v5270_v50 = vsub.f32 1.0, %v5261_v19  ;;  %v5352_v25 = vmax.f32 %v5343_v42, 0.0 }
 0x94e   : > { %v12150_v58 = vpop.permute.xlu0 %6057  ;;  %v5657_v61 = vmax.f32 %v5648_v37, 0.0  ;;  %v5415_v59 = vsub.f32 1.0, %v5406_v8  ;;  %v5280_v16 = vmax.f32 %v5271_v23, 0.0  ;;  %v5649_v29 = vsub.f32 1.0, %v5640_v39  ;;  %v14407_v8 = vld [vmem:[#allocation281_spill] sm:$0xff] }
 0x94f   : > { %6402 = vrot.lane.b32.xlu1 %v14241_v63, %s8666_s21  ;;  %v12167_v63 = vmax.f32 %v4399_v7, 0.0  ;;  %v12177_v49 = vand.u32 2147483647, %v4668_v14  ;;  %v12179_v18 = vand.u32 2147483647, %v4812_v52  ;;  %v5559_v4 = vsub.f32 %v12002_v28, %v12006_v36 }
 0x950   : > { %8288 = vset.pattern.permute.xlu1 %v14279_v13  ;;  %v5711_v13 = vand.u32 2147483647, %v5702_v11  ;;  %v12183_v19 = vmax.f32 %v4614_v3, 0.0  ;;  %v12185_v37 = vand.u32 2147483647, %v4813_v17  ;;  %v12190_v42 = vmul.f32 %v4705_v57, %v12052_v48 }
 0x951   : > { %v12165_v38 = vpop.permute.xlu1 %5305  ;;  %14403 = vst [vmem:[#allocation152_spill] sm:$0xff] %v12167_v63  ;;  %v5585_v63 = vmax.f32 %v5576_v2, 0.0  ;;  %v12196_v11 = vmax.f32 %v5270_v50, 0.0  ;;  %v5442_v2 = vmul.f32 %v5352_v25, %v5280_v16  ;;  %v5424_v36 = vmax.f32 %v5415_v59, 0.0  ;;  %v14410_v25 = vld [vmem:[#allocation76_spill] sm:$0xff] }
 0x952   : > { %14402 = vst [vmem:[#allocation148_spill] sm:$0xff] %v12165_v38  ;;  %v12172_v32 = vpop.permute.xlu0 %6061  ;;  %v14406_v38 = vld [vmem:[#allocation280_spill] sm:$0xff]  ;;  %v12201_v52 = vmax.f32 %v5649_v29, 0.0  ;;  %v5919_v48 = vsub.f32 %v11983_v51, %v11633_v12  ;;  %v5568_v59 = vand.u32 2147483647, %v5559_v4  ;;  %v5703_v29 = vsub.f32 %v12023_v54, %v11777_v43 }
 0x953   : > { %14405 = vst [vmem:[#allocation180_spill] sm:$0xff] %v12172_v32  ;;  %5029 = vperm.xlu1 %8288, %v11974_v26   ;;  %v5846_v7 = vsub.f32 %v12058_v47, %v14406_v38  ;;  %v5847_v26 = vsub.f32 %v12058_v47, %v14407_v8  ;;  %v12198_v14 = vmul.f32 %v5657_v61, %v5585_v63  ;;  %v5720_v38 = vsub.f32 1.0, %v5711_v13 }
 0x954   : > { %v5324_v63 = vsub.f32 %v11977_v27, %v11907_v34  ;;  %v6278_v13 = vsub.f32 %v11996_v5, %v14410_v25  ;;  %v5849_v61 = vsub.f32 %v12058_v47, %v11873_v40  ;;  %v5396_v34 = vsub.f32 %v12023_v54, %v12095_v22 }
 0x955   : > { %v12203_v3 = vand.u32 2147483647, %v5846_v7  ;;  %v5856_v50 = vand.u32 2147483647, %v5847_v26  ;;  %v12223_v7 = vmul.f32 %v5442_v2, %v5424_v36  ;;  %v12227_v8 = vmax.f32 %v5720_v38, 0.0 }
 0x956   : > { %v12192_v23 = vpop.permute.xlu0 %5393  ;;  %v12194_v39 = vpop.permute.xlu1 %5539  ;;  %v5928_v25 = vand.u32 2147483647, %v5919_v48  ;;  %v5993_v40 = vsub.f32 %v11996_v5, %v11937_v0  ;;  %v5991_v57 = vsub.f32 %v11996_v5, %v11674_v6  ;;  %v6206_v43 = vsub.f32 %v11983_v51, %v11688_v24 }
 0x957   : > { %14408 = vst [vmem:[#allocation182_spill] sm:$0xff] %v12192_v23  ;;  %14409 = vst [vmem:[#allocation150_spill] sm:$0xff] %v12194_v39  ;;  %8289 = vset.pattern.permute.xlu1 %v14243_v44  ;;  %v5333_v2 = vand.u32 2147483647, %v5324_v63  ;;  %v5577_v36 = vsub.f32 1.0, %v5568_v59  ;;  %v5865_v22 = vsub.f32 1.0, %v5856_v50  ;;  %v6135_v48 = vsub.f32 %v12058_v47, %v11948_v20 }
 0x958   : > { %6053 = vperm.xlu1 %8289, %v11720_v21   ;;  %v14412_v21 = vld [vmem:[#allocation276_spill] sm:$0xff]  ;;  %v12238_v38 = vand.u32 2147483647, %v6278_v13  ;;  %v5858_v17 = vand.u32 2147483647, %v5849_v61  ;;  %v6134_v0 = vsub.f32 %v12058_v47, %v11681_v60  ;;  %v5937_v63 = vsub.f32 1.0, %v5928_v25 }
 0x959   : > { %v5712_v30 = vand.u32 2147483647, %v5703_v29  ;;  %v5405_v16 = vand.u32 2147483647, %v5396_v34  ;;  %v6002_v59 = vand.u32 2147483647, %v5993_v40 }
 0x95a   : > { %v12217_v12 = vpop.permute.xlu1 %5543  ;;  %v6000_v13 = vand.u32 2147483647, %v5991_v57  ;;  %v6215_v61 = vand.u32 2147483647, %v6206_v43  ;;  %v5342_v20 = vsub.f32 1.0, %v5333_v2  ;;  %v5586_v32 = vmax.f32 %v5577_v36, 0.0 }
 0x95b   : > { %14411 = vst [vmem:[#allocation184_spill] sm:$0xff] %v12217_v12  ;;  %v5884_v4 = vpop.permute.xlu0 %5883  ;;  %v5874_v60 = vmax.f32 %v5865_v22, 0.0  ;;  %v5867_v29 = vsub.f32 1.0, %v5858_v17  ;;  %v6144_v34 = vand.u32 2147483647, %v6135_v48  ;;  %v5721_v12 = vsub.f32 1.0, %v5712_v30 }
 0x95c   : > { %8290 = vset.pattern.permute.xlu1 %v14287_v55  ;;  %v5918_v6 = vsub.f32 %v11983_v51, %v5884_v4  ;;  %v6143_v23 = vand.u32 2147483647, %v6134_v0  ;;  %v6011_v57 = vsub.f32 1.0, %v6002_v59  ;;  %v5946_v2 = vmax.f32 %v5937_v63, 0.0  ;;  %v14415_v0 = vld [vmem:[#allocation96_spill] sm:$0xff] }
 0x95d   : > { %6259 = vperm.xlu1 %8290, %v12079_v15   ;;  %v6207_v15 = vsub.f32 %v11983_v51, %v11696_v46  ;;  %v5351_v36 = vmax.f32 %v5342_v20, 0.0  ;;  %v5739_v17 = vmul.f32 %v12201_v52, %v5586_v32  ;;  %v6224_v30 = vsub.f32 1.0, %v6215_v61 }
 0x95e   : > { %v5927_v25 = vand.u32 2147483647, %v5918_v6  ;;  %v6153_v22 = vsub.f32 1.0, %v6144_v34  ;;  %v6152_v6 = vsub.f32 1.0, %v6143_v23  ;;  %v6296_v61 = vsub.f32 1.0, %v12238_v38 }
 0x95f   : > { %v5896_v26 = vpop.permute.xlu0 %5895  ;;  %v12245_v24 = vpop.permute.xlu1 %5615  ;;  %v6216_v46 = vand.u32 2147483647, %v6207_v15  ;;  %v5730_v15 = vmax.f32 %v5721_v12, 0.0  ;;  %v5441_v32 = vmul.f32 %v5351_v36, %v12196_v11  ;;  %v14417_v34 = vmov 0.0  }
 0x960   : > { %14413 = vst [vmem:[#allocation186_spill] sm:$0xff] %v12245_v24  ;;  %v5921_v50 = vsub.f32 %v11983_v51, %v5896_v26  ;;  %v5414_v24 = vsub.f32 1.0, %v5405_v16  ;;  %v6279_v26 = vsub.f32 %v11996_v5, %v11718_v41  ;;  %v5876_v16 = vmax.f32 %v5867_v29, 0.0 }
 0x961   : > { %6263 = vperm.xlu1 %8290, %v11918_v56   ;;  %v6009_v56 = vsub.f32 1.0, %v6000_v13  ;;  %v5936_v59 = vsub.f32 1.0, %v5927_v25  ;;  %v6233_v29 = vmax.f32 %v6224_v30, 0.0  ;;  %v6162_v23 = vmax.f32 %v6153_v22, 0.0 }
 0x962   : > { %v5930_v4 = vand.u32 2147483647, %v5921_v50  ;;  %v5423_v41 = vmax.f32 %v5414_v24, 0.0  ;;  %v6225_v50 = vsub.f32 1.0, %v6216_v46  ;;  %v14416_v24 = vmov 30  }
 0x963   : > { %v12251_v39 = vpop.permute.xlu0 %5915  ;;  %v6018_v55 = vmax.f32 %v6009_v56, 0.0  ;;  %v6027_v46 = vmul.f32 %v5946_v2, %v5874_v60  ;;  %v6161_v11 = vmax.f32 %v6152_v6, 0.0 }
 0x964   : > { %14414 = vst [vmem:[#allocation154_spill] sm:$0xff] %v12251_v39  ;;  %v5939_v40 = vsub.f32 1.0, %v5930_v4  ;;  %v12255_v43 = vpop.permute.xlu1 %6333  ;;  %v6288_v4 = vand.u32 2147483647, %v6279_v26  ;;  %v6020_v39 = vmax.f32 %v6011_v57, 0.0  ;;  %v5450_v25 = vmul.f32 %v5441_v32, %v5423_v41  ;;  %v14424_v32 = vld [vmem:[#allocation77_spill] sm:$0xff] }
 0x965   : > { %8292 = vset.pattern.permute.xlu1 %v14296_v33  ;;  %v5748_v33 = vmul.f32 %v5739_v17, %v5730_v15  ;;  %v5945_v26 = vmax.f32 %v5936_v59, 0.0  ;;  %v6036_v60 = vmul.f32 %v6027_v46, %v6018_v55  ;;  %v5747_v15 = vmul.f32 %v12198_v14, %v12227_v8  ;;  %v14421_v59 = vld [vmem:[#allocation153_spill] sm:$0xff]  ;;  %v14426_v14 = vld [vmem:[#allocation164_spill] sm:$0xff] }
 0x966   : > { %v5948_v48 = vmax.f32 %v5939_v40, 0.0  ;;  %4519 = vperm.xlu1 %8292, %v14415_v0   ;;  %v6234_v40 = vmax.f32 %v6225_v50, 0.0  ;;  %v6297_v56 = vsub.f32 1.0, %v6288_v4  ;;  %v5504_v50 = vmul.f32 %v14421_v59, %v5450_v25  ;;  %v14427_v8 = vld [vmem:[#allocation80_spill] sm:$0xff]  ;;  %v14435_v59 = vld [vmem:[#allocation21_spill] sm:$0xff] }
 0x968   : > { %v6029_v63 = vmul.f32 %v5948_v48, %v5876_v16  ;;  %v5956_v13 = vpop.permute.xlu0 %5955  ;;  %v6405_v20 = vpop.permute.xlu1 %6404  ;;  %v14419_v16 = vld [vmem:[#allocation126_spill] sm:$0xff]  ;;  %v6314_v48 = vmul.f32 %v6233_v29, %v6161_v11  ;;  %v6315_v41 = vmul.f32 %v6234_v40, %v6162_v23  ;;  %v4883_v29 = vsub.f32 %v11983_v51, %v14427_v8  ;;  %v14432_v11 = vld [vmem:[#allocation129_spill] sm:$0xff] }
 0x969   : > { %v5990_v52 = vsub.f32 %v11996_v5, %v5956_v13  ;;  %7701 = vmatpush3.bf16.msra.mxu1 %v6405_v20  ;;  %v5793_v22 = vmul.f32 %v14419_v16, %v5748_v33  ;;  %v6305_v13 = vmax.f32 %v6296_v61, 0.0  ;;  %v14423_v20 = vld [vmem:[#allocation78_spill] sm:$0xff]  ;;  %v4000_v33 = vsub.f32 %v11977_v27, %v14424_v32  ;;  %v14438_v32 = vld [vmem:[#allocation216_spill] sm:$0xff] }
 0x96a   : > { %v6038_v12 = vmul.f32 %v6029_v63, %v6020_v39  ;;  %8293 = vset.pattern.permute.xlu1 %v14416_v24  ;;  %7702 = vmatprep.subr.bf16.mxu1 %v14417_v34  ;;  %v14418_v39 = vsub.f32 1.0, %v12203_v3  ;;  %v14422_v3 = vmov 3   ;;  %v4522_v55 = vsub.f32 %v12058_v47, %v14423_v20  ;;  %v14441_v8 = vld [vmem:[#allocation134_spill] sm:$0xff] }
 0x96b   : > { %v5999_v57 = vand.u32 2147483647, %v5990_v52  ;;  %4591 = vperm.xlu1 %8293, %v14415_v0   ;;  %v14420_v0 = vld [vmem:[#allocation142_spill] sm:$0xff]  ;;  %v14430_v61 = vsub.f32 %v11983_v51, %v14412_v21  ;;  %v4072_v40 = vsub.f32 %v12023_v54, %v14432_v11  ;;  %v4003_v21 = vsub.f32 %v11977_v27, %v14435_v59 }
 0x96c   : > { %v12266_v36 = vpop.permute.xlu0 %5963  ;;  %v12268_v17 = vpop.permute.xlu1 %4449  ;;  %v12271_v38 = vmul.f32 %v12150_v58, %v6038_v12  ;;  %v5873_v30 = vmax.f32 %v14418_v39, 0.0  ;;  %v5505_v6 = vmul.f32 %v14420_v0, %v12223_v7  ;;  %v6081_v58 = vmul.f32 %v12130_v53, %v6036_v60  ;;  %v14428_v53 = vld [vmem:[#allocation151_spill] sm:$0xff]  ;;  %v14434_v0 = vld [vmem:[#allocation70_spill] sm:$0xff] }
 0x96d   : > { %v6008_v2 = vsub.f32 1.0, %v5999_v57  ;;  %v6306_v7 = vmax.f32 %v6297_v56, 0.0  ;;  %v5792_v23 = vmul.f32 %v14428_v53, %v5747_v15  ;;  %v4894_v46 = vand.u32 2147483647, %v14430_v61  ;;  %v14433_v60 = vld [vmem:[#allocation167_spill] sm:$0xff]  ;;  %v14442_v53 = vld [vmem:[#allocation81_spill] sm:$0xff] }
 0x96e   : > { %v6026_v4 = vmul.f32 %v5945_v26, %v5873_v30  ;;  %v5802_v12 = vadd.f32 %v5793_v22, %v5505_v6  ;;  %v14431_v26 = vld [vmem:[#allocation83_spill] sm:$0xff]  ;;  %v6323_v56 = vmul.f32 %v6314_v48, %v6305_v13  ;;  %v4531_v22 = vand.u32 2147483647, %v4522_v55 }
 0x96f   : > { %v6017_v63 = vmax.f32 %v6008_v2, 0.0  ;;  %8294 = vset.pattern.permute.xlu1 %v14422_v3  ;;  %v4810_v57 = vsub.f32 %v12058_v47, %v14431_v26  ;;  %v6324_v39 = vmul.f32 %v6315_v41, %v6306_v7  ;;  %v5801_v30 = vadd.f32 %v5792_v23, %v5504_v50 }
 0x970   : > { %v12287_v52 = vpop.permute.xlu0 %5975  ;;  %5244 = vperm.xlu1 %8294, %v14426_v14   ;;  %v6090_v16 = vadd.f32 %v6081_v58, %v5802_v12  ;;  %v4378_v6 = vsub.f32 %v12023_v54, %v14434_v0  ;;  %v4009_v15 = vand.u32 2147483647, %v4000_v33  ;;  %v4892_v20 = vand.u32 2147483647, %v4883_v29  ;;  %v12312_v58 = vld [vmem:[#allocation3 + $0x30] sm:$0xff] }
 0x971   : > { %14425 = vst [vmem:[#allocation47_spill] sm:$0xff] %v12287_v52  ;;  %v6035_v24 = vmul.f32 %v6026_v4, %v6017_v63  ;;  %v12293_v25 = vpop.permute.xlu1 %4655  ;;  %v14437_v63 = vmov 7   ;;  %v6369_v48 = vmul.f32 %v14438_v32, %v6324_v39  ;;  %v6368_v41 = vmul.f32 %v12255_v43, %v6323_v56  ;;  %v14445_v39 = vld [vmem:[#allocation82_spill] sm:$0xff] }
 0x972   : > { %14429 = vst [vmem:[#allocation189_spill] sm:$0xff] %v12293_v25  ;;  %v14440_v55 = vsub.f32 1.0, %v12179_v18  ;;  %v4903_v27 = vsub.f32 1.0, %v4894_v46  ;;  %v4081_v7 = vand.u32 2147483647, %v4072_v40  ;;  %v4075_v29 = vsub.f32 %v12023_v54, %v14441_v8 }
 0x973   : > { %v6080_v2 = vmul.f32 %v14433_v60, %v6035_v24  ;;  %v4524_v23 = vsub.f32 %v12058_v47, %v14442_v53  ;;  %v4819_v43 = vand.u32 2147483647, %v4810_v57  ;;  %v12325_v12 = vadd.f32 %v6369_v48, %v6090_v16  ;;  %v14450_v48 = vld [vmem:[#allocation34_spill] sm:$0xff] }
 0x974   : > { %v12307_v4 = vpop.permute.xlu0 %5987  ;;  %8295 = vset.pattern.permute.xlu1 %v14437_v63  ;;  %v12319_v33 = vmax.f32 %v14440_v55, 0.0  ;;  %v14444_v61 = vsub.f32 1.0, %v12185_v37  ;;  %v4540_v18 = vsub.f32 1.0, %v4531_v22  ;;  %v4018_v11 = vsub.f32 1.0, %v4009_v15 }
 0x975   : > { %14436 = vst [vmem:[#allocation157_spill] sm:$0xff] %v12307_v4  ;;  %v6089_v50 = vadd.f32 %v6080_v2, %v5801_v30  ;;  %5313 = vperm.xlu1 %8295, %v12312_v58   ;;  %v12315_v13 = vpop.permute.xlu1 %4659  ;;  %v4012_v56 = vand.u32 2147483647, %v4003_v21  ;;  %v4387_v46 = vand.u32 2147483647, %v4378_v6  ;;  %v4901_v40 = vsub.f32 1.0, %v4892_v20 }
 0x976   : > { %14439 = vst [vmem:[#allocation27_spill] sm:$0xff] %v12315_v13  ;;  %v12331_v26 = vmax.f32 %v14444_v61, 0.0  ;;  %v4884_v30 = vsub.f32 %v11983_v51, %v14445_v39  ;;  %v14446_v16 = vmov 15   ;;  %v12338_v2 = vmax.f32 %v4903_v27, 0.0  ;;  %v14448_v6 = vld [vmem:[#allocation22_spill] sm:$0xff]  ;;  %v14449_v20 = vld [vmem:[#allocation100_spill] sm:$0xff] }
 0x977   : > { %v12327_v24 = vadd.f32 %v6368_v41, %v6089_v50  ;;  %v4090_v0 = vsub.f32 1.0, %v4081_v7  ;;  %v4084_v37 = vand.u32 2147483647, %v4075_v29  ;;  %v4181_v15 = vmul.f32 %v14448_v6, %v12088_v9  ;;  %v14451_v6 = vld [vmem:[#allocation74_spill] sm:$0xff]  ;;  %v14455_v4 = vld [vmem:[#allocation169_spill] sm:$0xff] }
 0x978   : > { %v4533_v51 = vand.u32 2147483647, %v4524_v23  ;;  %v4828_v21 = vsub.f32 1.0, %v4819_v43  ;;  %v4957_v32 = vsub.f32 %v11996_v5, %v14449_v20  ;;  %v4469_v41 = vmul.f32 %v14450_v48, %v12108_v62  ;;  %v14521_v13 = vld [vmem:[#allocation149_spill] sm:$0xff] }
 0x979   : > { %14443 = vst [vmem:[#allocation28_spill] sm:$0xff] %v12327_v24  ;;  %v4200_v57 = vpop.permute.xlu0 %4199  ;;  %8296 = vset.pattern.permute.xlu1 %v14446_v16  ;;  %v4027_v50 = vmax.f32 %v4018_v11, 0.0  ;;  %v4021_v55 = vsub.f32 1.0, %v4012_v56  ;;  %v4549_v7 = vmax.f32 %v4540_v18, 0.0  ;;  %v4396_v8 = vsub.f32 1.0, %v4387_v46  ;;  %v14453_v18 = vld [vmem:[#allocation141_spill] sm:$0xff] }
 0x97a   : > { %v4234_v59 = vsub.f32 %v12002_v28, %v4200_v57  ;;  %5547 = vperm.xlu1 %8296, %v12312_v58   ;;  %v12342_v22 = vpop.permute.xlu1 %4803  ;;  %v4910_v29 = vmax.f32 %v4901_v40, 0.0  ;;  %v4893_v53 = vand.u32 2147483647, %v4884_v30  ;;  %v4099_v39 = vmax.f32 %v4090_v0, 0.0  ;;  %v14454_v0 = vld [vmem:[#allocation178_spill] sm:$0xff] }
 0x97b   : > { %14447 = vst [vmem:[#allocation155_spill] sm:$0xff] %v12342_v22  ;;  %v4093_v57 = vsub.f32 1.0, %v4084_v37  ;;  %v4542_v23 = vsub.f32 1.0, %v4533_v51  ;;  %v4837_v43 = vmax.f32 %v4828_v21, 0.0  ;;  %v4956_v62 = vsub.f32 %v11996_v5, %v14451_v6 }
 0x97c   : > { %v4243_v27 = vand.u32 2147483647, %v4234_v59  ;;  %v4966_v11 = vand.u32 2147483647, %v4957_v32  ;;  %v4117_v46 = vmul.f32 %v4027_v50, %v14453_v18  ;;  %v4030_v40 = vmax.f32 %v4021_v55, 0.0 }
 0x97d   : > { %v4212_v61 = vpop.permute.xlu0 %4211  ;;  %v4702_v37 = vmul.f32 %v14454_v0, %v4549_v7  ;;  %v4405_v20 = vmax.f32 %v4396_v8, 0.0  ;;  %v4991_v48 = vmul.f32 %v4910_v29, %v12144_v31  ;;  %v4102_v21 = vmax.f32 %v4093_v57, 0.0  ;;  %v14457_v7 = vld [vmem:[#allocation32_spill] sm:$0xff] }
 0x97e   : > { %v4252_v60 = vsub.f32 1.0, %v4243_v27  ;;  %v4237_v9 = vsub.f32 %v12002_v28, %v4212_v61  ;;  %5551 = vperm.xlu1 %8296, %v14426_v14   ;;  %v4902_v27 = vsub.f32 1.0, %v4893_v53  ;;  %v4126_v51 = vmul.f32 %v4117_v46, %v4099_v39  ;;  %v14458_v31 = vld [vmem:[#allocation136_spill] sm:$0xff] }
 0x97f   : > { %v12354_v56 = vpop.permute.xlu1 %4871  ;;  %v14456_v6 = vmov 19   ;;  %v4551_v52 = vmax.f32 %v4542_v23, 0.0  ;;  %v4965_v50 = vand.u32 2147483647, %v4956_v62  ;;  %v4975_v55 = vsub.f32 1.0, %v4966_v11 }
 0x980   : > { %14452 = vst [vmem:[#allocation159_spill] sm:$0xff] %v12354_v56  ;;  %v4261_v30 = vmax.f32 %v4252_v60, 0.0  ;;  %v4246_v59 = vand.u32 2147483647, %v4237_v9  ;;  %v4990_v60 = vmul.f32 %v12148_v35, %v4837_v43  ;;  %v4120_v8 = vmul.f32 %v4030_v40, %v14457_v7  ;;  %v14460_v9 = vld [vmem:[#allocation146_spill] sm:$0xff]  ;;  %v14463_v43 = vld [vmem:[#allocation13_spill] sm:$0xff] }
 0x981   : > { %v12359_v61 = vpop.permute.xlu0 %4219  ;;  %v4757_v29 = vmul.f32 %v14458_v31, %v12146_v10  ;;  %v4711_v18 = vmul.f32 %v4702_v37, %v14460_v9  ;;  %v5000_v23 = vmul.f32 %v4991_v48, %v12159_v1  ;;  %v4911_v62 = vmax.f32 %v4902_v27, 0.0  ;;  %v14466_v48 = vld [vmem:[#allocation152_spill] sm:$0xff]  ;;  %v14471_v31 = vld [vmem:[#allocation11_spill] sm:$0xff]  ;;  %v14520_v56 = vld [vmem:[#allocation113_spill] sm:$0xff] }
 0x982   : > { %v4414_v5 = vmul.f32 %v14455_v4, %v4261_v30  ;;  %v4255_v32 = vsub.f32 1.0, %v4246_v59  ;;  %8298 = vset.pattern.permute.xlu1 %v14456_v6  ;;  %v4478_v4 = vadd.f32 %v4469_v41, %v4181_v15  ;;  %v4129_v35 = vmul.f32 %v4120_v8, %v4102_v21  ;;  %v14464_v30 = vld [vmem:[#allocation137_spill] sm:$0xff]  ;;  %v14472_v9 = vld [vmem:[#allocation175_spill] sm:$0xff] }
 0x983   : > { %5623 = vperm.xlu1 %8298, %v14426_v14   ;;  %v14462_v14 = vld [vmem:[#allocation25_spill] sm:$0xff]  ;;  %v4704_v10 = vmul.f32 %v12183_v19, %v4551_v52  ;;  %v4974_v0 = vsub.f32 1.0, %v4965_v50  ;;  %v4999_v15 = vmul.f32 %v4990_v60, %v12154_v45  ;;  %v4992_v19 = vmul.f32 %v4911_v62, %v12319_v33  ;;  %v14469_v52 = vld [vmem:[#allocation16_spill] sm:$0xff]  ;;  %v14470_v60 = vld [vmem:[#allocation26_spill] sm:$0xff] }
 0x984   : > { %v4423_v53 = vmul.f32 %v4414_v5, %v4405_v20  ;;  %v4264_v39 = vmax.f32 %v4255_v32, 0.0  ;;  %v12368_v57 = vpop.permute.xlu1 %5377  ;;  %v4180_v46 = vmul.f32 %v14462_v14, %v4126_v51  ;;  %v4984_v20 = vmax.f32 %v4975_v55, 0.0  ;;  %v14465_v41 = vld [vmem:[#allocation253_spill] sm:$0xff]  ;;  %v8479_v5 = vld [vmem:[#allocation4 + $0x10] sm:$0xff] }
 0x985   : > { %14459 = vst [vmem:[#allocation163_spill] sm:$0xff] %v12368_v57  ;;  %v12372_v11 = vpop.permute.xlu0 %4227  ;;  %v4756_v1 = vmul.f32 %v14465_v41, %v4711_v18  ;;  %v4766_v37 = vadd.f32 %v4757_v29, %v4478_v4  ;;  %v14468_v32 = vsub.f32 1.0, %v12177_v49  ;;  %v5045_v50 = vmul.f32 %v14469_v52, %v5000_v23  ;;  %v14473_v18 = vld [vmem:[#allocation98_spill] sm:$0xff]  ;;  %v14474_v33 = vld [vmem:[#allocation145_spill] sm:$0xff] }
 0x986   : > { %14461 = vst [vmem:[#allocation17_spill] sm:$0xff] %v12372_v11  ;;  %v4468_v40 = vmul.f32 %v14463_v43, %v4423_v53  ;;  %v4417_v59 = vmul.f32 %v14464_v30, %v4264_v39  ;;  %v4993_v45 = vmul.f32 %v12338_v2, %v12331_v26  ;;  %v4183_v8 = vmul.f32 %v14470_v60, %v4129_v35  ;;  %v14476_v2 = vld [vmem:[#allocation40_spill] sm:$0xff]  ;;  %v14477_v35 = vld [vmem:[#allocation58_spill] sm:$0xff] }
 0x987   : > { %8299 = vset.pattern.permute.xlu1 %v14446_v16  ;;  %v4695_v7 = vmax.f32 %v14468_v32, 0.0  ;;  %v4983_v4 = vmax.f32 %v4974_v0, 0.0  ;;  %v4470_v14 = vmul.f32 %v14473_v18, %v14472_v9  ;;  %v5054_v43 = vadd.f32 %v5045_v50, %v4766_v37 }
 0x988   : > { %v4426_v27 = vmul.f32 %v4417_v59, %v14466_v48  ;;  %6341 = vperm.xlu1 %8299, %v8479_v5   ;;  %v12382_v51 = vpop.permute.xlu1 %5381  ;;  %v4477_v21 = vadd.f32 %v4468_v40, %v4180_v46  ;;  %v5002_v46 = vmul.f32 %v4993_v45, %v4984_v20  ;;  %v4759_v23 = vmul.f32 %v14474_v33, %v12190_v42  ;;  %v14475_v40 = vld [vmem:[#allocation79_spill] sm:$0xff]  ;;  %v14491_v33 = vld [vmem:[#allocation140_spill] sm:$0xff] }
 0x989   : > { %14467 = vst [vmem:[#allocation38_spill] sm:$0xff] %v12382_v51  ;;  %v5010_v55 = vpop.permute.xlu0 %5009  ;;  %v4713_v49 = vmul.f32 %v4704_v10, %v4695_v7  ;;  %v4182_v30 = vmul.f32 %v14477_v35, %v14476_v2  ;;  %v5001_v59 = vmul.f32 %v4992_v19, %v4983_v4  ;;  %v14479_v41 = vmov 6   ;;  %v14480_v10 = vld [vmem:[#allocation147_spill] sm:$0xff]  ;;  %v14488_v4 = vld [vmem:[#allocation121_spill] sm:$0xff] }
 0x98a   : > { %v4471_v29 = vmul.f32 %v14471_v31, %v4426_v27  ;;  %v4765_v53 = vadd.f32 %v4756_v1, %v4477_v21  ;;  %v5044_v39 = vmul.f32 %v5010_v55, %v4999_v15  ;;  %v14481_v27 = vld [vmem:[#allocation133_spill] sm:$0xff]  ;;  %v12406_v21 = vld [vmem:[#allocation4 + $0x30] sm:$0xff]  ;;  %v14483_v50 = vmov 34   ;;  %v12414_v55 = vld [vmem:[#allocation3 + $0x40] sm:$0xff] }
 0x98b   : > { %v4758_v20 = vmul.f32 %v14480_v10, %v4713_v49  ;;  %v4479_v42 = vadd.f32 %v4470_v14, %v4182_v30  ;;  %v5046_v5 = vmul.f32 %v14481_v27, %v5001_v59  ;;  %v14489_v14 = vld [vmem:[#allocation89_spill] sm:$0xff]  ;;  %v14496_v27 = vld [vmem:[#allocation224_spill] sm:$0xff] }
 0x98c   : > { %v5053_v62 = vadd.f32 %v5044_v39, %v4765_v53  ;;  %6400 = vrot.lane.b32.xlu1 %v14475_v40, %s8666_s21  ;;  %v4480_v26 = vadd.f32 %v4471_v29, %v4183_v8  ;;  %v14485_v8 = vmov 38   ;;  %v12428_v29 = vld [vmem:[#allocation7 + $0x1] ss:$0 sm:$0xff]  ;;  %v14487_v53 = vld [vmem:[#allocation118_spill] sm:$0xff]  ;;  %v5255_v49 = vsub.f32 %v12002_v28, %v14489_v14 }
 0x98d   : > { %v5022_v15 = vpop.permute.xlu0 %5021  ;;  %v12400_v0 = vpop.permute.xlu1 %5687  ;;  %8300 = vset.pattern.permute.xlu1 %v14479_v41  ;;  %v4767_v32 = vadd.f32 %v4758_v20, %v4479_v42  ;;  %v5633_v39 = vsub.f32 %v12428_v29, %v14487_v53  ;;  %v5327_v9 = vsub.f32 %v12428_v29, %v14488_v4  ;;  %v14500_v4 = vld [vmem:[#allocation239_spill] sm:$0xff] }
 0x98e   : > { %14478 = vst [vmem:[#allocation20_spill] sm:$0xff] %v12400_v0  ;;  %v5071_v1 = vpack.c.bf16 %v5054_v43, %v5053_v62  ;;  %v4768_v37 = vadd.f32 %v4759_v23, %v4480_v26  ;;  %v5047_v48 = vmul.f32 %v5022_v15, %v5002_v46  ;;  %v14490_v46 = vld [vmem:[#allocation94_spill] sm:$0xff]  ;;  %v5705_v23 = vsub.f32 %v12023_v54, %v14491_v33  ;;  %v14504_v0 = vld [vmem:[#allocation64_spill] sm:$0xff] }
 0x98f   : > { %v5055_v52 = vadd.f32 %v5046_v5, %v4767_v32  ;;  %v5561_v43 = vsub.f32 %v12002_v28, %v14490_v46  ;;  %v14492_v62 = vld [vmem:[#allocation42_spill] sm:$0xff]  ;;  %v5642_v2 = vand.u32 2147483647, %v5633_v39  ;;  %v5336_v35 = vand.u32 2147483647, %v5327_v9 }
 0x990   : > { %7677 = vmatmul.mubr.msk.bf16.vlgmr.msra.gmra.mxu0 %vm2435_vm7, %v5071_v1  ;;  %4457 = vperm.xlu1 %8300, %v12406_v21   ;;  %v5056_v7 = vadd.f32 %v5047_v48, %v4768_v37  ;;  %v5399_v40 = vsub.f32 %v12023_v54, %v14492_v62  ;;  %v12444_v26 = vld [vmem:[#allocation3 + $0x38] sm:$0xff]  ;;  %v5264_v30 = vand.u32 2147483647, %v5255_v49  ;;  %v5714_v10 = vand.u32 2147483647, %v5705_v23  ;;  %v14494_v1 = vld [vmem:[#allocation245_spill] sm:$0xff] }
 0x991   : > { %7680 = vmatprep.mubr.msk.bf16.mxu0 %vm8618_vm0, %v14417_v34  ;;  %v5570_v15 = vand.u32 2147483647, %v5561_v43  ;;  %v4311_v37 = vsub.f32 %v12428_v29, %v14494_v1  ;;  %v14495_v48 = vld [vmem:[#allocation285_spill] sm:$0xff]  ;;  %v3932_v5 = vsub.f32 %v12002_v28, %v14496_v27  ;;  %v14497_v32 = vmov 23   ;;  %v12461_v39 = vld [vmem:[#allocation7] ss:$0 sm:$0xff] }
 0x992   : > { %v12411_v19 = vpop.permute.xlu1 %5827  ;;  %v5072_v45 = vpack.c.bf16 %v5056_v7, %v5055_v52  ;;  %v5408_v20 = vand.u32 2147483647, %v5399_v40  ;;  %v3933_v42 = vsub.f32 %v12002_v28, %v14495_v48  ;;  %v5651_v7 = vsub.f32 1.0, %v5642_v2  ;;  %v14501_v40 = vld [vmem:[#allocation247_spill] sm:$0xff] }
 0x993   : > { %14482 = vst [vmem:[#allocation31_spill] sm:$0xff] %v12411_v19  ;;  %v5345_v52 = vsub.f32 1.0, %v5336_v35  ;;  %v4238_v9 = vsub.f32 %v12461_v39, %v14500_v4  ;;  %v5273_v14 = vsub.f32 1.0, %v5264_v30  ;;  %v5579_v49 = vsub.f32 1.0, %v5570_v15  ;;  %v14502_v35 = vld [vmem:[#allocation62_spill] sm:$0xff] }
 0x994   : > { %8302 = vset.pattern.permute.xlu1 %v14483_v50  ;;  %v14498_v50 = vld [vmem:[#allocation229_spill] sm:$0xff]  ;;  %v5723_v28 = vsub.f32 1.0, %v5714_v10  ;;  %v5417_v46 = vsub.f32 1.0, %v5408_v20  ;;  %v4320_v33 = vand.u32 2147483647, %v4311_v37  ;;  %v4310_v2 = vsub.f32 %v12428_v29, %v14501_v40 }
 0x995   : > { %4663 = vperm.xlu1 %8302, %v12414_v55   ;;  %v3942_v23 = vand.u32 2147483647, %v3933_v42  ;;  %v3941_v62 = vand.u32 2147483647, %v3932_v5  ;;  %v5660_v1 = vmax.f32 %v5651_v7, 0.0  ;;  %v5354_v48 = vmax.f32 %v5345_v52, 0.0 }
 0x996   : > { %v14503_v27 = vmov 27   ;;  %v4247_v15 = vand.u32 2147483647, %v4238_v9  ;;  %v5282_v10 = vmax.f32 %v5273_v14, 0.0  ;;  %v5588_v20 = vmax.f32 %v5579_v49, 0.0 }
 0x997   : > { %v12417_v60 = vpop.permute.xlu1 %5899  ;;  %v5732_v37 = vmax.f32 %v5723_v28, 0.0  ;;  %v5426_v42 = vmax.f32 %v5417_v46, 0.0  ;;  %v3951_v4 = vsub.f32 1.0, %v3942_v23  ;;  %v3950_v40 = vsub.f32 1.0, %v3941_v62 }
 0x998   : > { %14484 = vst [vmem:[#allocation191_spill] sm:$0xff] %v12417_v60  ;;  %7681 = vmatmul.mubr.msk.bf16.gmra.mxu0 %vm2435_vm7, %v5072_v45  ;;  %v4004_v45 = vsub.f32 %v12428_v29, %v14498_v50  ;;  %v4319_v19 = vand.u32 2147483647, %v4310_v2  ;;  %v5444_v7 = vmul.f32 %v5354_v48, %v5282_v10  ;;  %v14505_v9 = vmov 31   ;;  %v14507_v10 = vld [vmem:[#allocation104_spill] sm:$0xff] }
 0x999   : > { %8303 = vset.pattern.permute.xlu1 %v14485_v8  ;;  %7684 = vmatprep.mubr.msk.bf16.mxu0 %vm8618_vm0, %v14417_v34  ;;  %v14499_v8 = vld [vmem:[#allocation234_spill] sm:$0xff]  ;;  %v4256_v49 = vsub.f32 1.0, %v4247_v15  ;;  %v12481_v23 = vmax.f32 %v3951_v4, 0.0  ;;  %v3959_v62 = vmax.f32 %v3950_v40, 0.0 }
 0x99a   : > { %4807 = vperm.xlu1 %8303, %v12414_v55   ;;  %v4076_v53 = vsub.f32 %v12023_v54, %v14499_v8  ;;  %v4527_v54 = vsub.f32 %v12058_v47, %v14502_v35  ;;  %v4013_v50 = vand.u32 2147483647, %v4004_v45  ;;  %v4329_v8 = vsub.f32 1.0, %v4320_v33 }
 0x99b   : > { %v12424_v31 = vpop.permute.xlu1 %5903  ;;  %v5741_v35 = vmul.f32 %v5660_v1, %v5588_v20  ;;  %v4814_v45 = vsub.f32 %v12058_v47, %v14504_v0  ;;  %v5453_v28 = vmul.f32 %v5444_v7, %v5426_v42  ;;  %v4328_v2 = vsub.f32 1.0, %v4319_v19  ;;  %v12483_v47 = vld [vmem:[#allocation7 + $0x2] ss:$0 sm:$0xff]  ;;  %v14506_v0 = vld [vmem:[#allocation72_spill] sm:$0xff] }
 0x99c   : > { %14486 = vst [vmem:[#allocation161_spill] sm:$0xff] %v12424_v31  ;;  %v4085_v30 = vand.u32 2147483647, %v4076_v53  ;;  %v4536_v60 = vand.u32 2147483647, %v4527_v54  ;;  %v4022_v52 = vsub.f32 1.0, %v4013_v50  ;;  %v4239_v53 = vsub.f32 %v12461_v39, %v12359_v61 }
 0x99d   : > { %v5750_v46 = vmul.f32 %v5741_v35, %v5732_v37  ;;  %v12479_v33 = vmax.f32 %v4329_v8, 0.0  ;;  %v4382_v61 = vsub.f32 %v12483_v47, %v14506_v0  ;;  %v12487_v15 = vand.u32 2147483647, %v4814_v45  ;;  %v14508_v19 = vld [vmem:[#allocation15_spill] sm:$0xff] }
 0x99e   : > { %8305 = vset.pattern.permute.xlu1 %v14243_v44  ;;  %v4094_v14 = vsub.f32 1.0, %v4085_v30  ;;  %v4545_v1 = vsub.f32 1.0, %v4536_v60  ;;  %v4031_v30 = vmax.f32 %v4022_v52, 0.0  ;;  %v4005_v20 = vsub.f32 %v12428_v29, %v14507_v10  ;;  %v12496_v35 = vld [vmem:[#allocation7 + $0x4] ss:$0 sm:$0xff]  ;;  %v14514_v10 = vld [vmem:[#allocation101_spill] sm:$0xff] }
 0x99f   : > { %5385 = vperm.xlu1 %8305, %v12312_v58   ;;  %v4248_v37 = vand.u32 2147483647, %v4239_v53  ;;  %v4265_v8 = vmax.f32 %v4256_v49, 0.0  ;;  %v4383_v60 = vsub.f32 %v12483_v47, %v14508_v19  ;;  %v4337_v40 = vmax.f32 %v4328_v2, 0.0  ;;  %v14510_v52 = vld [vmem:[#allocation103_spill] sm:$0xff] }
 0x9a0   : > { %v12434_v18 = vpop.permute.xlu1 %4741  ;;  %v12491_v42 = vmax.f32 %v4094_v14, 0.0  ;;  %v4077_v45 = vsub.f32 %v12483_v47, %v14510_v52  ;;  %v12504_v14 = vmax.f32 %v4545_v1, 0.0  ;;  %v4391_v49 = vand.u32 2147483647, %v4382_v61  ;;  %v12518_v52 = vld [vmem:[#allocation7 + $0x3] ss:$0 sm:$0xff] }
 0x9a1   : > { %v4832_v0 = vsub.f32 1.0, %v12487_v15  ;;  %v4392_v1 = vand.u32 2147483647, %v4383_v60  ;;  %v14515_v61 = vld [vmem:[#allocation102_spill] sm:$0xff]  ;;  %v14518_v15 = vmov 10  }
 0x9a2   : > { %v4086_v57 = vand.u32 2147483647, %v4077_v45  ;;  %v4418_v45 = vmul.f32 %v4337_v40, %v4265_v8 }
 0x9a3   : > { %5389 = vperm.xlu1 %8305, %v12444_v26  }
 0x9a5   : > { %v12447_v59 = vpop.permute.xlu1 %4943 }
 0x9a6   : > { %14493 = vst [vmem:[#allocation209_spill] sm:$0xff] %v12447_v59 }
 0x9a7   : > { %8307 = vset.pattern.permute.xlu1 %v14497_v32 }
 0x9a8   : > { %5695 = vperm.xlu1 %8307, %v12444_v26  }
 0x9aa   : > { %v12465_v43 = vpop.permute.xlu1 %5471 }
 0x9ac   : > { %8308 = vset.pattern.permute.xlu1 %v14503_v27 }
 0x9ad   : > { %5835 = vperm.xlu1 %8308, %v12312_v58  }
 0x9ae   : > { %v5477_v5 = vpop.permute.xlu1 %5476 }
 0x9af   : > { %v5507_v48 = vmul.f32 %v5477_v5, %v5453_v28  ;;  %v14509_v5 = vld [vmem:[#allocation86_spill] sm:$0xff] }
 0x9b0   : > { %v4599_v7 = vsub.f32 %v12496_v35, %v14509_v5  ;;  %v14512_v28 = vld [vmem:[#allocation106_spill] sm:$0xff]  ;;  %v4257_v5 = vsub.f32 1.0, %v4248_v37 }
 0x9b1   : > { %8310 = vset.pattern.permute.xlu1 %v14505_v9  ;;  %v14511_v9 = vld [vmem:[#allocation131_spill] sm:$0xff]  ;;  %v14519_v37 = vld [vmem:[#allocation90_spill] sm:$0xff] }
 0x9b2   : > { %5907 = vperm.xlu1 %8310, %v12312_v58   ;;  %v4886_v53 = vsub.f32 %v12496_v35, %v14511_v9  ;;  %v4526_v9 = vsub.f32 %v12518_v52, %v14515_v61  ;;  %v4608_v51 = vand.u32 2147483647, %v4599_v7  ;;  %v4400_v61 = vsub.f32 1.0, %v4391_v49 }
 0x9b3   : > { %v5770_v54 = vpop.permute.xlu1 %5769 }
 0x9b4   : > { %v5795_v50 = vmul.f32 %v5770_v54, %v5750_v46  ;;  %v4598_v46 = vsub.f32 %v12496_v35, %v14512_v28  ;;  %v14516_v28 = vld [vmem:[#allocation127_spill] sm:$0xff]  ;;  %v4895_v31 = vand.u32 2147483647, %v4886_v53  ;;  %v4535_v53 = vand.u32 2147483647, %v4526_v9 }
 0x9b5   : > { %v4617_v27 = vsub.f32 1.0, %v4608_v51 }
 0x9b6   : > { %v5804_v4 = vadd.f32 %v5795_v50, %v5507_v48  ;;  %5911 = vperm.xlu1 %8310, %v12444_v26   ;;  %v4014_v48 = vand.u32 2147483647, %v4005_v20  ;;  %v12514_v50 = vld [vmem:[#allocation7 + $0x5] ss:$0 sm:$0xff]  ;;  %v4121_v20 = vmul.f32 %v4031_v30, %v3959_v62  ;;  %v4607_v59 = vand.u32 2147483647, %v4598_v46 }
 0x9b7   : > { %v4671_v19 = vsub.f32 %v12514_v50, %v14514_v10  ;;  %v12527_v10 = vld [vmem:[#allocation4 + $0x38] sm:$0xff]  ;;  %v4958_v60 = vsub.f32 %v12514_v50, %v14519_v37  ;;  %v4959_v62 = vsub.f32 %v12514_v50, %v14521_v13  ;;  %v4266_v30 = vmax.f32 %v4257_v5, 0.0 }
 0x9b8   : > { %v12509_v54 = vadd.f32 %v12271_v38, %v5804_v4  ;;  %v12511_v2 = vpop.permute.xlu1 %5971  ;;  %v4670_v38 = vsub.f32 %v12514_v50, %v14516_v28  ;;  %v14517_v4 = vld [vmem:[#allocation105_spill] sm:$0xff]  ;;  %v4887_v28 = vsub.f32 %v12496_v35, %v14520_v56  ;;  %v4023_v22 = vsub.f32 1.0, %v4014_v48 }
 0x9b9   : > { %14513 = vst [vmem:[#allocation165_spill] sm:$0xff] %v12511_v2  ;;  %v4815_v2 = vsub.f32 %v12518_v52, %v14517_v4  ;;  %v4680_v4 = vand.u32 2147483647, %v4671_v19  ;;  %v4095_v37 = vsub.f32 1.0, %v4086_v57  ;;  %v4904_v49 = vsub.f32 1.0, %v4895_v31 }
 0x9ba   : > { %8312 = vset.pattern.permute.xlu1 %v14518_v15  ;;  %v4679_v25 = vand.u32 2147483647, %v4670_v38  ;;  %v4401_v15 = vsub.f32 1.0, %v4392_v1  ;;  %v14522_v46 = vmov 46   ;;  %v4967_v32 = vand.u32 2147483647, %v4958_v60 }
 0x9bb   : > { %4749 = vperm.xlu1 %8312, %v12527_v10   ;;  %v4824_v11 = vand.u32 2147483647, %v4815_v2  ;;  %v4409_v56 = vmax.f32 %v4400_v61, 0.0  ;;  %v4616_v48 = vsub.f32 1.0, %v4607_v59  ;;  %v4896_v19 = vand.u32 2147483647, %v4887_v28 }
 0x9bc   : > { %v4032_v13 = vmax.f32 %v4023_v22, 0.0  ;;  %v4689_v5 = vsub.f32 1.0, %v4680_v4  ;;  %v4968_v24 = vand.u32 2147483647, %v4959_v62  ;;  %v4419_v8 = vmul.f32 %v12479_v33, %v4266_v30  ;;  %v12545_v30 = vld [vmem:[#allocation4 + $0x28] sm:$0xff] }
 0x9bd   : > { %v12536_v7 = vpop.permute.xlu1 %6115  ;;  %v4841_v2 = vmax.f32 %v4832_v0, 0.0  ;;  %v4544_v1 = vsub.f32 1.0, %v4535_v53  ;;  %v4688_v51 = vsub.f32 1.0, %v4679_v25  ;;  %v4833_v57 = vsub.f32 1.0, %v4824_v11 }
 0x9be   : > { %v4410_v31 = vmax.f32 %v4401_v15, 0.0  ;;  %v4626_v9 = vmax.f32 %v4617_v27, 0.0  ;;  %v4104_v38 = vmax.f32 %v4095_v37, 0.0  ;;  %v4913_v60 = vmax.f32 %v4904_v49, 0.0  ;;  %v14523_v37 = vld [vmem:[#allocation67_spill] sm:$0xff] }
 0x9bf   : > { %8313 = vset.pattern.permute.xlu1 %v14522_v46  ;;  %v4976_v61 = vsub.f32 1.0, %v4967_v32  ;;  %v4625_v59 = vmax.f32 %v4616_v48, 0.0  ;;  %v4905_v28 = vsub.f32 1.0, %v4896_v19  ;;  %v4427_v46 = vmul.f32 %v4418_v45, %v4409_v56 }
 0x9c0   : > { %4951 = vperm.xlu1 %8313, %v12414_v55   ;;  %v4122_v22 = vmul.f32 %v4032_v13, %v12481_v23  ;;  %v4698_v4 = vmax.f32 %v4689_v5, 0.0  ;;  %v4977_v33 = vsub.f32 1.0, %v4968_v24  ;;  %v4428_v62 = vmul.f32 %v4419_v8, %v4410_v31  ;;  %v14524_v13 = vld [vmem:[#allocation19_spill] sm:$0xff] }
 0x9c1   : > { %v12541_v40 = vpop.permute.xlu1 %6119  ;;  %v4130_v25 = vmul.f32 %v4121_v20, %v12491_v42  ;;  %v4553_v11 = vmax.f32 %v4544_v1, 0.0  ;;  %v4697_v27 = vmax.f32 %v4688_v51, 0.0  ;;  %v4842_v0 = vmax.f32 %v4833_v57, 0.0  ;;  %v5026_v1 = vpop.permute.xlu0 %5025  ;;  %v12556_v51 = vld [vmem:[#allocation4 + $0x20] sm:$0xff] }
 0x9c2   : > { %v4707_v15 = vmul.f32 %v4626_v9, %v12504_v14  ;;  %v4131_v45 = vmul.f32 %v4122_v22, %v4104_v38  ;;  %v4472_v53 = vmul.f32 %v12268_v17, %v4427_v46  ;;  %v4994_v23 = vmul.f32 %v4913_v60, %v4841_v2  ;;  %v14525_v14 = vld [vmem:[#allocation60_spill] sm:$0xff]  ;;  %v14526_v38 = vld [vmem:[#allocation138_spill] sm:$0xff] }
 0x9c3   : > { %v4184_v24 = vmul.f32 %v14523_v37, %v4130_v25  ;;  %v4706_v49 = vmul.f32 %v4625_v59, %v4553_v11  ;;  %v4914_v56 = vmax.f32 %v4905_v28, 0.0  ;;  %v4985_v48 = vmax.f32 %v4976_v61, 0.0 }
 0x9c4   : > { %8315 = vset.pattern.permute.xlu1 %v14422_v3  ;;  %v4986_v19 = vmax.f32 %v4977_v33, 0.0  ;;  %v4473_v5 = vmul.f32 %v14524_v13, %v4428_v62  ;;  %v4716_v42 = vmul.f32 %v4707_v15, %v4698_v4  ;;  %v4185_v2 = vmul.f32 %v14525_v14, %v4131_v45 }
 0x9c5   : > { %5486 = vperm.xlu1 %8315, %v12545_v30   ;;  %v4995_v20 = vmul.f32 %v4914_v56, %v4842_v0  ;;  %v4715_v8 = vmul.f32 %v4706_v49, %v4697_v27  ;;  %v4481_v57 = vadd.f32 %v4472_v53, %v4184_v24  ;;  %v5003_v31 = vmul.f32 %v4994_v23, %v4985_v48  ;;  %v14531_v49 = vld [vmem:[#allocation112_spill] sm:$0xff] }
 0x9c6   : > { %v12549_v32 = vpop.permute.xlu1 %6191  ;;  %v4761_v9 = vmul.f32 %v12434_v18, %v4716_v42  ;;  %v4482_v59 = vadd.f32 %v4473_v5, %v4185_v2  ;;  %v14527_v46 = vmov 35   ;;  %v14528_v0 = vmov 39   ;;  %v14532_v56 = vld [vmem:[#allocation108_spill] sm:$0xff]  ;;  %v14534_v5 = vld [vmem:[#allocation115_spill] sm:$0xff] }
 0x9c7   : > { %v4760_v60 = vmul.f32 %v14526_v38, %v4715_v8  ;;  %v5048_v61 = vmul.f32 %v5026_v1, %v5003_v31  ;;  %v5004_v28 = vmul.f32 %v4995_v20, %v4986_v19  ;;  %v14529_v45 = vmov 43   ;;  %v14533_v19 = vld [vmem:[#allocation277_spill] sm:$0xff]  ;;  %v14538_v2 = vld [vmem:[#allocation92_spill] sm:$0xff] }
 0x9c8   : > { %v4770_v33 = vadd.f32 %v4761_v9, %v4482_v59  ;;  %v14530_v23 = vmov 14   ;;  %v5326_v48 = vsub.f32 %v12428_v29, %v14532_v56  ;;  %v5632_v13 = vsub.f32 %v12428_v29, %v14533_v19  ;;  %v14539_v9 = vld [vmem:[#allocation123_spill] sm:$0xff]  ;;  %v14546_v56 = vld [vmem:[#allocation160_spill] sm:$0xff] }
 0x9c9   : > { %8316 = vset.pattern.permute.xlu1 %v14437_v63  ;;  %v4769_v4 = vadd.f32 %v4760_v60, %v4481_v57  ;;  %v5560_v42 = vsub.f32 %v12461_v39, %v14534_v5  ;;  %v5704_v57 = vsub.f32 %v12483_v47, %v14538_v2  ;;  %v5848_v38 = vsub.f32 %v12518_v52, %v14539_v9  ;;  %v14540_v60 = vld [vmem:[#allocation132_spill] sm:$0xff]  ;;  %v14547_v5 = vld [vmem:[#allocation215_spill] sm:$0xff] }
 0x9ca   : > { %5773 = vperm.xlu1 %8316, %v12556_v51   ;;  %v6403_v17 = vpop.permute.xlu1 %6402  ;;  %v5335_v1 = vand.u32 2147483647, %v5326_v48  ;;  %v5641_v31 = vand.u32 2147483647, %v5632_v13  ;;  %v5992_v59 = vsub.f32 %v12514_v50, %v12266_v36  ;;  %v6136_v48 = vsub.f32 %v12518_v52, %v14546_v56 }
 0x9cb   : > { %7703 = vmatpush3.bf16.msra.mxu1 %v6403_v17  ;;  %v5057_v25 = vadd.f32 %v5048_v61, %v4769_v4  ;;  %v14537_v17 = vld [vmem:[#allocation109_spill] sm:$0xff]  ;;  %v6209_v61 = vsub.f32 %v12496_v35, %v14540_v60  ;;  %v14542_v4 = vld [vmem:[#allocation130_spill] sm:$0xff]  ;;  %v5857_v19 = vand.u32 2147483647, %v5848_v38 }
 0x9cc   : > { %7704 = vmatprep.subr.bf16.mxu1 %v14417_v34  ;;  %v5398_v14 = vsub.f32 %v12483_v47, %v14537_v17 }
 0x9cd   : > { %v6218_v13 = vand.u32 2147483647, %v6209_v61  ;;  %v5866_v61 = vsub.f32 1.0, %v5857_v19 }
 0x9ce   : > { %8318 = vset.pattern.permute.xlu1 %v14527_v46  ;;  %v5030_v22 = vpop.permute.xlu1 %5029  ;;  %v5407_v36 = vand.u32 2147483647, %v5398_v14 }
 0x9cf   : > { %v5049_v62 = vmul.f32 %v5030_v22, %v5004_v28  ;;  %5979 = vperm.xlu1 %8318, %v12312_v58   ;;  %v14541_v22 = vmov 47   ;;  %v5875_v56 = vmax.f32 %v5866_v61, 0.0 }
 0x9d0   : > { %v5416_v14 = vsub.f32 1.0, %v5407_v36 }
 0x9d1   : > { %v5058_v11 = vadd.f32 %v5049_v62, %v4770_v33  ;;  %v6208_v33 = vsub.f32 %v12496_v35, %v14542_v4  ;;  %v14543_v62 = vld [vmem:[#allocation162_spill] sm:$0xff]  ;;  %v6227_v4 = vsub.f32 1.0, %v6218_v13 }
 0x9d3   : > { %v5073_v27 = vpack.c.bf16 %v5058_v11, %v5057_v25  ;;  %5983 = vperm.xlu1 %8318, %v12444_v26   ;;  %v12566_v18 = vpop.permute.xlu1 %6053  ;;  %v6137_v25 = vsub.f32 %v12518_v52, %v14543_v62  ;;  %v14544_v11 = vld [vmem:[#allocation171_spill] sm:$0xff]  ;;  %v6217_v9 = vand.u32 2147483647, %v6208_v33 }
 0x9d5   : > { %7685 = vmatmul.mubr.msk.bf16.gmra.mxu0 %vm2435_vm7, %v5073_v27  ;;  %v6281_v27 = vsub.f32 %v12514_v50, %v14544_v11  ;;  %v6226_v33 = vsub.f32 1.0, %v6217_v9 }
 0x9d6   : > { %7688 = vmatprep.mubr.msk.bf16.mxu0 %vm8618_vm0, %v14417_v34 }
 0x9d7   : > { %8320 = vset.pattern.permute.xlu1 %v14528_v0  ;;  %v6290_v60 = vand.u32 2147483647, %v6281_v27  ;;  %v5425_v27 = vmax.f32 %v5416_v14, 0.0 }
 0x9d8   : > { %6127 = vperm.xlu1 %8320, %v12444_v26   ;;  %v12573_v15 = vpop.permute.xlu1 %6259  ;;  %v5254_v26 = vsub.f32 %v12461_v39, %v14531_v49  ;;  %v5344_v49 = vsub.f32 1.0, %v5335_v1 }
 0x9da   : > { %v5263_v20 = vand.u32 2147483647, %v5254_v26  ;;  %v5713_v26 = vand.u32 2147483647, %v5704_v57  ;;  %v5353_v1 = vmax.f32 %v5344_v49, 0.0 }
 0x9dc   : > { %8321 = vset.pattern.permute.xlu1 %v14529_v45  ;;  %v12576_v53 = vpop.permute.xlu1 %6263  ;;  %v5272_v28 = vsub.f32 1.0, %v5263_v20  ;;  %v6001_v20 = vand.u32 2147483647, %v5992_v59  ;;  %v5722_v57 = vsub.f32 1.0, %v5713_v26 }
 0x9dd   : > { %6195 = vperm.xlu1 %8321, %v12312_v58  }
 0x9de   : > { %v5281_v17 = vmax.f32 %v5272_v28, 0.0  ;;  %v5731_v49 = vmax.f32 %v5722_v57, 0.0 }
 0x9e0   : > { %v5443_v28 = vmul.f32 %v5353_v1, %v5281_v17 }
 0x9e1   : > { %8323 = vset.pattern.permute.xlu1 %v14530_v23  ;;  %v12580_v37 = vpop.permute.xlu1 %4519 }
 0x9e2   : > { %5033 = vperm.xlu1 %8323, %v12406_v21   ;;  %v14535_v21 = vld [vmem:[#allocation114_spill] sm:$0xff] }
 0x9e6   : > { %5037 = vperm.xlu1 %8323, %v12527_v10   ;;  %v12584_v24 = vpop.permute.xlu1 %4591  ;;  %v5920_v10 = vsub.f32 %v12496_v35, %v14535_v21  ;;  %v5650_v21 = vsub.f32 1.0, %v5641_v31  ;;  %v6010_v31 = vsub.f32 1.0, %v6001_v20 }
 0x9e8   : > { %v5929_v46 = vand.u32 2147483647, %v5920_v10  ;;  %v5659_v11 = vmax.f32 %v5650_v21, 0.0  ;;  %v6019_v13 = vmax.f32 %v6010_v31, 0.0 }
 0x9ea   : > { %8324 = vset.pattern.permute.xlu1 %v14243_v44  ;;  %v5938_v2 = vsub.f32 1.0, %v5929_v46 }
 0x9eb   : > { %6065 = vperm.xlu1 %8324, %v12545_v30   ;;  %v12598_v8 = vpop.permute.xlu1 %5244  ;;  %v5569_v30 = vand.u32 2147483647, %v5560_v42  ;;  %v6280_v42 = vsub.f32 %v12514_v50, %v14547_v5 }
 0x9ec   : > { %14536 = vst [vmem:[#allocation18_spill] sm:$0xff] %v12598_v8  ;;  %v5947_v46 = vmax.f32 %v5938_v2, 0.0 }
 0x9ed   : > { %v5578_v10 = vsub.f32 1.0, %v5569_v30  ;;  %v6289_v59 = vand.u32 2147483647, %v6280_v42  ;;  %v5452_v42 = vmul.f32 %v5443_v28, %v5425_v27 }
 0x9ee   : > { %v6028_v20 = vmul.f32 %v5947_v46, %v5875_v56 }
 0x9ef   : > { %8325 = vset.pattern.permute.xlu1 %v14541_v22  ;;  %v6145_v22 = vand.u32 2147483647, %v6136_v48  ;;  %v5587_v30 = vmax.f32 %v5578_v10, 0.0  ;;  %v6236_v48 = vmax.f32 %v6227_v4, 0.0  ;;  %v6298_v19 = vsub.f32 1.0, %v6289_v59 }
 0x9f0   : > { %6267 = vperm.xlu1 %8325, %v12312_v58   ;;  %v12618_v23 = vpop.permute.xlu1 %5313  ;;  %v6146_v58 = vand.u32 2147483647, %v6137_v25  ;;  %v6299_v25 = vsub.f32 1.0, %v6290_v60  ;;  %v6235_v10 = vmax.f32 %v6226_v33, 0.0  ;;  %v5506_v1 = vmul.f32 %v12465_v43, %v5452_v42  ;;  %v14552_v33 = vld [vmem:[#allocation139_spill] sm:$0xff] }
 0x9f1   : > { %14545 = vst [vmem:[#allocation45_spill] sm:$0xff] %v12618_v23  ;;  %v6154_v36 = vsub.f32 1.0, %v6145_v22  ;;  %v5740_v5 = vmul.f32 %v5659_v11, %v5587_v30  ;;  %v6307_v60 = vmax.f32 %v6298_v19, 0.0  ;;  %v6037_v14 = vmul.f32 %v6028_v20, %v6019_v13  ;;  %v14551_v22 = vld [vmem:[#allocation156_spill] sm:$0xff] }
 0x9f2   : > { %v6155_v62 = vsub.f32 1.0, %v6146_v58  ;;  %v6308_v2 = vmax.f32 %v6299_v25, 0.0  ;;  %v14558_v19 = vmov 10  }
 0x9f3   : > { %v5749_v21 = vmul.f32 %v5740_v5, %v5731_v49  ;;  %v6163_v9 = vmax.f32 %v6154_v36, 0.0  ;;  %v6082_v31 = vmul.f32 %v12566_v18, %v6037_v14  ;;  %v8492_v18 = vld [vmem:[#allocation4 + $0x40] sm:$0xff]  ;;  %v5438_v5 = vld [vmem:[#allocation4 + $0x30] sm:$0xff] }
 0x9f4   : > { %8326 = vset.pattern.permute.xlu1 %v14422_v3  ;;  %v6164_v17 = vmax.f32 %v6155_v62, 0.0  ;;  %v14553_v36 = vld [vmem:[#allocation28_spill] sm:$0xff] }
 0x9f5   : > { %5249 = vperm.xlu1 %8326, %v12414_v55   ;;  %v12626_v38 = vpop.permute.xlu1 %5547  ;;  %v5794_v61 = vmul.f32 %v14551_v22, %v5749_v21  ;;  %v6316_v4 = vmul.f32 %v6235_v10, %v6163_v9  ;;  %v14554_v56 = vpack.c.bf16 %v12325_v12, %v14553_v36  ;;  %v8493_v10 = vld [vmem:[#allocation4 + $0x38] sm:$0xff]  ;;  %v14565_v9 = vld [vmem:[#allocation225_spill] sm:$0xff]  ;;  %v14568_v22 = vld [vmem:[#allocation248_spill] sm:$0xff] }
 0x9f6   : > { %14548 = vst [vmem:[#allocation217_spill] sm:$0xff] %v12626_v38  ;;  %v6317_v58 = vmul.f32 %v6236_v48, %v6164_v17  ;;  %v14573_v36 = vld [vmem:[#allocation66_spill] sm:$0xff] }
 0x9f7   : > { %v5803_v30 = vadd.f32 %v5794_v61, %v5506_v1  ;;  %v6325_v28 = vmul.f32 %v6316_v4, %v6307_v60  ;;  %v14567_v1 = vld [vmem:[#allocation235_spill] sm:$0xff]  ;;  %v4313_v61 = vsub.f32 %v12428_v29, %v14568_v22 }
 0x9f8   : > { %v6326_v59 = vmul.f32 %v6317_v58, %v6308_v2  ;;  %v3934_v58 = vsub.f32 %v12461_v39, %v14565_v9  ;;  %v4078_v14 = vsub.f32 %v12483_v47, %v14567_v1 }
 0x9f9   : > { %8327 = vset.pattern.permute.xlu1 %v14437_v63  ;;  %v12629_v26 = vpop.permute.xlu1 %5551  ;;  %v6091_v62 = vadd.f32 %v6082_v31, %v5803_v30  ;;  %v14570_v31 = vld [vmem:[#allocation249_spill] sm:$0xff] }
 0x9fa   : > { %14549 = vst [vmem:[#allocation212_spill] sm:$0xff] %v12629_v26  ;;  %5321 = vperm.xlu1 %8327, %v12414_v55   ;;  %v6371_v43 = vmul.f32 %v14552_v33, %v6326_v59  ;;  %v4087_v4 = vand.u32 2147483647, %v4078_v14  ;;  %v14569_v59 = vld [vmem:[#allocation240_spill] sm:$0xff]  ;;  %v4312_v30 = vsub.f32 %v12428_v29, %v14570_v31  ;;  %v4322_v33 = vand.u32 2147483647, %v4313_v61 }
 0x9fb   : > { %v14578_v14 = vld [vmem:[#allocation75_spill] sm:$0xff] }
 0x9fc   : > { %v4331_v22 = vsub.f32 1.0, %v4322_v33 }
 0x9fe   : > { %8328 = vset.pattern.permute.xlu1 %v14456_v6  ;;  %v12634_v57 = vpop.permute.xlu1 %5623  ;;  %v6380_v6 = vadd.f32 %v6371_v43, %v12509_v54  ;;  %v14555_v54 = vmov 23   ;;  %v14571_v43 = vld [vmem:[#allocation286_spill] sm:$0xff] }
 0x9ff   : > { %14550 = vst [vmem:[#allocation166_spill] sm:$0xff] %v12634_v57  ;;  %5627 = vperm.xlu1 %8328, %v12414_v55  }
 0xa03   : > { %8329 = vset.pattern.permute.xlu1 %v14446_v16  ;;  %v6342_v46 = vpop.permute.xlu1 %6341 }
 0xa04   : > { %v6370_v25 = vmul.f32 %v6342_v46, %v6325_v28  ;;  %6349 = vperm.xlu1 %8329, %v12556_v51   ;;  %v14557_v51 = vmov 27  }
 0xa06   : > { %v6379_v11 = vadd.f32 %v6370_v25, %v6091_v62  ;;  %v3935_v62 = vsub.f32 %v12461_v39, %v14571_v43 }
 0xa07   : > { %v6401_v27 = vpop.permute.xlu1 %6400 }
 0xa08   : > { %v6396_v49 = vpack.c.bf16 %v6380_v6, %v6379_v11  ;;  %8331 = vset.pattern.permute.xlu1 %v14479_v41  ;;  %7705 = vmatpush3.bf16.msra.mxu1 %v6401_v27  ;;  %v4096_v6 = vsub.f32 1.0, %v4087_v4  ;;  %v4321_v27 = vand.u32 2147483647, %v4312_v30  ;;  %v3944_v61 = vand.u32 2147483647, %v3935_v62  ;;  %v14579_v4 = vld [vmem:[#allocation107_spill] sm:$0xff] }
 0xa09   : > { %4465 = vperm.xlu1 %8331, %v8492_v18   ;;  %7761 = vmatprep.subr.mxu1 %v14417_v34 }
 0xa0a   : > { %v4330_v30 = vsub.f32 1.0, %v4321_v27 }
 0xa0b   : > { %7707 = vmatmul.mubr.msk.bf16.vlgmr.msra.gmra.mxu1 %vm2435_vm7, %v14554_v56  ;;  %v12649_v48 = vpop.permute.xlu1 %4457  ;;  %v4529_v56 = vsub.f32 %v12518_v52, %v14573_v36 }
 0xa0c   : > { %7710 = vmatprep.mubr.msk.bf16.mxu1 %vm8618_vm0, %v14417_v34 }
 0xa0d   : > { %8333 = vset.pattern.permute.xlu1 %v14555_v54  ;;  %v14574_v54 = vld [vmem:[#allocation87_spill] sm:$0xff] }
 0xa0e   : > { %5699 = vperm.xlu1 %8333, %v12414_v55  }
 0xa10   : > { %v12655_v41 = vpop.permute.xlu1 %4663 }
 0xa11   : > { %14556 = vst [vmem:[#allocation116_spill] sm:$0xff] %v12655_v41 }
 0xa12   : > { %8334 = vset.pattern.permute.xlu1 %v14557_v51  ;;  %v4816_v51 = vsub.f32 %v12518_v52, %v14574_v54  ;;  %v14580_v54 = vld [vmem:[#allocation84_spill] sm:$0xff] }
 0xa13   : > { %5843 = vperm.xlu1 %8334, %v12414_v55   ;;  %7711 = vmatmul.mubr.msk.bf16.gmra.mxu1 %vm2435_vm7, %v6396_v49  ;;  %v14572_v49 = vld [vmem:[#allocation12_spill] sm:$0xff] }
 0xa14   : > { %7714 = vmatprep.mubr.msk.bf16.mxu1 %vm8618_vm0, %v14417_v34 }
 0xa15   : > { %v12662_v12 = vpop.permute.xlu1 %4807 }
 0xa17   : > { %8336 = vset.pattern.permute.xlu1 %v14558_v19  ;;  %v14575_v19 = vld [vmem:[#allocation68_spill] sm:$0xff] }
 0xa18   : > { %4753 = vperm.xlu1 %8336, %v8492_v18   ;;  %v4007_v18 = vsub.f32 %v12428_v29, %v14572_v49  ;;  %v4825_v49 = vand.u32 2147483647, %v4816_v51 }
 0xa1a   : > { %v12665_v13 = vpop.permute.xlu1 %5385  ;;  %v4016_v43 = vand.u32 2147483647, %v4007_v18 }
 0xa1b   : > { %14559 = vst [vmem:[#allocation218_spill] sm:$0xff] %v12665_v13 }
 0xa1c   : > { %8337 = vset.pattern.permute.xlu1 %v14422_v3  ;;  %v14564_v3 = vld [vmem:[#allocation230_spill] sm:$0xff]  ;;  %v4025_v18 = vsub.f32 1.0, %v4016_v43  ;;  %v14585_v43 = vld [vmem:[#allocation231_spill] sm:$0xff] }
 0xa1d   : > { %5491 = vperm.xlu1 %8337, %v5438_v5   ;;  %v4006_v21 = vsub.f32 %v12428_v29, %v14564_v3  ;;  %v4961_v3 = vsub.f32 %v12514_v50, %v14575_v19  ;;  %v4889_v19 = vsub.f32 %v12496_v35, %v14580_v54 }
 0xa1e   : > { %v12668_v42 = vpop.permute.xlu1 %5389 }
 0xa1f   : > { %14560 = vst [vmem:[#allocation193_spill] sm:$0xff] %v12668_v42  ;;  %v4970_v36 = vand.u32 2147483647, %v4961_v3  ;;  %v4898_v3 = vand.u32 2147483647, %v4889_v19 }
 0xa21   : > { %8338 = vset.pattern.permute.xlu1 %v14437_v63  ;;  %v4979_v51 = vsub.f32 1.0, %v4970_v36  ;;  %v14586_v36 = vld [vmem:[#allocation59_spill] sm:$0xff] }
 0xa22   : > { %5781 = vperm.xlu1 %8338, %v5438_v5  }
 0xa23   : > { %v12671_v20 = vpop.permute.xlu1 %5695 }
 0xa24   : > { %14561 = vst [vmem:[#allocation195_spill] sm:$0xff] %v12671_v20 }
 0xa26   : > { %5785 = vperm.xlu1 %8338, %v8493_v10  }
 0xa28   : > { %v12673_v17 = vpop.permute.xlu1 %5835 }
 0xa29   : > { %14562 = vst [vmem:[#allocation197_spill] sm:$0xff] %v12673_v17 }
 0xa2a   : > { %8340 = vset.pattern.permute.xlu1 %v14528_v0  ;;  %v4015_v0 = vand.u32 2147483647, %v4006_v21 }
 0xa2b   : > { %6131 = vperm.xlu1 %8340, %v12414_v55  }
 0xa2c   : > { %v4024_v46 = vsub.f32 1.0, %v4015_v0  ;;  %v5634_v0 = vsub.f32 %v12428_v29, %v14578_v14  ;;  %v12721_v14 = vmax.f32 %v4331_v22, 0.0 }
 0xa2d   : > { %v12677_v2 = vpop.permute.xlu1 %5907 }
 0xa2e   : > { %14563 = vst [vmem:[#allocation200_spill] sm:$0xff] %v12677_v2  ;;  %v4033_v9 = vmax.f32 %v4024_v46, 0.0  ;;  %v4538_v46 = vand.u32 2147483647, %v4529_v56  ;;  %v5643_v62 = vand.u32 2147483647, %v5634_v0 }
 0xa2f   : > { %8341 = vset.pattern.permute.xlu1 %v14529_v45  ;;  %v3943_v45 = vand.u32 2147483647, %v3934_v58  ;;  %v14577_v58 = vld [vmem:[#allocation95_spill] sm:$0xff]  ;;  %v4834_v56 = vsub.f32 1.0, %v4825_v49  ;;  %v14582_v0 = vld [vmem:[#allocation17_spill] sm:$0xff]  ;;  %v5062_v2 = vld [vmem:[#allocation2] sm:$0xff] }
 0xa30   : > { %6203 = vperm.xlu1 %8341, %v12414_v55   ;;  %v4240_v55 = vsub.f32 %v12461_v39, %v14569_v59  ;;  %v4384_v1 = vsub.f32 %v12483_v47, %v14577_v58  ;;  %v4079_v59 = vsub.f32 %v12483_v47, %v14579_v4  ;;  %v3953_v4 = vsub.f32 1.0, %v3944_v61  ;;  %v14583_v61 = vld [vmem:[#allocation99_spill] sm:$0xff] }
 0xa31   : > { %v12685_v60 = vpop.permute.xlu1 %5911  ;;  %v3952_v25 = vsub.f32 1.0, %v3943_v45  ;;  %v5652_v54 = vsub.f32 1.0, %v5643_v62  ;;  %v4241_v22 = vsub.f32 %v12461_v39, %v14582_v0  ;;  %v12741_v62 = vmax.f32 %v4834_v56, 0.0 }
 0xa32   : > { %14566 = vst [vmem:[#allocation29_spill] sm:$0xff] %v12685_v60  ;;  %v4249_v11 = vand.u32 2147483647, %v4240_v55  ;;  %v4105_v55 = vmax.f32 %v4096_v6, 0.0  ;;  %v4393_v33 = vand.u32 2147483647, %v4384_v1 }
 0xa33   : > { %v3961_v45 = vmax.f32 %v3952_v25, 0.0  ;;  %v14590_v60 = vld [vmem:[#allocation143_spill] sm:$0xff] }
 0xa34   : > { %8343 = vset.pattern.permute.xlu1 %v14243_v44  ;;  %v4258_v31 = vsub.f32 1.0, %v4249_v11  ;;  %v4339_v11 = vmax.f32 %v4330_v30, 0.0  ;;  %v4402_v20 = vsub.f32 1.0, %v4393_v33 }
 0xa35   : > { %6069 = vperm.xlu1 %8343, %v5438_v5   ;;  %v4123_v58 = vmul.f32 %v4033_v9, %v3961_v45  ;;  %v14581_v9 = vld [vmem:[#allocation91_spill] sm:$0xff]  ;;  %v3962_v45 = vmax.f32 %v3953_v4, 0.0  ;;  %v12743_v4 = vmax.f32 %v4979_v51, 0.0 }
 0xa36   : > { %v12696_v28 = vpop.permute.xlu1 %4749  ;;  %v4267_v6 = vmax.f32 %v4258_v31, 0.0  ;;  %v5706_v1 = vsub.f32 %v12483_v47, %v14581_v9  ;;  %v8494_v9 = vld [vmem:[#allocation4 + $0x40] sm:$0xff]  ;;  %v4411_v0 = vmax.f32 %v4402_v20, 0.0  ;;  %v14589_v51 = vld [vmem:[#allocation39_spill] sm:$0xff]  ;;  %v4601_v20 = vsub.f32 %v12496_v35, %v14590_v60 }
 0xa37   : > { %v4132_v27 = vmul.f32 %v4123_v58, %v4105_v55  ;;  %v14584_v55 = vld [vmem:[#allocation117_spill] sm:$0xff]  ;;  %v4034_v58 = vmax.f32 %v4025_v18, 0.0  ;;  %v14596_v60 = vld [vmem:[#allocation159_spill] sm:$0xff] }
 0xa38   : > { %v4420_v49 = vmul.f32 %v4339_v11, %v4267_v6  ;;  %v4250_v6 = vand.u32 2147483647, %v4241_v22  ;;  %v14587_v18 = vld [vmem:[#allocation173_spill] sm:$0xff]  ;;  %v4888_v42 = vsub.f32 %v12496_v35, %v14596_v60  ;;  %v4610_v57 = vand.u32 2147483647, %v4601_v20 }
 0xa39   : > { %6073 = vperm.xlu1 %8343, %v8493_v10   ;;  %v12736_v19 = vmul.f32 %v14586_v36, %v4132_v27  ;;  %v14592_v22 = vld [vmem:[#allocation41_spill] sm:$0xff] }
 0xa3a   : > { %v4429_v60 = vmul.f32 %v4420_v49, %v4411_v0 }
 0xa3b   : > { %v12708_v21 = vpop.permute.xlu1 %4951 }
 0xa3c   : > { %14576 = vst [vmem:[#allocation24_spill] sm:$0xff] %v12708_v21 }
 0xa3d   : > { %8345 = vset.pattern.permute.xlu1 %v14446_v16  ;;  %v4088_v16 = vand.u32 2147483647, %v4079_v59  ;;  %v5851_v59 = vsub.f32 %v12518_v52, %v14583_v61  ;;  %v12745_v61 = vmax.f32 %v5652_v54, 0.0 }
 0xa3e   : > { %6357 = vperm.xlu1 %8345, %v5438_v5   ;;  %v4547_v5 = vsub.f32 1.0, %v4538_v46  ;;  %v14588_v46 = vld [vmem:[#allocation124_spill] sm:$0xff] }
 0xa3f   : > { %v4097_v31 = vsub.f32 1.0, %v4088_v16  ;;  %v4907_v16 = vsub.f32 1.0, %v4898_v3  ;;  %v5860_v11 = vand.u32 2147483647, %v5851_v59  ;;  %v5329_v56 = vsub.f32 %v12428_v29, %v14588_v46 }
 0xa40   : > { %v12719_v25 = vpop.permute.xlu1 %5486  ;;  %v12739_v33 = vmax.f32 %v4547_v5, 0.0  ;;  %v4124_v5 = vmul.f32 %v4034_v58, %v3962_v45  ;;  %v4385_v3 = vsub.f32 %v12483_v47, %v14589_v51  ;;  %v4528_v59 = vsub.f32 %v12518_v52, %v14592_v22  ;;  %v14594_v45 = vld [vmem:[#allocation27_spill] sm:$0xff] }
 0xa41   : > { %v4106_v27 = vmax.f32 %v4097_v31, 0.0  ;;  %v14593_v31 = vld [vmem:[#allocation189_spill] sm:$0xff]  ;;  %v4673_v58 = vsub.f32 %v12514_v50, %v14594_v45  ;;  %v5869_v26 = vsub.f32 1.0, %v5860_v11  ;;  %v12770_v13 = vand.u32 2147483647, %v5329_v56 }
 0xa42   : > { %6361 = vperm.xlu1 %8345, %v8493_v10   ;;  %v5256_v10 = vsub.f32 %v12461_v39, %v14584_v55  ;;  %v5715_v55 = vand.u32 2147483647, %v5706_v1  ;;  %v12757_v1 = vmax.f32 %v4907_v16, 0.0  ;;  %v4259_v16 = vsub.f32 1.0, %v4250_v6  ;;  %v14597_v45 = vld [vmem:[#allocation209_spill] sm:$0xff] }
 0xa43   : > { %v4682_v38 = vand.u32 2147483647, %v4673_v58  ;;  %v4897_v11 = vand.u32 2147483647, %v4888_v42  ;;  %v5347_v42 = vsub.f32 1.0, %v12770_v13 }
 0xa44   : > { %v5265_v36 = vand.u32 2147483647, %v5256_v10  ;;  %v4672_v10 = vsub.f32 %v12514_v50, %v14593_v31  ;;  %v5724_v46 = vsub.f32 1.0, %v5715_v55  ;;  %v4394_v31 = vand.u32 2147483647, %v4385_v3 }
 0xa45   : > { %v12731_v30 = vpop.permute.xlu1 %5773 }
 0xa46   : > { %8346 = vset.pattern.permute.xlu1 %v14437_v63  ;;  %v4600_v63 = vsub.f32 %v12496_v35, %v14587_v18  ;;  %v14595_v18 = vld [vmem:[#allocation155_spill] sm:$0xff]  ;;  %v5274_v22 = vsub.f32 1.0, %v5265_v36  ;;  %v4681_v23 = vand.u32 2147483647, %v4672_v10  ;;  %v12776_v6 = vmax.f32 %v5724_v46, 0.0 }
 0xa47   : > { %5789 = vperm.xlu1 %8346, %v8494_v9   ;;  %v4817_v51 = vsub.f32 %v12518_v52, %v14595_v18  ;;  %v4537_v18 = vand.u32 2147483647, %v4528_v59  ;;  %v4403_v59 = vsub.f32 1.0, %v4394_v31  ;;  %v4619_v10 = vsub.f32 1.0, %v4610_v57 }
 0xa48   : > { %v4609_v17 = vand.u32 2147483647, %v4600_v63  ;;  %v12778_v63 = vmax.f32 %v5869_v26, 0.0  ;;  %v12785_v0 = vmax.f32 %v5274_v22, 0.0 }
 0xa49   : > { %v4546_v46 = vsub.f32 1.0, %v4537_v18 }
 0xa4a   : > { %v12755_v54 = vpop.permute.xlu1 %5979  ;;  %v4618_v3 = vsub.f32 1.0, %v4609_v17 }
 0xa4b   : > { %14591 = vst [vmem:[#allocation52_spill] sm:$0xff] %v12755_v54  ;;  %8347 = vset.pattern.permute.xlu1 %v14243_v44  ;;  %v4133_v54 = vmul.f32 %v4124_v5, %v4106_v27  ;;  %v4960_v44 = vsub.f32 %v12514_v50, %v14597_v45  ;;  %v4268_v27 = vmax.f32 %v4259_v16, 0.0  ;;  %v14599_v5 = vld [vmem:[#allocation50_spill] sm:$0xff]  ;;  %v14600_v45 = vld [vmem:[#allocation135_spill] sm:$0xff] }
 0xa4c   : > { %6077 = vperm.xlu1 %8347, %v8494_v9   ;;  %v4826_v9 = vand.u32 2147483647, %v4817_v51  ;;  %v4690_v51 = vsub.f32 1.0, %v4681_v23  ;;  %v4627_v57 = vmax.f32 %v4618_v3, 0.0 }
 0xa4d   : > { %v12781_v56 = vmul.f32 %v14599_v5, %v4133_v54  ;;  %v4969_v58 = vand.u32 2147483647, %v4960_v44  ;;  %v4691_v54 = vsub.f32 1.0, %v4682_v38  ;;  %v4421_v16 = vmul.f32 %v12721_v14, %v4268_v27  ;;  %v14602_v44 = vld [vmem:[#allocation144_spill] sm:$0xff]  ;;  %v14603_v5 = vld [vmem:[#allocation150_spill] sm:$0xff] }
 0xa4e   : > { %v12774_v55 = vpop.permute.xlu1 %5983  ;;  %v4835_v17 = vsub.f32 1.0, %v4826_v9  ;;  %v5257_v22 = vsub.f32 %v12461_v39, %v14602_v44  ;;  %v5562_v13 = vsub.f32 %v12461_v39, %v14603_v5  ;;  %v14604_v38 = vld [vmem:[#allocation208_spill] sm:$0xff]  ;;  %v4699_v3 = vmax.f32 %v4690_v51, 0.0 }
 0xa4f   : > { %14598 = vst [vmem:[#allocation30_spill] sm:$0xff] %v12774_v55  ;;  %v6140_v55 = vsub.f32 %v12518_v52, %v14600_v45  ;;  %v4412_v45 = vmax.f32 %v4403_v59, 0.0  ;;  %v6210_v9 = vsub.f32 %v12496_v35, %v14604_v38  ;;  %v14605_v14 = vld [vmem:[#allocation148_spill] sm:$0xff]  ;;  %v4700_v44 = vmax.f32 %v4691_v54, 0.0 }
 0xa50   : > { %v5142_v36 = vpop.f32.mrf.mxu0  ;;  %v5328_v27 = vsub.f32 %v12428_v29, %v14605_v14  ;;  %v4844_v8 = vmax.f32 %v4835_v17, 0.0  ;;  %v4474_v51 = vmul.f32 %v12649_v48, %v4429_v60  ;;  %v14606_v17 = vld [vmem:[#allocation184_spill] sm:$0xff]  ;;  %v12811_v60 = vld [vmem:[#allocation7 + $0x1] ss:$0 sm:$0xff] }
 0xa51   : > { %v5180_v20 = vadd.f32 %v5142_v36, %v5062_v2  ;;  %v4906_v2 = vsub.f32 1.0, %v4897_v11  ;;  %v5063_v36 = vld [vmem:[#allocation2 + $0x8] sm:$0xff]  ;;  %v6149_v23 = vand.u32 2147483647, %v6140_v55  ;;  %v4555_v11 = vmax.f32 %v4546_v46, 0.0  ;;  %v5064_v55 = vld [vmem:[#allocation2 + $0x10] sm:$0xff] }
 0xa52   : > { %v7678_v49 = vpop.f32.mrf.mxu0  ;;  %v4430_v5 = vmul.f32 %v4421_v16, %v4412_v45  ;;  %v5337_v54 = vand.u32 2147483647, %v5328_v27  ;;  %v14607_v45 = vld [vmem:[#allocation23_spill] sm:$0xff] }
 0xa53   : > { %5189 = vst.msk [vmem:[#allocation2] sm:$0xff] %vm329_vm1, %v5180_v20  ;;  %v12789_v26 = vpop.permute.xlu1 %6127  ;;  %v4628_v20 = vmax.f32 %v4619_v10, 0.0  ;;  %v4978_v49 = vsub.f32 1.0, %v4969_v58  ;;  %v4915_v21 = vmax.f32 %v4906_v2, 0.0  ;;  %v4708_v10 = vmul.f32 %v4627_v57, %v4555_v11 }
 0xa54   : > { %14601 = vst [vmem:[#allocation37_spill] sm:$0xff] %v12789_v26  ;;  %v5145_v31 = vpop.f32.mrf.mxu0  ;;  %v5266_v58 = vand.u32 2147483647, %v5257_v22  ;;  %v6158_v38 = vsub.f32 1.0, %v6149_v23  ;;  %v5563_v2 = vsub.f32 %v12461_v39, %v14606_v17  ;;  %v4475_v57 = vmul.f32 %v14607_v45, %v4430_v5 }
 0xa55   : > { %v5181_v18 = vadd.f32 %v5145_v31, %v5063_v36  ;;  %v4709_v46 = vmul.f32 %v4628_v20, %v12739_v33  ;;  %v4987_v41 = vmax.f32 %v4978_v49, 0.0  ;;  %v4717_v16 = vmul.f32 %v4708_v10, %v4699_v3  ;;  %v14608_v49 = vld [vmem:[#allocation186_spill] sm:$0xff] }
 0xa56   : > { %v7679_v26 = vpop.f32.mrf.mxu0  ;;  %v4996_v23 = vmul.f32 %v4915_v21, %v12741_v62  ;;  %v4997_v33 = vmul.f32 %v12757_v1, %v4844_v8  ;;  %v5275_v20 = vsub.f32 1.0, %v5266_v58  ;;  %v5356_v3 = vmax.f32 %v5347_v42, 0.0  ;;  %v14609_v58 = vld [vmem:[#allocation110_spill] sm:$0xff] }
 0xa57   : > { %5190 = vst.msk [vmem:[#allocation2 + $0x8] sm:$0xff] %vm329_vm1, %v5181_v18  ;;  %v5571_v26 = vand.u32 2147483647, %v5562_v13  ;;  %v6219_v18 = vand.u32 2147483647, %v6210_v9  ;;  %v4718_v22 = vmul.f32 %v4709_v46, %v4700_v44  ;;  %v5065_v13 = vld [vmem:[#allocation2 + $0x18] sm:$0xff]  ;;  %v5635_v9 = vsub.f32 %v12811_v60, %v14608_v49 }
 0xa58   : > { %v12801_v36 = vpop.permute.xlu1 %6195  ;;  %v5150_v59 = vpop.f32.mrf.mxu0  ;;  %v5005_v5 = vmul.f32 %v4996_v23, %v4987_v41  ;;  %v12817_v10 = vmax.f32 %v6158_v38, 0.0  ;;  %v5346_v8 = vsub.f32 1.0, %v5337_v54  ;;  %v5572_v62 = vand.u32 2147483647, %v5563_v2 }
 0xa59   : > { %v5182_v31 = vadd.f32 %v5150_v59, %v5064_v55  ;;  %v5580_v48 = vsub.f32 1.0, %v5571_v26  ;;  %v4483_v55 = vadd.f32 %v4474_v51, %v12736_v19  ;;  %v4763_v44 = vmul.f32 %v12696_v28, %v4718_v22  ;;  %v14610_v28 = vld [vmem:[#allocation161_spill] sm:$0xff]  ;;  %v14613_v22 = vld [vmem:[#allocation163_spill] sm:$0xff] }
 0xa5a   : > { %v7682_v14 = vpop.f32.mrf.mxu0  ;;  %v6228_v21 = vsub.f32 1.0, %v6219_v18  ;;  %v4484_v1 = vadd.f32 %v4475_v57, %v12781_v56  ;;  %v4762_v26 = vmul.f32 %v14609_v58, %v4717_v16  ;;  %v5006_v42 = vmul.f32 %v4997_v33, %v12743_v4  ;;  %v14611_v56 = vld [vmem:[#allocation182_spill] sm:$0xff]  ;;  %v14612_v57 = vld [vmem:[#allocation47_spill] sm:$0xff] }
 0xa5b   : > { %5191 = vst.msk [vmem:[#allocation2 + $0x10] sm:$0xff] %vm329_vm1, %v5182_v31  ;;  %v5284_v46 = vmax.f32 %v5275_v20, 0.0  ;;  %v5589_v19 = vmax.f32 %v5580_v48, 0.0  ;;  %v5644_v51 = vand.u32 2147483647, %v5635_v9  ;;  %v5923_v41 = vsub.f32 %v12496_v35, %v14610_v28  ;;  %v14616_v9 = vld [vmem:[#allocation191_spill] sm:$0xff] }
 0xa5c   : > { %v5153_v11 = vpop.f32.mrf.mxu0  ;;  %v4772_v14 = vadd.f32 %v4763_v44, %v4484_v1  ;;  %v6212_v18 = vsub.f32 %v12496_v35, %v12801_v36  ;;  %v4771_v54 = vadd.f32 %v4762_v26, %v4483_v55  ;;  %v5355_v2 = vmax.f32 %v5346_v8, 0.0  ;;  %v14615_v36 = vld [vmem:[#allocation20_spill] sm:$0xff] }
 0xa5d   : > { %v5183_v39 = vadd.f32 %v5153_v11, %v5065_v13  ;;  %v5034_v27 = vpop.permute.xlu1 %5033  ;;  %v5404_v16 = vsub.f32 %v12483_v47, %v14611_v56  ;;  %v5581_v45 = vsub.f32 1.0, %v5572_v62  ;;  %v5995_v4 = vsub.f32 %v12514_v50, %v14612_v57  ;;  %v14614_v11 = vld [vmem:[#allocation38_spill] sm:$0xff] }
 0xa5e   : > { %v7683_v59 = vpop.f32.mrf.mxu0  ;;  %v5050_v31 = vmul.f32 %v5034_v27, %v5005_v5  ;;  %v5400_v13 = vsub.f32 %v12483_v47, %v14613_v22  ;;  %v5401_v23 = vsub.f32 %v12483_v47, %v14614_v11  ;;  %v12835_v48 = vmax.f32 %v6228_v21, 0.0 }
 0xa5f   : > { %5192 = vst.msk [vmem:[#allocation2 + $0x18] sm:$0xff] %vm329_vm1, %v5183_v39  ;;  %v5707_v49 = vsub.f32 %v12483_v47, %v14615_v36  ;;  %v5922_v39 = vsub.f32 %v12496_v35, %v14616_v9  ;;  %v5932_v27 = vand.u32 2147483647, %v5923_v41  ;;  %v5742_v55 = vmul.f32 %v12745_v61, %v5589_v19 }
 0xa60   : > { %v5059_v33 = vadd.f32 %v5050_v31, %v4771_v54  ;;  %v5653_v44 = vsub.f32 1.0, %v5644_v51  ;;  %v6221_v5 = vand.u32 2147483647, %v6212_v18  ;;  %v12844_v62 = vmul.f32 %v5356_v3, %v5284_v46  ;;  %v14618_v46 = vld [vmem:[#allocation165_spill] sm:$0xff] }
 0xa61   : > { %v5038_v38 = vpop.permute.xlu1 %5037  ;;  %v5445_v1 = vmul.f32 %v5355_v2, %v12785_v0  ;;  %v12847_v21 = vand.u32 2147483647, %v5404_v16  ;;  %v6004_v58 = vand.u32 2147483647, %v5995_v4  ;;  %v5590_v26 = vmax.f32 %v5581_v45, 0.0 }
 0xa62   : > { %v5051_v17 = vmul.f32 %v5038_v38, %v5006_v42  ;;  %v5409_v47 = vand.u32 2147483647, %v5400_v13  ;;  %v5410_v31 = vand.u32 2147483647, %v5401_v23  ;;  %v14617_v42 = vld [vmem:[#allocation31_spill] sm:$0xff]  ;;  %v5941_v51 = vsub.f32 1.0, %v5932_v27 }
 0xa63   : > { %v5850_v28 = vsub.f32 %v12518_v52, %v14617_v42  ;;  %v5716_v61 = vand.u32 2147483647, %v5707_v49  ;;  %v5931_v19 = vand.u32 2147483647, %v5922_v39  ;;  %v6211_v3 = vsub.f32 %v12496_v35, %v12549_v32 }
 0xa64   : > { %v5060_v20 = vadd.f32 %v5051_v17, %v4772_v14  ;;  %v5662_v0 = vmax.f32 %v5653_v44, 0.0  ;;  %v5994_v41 = vsub.f32 %v12514_v50, %v14618_v46  ;;  %v5751_v38 = vmul.f32 %v5742_v55, %v12776_v6 }
 0xa65   : > { %v6230_v14 = vsub.f32 1.0, %v6221_v5  ;;  %v6013_v18 = vsub.f32 1.0, %v6004_v58  ;;  %v6138_v54 = vsub.f32 %v12518_v52, %v12536_v7  ;;  %v6139_v17 = vsub.f32 %v12518_v52, %v12541_v40  ;;  %v12868_v5 = vld [vmem:[#allocation7] ss:$0 sm:$0xff] }
 0xa66   : > { %v5074_v59 = vpack.c.bf16 %v5060_v20, %v5059_v33  ;;  %v12842_v8 = vpop.permute.xlu1 %6065  ;;  %v6283_v35 = vsub.f32 %v12514_v50, %v12576_v53  ;;  %v5418_v2 = vsub.f32 1.0, %v5409_v47  ;;  %v5419_v56 = vsub.f32 1.0, %v5410_v31 }
 0xa67   : > { %v5859_v16 = vand.u32 2147483647, %v5850_v28  ;;  %v5725_v57 = vsub.f32 1.0, %v5716_v61  ;;  %v5940_v4 = vsub.f32 1.0, %v5931_v19  ;;  %v5950_v6 = vmax.f32 %v5941_v51, 0.0 }
 0xa68   : > { %7689 = vmatmul.mubr.msk.bf16.gmra.mxu0 %vm2435_vm7, %v5074_v59  ;;  %v6220_v22 = vand.u32 2147483647, %v6211_v3  ;;  %v6003_v13 = vand.u32 2147483647, %v5994_v41  ;;  %v6282_v7 = vsub.f32 %v12514_v50, %v12573_v15  ;;  %v6239_v11 = vmax.f32 %v6230_v14, 0.0 }
 0xa69   : > { %7692 = vmatprep.mubr.msk.bf16.mxu0 %vm8618_vm0, %v14417_v34  ;;  %v5743_v52 = vmul.f32 %v5662_v0, %v5590_v26  ;;  %v6147_v40 = vand.u32 2147483647, %v6138_v54  ;;  %v6148_v33 = vand.u32 2147483647, %v6139_v17  ;;  %v6292_v53 = vand.u32 2147483647, %v6283_v35 }
 0xa6a   : > { %v5427_v20 = vmax.f32 %v5418_v2, 0.0  ;;  %v5428_v36 = vmax.f32 %v5419_v56, 0.0  ;;  %v5868_v49 = vsub.f32 1.0, %v5859_v16  ;;  %v5734_v27 = vmax.f32 %v5725_v57, 0.0 }
 0xa6b   : > { %v6268_v32 = vpop.permute.xlu1 %6267  ;;  %v5949_v55 = vmax.f32 %v5940_v4, 0.0  ;;  %v6229_v44 = vsub.f32 1.0, %v6220_v22  ;;  %v6012_v58 = vsub.f32 1.0, %v6003_v13  ;;  %v6320_v15 = vmul.f32 %v6239_v11, %v12817_v10  ;;  %v14620_v13 = vld [vmem:[#allocation119_spill] sm:$0xff] }
 0xa6c   : > { %v6284_v45 = vsub.f32 %v12514_v50, %v6268_v32  ;;  %v6291_v50 = vand.u32 2147483647, %v6282_v7  ;;  %v6156_v47 = vsub.f32 1.0, %v6147_v40  ;;  %v6157_v31 = vsub.f32 1.0, %v6148_v33 }
 0xa6d   : > { %v6301_v42 = vsub.f32 1.0, %v6292_v53  ;;  %v6031_v28 = vmul.f32 %v5950_v6, %v12778_v63  ;;  %v6022_v61 = vmax.f32 %v6013_v18, 0.0  ;;  %v5877_v19 = vmax.f32 %v5868_v49, 0.0  ;;  %v14621_v53 = vld [vmem:[#allocation226_spill] sm:$0xff] }
 0xa6e   : > { %v6293_v23 = vand.u32 2147483647, %v6284_v45  ;;  %v5454_v0 = vmul.f32 %v5445_v1, %v5427_v20  ;;  %v5752_v46 = vmul.f32 %v5743_v52, %v5734_v27  ;;  %v6238_v41 = vmax.f32 %v6229_v44, 0.0 }
 0xa6f   : > { %v5455_v14 = vmul.f32 %v12844_v62, %v5428_v36  ;;  %v6030_v17 = vmul.f32 %v5949_v55, %v5877_v19  ;;  %v6021_v35 = vmax.f32 %v6012_v58, 0.0  ;;  %v6300_v10 = vsub.f32 1.0, %v6291_v50  ;;  %v14619_v62 = vld [vmem:[#allocation128_spill] sm:$0xff]  ;;  %v14624_v55 = vld [vmem:[#allocation242_spill] sm:$0xff]  ;;  %v14625_v58 = vld [vmem:[#allocation97_spill] sm:$0xff] }
 0xa70   : > { %v6302_v9 = vsub.f32 1.0, %v6293_v23  ;;  %v5250_v39 = vpop.permute.xlu1 %5249  ;;  %v6165_v2 = vmax.f32 %v6156_v47, 0.0  ;;  %v6166_v56 = vmax.f32 %v6157_v31, 0.0  ;;  %v6310_v16 = vmax.f32 %v6301_v42, 0.0 }
 0xa71   : > { %v5260_v59 = vsub.f32 %v12868_v5, %v5250_v39  ;;  %v6040_v63 = vmul.f32 %v6031_v28, %v6022_v61  ;;  %v5509_v18 = vmul.f32 %v12719_v25, %v5455_v14  ;;  %v5796_v45 = vmul.f32 %v12731_v30, %v5751_v38  ;;  %v14622_v30 = vld [vmem:[#allocation251_spill] sm:$0xff]  ;;  %v14627_v28 = vld [vmem:[#allocation236_spill] sm:$0xff] }
 0xa72   : > { %v6311_v26 = vmax.f32 %v6302_v9, 0.0  ;;  %v5422_v4 = vsub.f32 1.0, %v12847_v21  ;;  %v6319_v6 = vmul.f32 %v6238_v41, %v6166_v56  ;;  %v5797_v22 = vmul.f32 %v14619_v62, %v5752_v46  ;;  %v12907_v41 = vld [vmem:[#allocation7 + $0x3] ss:$0 sm:$0xff] }
 0xa73   : > { %v5269_v51 = vand.u32 2147483647, %v5260_v59  ;;  %v5508_v7 = vmul.f32 %v14620_v13, %v5454_v0  ;;  %v6039_v11 = vmul.f32 %v6030_v17, %v6021_v35  ;;  %v6309_v23 = vmax.f32 %v6300_v10, 0.0  ;;  %v12895_v59 = vld [vmem:[#allocation7 + $0x2] ss:$0 sm:$0xff] }
 0xa74   : > { %v12873_v3 = vmul.f32 %v6320_v15, %v6311_v26  ;;  %v6085_v52 = vmul.f32 %v12842_v8, %v6040_v63  ;;  %v3936_v25 = vsub.f32 %v12868_v5, %v14621_v53  ;;  %v4314_v38 = vsub.f32 %v12811_v60, %v14622_v30  ;;  %v14630_v63 = vld [vmem:[#allocation116_spill] sm:$0xff] }
 0xa75   : > { %v5322_v54 = vpop.permute.xlu1 %5321  ;;  %v5278_v57 = vsub.f32 1.0, %v5269_v51  ;;  %v6328_v20 = vmul.f32 %v6319_v6, %v6310_v16  ;;  %v6318_v21 = vmul.f32 %v12835_v48, %v6165_v2  ;;  %v5806_v36 = vadd.f32 %v5797_v22, %v5509_v18  ;;  %v14626_v48 = vld [vmem:[#allocation180_spill] sm:$0xff]  ;;  %v14628_v51 = vld [vmem:[#allocation35_spill] sm:$0xff] }
 0xa76   : > { %v5332_v32 = vsub.f32 %v12811_v60, %v5322_v54  ;;  %v5805_v49 = vadd.f32 %v5796_v45, %v5508_v7  ;;  %v14623_v27 = vsub.f32 %v12428_v29, %v14585_v43  ;;  %v4242_v44 = vsub.f32 %v12868_v5, %v14624_v55  ;;  %v12902_v29 = vld [vmem:[#allocation7 + $0x4] ss:$0 sm:$0xff]  ;;  %v12917_v16 = vld [vmem:[#allocation7 + $0x5] ss:$0 sm:$0xff]  ;;  %v14631_v45 = vld [vmem:[#allocation24_spill] sm:$0xff] }
 0xa77   : > { %v5287_v9 = vmax.f32 %v5278_v57, 0.0  ;;  %v4386_v50 = vsub.f32 %v12895_v59, %v14625_v58  ;;  %v5431_v15 = vmax.f32 %v5422_v4, 0.0  ;;  %v6094_v26 = vadd.f32 %v6085_v52, %v5806_v36  ;;  %v14629_v2 = vld [vmem:[#allocation111_spill] sm:$0xff] }
 0xa78   : > { %v5341_v1 = vand.u32 2147483647, %v5332_v32  ;;  %v4017_v8 = vand.u32 2147483647, %v14623_v27  ;;  %v6084_v31 = vmul.f32 %v14626_v48, %v6039_v11  ;;  %v6327_v42 = vmul.f32 %v6318_v21, %v6309_v23  ;;  %v14633_v48 = vld [vmem:[#allocation157_spill] sm:$0xff] }
 0xa79   : > { %v4080_v61 = vsub.f32 %v12895_v59, %v14627_v28  ;;  %v4323_v19 = vand.u32 2147483647, %v4314_v38  ;;  %v4602_v43 = vsub.f32 %v12902_v29, %v12584_v24  ;;  %v6373_v0 = vmul.f32 %v14628_v51, %v6328_v20 }
 0xa7a   : > { %v5350_v40 = vsub.f32 1.0, %v5341_v1  ;;  %v12883_v33 = vpop.permute.xlu1 %5627  ;;  %v4818_v14 = vsub.f32 %v12907_v41, %v12662_v12  ;;  %v6093_v17 = vadd.f32 %v6084_v31, %v5805_v49  ;;  %v4251_v10 = vand.u32 2147483647, %v4242_v44 }
 0xa7b   : > { %v4395_v32 = vand.u32 2147483647, %v4386_v50  ;;  %v4890_v56 = vsub.f32 %v12902_v29, %v14629_v2  ;;  %v4530_v24 = vsub.f32 %v12907_v41, %v12580_v37  ;;  %v4674_v18 = vsub.f32 %v12917_v16, %v14630_v63 }
 0xa7c   : > { %v5359_v39 = vmax.f32 %v5350_v40, 0.0  ;;  %v4962_v12 = vsub.f32 %v12917_v16, %v14631_v45  ;;  %v6382_v57 = vadd.f32 %v6373_v0, %v6094_v26  ;;  %v3945_v4 = vand.u32 2147483647, %v3936_v25 }
 0xa7d   : > { %v4332_v6 = vsub.f32 1.0, %v4323_v19  ;;  %v4089_v62 = vand.u32 2147483647, %v4080_v61  ;;  %v4611_v22 = vand.u32 2147483647, %v4602_v43  ;;  %v4026_v23 = vsub.f32 1.0, %v4017_v8 }
 0xa7e   : > { %v5449_v47 = vmul.f32 %v5359_v39, %v5287_v9  ;;  %v4827_v13 = vand.u32 2147483647, %v4818_v14  ;;  %v4260_v52 = vsub.f32 1.0, %v4251_v10  ;;  %v4404_v37 = vsub.f32 1.0, %v4395_v32  ;;  %v14632_v8 = vld [vmem:[#allocation154_spill] sm:$0xff] }
 0xa7f   : > { %v6350_v46 = vpop.permute.xlu1 %6349  ;;  %v4899_v40 = vand.u32 2147483647, %v4890_v56  ;;  %v4539_v53 = vand.u32 2147483647, %v4530_v24  ;;  %v4683_v30 = vand.u32 2147483647, %v4674_v18  ;;  %v5926_v55 = vsub.f32 %v12902_v29, %v14632_v8 }
 0xa80   : > { %v12911_v54 = vmul.f32 %v5449_v47, %v5431_v15  ;;  %v6372_v35 = vmul.f32 %v6350_v46, %v6327_v42  ;;  %v4971_v38 = vand.u32 2147483647, %v4962_v12  ;;  %v3954_v20 = vsub.f32 1.0, %v3945_v4 }
 0xa81   : > { %v4341_v21 = vmax.f32 %v4332_v6, 0.0  ;;  %v4098_v25 = vsub.f32 1.0, %v4089_v62  ;;  %v4620_v36 = vsub.f32 1.0, %v4611_v22  ;;  %v4836_v49 = vsub.f32 1.0, %v4827_v13 }
 0xa82   : > { %v6381_v1 = vadd.f32 %v6372_v35, %v6093_v17  ;;  %v4035_v9 = vmax.f32 %v4026_v23, 0.0  ;;  %v4269_v39 = vmax.f32 %v4260_v52, 0.0  ;;  %v4413_v27 = vmax.f32 %v4404_v37, 0.0  ;;  %v14635_v52 = vld [vmem:[#allocation14_spill] sm:$0xff] }
 0xa83   : > { %v4908_v58 = vsub.f32 1.0, %v4899_v40  ;;  %v4548_v50 = vsub.f32 1.0, %v4539_v53  ;;  %v4692_v15 = vsub.f32 1.0, %v4683_v30  ;;  %v4980_v26 = vsub.f32 1.0, %v4971_v38  ;;  %v5042_v53 = vpop.permute.xlu0 %5041  ;;  %v5066_v38 = vld [vmem:[#allocation2 + $0x20] sm:$0xff] }
 0xa84   : > { %v6397_v7 = vpack.c.bf16 %v6382_v57, %v6381_v1  ;;  %v4466_v11 = vpop.permute.xlu1 %4465  ;;  %v3963_v47 = vmax.f32 %v3954_v20, 0.0  ;;  %v5998_v31 = vsub.f32 %v12917_v16, %v14633_v48  ;;  %v4422_v42 = vmul.f32 %v4341_v21, %v4269_v39  ;;  %v14634_v57 = vld [vmem:[#allocation93_spill] sm:$0xff]  ;;  %v14636_v20 = vld [vmem:[#allocation120_spill] sm:$0xff] }
 0xa85   : > { %v4107_v28 = vmax.f32 %v4098_v25, 0.0  ;;  %v4629_v61 = vmax.f32 %v4620_v36, 0.0  ;;  %v4845_v19 = vmax.f32 %v4836_v49, 0.0  ;;  %v5935_v51 = vand.u32 2147483647, %v5926_v55 }
 0xa86   : > { %7715 = vmatmul.mubr.msk.bf16.gmra.mxu1 %vm2435_vm7, %v6397_v7  ;;  %v4125_v43 = vmul.f32 %v4035_v9, %v3963_v47  ;;  %v4431_v0 = vmul.f32 %v4422_v42, %v4413_v27  ;;  %v4917_v46 = vmax.f32 %v4908_v58, 0.0  ;;  %v4557_v14 = vmax.f32 %v4548_v50, 0.0  ;;  %v14637_v9 = vld [vmem:[#allocation125_spill] sm:$0xff]  ;;  %v14638_v27 = vld [vmem:[#allocation122_spill] sm:$0xff] }
 0xa87   : > { %7718 = vmatprep.mubr.msk.bf16.mxu1 %vm8618_vm0, %v14417_v34  ;;  %v4701_v17 = vmax.f32 %v4692_v15, 0.0  ;;  %v4989_v35 = vmax.f32 %v4980_v26, 0.0  ;;  %v6007_v32 = vand.u32 2147483647, %v5998_v31  ;;  %v5944_v45 = vsub.f32 1.0, %v5935_v51  ;;  %v14639_v15 = vld [vmem:[#allocation158_spill] sm:$0xff] }
 0xa88   : > { %v4134_v56 = vmul.f32 %v4125_v43, %v4107_v28  ;;  %v4998_v24 = vmul.f32 %v4917_v46, %v4845_v19  ;;  %v4476_v63 = vmul.f32 %v4466_v11, %v4431_v0  ;;  %v4710_v18 = vmul.f32 %v4629_v61, %v4557_v14  ;;  %v14640_v42 = vld [vmem:[#allocation210_spill] sm:$0xff]  ;;  %v5067_v61 = vld [vmem:[#allocation2 + $0x28] sm:$0xff] }
 0xa89   : > { %v12928_v44 = vpop.permute.xlu1 %5699  ;;  %v6016_v62 = vsub.f32 1.0, %v6007_v32  ;;  %v5636_v37 = vsub.f32 %v12811_v60, %v14635_v52  ;;  %v5953_v40 = vmax.f32 %v5944_v45, 0.0  ;;  %v5708_v21 = vsub.f32 %v12895_v59, %v14636_v20  ;;  %v14642_v45 = vld [vmem:[#allocation217_spill] sm:$0xff] }
 0xa8a   : > { %v4188_v1 = vmul.f32 %v14634_v57, %v4134_v56  ;;  %v5007_v4 = vmul.f32 %v4998_v24, %v4989_v35  ;;  %v4719_v6 = vmul.f32 %v4710_v18, %v4701_v17  ;;  %v5853_v39 = vsub.f32 %v12907_v41, %v14637_v9  ;;  %v14647_v9 = vld [vmem:[#allocation197_spill] sm:$0xff] }
 0xa8b   : > { %v5258_v8 = vsub.f32 %v12868_v5, %v14638_v27  ;;  %v6025_v55 = vmax.f32 %v6016_v62, 0.0  ;;  %v5331_v26 = vsub.f32 %v12811_v60, %v14639_v15  ;;  %v5645_v31 = vand.u32 2147483647, %v5636_v37  ;;  %v14648_v27 = vld [vmem:[#allocation52_spill] sm:$0xff]  ;;  %v14650_v15 = vld [vmem:[#allocation193_spill] sm:$0xff] }
 0xa8c   : > { %v4485_v7 = vadd.f32 %v4476_v63, %v4188_v1  ;;  %v5052_v25 = vmul.f32 %v5042_v53, %v5007_v4  ;;  %v6213_v28 = vsub.f32 %v12902_v29, %v14640_v42  ;;  %v5717_v51 = vand.u32 2147483647, %v5708_v21  ;;  %v14641_v63 = vld [vmem:[#allocation18_spill] sm:$0xff]  ;;  %v6272_v42 = vpop.permute.xlu0 %6271 }
 0xa8d   : > { %v5862_v14 = vand.u32 2147483647, %v5853_v39  ;;  %v5267_v17 = vand.u32 2147483647, %v5258_v8  ;;  %v5654_v32 = vsub.f32 1.0, %v5645_v31  ;;  %v5259_v18 = vsub.f32 %v12868_v5, %v14641_v63  ;;  %v14646_v21 = vld [vmem:[#allocation218_spill] sm:$0xff] }
 0xa8e   : > { %v5844_v10 = vpop.permute.xlu1 %5843  ;;  %v5726_v24 = vsub.f32 1.0, %v5717_v51  ;;  %v5852_v39 = vsub.f32 %v12907_v41, %v14647_v9  ;;  %v5996_v8 = vsub.f32 %v12917_v16, %v14648_v27 }
 0xa8f   : > { %v5854_v2 = vsub.f32 %v12907_v41, %v5844_v10  ;;  %v5340_v10 = vand.u32 2147483647, %v5331_v26  ;;  %v5871_v57 = vsub.f32 1.0, %v5862_v14  ;;  %v5276_v1 = vsub.f32 1.0, %v5267_v17 }
 0xa90   : > { %v5268_v52 = vand.u32 2147483647, %v5259_v18  ;;  %v5403_v26 = vsub.f32 %v12895_v59, %v14650_v15 }
 0xa91   : > { %v5863_v12 = vand.u32 2147483647, %v5854_v2  ;;  %v6222_v2 = vand.u32 2147483647, %v6213_v28  ;;  %v5349_v4 = vsub.f32 1.0, %v5340_v10 }
 0xa92   : > { %v5277_v28 = vsub.f32 1.0, %v5268_v52 }
 0xa93   : > { %v5872_v22 = vsub.f32 1.0, %v5863_v12  ;;  %v4754_v13 = vpop.permute.xlu1 %4753  ;;  %v5564_v12 = vsub.f32 %v12868_v5, %v14642_v45  ;;  %v5861_v45 = vand.u32 2147483647, %v5852_v39 }
 0xa94   : > { %v4764_v23 = vmul.f32 %v4754_v13, %v4719_v6  ;;  %v14643_v6 = vld [vmem:[#allocation45_spill] sm:$0xff]  ;;  %v6231_v13 = vsub.f32 1.0, %v6222_v2 }
 0xa95   : > { %v5881_v30 = vmax.f32 %v5872_v22, 0.0  ;;  %v5158_v11 = vpop.f32.mrf.mxu0  ;;  %v5330_v62 = vsub.f32 %v12811_v60, %v14643_v6  ;;  %v5663_v22 = vmax.f32 %v5654_v32, 0.0  ;;  %v5573_v37 = vand.u32 2147483647, %v5564_v12  ;;  %v14654_v32 = vld [vmem:[#allocation37_spill] sm:$0xff] }
 0xa96   : > { %v4773_v36 = vadd.f32 %v4764_v23, %v4485_v7  ;;  %v5184_v49 = vadd.f32 %v5158_v11, %v5066_v38  ;;  %v12965_v23 = vmax.f32 %v5726_v24, 0.0  ;;  %v5285_v38 = vmax.f32 %v5276_v1, 0.0  ;;  %v14645_v11 = vld [vmem:[#allocation166_spill] sm:$0xff]  ;;  %v14655_v24 = vld [vmem:[#allocation36_spill] sm:$0xff] }
 0xa97   : > { %v6034_v58 = vmul.f32 %v5953_v40, %v5881_v30  ;;  %v7686_v50 = vpop.f32.mrf.mxu0  ;;  %v14644_v40 = vld [vmem:[#allocation200_spill] sm:$0xff]  ;;  %v12969_v30 = vmax.f32 %v5871_v57, 0.0  ;;  %v5637_v20 = vsub.f32 %v12811_v60, %v14645_v11  ;;  %v6141_v2 = vsub.f32 %v12907_v41, %v14654_v32 }
 0xa98   : > { %v5061_v47 = vadd.f32 %v5052_v25, %v4773_v36  ;;  %5193 = vst.msk [vmem:[#allocation2 + $0x20] sm:$0xff] %vm329_vm1, %v5184_v49  ;;  %v12945_v48 = vpop.permute.xlu1 %5491  ;;  %v5924_v53 = vsub.f32 %v12902_v29, %v14644_v40  ;;  %v5402_v25 = vsub.f32 %v12895_v59, %v14646_v21  ;;  %v5358_v36 = vmax.f32 %v5349_v4, 0.0 }
 0xa99   : > { %v5161_v19 = vpop.f32.mrf.mxu0  ;;  %v12949_v43 = vmul.f32 %v6034_v58, %v6025_v55  ;;  %v5339_v49 = vand.u32 2147483647, %v5330_v62  ;;  %v12979_v55 = vmax.f32 %v6231_v13, 0.0  ;;  %v14649_v58 = vld [vmem:[#allocation212_spill] sm:$0xff]  ;;  %v5646_v14 = vand.u32 2147483647, %v5637_v20 }
 0xa9a   : > { %v5075_v0 = vpack.c.bf16 %v5061_v47, %v5061_v47  ;;  %v5185_v46 = vadd.f32 %v5161_v19, %v5067_v61  ;;  %v5565_v50 = vsub.f32 %v12868_v5, %v14649_v58  ;;  %v14651_v47 = vld [vmem:[#allocation29_spill] sm:$0xff]  ;;  %v5582_v61 = vsub.f32 1.0, %v5573_v37  ;;  %v14652_v19 = vld [vmem:[#allocation195_spill] sm:$0xff] }
 0xa9b   : > { %v7687_v35 = vpop.f32.mrf.mxu0  ;;  %v5925_v31 = vsub.f32 %v12902_v29, %v14651_v47  ;;  %v5709_v51 = vsub.f32 %v12895_v59, %v14652_v19  ;;  %v5411_v17 = vand.u32 2147483647, %v5402_v25  ;;  %v5566_v63 = vsub.f32 %v12868_v5, %v14655_v24 }
 0xa9c   : > { %5194 = vst.msk [vmem:[#allocation2 + $0x28] sm:$0xff] %vm329_vm1, %v5185_v46  ;;  %7693 = vmatmul.mubr.msk.bf16.gmra.mxu0 %vm2435_vm7, %v5075_v0  ;;  %v5933_v0 = vand.u32 2147483647, %v5924_v53  ;;  %v14653_v35 = vld [vmem:[#allocation30_spill] sm:$0xff]  ;;  %v5348_v18 = vsub.f32 1.0, %v5339_v49  ;;  %v6285_v57 = vsub.f32 %v12917_v16, %v6272_v42  ;;  %v5286_v62 = vmax.f32 %v5277_v28, 0.0 }
 0xa9d   : > { %v12953_v56 = vpop.permute.xlu1 %5781  ;;  %7734 = vmatprep.mubr.msk.f32.mxu0 %vm8618_vm0, %v14417_v34  ;;  %v5997_v10 = vsub.f32 %v12917_v16, %v14653_v35  ;;  %v6005_v12 = vand.u32 2147483647, %v5996_v8  ;;  %v5574_v1 = vand.u32 2147483647, %v5565_v50  ;;  %v5412_v4 = vand.u32 2147483647, %v5403_v26 }
 0xa9e   : > { %v5934_v6 = vand.u32 2147483647, %v5925_v31  ;;  %v5591_v13 = vmax.f32 %v5582_v61, 0.0  ;;  %v5718_v52 = vand.u32 2147483647, %v5709_v51  ;;  %v5942_v37 = vsub.f32 1.0, %v5933_v0 }
 0xa9f   : > { %v5655_v40 = vsub.f32 1.0, %v5646_v14  ;;  %v5420_v53 = vsub.f32 1.0, %v5411_v17  ;;  %v6006_v11 = vand.u32 2147483647, %v5997_v10  ;;  %v6150_v20 = vand.u32 2147483647, %v6141_v2  ;;  %v6276_v2 = vpop.permute.xlu0 %6275 }
 0xaa0   : > { %v12998_v25 = vand.u32 2147483647, %v5566_v63  ;;  %v5357_v5 = vmax.f32 %v5348_v18, 0.0  ;;  %v5870_v49 = vsub.f32 1.0, %v5861_v45  ;;  %v6014_v9 = vsub.f32 1.0, %v6005_v12 }
 0xaa1   : > { %v12963_v7 = vpop.permute.xlu1 %5785  ;;  %v6294_v39 = vand.u32 2147483647, %v6285_v57  ;;  %v5583_v27 = vsub.f32 1.0, %v5574_v1  ;;  %v5421_v8 = vsub.f32 1.0, %v5412_v4  ;;  %v5943_v58 = vsub.f32 1.0, %v5934_v6 }
 0xaa2   : > { %v5448_v50 = vmul.f32 %v5358_v36, %v5286_v62  ;;  %v5727_v15 = vsub.f32 1.0, %v5718_v52  ;;  %v5951_v26 = vmax.f32 %v5942_v37, 0.0  ;;  %v5744_v47 = vmul.f32 %v5663_v22, %v5591_v13 }
 0xaa3   : > { %v5664_v31 = vmax.f32 %v5655_v40, 0.0  ;;  %v5429_v42 = vmax.f32 %v5420_v53, 0.0  ;;  %v6015_v28 = vsub.f32 1.0, %v6006_v11  ;;  %v6159_v61 = vsub.f32 1.0, %v6150_v20  ;;  %v5497_v11 = vpop.permute.xlu0 %5496 }
 0xaa4   : > { %v5879_v19 = vmax.f32 %v5870_v49, 0.0  ;;  %v6023_v51 = vmax.f32 %v6014_v9, 0.0  ;;  %v5638_v0 = vsub.f32 %v12811_v60, %v12883_v33  ;;  %v5447_v14 = vmul.f32 %v5357_v5, %v5285_v38 }
 0xaa5   : > { %v5592_v35 = vmax.f32 %v5583_v27, 0.0  ;;  %v5430_v10 = vmax.f32 %v5421_v8, 0.0  ;;  %v5952_v32 = vmax.f32 %v5943_v58, 0.0  ;;  %v5710_v36 = vsub.f32 %v12895_v59, %v12928_v44 }
 0xaa6   : > { %v12989_v46 = vpop.permute.xlu1 %6131  ;;  %v5736_v24 = vmax.f32 %v5727_v15, 0.0  ;;  %v5753_v22 = vmul.f32 %v5744_v47, %v12965_v23  ;;  %v6032_v18 = vmul.f32 %v5951_v26, %v5879_v19  ;;  %v6024_v45 = vmax.f32 %v6015_v28, 0.0 }
 0xaa7   : > { %v6168_v12 = vmax.f32 %v6159_v61, 0.0  ;;  %v5456_v57 = vmul.f32 %v5447_v14, %v5429_v42  ;;  %v5745_v1 = vmul.f32 %v5664_v31, %v5592_v35  ;;  %v5647_v60 = vand.u32 2147483647, %v5638_v0 }
 0xaa8   : > { %v5798_v33 = vmul.f32 %v12953_v56, %v5753_v22  ;;  %v6142_v38 = vsub.f32 %v12907_v41, %v12989_v46  ;;  %v6041_v4 = vmul.f32 %v6032_v18, %v6023_v51  ;;  %v6303_v59 = vsub.f32 1.0, %v6294_v39 }
 0xaa9   : > { %v5457_v44 = vmul.f32 %v5448_v50, %v5430_v10  ;;  %v5719_v62 = vand.u32 2147483647, %v5710_v36  ;;  %v6033_v23 = vmul.f32 %v5952_v32, %v12969_v30  ;;  %v5754_v13 = vmul.f32 %v5745_v1, %v5736_v24  ;;  %v5502_v32 = vpop.permute.xlu0 %5501 }
 0xaaa   : > { %v6286_v40 = vsub.f32 %v12917_v16, %v6276_v2  ;;  %v6321_v53 = vmul.f32 %v12979_v55, %v6168_v12  ;;  %v5656_v20 = vsub.f32 1.0, %v5647_v60  ;;  %v5584_v5 = vsub.f32 1.0, %v12998_v25  ;;  %v6386_v60 = vld [vmem:[#allocation2] sm:$0xff] }
 0xaab   : > { %v6204_v21 = vpop.permute.xlu1 %6203  ;;  %v6042_v56 = vmul.f32 %v6033_v23, %v6024_v45  ;;  %v5799_v46 = vmul.f32 %v12963_v7, %v5754_v13  ;;  %v6312_v49 = vmax.f32 %v6303_v59, 0.0  ;;  %v5728_v30 = vsub.f32 1.0, %v5719_v62  ;;  %v13026_v13 = vld [vmem:[#allocation7 + $0x8] ss:$0 sm:$0xff] }
 0xaac   : > { %v6214_v63 = vsub.f32 %v12902_v29, %v6204_v21  ;;  %v5510_v29 = vmul.f32 %v12945_v48, %v5456_v57  ;;  %v6151_v21 = vand.u32 2147483647, %v6142_v38  ;;  %v5511_v9 = vmul.f32 %v5497_v11, %v5457_v44  ;;  %v6387_v44 = vld [vmem:[#allocation2 + $0x8] sm:$0xff] }
 0xaad   : > { %v6295_v58 = vand.u32 2147483647, %v6286_v40  ;;  %v6330_v55 = vmul.f32 %v6321_v53, %v6312_v49  ;;  %v5665_v50 = vmax.f32 %v5656_v20, 0.0  ;;  %v5593_v31 = vmax.f32 %v5584_v5, 0.0  ;;  %v6366_v12 = vpop.permute.xlu0 %6365 }
 0xaae   : > { %v6223_v52 = vand.u32 2147483647, %v6214_v63  ;;  %v5807_v41 = vadd.f32 %v5798_v33, %v5510_v29  ;;  %v5808_v15 = vadd.f32 %v5799_v46, %v5511_v9  ;;  %v6160_v26 = vsub.f32 1.0, %v6151_v21  ;;  %v8502_v9 = vld [vmem:[%s8802_s18 + $0x8] sm:$0xff] }
 0xaaf   : > { %v5737_v42 = vmax.f32 %v5728_v30, 0.0  ;;  %v6304_v19 = vsub.f32 1.0, %v6295_v58  ;;  %v5746_v51 = vmul.f32 %v5665_v50, %v5593_v31  ;;  %v5512_v22 = vmul.f32 %v5502_v32, %v12911_v54 }
 0xab0   : > { %v6070_v17 = vpop.permute.xlu1 %6069  ;;  %v6232_v39 = vsub.f32 1.0, %v6223_v52  ;;  %v6169_v0 = vmax.f32 %v6160_v26, 0.0  ;;  %v8504_v26 = vld [vmem:[%s8802_s18 + $0x18] sm:$0xff] }
 0xab1   : > { %v6086_v37 = vmul.f32 %v6070_v17, %v6041_v4  ;;  %v5755_v10 = vmul.f32 %v5746_v51, %v5737_v42  ;;  %v6313_v36 = vmax.f32 %v6304_v19, 0.0 }
 0xab2   : > { %v6241_v28 = vmax.f32 %v6232_v39, 0.0 }
 0xab3   : > { %v6095_v27 = vadd.f32 %v6086_v37, %v5807_v41  ;;  %v8501_v41 = vld [vmem:[%s8802_s18] sm:$0xff] }
 0xab4   : > { %v6074_v6 = vpop.permute.xlu1 %6073  ;;  %v6322_v17 = vmul.f32 %v6241_v28, %v6169_v0 }
 0xab5   : > { %v6087_v8 = vmul.f32 %v6074_v6, %v6042_v56  ;;  %v6389_v56 = vld [vmem:[#allocation2 + $0x18] sm:$0xff] }
 0xab6   : > { %v6331_v24 = vmul.f32 %v6322_v17, %v6313_v36 }
 0xab7   : > { %v6096_v25 = vadd.f32 %v6087_v8, %v5808_v15 }
 0xab8   : > { %v6376_v57 = vmul.f32 %v6366_v12, %v6331_v24 }
 0xab9   : > { %v6358_v48 = vpop.permute.xlu1 %6357 }
 0xaba   : > { %v6374_v16 = vmul.f32 %v6358_v48, %v12873_v3 }
 0xabc   : > { %v6383_v47 = vadd.f32 %v6374_v16, %v6095_v27  ;;  %v8503_v16 = vld [vmem:[%s8802_s18 + $0x10] sm:$0xff] }
 0xabd   : > { %v6362_v7 = vpop.permute.xlu1 %6361 }
 0xabe   : > { %v6375_v61 = vmul.f32 %v6362_v7, %v6330_v55  ;;  %v5068_v7 = vld [vmem:[#allocation2 + $0x30] sm:$0xff] }
 0xac0   : > { %v6384_v14 = vadd.f32 %v6375_v61, %v6096_v25  ;;  %v5069_v61 = vld [vmem:[#allocation2 + $0x38] sm:$0xff] }
 0xac2   : > { %v6398_v35 = vpack.c.bf16 %v6384_v14, %v6383_v47  ;;  %v5790_v3 = vpop.permute.xlu1 %5789  ;;  %v6390_v14 = vld [vmem:[#allocation2 + $0x20] sm:$0xff] }
 0xac3   : > { %v5800_v2 = vmul.f32 %v5790_v3, %v5755_v10  ;;  %v6391_v3 = vld [vmem:[#allocation2 + $0x28] sm:$0xff] }
 0xac4   : > { %7719 = vmatmul.mubr.msk.bf16.gmra.mxu1 %vm2435_vm7, %v6398_v35 }
 0xac5   : > { %7722 = vmatprep.mubr.msk.bf16.mxu1 %vm8618_vm0, %v14417_v34  ;;  %v5809_v18 = vadd.f32 %v5800_v2, %v5512_v22 }
 0xac7   : > { %v6078_v63 = vpop.permute.xlu1 %6077 }
 0xac8   : > { %v6088_v45 = vmul.f32 %v6078_v63, %v12949_v43  ;;  %v6388_v43 = vld [vmem:[#allocation2 + $0x10] sm:$0xff]  ;;  %v8505_v63 = vld [vmem:[%s8802_s18 + $0x20] sm:$0xff] }
 0xaca   : > { %v6097_v1 = vadd.f32 %v6088_v45, %v5809_v18 }
 0xacb   : > { %v6466_v33 = vpop.f32.mrf.mxu1 }
 0xacc   : > { %v6385_v38 = vadd.f32 %v6376_v57, %v6097_v1  ;;  %v6504_v4 = vadd.f32 %v6466_v33, %v6386_v60  ;;  %v8506_v1 = vld [vmem:[%s8802_s18 + $0x28] sm:$0xff] }
 0xacd   : > { %v7708_v6 = vpop.f32.mrf.mxu1 }
 0xace   : > { %v6399_v59 = vpack.c.bf16 %v6385_v38, %v6385_v38  ;;  %6513 = vst.msk [vmem:[#allocation2] sm:$0xff] %vm329_vm1, %v6504_v4  ;;  %v5070_v38 = vld [vmem:[#allocation2 + $0x40] sm:$0xff] }
 0xacf   : > { %v6469_v62 = vpop.f32.mrf.mxu1 }
 0xad0   : > { %v6505_v23 = vadd.f32 %v6469_v62, %v6387_v44  ;;  %7723 = vmatmul.mubr.msk.bf16.gmra.mxu1 %vm2435_vm7, %v6399_v59 }
 0xad1   : > { %v7709_v54 = vpop.f32.mrf.mxu1  ;;  %7777 = vmatprep.mubr.msk.f32.mxu1 %vm8618_vm0, %v14417_v34 }
 0xad2   : > { %6514 = vst.msk [vmem:[#allocation2 + $0x8] sm:$0xff] %vm329_vm1, %v6505_v23 }
 0xad3   : > { %v6474_v29 = vpop.f32.mrf.mxu1 }
 0xad4   : > { %v6506_v52 = vadd.f32 %v6474_v29, %v6388_v43 }
 0xad5   : > { %v7712_v37 = vpop.f32.mrf.mxu1  ;;  %v6522_v40 = vld [vmem:[#allocation2] sm:$0xff] }
 0xad6   : > { %6515 = vst.msk [vmem:[#allocation2 + $0x10] sm:$0xff] %vm329_vm1, %v6506_v52  ;;  %v6535_v53 = vadd.f32 %v13026_v13, %v6522_v40 }
 0xad7   : > { %v6477_v11 = vpop.f32.mrf.mxu1 }
 0xad8   : > { %v6507_v20 = vadd.f32 %v6477_v11, %v6389_v56  ;;  %v13031_v46 = vadd.f32 %v8501_v41, %v6535_v53 }
 0xad9   : > { %v7713_v21 = vpop.f32.mrf.mxu1  ;;  %v6523_v5 = vld [vmem:[#allocation2 + $0x8] sm:$0xff] }
 0xada   : > { %6516 = vst.msk [vmem:[#allocation2 + $0x18] sm:$0xff] %vm329_vm1, %v6507_v20  ;;  %v6553_v49 = vsel %vm329_vm1, %v13031_v46, 0.0  ;;  %v6536_v30 = vadd.f32 %v13026_v13, %v6523_v5 }
 0xadb   : > { %6554 = vadd.xlane.f32.xlu1 %v6553_v49 }
 0xadc   : > { %v13038_v48 = vadd.f32 %v8502_v9, %v6536_v30  ;;  %v8507_v9 = vld [vmem:[%s8802_s18 + $0x30] sm:$0xff] }
 0xadd   : > { %v6524_v39 = vld [vmem:[#allocation2 + $0x10] sm:$0xff] }
 0xade   : > { %v6556_v27 = vsel %vm329_vm1, %v13038_v48, 0.0  ;;  %v6537_v8 = vadd.f32 %v13026_v13, %v6524_v39 }
 0xadf   : > { %6557 = vadd.xlane.f32.xlu0 %v6556_v27 }
 0xae0   : > { %v13044_v58 = vadd.f32 %v8503_v16, %v6537_v8 }
 0xae1   : > { %v6525_v55 = vld [vmem:[#allocation2 + $0x18] sm:$0xff] }
 0xae2   : > { %v6559_v50 = vsel %vm329_vm1, %v13044_v58, 0.0  ;;  %v6538_v15 = vadd.f32 %v13026_v13, %v6525_v55 }
 0xae3   : > { %6560 = vadd.xlane.f32.xlu1 %v6559_v50 }
 0xae4   : > { %v13050_v47 = vadd.f32 %v8504_v26, %v6538_v15 }
 0xae6   : > { %v6562_v31 = vsel %vm329_vm1, %v13050_v47, 0.0 }
 0xae7   : > { %6563 = vadd.xlane.f32.xlu0 %v6562_v31 }
 0xb28   : > { %v5166_v42 = vpop.f32.mrf.mxu0 }
 0xb29   : > { %v5186_v28 = vadd.f32 %v5166_v42, %v5068_v7  ;;  %v8508_v7 = vld [vmem:[%s8802_s18 + $0x38] sm:$0xff] }
 0xb2a   : > { %v7690_v25 = vpop.f32.mrf.mxu0 }
 0xb2b   : > { %5195 = vst.msk [vmem:[#allocation2 + $0x30] sm:$0xff] %vm329_vm1, %v5186_v28 }
 0xb2c   : > { %v5169_v19 = vpop.f32.mrf.mxu0 }
 0xb2d   : > { %v5187_v51 = vadd.f32 %v5169_v19, %v5069_v61 }
 0xb2e   : > { %v7691_v0 = vpop.f32.mrf.mxu0 }
 0xb2f   : > { %5196 = vst.msk [vmem:[#allocation2 + $0x38] sm:$0xff] %vm329_vm1, %v5187_v51 }
 0xb32   : > { %v6392_v23 = vld [vmem:[#allocation2 + $0x30] sm:$0xff] }
 0xb36   : > { %v6393_v52 = vld [vmem:[#allocation2 + $0x38] sm:$0xff] }
 0xb46   : > { %v6482_v17 = vpop.f32.mrf.mxu1 }
 0xb47   : > { %v6508_v35 = vadd.f32 %v6482_v17, %v6390_v14 }
 0xb48   : > { %v7716_v10 = vpop.f32.mrf.mxu1 }
 0xb49   : > { %6517 = vst.msk [vmem:[#allocation2 + $0x20] sm:$0xff] %vm329_vm1, %v6508_v35 }
 0xb4a   : > { %v6485_v32 = vpop.f32.mrf.mxu1 }
 0xb4b   : > { %v6509_v36 = vadd.f32 %v6485_v32, %v6391_v3  ;;  %v8509_v3 = vld [vmem:[%s8802_s18 + $0x40] sm:$0xff] }
 0xb4c   : > { %v7717_v2 = vpop.f32.mrf.mxu1 }
 0xb4d   : > { %6518 = vst.msk [vmem:[#allocation2 + $0x28] sm:$0xff] %vm329_vm1, %v6509_v36 }
 0xb50   : > { %v6526_v24 = vld [vmem:[#allocation2 + $0x20] sm:$0xff] }
 0xb51   : > { %v6539_v22 = vadd.f32 %v13026_v13, %v6526_v24 }
 0xb53   : > { %v13060_v18 = vadd.f32 %v8505_v63, %v6539_v22 }
 0xb54   : > { %v6527_v45 = vld [vmem:[#allocation2 + $0x28] sm:$0xff] }
 0xb55   : > { %v6565_v12 = vsel %vm329_vm1, %v13060_v18, 0.0  ;;  %v6540_v57 = vadd.f32 %v13026_v13, %v6527_v45 }
 0xb56   : > { %6566 = vadd.xlane.f32.xlu1 %v6565_v12 }
 0xb57   : > { %v13066_v60 = vadd.f32 %v8506_v1, %v6540_v57 }
 0xb59   : > { %v6568_v33 = vsel %vm329_vm1, %v13066_v60, 0.0 }
 0xb5a   : > { %6569 = vadd.xlane.f32.xlu0 %v6568_v33 }
 0xb5c   : > { %v5174_v4 = vpop.f32.mrf.mxu0 }
 0xb5d   : > { %v5188_v6 = vadd.f32 %v5174_v4, %v5070_v38 }
 0xb5e   : > { %v7694_v59 = vpop.f32.mrf.mxu0 }
 0xb5f   : > { %5197 = vst.msk [vmem:[#allocation2 + $0x40] sm:$0xff] %vm329_vm1, %v5188_v6 }
 0xb60   : > { %v5177_v44 = vpop.f32.mrf.mxu0 }
 0xb62   : > { %v7695_v62 = vpop.f32.mrf.mxu0 }
 0xb64   : > { %v6555_v56 = vpop.xlane.xlu1 %6554 }
 0xb65   : > { %v6581_v20 = vmul.f32 0.03125, %v6555_v56  ;;  %v8512_v56 = vld [vmem:[%s13412_s1 + $0x30] sm:$0xff] }
 0xb66   : > { %v6394_v5 = vld [vmem:[#allocation2 + $0x40] sm:$0xff] }
 0xb67   : > { %v13076_v16 = vsub.f32 %v13031_v46, %v6581_v20  ;;  %v8514_v20 = vld [vmem:[%s13412_s1 + $0x18] sm:$0xff] }
 0xb68   : > { %v6558_v55 = vpop.xlane.xlu0 %6557 }
 0xb69   : > { %v6582_v28 = vmul.f32 0.03125, %v6558_v55  ;;  %v6599_v19 = vmul.f32 %v13076_v16, %v13076_v16  ;;  %v252_v55 = vld [vmem:[%s13413_s2 + $0x30] sm:$0xff] }
 0xb6b   : > { %v13089_v0 = vsub.f32 %v13038_v48, %v6582_v28  ;;  %v6608_v35 = vsel %vm329_vm1, %v6599_v19, 0.0 }
 0xb6c   : > { %v6561_v21 = vpop.xlane.xlu1 %6560 }
 0xb6d   : > { %v6583_v50 = vmul.f32 0.03125, %v6561_v21  ;;  %v6600_v24 = vmul.f32 %v13089_v0, %v13089_v0  ;;  %v8516_v21 = vld [vmem:[%s13412_s1] sm:$0xff] }
 0xb6f   : > { %v13083_v61 = vsub.f32 %v13044_v58, %v6583_v50  ;;  %v6611_v22 = vsel %vm329_vm1, %v6600_v24, 0.0  ;;  %v251_v50 = vld [vmem:[%s13413_s2 + $0x28] sm:$0xff] }
 0xb70   : > { %v6564_v51 = vpop.xlane.xlu0 %6563 }
 0xb71   : > { %v6584_v17 = vmul.f32 0.03125, %v6564_v51  ;;  %v6601_v10 = vmul.f32 %v13083_v61, %v13083_v61 }
 0xb73   : > { %v13097_v36 = vsub.f32 %v13050_v47, %v6584_v17  ;;  %v6614_v2 = vsel %vm329_vm1, %v6601_v10, 0.0 }
 0xb84   : > { %v6490_v54 = vpop.f32.mrf.mxu1 }
 0xb85   : > { %v6510_v43 = vadd.f32 %v6490_v54, %v6392_v23 }
 0xb86   : > { %v7720_v29 = vpop.f32.mrf.mxu1 }
 0xb87   : > { %6519 = vst.msk [vmem:[#allocation2 + $0x30] sm:$0xff] %vm329_vm1, %v6510_v43 }
 0xb88   : > { %v6493_v37 = vpop.f32.mrf.mxu1 }
 0xb89   : > { %v6511_v40 = vadd.f32 %v6493_v37, %v6393_v52 }
 0xb8a   : > { %v7721_v53 = vpop.f32.mrf.mxu1 }
 0xb8b   : > { %6520 = vst.msk [vmem:[#allocation2 + $0x38] sm:$0xff] %vm329_vm1, %v6511_v40  ;;  %v8510_v40 = vld [vmem:[%s13412_s1 + $0x50] sm:$0xff]  ;;  %v8511_v53 = vld [vmem:[%s13412_s1 + $0x48] sm:$0xff] }
 0xb8e   : > { %v6528_v11 = vld [vmem:[#allocation2 + $0x30] sm:$0xff] }
 0xb8f   : > { %v6541_v41 = vadd.f32 %v13026_v13, %v6528_v11  ;;  %v8513_v11 = vld [vmem:[%s13412_s1 + $0x38] sm:$0xff] }
 0xb90   : > { %v6498_v49 = vpop.f32.mrf.mxu1 }
 0xb91   : > { %v6512_v30 = vadd.f32 %v6498_v49, %v6394_v5  ;;  %v6550_v39 = vadd.f32 %v8507_v9, %v6541_v41  ;;  %v8515_v41 = vld [vmem:[%s13412_s1 + $0x20] sm:$0xff]  ;;  %v8517_v5 = vld [vmem:[%s13412_s1 + $0x8] sm:$0xff] }
 0xb92   : > { %v7724_v27 = vpop.f32.mrf.mxu1  ;;  %v6529_v8 = vld [vmem:[#allocation2 + $0x38] sm:$0xff] }
 0xb93   : > { %6521 = vst.msk [vmem:[#allocation2 + $0x40] sm:$0xff] %vm329_vm1, %v6512_v30  ;;  %v6571_v15 = vsel %vm329_vm1, %v6550_v39, 0.0  ;;  %v6542_v26 = vadd.f32 %v13026_v13, %v6529_v8  ;;  %v253_v8 = vld [vmem:[%s13413_s2 + $0x38] sm:$0xff] }
 0xb94   : > { %v6501_v31 = vpop.f32.mrf.mxu1  ;;  %6572 = vadd.xlane.f32.xlu1 %v6571_v15  ;;  %7762 = vmatpush3.msra.mxu1 %v253_v8  ;;  %v250_v15 = vld [vmem:[%s13413_s2 + $0x20] sm:$0xff] }
 0xb95   : > { %v6551_v42 = vadd.f32 %v8508_v7, %v6542_v26  ;;  %7763 = vmatprep.subr.mxu1 %v14417_v34  ;;  %v249_v26 = vld [vmem:[%s13413_s2 + $0x18] sm:$0xff] }
 0xb96   : > { %v7725_v25 = vpop.f32.mrf.mxu1  ;;  %7764 = vmatpush3.msra.mxu1 %v252_v55 }
 0xb97   : > { %v6574_v46 = vsel %vm329_vm1, %v6551_v42, 0.0  ;;  %7765 = vmatprep.subr.mxu1 %v14417_v34 }
 0xb98   : > { %6575 = vadd.xlane.f32.xlu0 %v6574_v46  ;;  %7766 = vmatpush3.msra.mxu1 %v251_v50 }
 0xb99   : > { %7767 = vmatprep.subr.mxu1 %v14417_v34 }
 0xb9a   : > { %v6530_v14 = vld [vmem:[#allocation2 + $0x40] sm:$0xff]  ;;  %7768 = vmatpush3.msra.mxu1 %v250_v15 }
 0xb9b   : > { %v6543_v58 = vadd.f32 %v13026_v13, %v6530_v14  ;;  %v6602_v13 = vmul.f32 %v13097_v36, %v13097_v36  ;;  %7769 = vmatprep.subr.mxu1 %v14417_v34 }
 0xb9c   : > { %6609 = vadd.xlane.f32.xlu0 %v6608_v35  ;;  %7770 = vmatpush3.msra.mxu1 %v249_v26 }
 0xb9d   : > { %v6552_v32 = vadd.f32 %v8509_v3, %v6543_v58  ;;  %v6617_v63 = vsel %vm329_vm1, %v6602_v13, 0.0  ;;  %7771 = vmatprep.subr.mxu1 %v14417_v34 }
 0xb9f   : > { %v6577_v48 = vsel %vm329_vm1, %v6552_v32, 0.0 }
 0xba0   : > { %6615 = vadd.xlane.f32.xlu0 %v6614_v2  ;;  %6578 = vadd.xlane.f32.xlu1 %v6577_v48 }
 0xba4   : > { %6612 = vadd.xlane.f32.xlu1 %v6611_v22 }
 0xba8   : > { %6618 = vadd.xlane.f32.xlu1 %v6617_v63 }
 0xbdf   : > { %v6567_v47 = vpop.xlane.xlu1 %6566 }
 0xbe0   : > { %v6585_v45 = vmul.f32 0.03125, %v6567_v47 }
 0xbe2   : > { %v13108_v12 = vsub.f32 %v13060_v18, %v6585_v45 }
 0xbe3   : > { %v6570_v57 = vpop.xlane.xlu0 %6569 }
 0xbe4   : > { %v6586_v1 = vmul.f32 0.03125, %v6570_v57  ;;  %v6603_v33 = vmul.f32 %v13108_v12, %v13108_v12 }
 0xbe6   : > { %v13113_v38 = vsub.f32 %v13066_v60, %v6586_v1  ;;  %v6620_v4 = vsel %vm329_vm1, %v6603_v33, 0.0 }
 0xbe7   : > { %6621 = vadd.xlane.f32.xlu0 %v6620_v4 }
 0xbe8   : > { %v6604_v6 = vmul.f32 %v13113_v38, %v13113_v38 }
 0xbea   : > { %v6623_v59 = vsel %vm329_vm1, %v6604_v6, 0.0 }
 0xbeb   : > { %6624 = vadd.xlane.f32.xlu1 %v6623_v59 }
 0xc1d   : > { %v6573_v44 = vpop.xlane.xlu1 %6572 }
 0xc1e   : > { %v6587_v18 = vmul.f32 0.03125, %v6573_v44  ;;  %v13191_v44 = vld [vmem:[#allocation7 + $0x9] ss:$0 sm:$0xff] }
 0xc20   : > { %v13119_v62 = vsub.f32 %v6550_v39, %v6587_v18 }
 0xc21   : > { %v6576_v23 = vpop.xlane.xlu0 %6575 }
 0xc22   : > { %v6588_v54 = vmul.f32 0.03125, %v6576_v23  ;;  %v6605_v43 = vmul.f32 %v13119_v62, %v13119_v62 }
 0xc24   : > { %v13123_v60 = vsub.f32 %v6551_v42, %v6588_v54  ;;  %v6626_v29 = vsel %vm329_vm1, %v6605_v43, 0.0 }
 0xc25   : > { %6627 = vadd.xlane.f32.xlu0 %v6626_v29  ;;  %v6610_v31 = vpop.xlane.xlu0 %6609 }
 0xc26   : > { %v6606_v52 = vmul.f32 %v13123_v60, %v13123_v60  ;;  %v6635_v42 = vmul.f32 0.03125, %v6610_v31 }
 0xc28   : > { %v6629_v37 = vsel %vm329_vm1, %v6606_v52, 0.0  ;;  %v6644_v25 = vadd.f32 1e-05, %v6635_v42 }
 0xc29   : > { %6630 = vadd.xlane.f32.xlu1 %v6629_v37  ;;  %v6579_v49 = vpop.xlane.xlu1 %6578  ;;  %v6616_v28 = vpop.xlane.xlu0 %6615 }
 0xc2a   : > { %v6589_v30 = vmul.f32 0.03125, %v6579_v49  ;;  %8385 = vrsqrt.f32 %v6644_v25  ;;  %v6637_v14 = vmul.f32 0.03125, %v6616_v28 }
 0xc2c   : > { %v13161_v9 = vsub.f32 %v6552_v32, %v6589_v30  ;;  %v6646_v58 = vadd.f32 1e-05, %v6637_v14 }
 0xc2d   : > { %v6613_v7 = vpop.xlane.xlu1 %6612 }
 0xc2e   : > { %v6607_v39 = vmul.f32 %v13161_v9, %v13161_v9  ;;  %v6636_v51 = vmul.f32 0.03125, %v6613_v7 }
 0xc30   : > { %v6632_v27 = vsel %vm329_vm1, %v6607_v39, 0.0  ;;  %v6645_v10 = vadd.f32 1e-05, %v6636_v51 }
 0xc31   : > { %v6619_v46 = vpop.xlane.xlu1 %6618 }
 0xc32   : > { %8387 = vrsqrt.f32 %v6645_v10  ;;  %v6638_v2 = vmul.f32 0.03125, %v6619_v46 }
 0xc33   : > { %8389 = vrsqrt.f32 %v6646_v58 }
 0xc34   : > { %v6647_v22 = vadd.f32 1e-05, %v6638_v2  ;;  %v248_v2 = vld [vmem:[%s13413_s2 + $0x10] sm:$0xff] }
 0xc35   : > { %7772 = vmatpush3.msra.mxu1 %v248_v2 }
 0xc36   : > { %8391 = vrsqrt.f32 %v6647_v22  ;;  %7773 = vmatprep.subr.mxu1 %v14417_v34 }
 0xc37   : > { %v8386_v57 = vpop.eup %8385 }
 0xc38   : > { %v6662_v6 = vmul.f32 %v8386_v57, %v13076_v16  ;;  %v7325_v16 = vld [vmem:[#allocation7 + $0xa] ss:$0 sm:$0xff] }
 0xc3a   : > { %6715 = vrot.lane.b32.xlu1 %v8510_v40, %s8666_s21  ;;  %v6675_v29 = vmul.f32 %v13191_v44, %v6662_v6 }
 0xc3b   : > { %6713 = vrot.lane.b32.xlu0 %v8511_v53, %s8666_s21 }
 0xc3e   : > { %6709 = vrot.lane.b32.xlu1 %v8512_v56, %s8666_s21 }
 0xc3f   : > { %6711 = vrot.lane.b32.xlu0 %v8513_v11, %s8666_s21  ;;  %v8388_v43 = vpop.eup %8387 }
 0xc40   : > { %v8390_v37 = vpop.eup %8389  ;;  %v6663_v56 = vmul.f32 %v8388_v43, %v13089_v0 }
 0xc42   : > { %v6676_v49 = vmul.f32 %v13191_v44, %v6663_v56 }
 0xc43   : > { %6705 = vrot.lane.b32.xlu0 %v8514_v20, %s8666_s21  ;;  %v13197_v20 = vadd.f32 %v7325_v16, %v6675_v29  ;;  %v8392_v30 = vpop.eup %8391 }
 0xc44   : > { %v13206_v0 = vadd.f32 %v7325_v16, %v6676_v49 }
 0xc47   : > { %6707 = vrot.lane.b32.xlu0 %v8515_v41, %s8666_s21  ;;  %v6664_v41 = vmul.f32 %v8390_v37, %v13083_v61  ;;  %v6665_v61 = vmul.f32 %v8392_v30, %v13097_v36 }
 0xc49   : > { %v6677_v39 = vmul.f32 %v13191_v44, %v6664_v41  ;;  %v6678_v55 = vmul.f32 %v13191_v44, %v6665_v61 }
 0xc4b   : > { %6701 = vrot.lane.b32.xlu0 %v8516_v21, %s8666_s21  ;;  %v13214_v8 = vadd.f32 %v7325_v16, %v6677_v39  ;;  %v13222_v36 = vadd.f32 %v7325_v16, %v6678_v55 }
 0xc4f   : > { %6703 = vrot.lane.b32.xlu0 %v8517_v5, %s8666_s21 }
 0xc62   : > { %6633 = vadd.xlane.f32.xlu1 %v6632_v27 }
 0xc70   : > { %v6622_v19 = vpop.xlane.xlu0 %6621 }
 0xc71   : > { %v6639_v13 = vmul.f32 0.03125, %v6622_v19 }
 0xc73   : > { %v6648_v1 = vadd.f32 1e-05, %v6639_v13 }
 0xc74   : > { %v6625_v17 = vpop.xlane.xlu1 %6624 }
 0xc75   : > { %v6640_v33 = vmul.f32 0.03125, %v6625_v17  ;;  %8393 = vrsqrt.f32 %v6648_v1 }
 0xc77   : > { %v6649_v18 = vadd.f32 1e-05, %v6640_v33 }
 0xc79   : > { %8395 = vrsqrt.f32 %v6649_v18 }
 0xc82   : > { %v8394_v27 = vpop.eup %8393 }
 0xc83   : > { %v6666_v50 = vmul.f32 %v8394_v27, %v13108_v12 }
 0xc85   : > { %v6679_v26 = vmul.f32 %v13191_v44, %v6666_v50 }
 0xc86   : > { %v8396_v15 = vpop.eup %8395 }
 0xc87   : > { %v6667_v31 = vmul.f32 %v8396_v15, %v13113_v38  ;;  %v13230_v12 = vadd.f32 %v7325_v16, %v6679_v26 }
 0xc89   : > { %v6680_v42 = vmul.f32 %v13191_v44, %v6667_v31  ;;  %v7336_v31 = vld [vmem:[#allocation7 + $0xc] ss:$0 sm:$0xff] }
 0xc8b   : > { %v13238_v38 = vadd.f32 %v7325_v16, %v6680_v42 }
 0xcae   : > { %v6628_v35 = vpop.xlane.xlu0 %6627 }
 0xcaf   : > { %v6641_v23 = vmul.f32 0.03125, %v6628_v35 }
 0xcb1   : > { %v6650_v40 = vadd.f32 1e-05, %v6641_v23 }
 0xcb2   : > { %v6714_v3 = vpop.permute.xlu0 %6713  ;;  %v6631_v32 = vpop.xlane.xlu1 %6630 }
 0xcb3   : > { %v6642_v53 = vmul.f32 0.03125, %v6631_v32  ;;  %8397 = vrsqrt.f32 %v6650_v40 }
 0xcb5   : > { %v6651_v21 = vadd.f32 1e-05, %v6642_v53 }
 0xcb6   : > { %v6712_v48 = vpop.permute.xlu0 %6711  ;;  %v6716_v24 = vpop.permute.xlu1 %6715 }
 0xcb7   : > { %v6720_v63 = vsel %vm329_vm1, %v6714_v3, %v6716_v24  ;;  %8399 = vrsqrt.f32 %v6651_v21  ;;  %v7326_v24 = vld [vmem:[#allocation7 + $0xb] ss:$0 sm:$0xff] }
 0xcb8   : > { %7727 = vmatpush3.msra.mxu0 %v6720_v63 }
 0xcb9   : > { %7728 = vmatprep.subr.mxu0 %v14417_v34 }
 0xcba   : > { %v6706_v47 = vpop.permute.xlu0 %6705  ;;  %v6710_v45 = vpop.permute.xlu1 %6709 }
 0xcbb   : > { %v6719_v4 = vsel %vm329_vm1, %v6710_v45, %v6712_v48  ;;  %v247_v48 = vld [vmem:[%s13413_s2 + $0x8] sm:$0xff] }
 0xcbc   : > { %7729 = vmatpush3.msra.mxu0 %v6719_v4  ;;  %7774 = vmatpush3.msra.mxu1 %v247_v48 }
 0xcbd   : > { %7730 = vmatprep.subr.mxu0 %v14417_v34  ;;  %7775 = vmatprep.subr.mxu1 %v14417_v34 }
 0xcbe   : > { %v6708_v59 = vpop.permute.xlu0 %6707 }
 0xcbf   : > { %v6718_v54 = vsel %vm329_vm1, %v6706_v47, %v6708_v59 }
 0xcc0   : > { %7731 = vmatpush3.msra.mxu0 %v6718_v54  ;;  %v8398_v7 = vpop.eup %8397 }
 0xcc1   : > { %7732 = vmatprep.subr.mxu0 %v14417_v34  ;;  %v6668_v28 = vmul.f32 %v8398_v7, %v13119_v62 }
 0xcc2   : > { %v6702_v52 = vpop.permute.xlu0 %6701 }
 0xcc3   : > { %v6681_v46 = vmul.f32 %v13191_v44, %v6668_v28 }
 0xcc4   : > { %v8400_v25 = vpop.eup %8399 }
 0xcc5   : > { %v6669_v19 = vmul.f32 %v8400_v25, %v13123_v60  ;;  %v13246_v62 = vadd.f32 %v7325_v16, %v6681_v46 }
 0xcc6   : > { %v6704_v11 = vpop.permute.xlu0 %6703 }
 0xcc7   : > { %v6717_v5 = vsel %vm329_vm1, %v6702_v52, %v6704_v11  ;;  %v6682_v51 = vmul.f32 %v13191_v44, %v6669_v19 }
 0xcc8   : > { %7733 = vmatpush3.msra.mxu0 %v6717_v5 }
 0xcc9   : > { %7735 = vmatmul.mubr.msk.f32.vlgmr.msra.gmra.mxu0 %vm329_vm1, %v13197_v20  ;;  %v13253_v14 = vadd.f32 %v7325_v16, %v6682_v51 }
 0xcca   : > { %7737 = vmatprep.mubr.msk.f32.mxu0 %vm8618_vm0, %v14417_v34 }
 0xccd   : > { %7738 = vmatmul.mubr.msk.f32.gmra.mxu0 %vm329_vm1, %v13206_v0 }
 0xcce   : > { %7740 = vmatprep.mubr.msk.f32.mxu0 %vm8618_vm0, %v14417_v34 }
 0xcd1   : > { %7741 = vmatmul.mubr.msk.f32.gmra.mxu0 %vm329_vm1, %v13214_v8 }
 0xcd2   : > { %7743 = vmatprep.mubr.msk.f32.mxu0 %vm8618_vm0, %v14417_v34 }
 0xcd5   : > { %7744 = vmatmul.mubr.msk.f32.gmra.mxu0 %vm329_vm1, %v13222_v36 }
 0xcd6   : > { %7746 = vmatprep.mubr.msk.f32.mxu0 %vm8618_vm0, %v14417_v34 }
 0xcd9   : > { %7747 = vmatmul.mubr.msk.f32.gmra.mxu0 %vm329_vm1, %v13230_v12 }
 0xcda   : > { %7749 = vmatprep.mubr.msk.f32.mxu0 %vm8618_vm0, %v14417_v34 }
 0xcdd   : > { %7750 = vmatmul.mubr.msk.f32.gmra.mxu0 %vm329_vm1, %v13238_v38 }
 0xcde   : > { %7752 = vmatprep.mubr.msk.f32.mxu0 %vm8618_vm0, %v14417_v34 }
 0xce1   : > { %7753 = vmatmul.mubr.msk.f32.gmra.mxu0 %vm329_vm1, %v13246_v62 }
 0xce2   : > { %7755 = vmatprep.mubr.msk.f32.mxu0 %vm8618_vm0, %v14417_v34 }
 0xce5   : > { %7756 = vmatmul.mubr.msk.f32.gmra.mxu0 %vm329_vm1, %v13253_v14 }
 0xce6   : > { %7758 = vmatprep.mubr.msk.f32.mxu0 %vm8618_vm0, %v14417_v34 }
 0xceb   : > { %v6634_v60 = vpop.xlane.xlu1 %6633 }
 0xcec   : > { %v6643_v17 = vmul.f32 0.03125, %v6634_v60 }
 0xcee   : > { %v6652_v35 = vadd.f32 1e-05, %v6643_v17 }
 0xcf0   : > { %8401 = vrsqrt.f32 %v6652_v35 }
 0xcfd   : > { %v8402_v10 = vpop.eup %8401 }
 0xcfe   : > { %v6670_v58 = vmul.f32 %v8402_v10, %v13161_v9  ;;  %v246_v9 = vld [vmem:[%s13413_s2] sm:$0xff] }
 0xcff   : > { %7776 = vmatpush3.msra.mxu1 %v246_v9 }
 0xd00   : > { %v6683_v3 = vmul.f32 %v13191_v44, %v6670_v58 }
 0xd02   : > { %v13261_v32 = vadd.f32 %v7325_v16, %v6683_v3 }
 0xd04   : > { %7759 = vmatmul.mubr.msk.f32.gmra.mxu0 %vm329_vm1, %v13261_v32 }
 0xd89   : > { %v6818_v22 = vpop.f32.mrf.mxu0 }
 0xd8a   : > { %v6819_v13 = vadd.f32 %v7326_v24, %v6818_v22 }
 0xd8b   : > { %v7736_v63 = vpop.f32.mrf.mxu0 }
 0xd8c   : > { %v6862_v47 = vmax.f32 %v6819_v13, 0.0 }
 0xd8d   : > { %v6823_v45 = vpop.f32.mrf.mxu0 }
 0xd8e   : > { %v6824_v57 = vadd.f32 %v7326_v24, %v6823_v45  ;;  %7778 = vmatmul.mubr.msk.f32.vlgmr.msra.gmra.mxu1 %vm6875_vm8, %v6862_v47 }
 0xd8f   : > { %v7739_v1 = vpop.f32.mrf.mxu0  ;;  %7780 = vmatprep.mubr.msk.f32.mxu1 %vm8618_vm0, %v14417_v34 }
 0xd90   : > { %v6863_v33 = vmax.f32 %v6824_v57, 0.0 }
 0xd91   : > { %v6828_v4 = vpop.f32.mrf.mxu0 }
 0xd92   : > { %v6829_v6 = vadd.f32 %v7326_v24, %v6828_v4  ;;  %7781 = vmatmul.mubr.msk.f32.gmra.mxu1 %vm6875_vm8, %v6863_v33 }
 0xd93   : > { %v7742_v59 = vpop.f32.mrf.mxu0  ;;  %7783 = vmatprep.mubr.msk.f32.mxu1 %vm8618_vm0, %v14417_v34 }
 0xd94   : > { %v6864_v44 = vmax.f32 %v6829_v6, 0.0 }
 0xd95   : > { %v6833_v18 = vpop.f32.mrf.mxu0 }
 0xd96   : > { %v6834_v23 = vadd.f32 %v7326_v24, %v6833_v18  ;;  %7784 = vmatmul.mubr.msk.f32.gmra.mxu1 %vm6875_vm8, %v6864_v44 }
 0xd97   : > { %v7745_v54 = vpop.f32.mrf.mxu0  ;;  %7786 = vmatprep.mubr.msk.f32.mxu1 %vm8618_vm0, %v14417_v34 }
 0xd98   : > { %v6865_v43 = vmax.f32 %v6834_v23, 0.0 }
 0xd99   : > { %v6838_v29 = vpop.f32.mrf.mxu0 }
 0xd9a   : > { %v6839_v52 = vadd.f32 %v7326_v24, %v6838_v29  ;;  %7787 = vmatmul.mubr.msk.f32.gmra.mxu1 %vm6875_vm8, %v6865_v43 }
 0xd9b   : > { %v7748_v37 = vpop.f32.mrf.mxu0  ;;  %7789 = vmatprep.mubr.msk.f32.mxu1 %vm8618_vm0, %v14417_v34 }
 0xd9c   : > { %v6866_v40 = vmax.f32 %v6839_v52, 0.0 }
 0xd9d   : > { %v6843_v53 = vpop.f32.mrf.mxu0 }
 0xd9e   : > { %v6844_v16 = vadd.f32 %v7326_v24, %v6843_v53  ;;  %7790 = vmatmul.mubr.msk.f32.gmra.mxu1 %vm6875_vm8, %v6866_v40 }
 0xd9f   : > { %v7751_v56 = vpop.f32.mrf.mxu0  ;;  %7792 = vmatprep.mubr.msk.f32.mxu1 %vm8618_vm0, %v14417_v34 }
 0xda0   : > { %v6867_v11 = vmax.f32 %v6844_v16, 0.0 }
 0xda1   : > { %v6848_v41 = vpop.f32.mrf.mxu0 }
 0xda2   : > { %v6849_v21 = vadd.f32 %v7326_v24, %v6848_v41  ;;  %7793 = vmatmul.mubr.msk.f32.gmra.mxu1 %vm6875_vm8, %v6867_v11 }
 0xda3   : > { %v7754_v5 = vpop.f32.mrf.mxu0  ;;  %7795 = vmatprep.mubr.msk.f32.mxu1 %vm8618_vm0, %v14417_v34 }
 0xda4   : > { %v6868_v49 = vmax.f32 %v6849_v21, 0.0 }
 0xda5   : > { %v6853_v30 = vpop.f32.mrf.mxu0 }
 0xda6   : > { %v6854_v39 = vadd.f32 %v7326_v24, %v6853_v30  ;;  %7796 = vmatmul.mubr.msk.f32.gmra.mxu1 %vm6875_vm8, %v6868_v49 }
 0xda7   : > { %v7757_v61 = vpop.f32.mrf.mxu0  ;;  %7798 = vmatprep.mubr.msk.f32.mxu1 %vm8618_vm0, %v14417_v34 }
 0xda8   : > { %v6869_v27 = vmax.f32 %v6854_v39, 0.0 }
 0xdaa   : > { %7799 = vmatmul.mubr.msk.f32.gmra.mxu1 %vm6875_vm8, %v6869_v27 }
 0xdab   : > { %7801 = vmatprep.mubr.msk.f32.mxu1 %vm8618_vm0, %v14417_v34 }
 0xdc4   : > { %v6858_v55 = vpop.f32.mrf.mxu0 }
 0xdc5   : > { %v6859_v50 = vadd.f32 %v7326_v24, %v6858_v55 }
 0xdc6   : > { %v7760_v15 = vpop.f32.mrf.mxu0 }
 0xdc7   : > { %v6870_v26 = vmax.f32 %v6859_v50, 0.0 }
 0xdc9   : > { %7802 = vmatmul.mubr.msk.f32.gmra.mxu1 %vm6875_vm8, %v6870_v26 }
 0xe4e   : > { %v6969_v7 = vpop.f32.mrf.mxu1 }
 0xe4f   : > { %v6970_v42 = vadd.f32 %v7336_v31, %v6969_v7 }
 0xe50   : > { %v7779_v28 = vpop.f32.mrf.mxu1 }
 0xe51   : > { %v7013_v25 = vadd.f32 %v6970_v42, %v13197_v20 }
 0xe52   : > { %v6974_v46 = vpop.f32.mrf.mxu1 }
 0xe53   : > { %v6975_v19 = vadd.f32 %v7336_v31, %v6974_v46  ;;  %v7022_v51 = vsel %vm329_vm1, %v7013_v25, 0.0 }
 0xe54   : > { %7023 = vadd.xlane.f32.xlu0 %v7022_v51  ;;  %v7782_v60 = vpop.f32.mrf.mxu1 }
 0xe55   : > { %v7014_v34 = vadd.f32 %v6975_v19, %v13206_v0 }
 0xe56   : > { %v6979_v17 = vpop.f32.mrf.mxu1 }
 0xe57   : > { %v6980_v35 = vadd.f32 %v7336_v31, %v6979_v17  ;;  %v7025_v10 = vsel %vm329_vm1, %v7014_v34, 0.0 }
 0xe58   : > { %7026 = vadd.xlane.f32.xlu1 %v7025_v10  ;;  %v7785_v58 = vpop.f32.mrf.mxu1 }
 0xe59   : > { %v7015_v3 = vadd.f32 %v6980_v35, %v13214_v8 }
 0xe5a   : > { %v6984_v2 = vpop.f32.mrf.mxu1 }
 0xe5b   : > { %v6985_v48 = vadd.f32 %v7336_v31, %v6984_v2  ;;  %v7028_v20 = vsel %vm329_vm1, %v7015_v3, 0.0 }
 0xe5c   : > { %7029 = vadd.xlane.f32.xlu1 %v7028_v20  ;;  %v7788_v9 = vpop.f32.mrf.mxu1 }
 0xe5d   : > { %v7016_v24 = vadd.f32 %v6985_v48, %v13222_v36 }
 0xe5e   : > { %v6989_v22 = vpop.f32.mrf.mxu1 }
 0xe5f   : > { %v6990_v13 = vadd.f32 %v7336_v31, %v6989_v22  ;;  %v7031_v0 = vsel %vm329_vm1, %v7016_v24, 0.0 }
 0xe60   : > { %7032 = vadd.xlane.f32.xlu1 %v7031_v0  ;;  %v7791_v63 = vpop.f32.mrf.mxu1 }
 0xe61   : > { %v7017_v47 = vadd.f32 %v6990_v13, %v13230_v12 }
 0xe62   : > { %v6994_v45 = vpop.f32.mrf.mxu1 }
 0xe63   : > { %v6995_v57 = vadd.f32 %v7336_v31, %v6994_v45  ;;  %v7034_v8 = vsel %vm329_vm1, %v7017_v47, 0.0 }
 0xe64   : > { %7035 = vadd.xlane.f32.xlu1 %v7034_v8  ;;  %v7794_v1 = vpop.f32.mrf.mxu1 }
 0xe65   : > { %v7018_v33 = vadd.f32 %v6995_v57, %v13238_v38 }
 0xe66   : > { %v6999_v4 = vpop.f32.mrf.mxu1 }
 0xe67   : > { %v7000_v6 = vadd.f32 %v7336_v31, %v6999_v4  ;;  %v7037_v36 = vsel %vm329_vm1, %v7018_v33, 0.0 }
 0xe68   : > { %7038 = vadd.xlane.f32.xlu0 %v7037_v36  ;;  %v7797_v59 = vpop.f32.mrf.mxu1 }
 0xe69   : > { %v7019_v44 = vadd.f32 %v7000_v6, %v13246_v62 }
 0xe6a   : > { %v7004_v18 = vpop.f32.mrf.mxu1 }
 0xe6b   : > { %v7005_v23 = vadd.f32 %v7336_v31, %v7004_v18  ;;  %v7040_v12 = vsel %vm329_vm1, %v7019_v44, 0.0 }
 0xe6c   : > { %7041 = vadd.xlane.f32.xlu1 %v7040_v12  ;;  %v7800_v54 = vpop.f32.mrf.mxu1 }
 0xe6d   : > { %v7020_v43 = vadd.f32 %v7005_v23, %v13253_v14 }
 0xe6f   : > { %v7043_v29 = vsel %vm329_vm1, %v7020_v43, 0.0 }
 0xe70   : > { %7044 = vadd.xlane.f32.xlu0 %v7043_v29 }
 0xe89   : > { %v7009_v38 = vpop.f32.mrf.mxu1 }
 0xe8a   : > { %v7010_v52 = vadd.f32 %v7336_v31, %v7009_v38 }
 0xe8b   : > { %v7803_v37 = vpop.f32.mrf.mxu1 }
 0xe8c   : > { %v7021_v40 = vadd.f32 %v7010_v52, %v13261_v32  ;;  %v7346_v52 = vld [vmem:[#allocation7 + $0xd] ss:$0 sm:$0xff] }
 0xe8e   : > { %v7046_v53 = vsel %vm329_vm1, %v7021_v40, 0.0 }
 0xe8f   : > { %7047 = vadd.xlane.f32.xlu1 %v7046_v53  ;;  %v7347_v53 = vld [vmem:[#allocation7 + $0xe] ss:$0 sm:$0xff] }
 0xedd   : > { %v7024_v62 = vpop.xlane.xlu0 %7023 }
 0xede   : > { %v7049_v16 = vmul.f32 0.03125, %v7024_v62 }
 0xee0   : > { %v13319_v56 = vsub.f32 %v7013_v25, %v7049_v16 }
 0xee1   : > { %v7027_v11 = vpop.xlane.xlu1 %7026 }
 0xee2   : > { %v7050_v41 = vmul.f32 0.03125, %v7027_v11  ;;  %v7067_v14 = vmul.f32 %v13319_v56, %v13319_v56 }
 0xee4   : > { %v13323_v21 = vsub.f32 %v7014_v34, %v7050_v41  ;;  %v7076_v5 = vsel %vm329_vm1, %v7067_v14, 0.0 }
 0xee5   : > { %v7030_v49 = vpop.xlane.xlu1 %7029  ;;  %7077 = vadd.xlane.f32.xlu0 %v7076_v5 }
 0xee6   : > { %v7051_v30 = vmul.f32 0.03125, %v7030_v49  ;;  %v7068_v32 = vmul.f32 %v13323_v21, %v13323_v21 }
 0xee8   : > { %v13328_v39 = vsub.f32 %v7015_v3, %v7051_v30  ;;  %v7079_v61 = vsel %vm329_vm1, %v7068_v32, 0.0 }
 0xee9   : > { %v7033_v27 = vpop.xlane.xlu1 %7032  ;;  %7080 = vadd.xlane.f32.xlu1 %v7079_v61 }
 0xeea   : > { %v7052_v55 = vmul.f32 0.03125, %v7033_v27  ;;  %v7069_v50 = vmul.f32 %v13328_v39, %v13328_v39 }
 0xeec   : > { %v13333_v15 = vsub.f32 %v7016_v24, %v7052_v55  ;;  %v7082_v26 = vsel %vm329_vm1, %v7069_v50, 0.0 }
 0xeed   : > { %v7036_v31 = vpop.xlane.xlu1 %7035  ;;  %7083 = vadd.xlane.f32.xlu0 %v7082_v26 }
 0xeee   : > { %v7053_v7 = vmul.f32 0.03125, %v7036_v31  ;;  %v7070_v42 = vmul.f32 %v13333_v15, %v13333_v15 }
 0xef0   : > { %v13338_v28 = vsub.f32 %v7017_v47, %v7053_v7  ;;  %v7085_v25 = vsel %vm329_vm1, %v7070_v42, 0.0 }
 0xef1   : > { %v7039_v46 = vpop.xlane.xlu0 %7038  ;;  %7086 = vadd.xlane.f32.xlu1 %v7085_v25 }
 0xef2   : > { %v7054_v19 = vmul.f32 0.03125, %v7039_v46  ;;  %v7071_v51 = vmul.f32 %v13338_v28, %v13338_v28 }
 0xef4   : > { %v13343_v60 = vsub.f32 %v7018_v33, %v7054_v19  ;;  %v7088_v34 = vsel %vm329_vm1, %v7071_v51, 0.0 }
 0xef5   : > { %v7042_v17 = vpop.xlane.xlu1 %7041  ;;  %7089 = vadd.xlane.f32.xlu0 %v7088_v34 }
 0xef6   : > { %v7055_v35 = vmul.f32 0.03125, %v7042_v17  ;;  %v7072_v10 = vmul.f32 %v13343_v60, %v13343_v60 }
 0xef8   : > { %v13348_v58 = vsub.f32 %v7019_v44, %v7055_v35  ;;  %v7091_v3 = vsel %vm329_vm1, %v7072_v10, 0.0 }
 0xef9   : > { %v7045_v2 = vpop.xlane.xlu0 %7044  ;;  %7092 = vadd.xlane.f32.xlu1 %v7091_v3 }
 0xefa   : > { %v7056_v48 = vmul.f32 0.03125, %v7045_v2  ;;  %v7073_v20 = vmul.f32 %v13348_v58, %v13348_v58 }
 0xefc   : > { %v13353_v9 = vsub.f32 %v7020_v43, %v7056_v48  ;;  %v7094_v24 = vsel %vm329_vm1, %v7073_v20, 0.0 }
 0xefd   : > { %7095 = vadd.xlane.f32.xlu0 %v7094_v24 }
 0xefe   : > { %v7074_v22 = vmul.f32 %v13353_v9, %v13353_v9 }
 0xf00   : > { %v7097_v13 = vsel %vm329_vm1, %v7074_v22, 0.0 }
 0xf01   : > { %7098 = vadd.xlane.f32.xlu1 %v7097_v13 }
 0xf18   : > { %v7048_v0 = vpop.xlane.xlu1 %7047 }
 0xf19   : > { %v7057_v63 = vmul.f32 0.03125, %v7048_v0 }
 0xf1b   : > { %v13359_v47 = vsub.f32 %v7021_v40, %v7057_v63 }
 0xf1d   : > { %v7075_v45 = vmul.f32 %v13359_v47, %v13359_v47 }
 0xf1f   : > { %v7100_v57 = vsel %vm329_vm1, %v7075_v45, 0.0 }
 0xf20   : > { %7101 = vadd.xlane.f32.xlu0 %v7100_v57 }
 0xf6e   : > { %v7078_v8 = vpop.xlane.xlu0 %7077 }
 0xf6f   : > { %v7103_v1 = vmul.f32 0.03125, %v7078_v8 }
 0xf71   : > { %v7112_v33 = vadd.f32 1e-05, %v7103_v1 }
 0xf72   : > { %v7081_v4 = vpop.xlane.xlu1 %7080 }
 0xf73   : > { %8403 = vrsqrt.f32 %v7112_v33  ;;  %v7104_v6 = vmul.f32 0.03125, %v7081_v4 }
 0xf75   : > { %v7113_v36 = vadd.f32 1e-05, %v7104_v6 }
 0xf76   : > { %v7084_v59 = vpop.xlane.xlu0 %7083 }
 0xf77   : > { %8405 = vrsqrt.f32 %v7113_v36  ;;  %v7105_v44 = vmul.f32 0.03125, %v7084_v59 }
 0xf79   : > { %v7114_v18 = vadd.f32 1e-05, %v7105_v44 }
 0xf7a   : > { %v7087_v23 = vpop.xlane.xlu1 %7086 }
 0xf7b   : > { %8407 = vrsqrt.f32 %v7114_v18  ;;  %v7106_v12 = vmul.f32 0.03125, %v7087_v23 }
 0xf7d   : > { %v7115_v54 = vadd.f32 1e-05, %v7106_v12 }
 0xf7e   : > { %v7090_v43 = vpop.xlane.xlu0 %7089 }
 0xf7f   : > { %8409 = vrsqrt.f32 %v7115_v54  ;;  %v7107_v29 = vmul.f32 0.03125, %v7090_v43 }
 0xf80   : > { %v8404_v38 = vpop.eup %8403 }
 0xf81   : > { %v7130_v37 = vmul.f32 %v8404_v38, %v13319_v56  ;;  %v7116_v40 = vadd.f32 1e-05, %v7107_v29 }
 0xf82   : > { %v7093_v62 = vpop.xlane.xlu1 %7092 }
 0xf83   : > { %v7143_v16 = vmul.f32 %v7346_v52, %v7130_v37  ;;  %8411 = vrsqrt.f32 %v7116_v40  ;;  %v7108_v11 = vmul.f32 0.03125, %v7093_v62 }
 0xf84   : > { %v8406_v41 = vpop.eup %8405 }
 0xf85   : > { %v7156_v14 = vadd.f32 %v7347_v53, %v7143_v16  ;;  %v7131_v5 = vmul.f32 %v8406_v41, %v13323_v21  ;;  %v7117_v49 = vadd.f32 1e-05, %v7108_v11 }
 0xf86   : > { %v7096_v30 = vpop.xlane.xlu0 %7095 }
 0xf87   : > { %7165 = vst.msk [vmem:[%s13370_s30] sm:$0xff] %vm329_vm1, %v7156_v14  ;;  %v7144_v56 = vmul.f32 %v7346_v52, %v7131_v5  ;;  %8413 = vrsqrt.f32 %v7117_v49  ;;  %v7109_v32 = vmul.f32 0.03125, %v7096_v30 }
 0xf88   : > { %v8408_v61 = vpop.eup %8407 }
 0xf89   : > { %v7157_v27 = vadd.f32 %v7347_v53, %v7144_v56  ;;  %v7132_v55 = vmul.f32 %v8408_v61, %v13328_v39  ;;  %v7118_v50 = vadd.f32 1e-05, %v7109_v32 }
 0xf8a   : > { %v7099_v26 = vpop.xlane.xlu1 %7098 }
 0xf8b   : > { %7166 = vst.msk [vmem:[%s13370_s30 + $0x8] sm:$0xff] %vm329_vm1, %v7157_v27  ;;  %v7145_v31 = vmul.f32 %v7346_v52, %v7132_v55  ;;  %8415 = vrsqrt.f32 %v7118_v50  ;;  %v7110_v21 = vmul.f32 0.03125, %v7099_v26 }
 0xf8c   : > { %v8410_v7 = vpop.eup %8409 }
 0xf8d   : > { %v7158_v42 = vadd.f32 %v7347_v53, %v7145_v31  ;;  %v7133_v25 = vmul.f32 %v8410_v7, %v13333_v15  ;;  %v7119_v46 = vadd.f32 1e-05, %v7110_v21 }
 0xf8f   : > { %7167 = vst.msk [vmem:[%s13370_s30 + $0x10] sm:$0xff] %vm329_vm1, %v7158_v42  ;;  %v7146_v19 = vmul.f32 %v7346_v52, %v7133_v25  ;;  %8417 = vrsqrt.f32 %v7119_v46 }
 0xf90   : > { %v8412_v39 = vpop.eup %8411 }
 0xf91   : > { %v7159_v51 = vadd.f32 %v7347_v53, %v7146_v19  ;;  %v7134_v34 = vmul.f32 %v8412_v39, %v13338_v28 }
 0xf93   : > { %7168 = vst.msk [vmem:[%s13370_s30 + $0x18] sm:$0xff] %vm329_vm1, %v7159_v51  ;;  %v7147_v17 = vmul.f32 %v7346_v52, %v7134_v34 }
 0xf94   : > { %v8414_v35 = vpop.eup %8413 }
 0xf95   : > { %v7160_v10 = vadd.f32 %v7347_v53, %v7147_v17  ;;  %v7135_v3 = vmul.f32 %v8414_v35, %v13343_v60 }
 0xf97   : > { %7169 = vst.msk [vmem:[%s13370_s30 + $0x20] sm:$0xff] %vm329_vm1, %v7160_v10  ;;  %v7148_v15 = vmul.f32 %v7346_v52, %v7135_v3 }
 0xf98   : > { %v8416_v2 = vpop.eup %8415 }
 0xf99   : > { %v7161_v48 = vadd.f32 %v7347_v53, %v7148_v15  ;;  %v7136_v20 = vmul.f32 %v8416_v2, %v13348_v58 }
 0xf9b   : > { %7170 = vst.msk [vmem:[%s13370_s30 + $0x28] sm:$0xff] %vm329_vm1, %v7161_v48  ;;  %v7149_v24 = vmul.f32 %v7346_v52, %v7136_v20 }
 0xf9c   : > { %v8418_v28 = vpop.eup %8417 }
 0xf9d   : > { %v7162_v22 = vadd.f32 %v7347_v53, %v7149_v24  ;;  %v7137_v13 = vmul.f32 %v8418_v28, %v13353_v9 }
 0xf9f   : > { %7171 = vst.msk [vmem:[%s13370_s30 + $0x30] sm:$0xff] %vm329_vm1, %v7162_v22  ;;  %v7150_v0 = vmul.f32 %v7346_v52, %v7137_v13 }
 0xfa1   : > { %v7163_v63 = vadd.f32 %v7347_v53, %v7150_v0 }
 0xfa3   : > { %7172 = vst.msk [vmem:[%s13370_s30 + $0x38] sm:$0xff] %vm329_vm1, %v7163_v63 }
 0xfa9   : > { %v7102_v60 = vpop.xlane.xlu0 %7101 }
 0xfaa   : > { %v7111_v45 = vmul.f32 0.03125, %v7102_v60 }
 0xfac   : > { %v7120_v57 = vadd.f32 1e-05, %v7111_v45 }
 0xfae   : > { %8419 = vrsqrt.f32 %v7120_v57 }
 0xfbb   : > { %v8420_v8 = vpop.eup %8419 }
 0xfbc   : > { %v7138_v58 = vmul.f32 %v8420_v8, %v13359_v47 }
 0xfbe   : > { %v7151_v1 = vmul.f32 %v7346_v52, %v7138_v58 }
 0xfc0   : > { %v7164_v33 = vadd.f32 %v7347_v53, %v7151_v1 }
 0xfc2   : > { %7173 = vst.msk [vmem:[%s13370_s30 + $0x40] sm:$0xff] %vm329_vm1, %v7164_v33 }
 0xfc3 PF: > { %p15_p0 = scmp.ge.s32.totalorder %s8740_s25, 4   ;;  %s14656_s15 = smov %s8602_s16 }
 0xfc4   : > { %s14657_s16 = smov %s8606_s17  ;;  %s14658_s17 = smov %s8760_s7 }
 0xfc5   : > { %s14659_s18 = smov %s8740_s25  ;;  %17 = sbr.rel (!%p15_p0) target bundleno = 4 (0x4), region = 80 }
 0xfca   :  { %7195 = vsyncpa [#allocation6], 1 }
 0xfcb   :  { %7197 = vsyncpa [#allocation6 + $0x1], 1 }
 0xfcc   :  { %7198 = vsyncpa [#allocation8], 1 }

</bundles_post_ra>
